<compile_context>
chip_gen: v7x
topology: tpu7x:2x2x1
jax: 0.10.0
libtpu: 0.0.40
codegen_flags: <defaults>
</compile_context>

<pallas_src>
import jax
import jax.numpy as jnp
import numpy as np
from jax.experimental import pallas as pl
from jax.experimental.pallas import tpu as pltpu


# ----------------------------------------------------------------------------
# Model dimensions (fixed by the PyTorch module: fc1 = Linear(256*62, 128)
# forces the input length to be 500 -> 250 -> 125 -> 62).
# ----------------------------------------------------------------------------
L1, C0 = 500, 22
C1, K1, P1 = 64, 7, 3
C2, K2, P2 = 128, 5, 2
C3, K3, P3 = 256, 3, 1
LP1 = L1 // 2           # 250 pooled rows after layer 1
LP2 = LP1 // 2          # 125 pooled rows after layer 2
LP3 = LP2 // 2          # 62  pooled rows after layer 3 (floor pooling)
F_FC = C3 * LP3         # 15872
H_FC = 128
NUM_CLASSES = 4

# Pooled-row chunk sizes: bound each f32 accumulator pair to ~32 vregs.
PT1, PT2, PT3 = 125, 125, 62


# ----------------------------------------------------------------------------
# Kernel 1: conv1/2/3 (+ folded BN + ReLU + MaxPool1d(2)), one sample per
# grid step.  Emits (LP3, C3) bf16 features per sample (L-major layout).
# ----------------------------------------------------------------------------
def _conv_stack_kernel(x_ref, w1c_ref, s1_ref, t1_ref,
                       w2c_ref, s2_ref, t2_ref,
                       w3c_ref, s3_ref, t3_ref,
                       o_ref,
                       a1p_s, a2p_s):
    f32 = jnp.float32
    bf16 = jnp.bfloat16

    # Zero the halo rows of the padded inter-layer activation buffers.
    # Re-done every grid step (a handful of small stores) so iterations are
    # fully independent -> safe under megacore "parallel" sharding.
    a1p_s[0:P2, :] = jnp.zeros((P2, C1), f32)
    a1p_s[P2 + LP1:LP1 + 2 * P2, :] = jnp.zeros((P2, C1), f32)
    a2p_s[0:P3, :] = jnp.zeros((P3, C2), f32)
    a2p_s[P3 + LP2:LP2 + 2 * P3, :] = jnp.zeros((P3, C2), f32)

    def conv_bn_relu_pool(inp_ref, w_ref, s_ref, t_ref, out_ref, out_row0,
                          K, Cout, n_pool, pt):
        """'same' conv (stride 1) + folded BN + ReLU + MaxPool1d(2).

        inp_ref holds the zero-padded input, so conv output row r reads padded
        rows r .. r+K-1.  Even and odd conv rows use separate accumulators
        (stride-2 sublane loads for the LHS, cast to bf16 for the MXU), so the
        max-pool is a plain element-wise max and the pooled chunk is stored
        directly (cast to the destination dtype).
        """
        s = s_ref[...]
        t = t_ref[...]
        for c in range(n_pool // pt):          # static chunk loop (pooled rows)
            p0 = c * pt
            acc_e = jnp.zeros((pt, Cout), f32)
            acc_o = jnp.zeros((pt, Cout), f32)
            for k in range(K):                 # K shifted matmuls == 1D conv
                wk = w_ref[k]                  # (Cin, Cout), bf16
                lhs_e = inp_ref[pl.ds(2 * p0 + k, pt, stride=2), :].astype(bf16)
                lhs_o = inp_ref[pl.ds(2 * p0 + k + 1, pt, stride=2), :].astype(bf16)
                acc_e = acc_e + jnp.dot(lhs_e, wk, preferred_element_type=f32)
                acc_o = acc_o + jnp.dot(lhs_o, wk, preferred_element_type=f32)
            pooled = jnp.maximum(jnp.maximum(acc_e * s + t, 0.0),
                                 jnp.maximum(acc_o * s + t, 0.0))
            out_ref[pl.ds(out_row0 + p0, pt), :] = pooled.astype(out_ref.dtype)

    # layer 1: padded (506, 22) -> pooled (250, 64), into a1p_s halo at +P2
    conv_bn_relu_pool(x_ref, w1c_ref, s1_ref, t1_ref, a1p_s, P2,
                      K=K1, Cout=C1, n_pool=LP1, pt=PT1)
    # layer 2: (250, 64) -> pooled (125, 128), into a2p_s halo at +P3
    conv_bn_relu_pool(a1p_s, w2c_ref, s2_ref, t2_ref, a2p_s, P3,
                      K=K2, Cout=C2, n_pool=LP2, pt=PT2)
    # layer 3: (125, 128) -> pooled (62, 256) bf16, straight into the output
    # block (floor pooling drops conv row 124).
    conv_bn_relu_pool(a2p_s, w3c_ref, s3_ref, t3_ref, o_ref, 0,
                      K=K3, Cout=C3, n_pool=LP3, pt=PT3)


# ----------------------------------------------------------------------------
# Kernel 2: FC head over the whole batch.  fc1 weight streams from HBM once.
# ----------------------------------------------------------------------------
def _fc_head_kernel(feat_ref, w1_ref, b1_ref, w2_ref, b2_ref, o_ref):
    f32 = jnp.float32
    h = jnp.dot(feat_ref[...], w1_ref[...],
                preferred_element_type=f32) + b1_ref[...]        # (B, 128)
    h = jnp.maximum(h, 0.0)
    o_ref[...] = jnp.dot(h, w2_ref[...],
                         preferred_element_type=f32) + b2_ref[...]


def forward_pallas(x_ncl, params):
    """x_ncl: (B, 22, 500) f32 NCL (PyTorch layout) -> (B, 4) logits."""
    B = x_ncl.shape[0]
    # NCL -> NLC, plus host-side zero padding for conv1 (fuses with transpose).
    x_nlc = jnp.transpose(x_ncl, (0, 2, 1)).astype(jnp.float32)
    x_pad = jnp.pad(x_nlc, ((0, 0), (P1, P1), (0, 0)))           # (B, 506, 22)

    w1c, s1, t1 = params["conv1"]
    w2c, s2, t2 = params["conv2"]
    w3c, s3, t3 = params["conv3"]

    feats = pl.pallas_call(
        _conv_stack_kernel,
        out_shape=jax.ShapeDtypeStruct((B, LP3, C3), jnp.bfloat16),
        grid=(B,),
        in_specs=[
            pl.BlockSpec((None, L1 + 2 * P1, C0), lambda b: (b, 0, 0)),  # x (padded)
            pl.BlockSpec((K1, C0, C1), lambda b: (0, 0, 0)),             # conv1 w (bf16)
            pl.BlockSpec((1, C1), lambda b: (0, 0)),                     # conv1 scale
            pl.BlockSpec((1, C1), lambda b: (0, 0)),                     # conv1 shift
            pl.BlockSpec((K2, C1, C2), lambda b: (0, 0, 0)),             # conv2 w
            pl.BlockSpec((1, C2), lambda b: (0, 0)),
            pl.BlockSpec((1, C2), lambda b: (0, 0)),
            pl.BlockSpec((K3, C2, C3), lambda b: (0, 0, 0)),             # conv3 w
            pl.BlockSpec((1, C3), lambda b: (0, 0)),
            pl.BlockSpec((1, C3), lambda b: (0, 0)),
        ],
        out_specs=pl.BlockSpec((None, LP3, C3), lambda b: (b, 0, 0)),
        scratch_shapes=[
            pltpu.VMEM((LP1 + 2 * P2, C1), jnp.float32),  # padded layer-1 output
            pltpu.VMEM((LP2 + 2 * P3, C2), jnp.float32),  # padded layer-2 output
        ],
        compiler_params=pltpu.CompilerParams(
            dimension_semantics=("parallel",)),
    )(x_pad, w1c, s1, t1, w2c, s2, t2, w3c, s3, t3)

    # L-major flatten (matches the pre-permuted fc1 weight rows).
    flat = feats.reshape(B, F_FC)                                # bf16

    logits = pl.pallas_call(
        _fc_head_kernel,
        out_shape=jax.ShapeDtypeStruct((B, NUM_CLASSES), jnp.float32),
        grid=(1,),
        in_specs=[
            pl.BlockSpec((B, F_FC), lambda i: (0, 0)),               # features
            pl.BlockSpec((F_FC, H_FC), lambda i: (0, 0)),            # fc1 w (bf16)
            pl.BlockSpec((1, H_FC), lambda i: (0, 0)),               # fc1 bias
            pl.BlockSpec((H_FC, NUM_CLASSES), lambda i: (0, 0)),     # fc2 w
            pl.BlockSpec((1, NUM_CLASSES), lambda i: (0, 0)),        # fc2 bias
        ],
        out_specs=pl.BlockSpec((B, NUM_CLASSES), lambda i: (0, 0)),
        compiler_params=pltpu.CompilerParams(
            dimension_semantics=("arbitrary",)),
    )(flat, params["w1p_bf16"], params["b1"], params["w2"], params["b2"])

    return logits


forward_pallas_jit = jax.jit(forward_pallas)


# ----------------------------------------------------------------------------
# Parameter construction (deterministic, eval-mode BN folded to scale/shift).
# ----------------------------------------------------------------------------
def make_params(key, num_classes=NUM_CLASSES):
    eps = 1e-5
    keys = jax.random.split(key, 7)

    def conv_layer(k, Cin, Cout, K):
        k0, k1, k2, k3, k4, k5 = jax.random.split(k, 6)
        fan_in = Cin * K
        w = jax.random.normal(k0, (Cout, Cin, K), jnp.float32) / np.sqrt(fan_in)
        b = 0.01 * jax.random.normal(k1, (Cout,), jnp.float32)
        gamma = 1.0 + 0.1 * jax.random.normal(k2, (Cout,), jnp.float32)
        beta = 0.1 * jax.random.normal(k3, (Cout,), jnp.float32)
        rmean = 0.1 * jax.random.normal(k4, (Cout,), jnp.float32)
        rvar = 1.0 + 0.1 * jax.random.uniform(k5, (Cout,), jnp.float32)
        s = gamma / jnp.sqrt(rvar + eps)              # folded BN scale
        t = (b - rmean) * s + beta                    # conv bias + BN shift
        w_kio = jnp.transpose(w, (2, 1, 0)).astype(jnp.bfloat16)  # (K, Cin, Cout)
        return w_kio, s.reshape(1, Cout), t.reshape(1, Cout)

    conv1 = conv_layer(keys[0], C0, C1, K1)
    conv2 = conv_layer(keys[1], C1, C2, K2)
    conv3 = conv_layer(keys[2], C2, C3, K3)

    # fc1 weight in PyTorch order (rows indexed by c*62 + l), f32.
    w1 = jax.random.normal(keys[3], (F_FC, H_FC), jnp.float32) / np.sqrt(F_FC)
    b1 = 0.01 * jax.random.normal(keys[4], (1, H_FC), jnp.float32)
    w2 = jax.random.normal(keys[5], (H_FC, num_classes), jnp.float32) / np.sqrt(H_FC)
    b2 = 0.01 * jax.random.normal(keys[6], (1, num_classes), jnp.float32)

    # Kernel-layout fc1 weight: rows permuted from PyTorch's channel-major
    # flatten (c*62 + l) to the kernel's L-major flatten (l*256 + c), bf16 to
    # halve the dominant HBM transfer (accumulation stays f32 on the MXU).
    w1p = w1.reshape(C3, LP3, H_FC).transpose(1, 0, 2).reshape(F_FC, H_FC)
    w1p_bf16 = w1p.astype(jnp.bfloat16)

    return dict(conv1=conv1, conv2=conv2, conv3=conv3,
                w1=w1, w1p_bf16=w1p_bf16, b1=b1, w2=w2, b2=b2)


# ----------------------------------------------------------------------------
# Pure-JAX reference (PyTorch semantics; mirrors the kernel's bf16
# quantization of conv LHS/weights, layer-3 output and fc1 inputs/weight,
# with all accumulation in f32).
# ----------------------------------------------------------------------------
def forward_ref(x_ncl, params):
    hi = jax.lax.Precision.HIGHEST
    h = jnp.transpose(x_ncl, (0, 2, 1)).astype(jnp.float32)
    for (w_kio, s, t), (K, pad) in zip(
            (params["conv1"], params["conv2"], params["conv3"]),
            ((K1, P1), (K2, P2), (K3, P3))):
        B, L, _ = h.shape
        hp = jnp.pad(h, ((0, 0), (pad, pad), (0, 0)))
        hp_q = hp.astype(jnp.bfloat16).astype(jnp.float32)   # kernel casts LHS to bf16
        w_f32 = w_kio.astype(jnp.float32)                    # weights already bf16-rounded
        acc = jnp.zeros((B, L, w_kio.shape[2]), jnp.float32)
        for k in range(K):
            acc = acc + jnp.einsum("blc,cd->bld", hp_q[:, k:k + L, :], w_f32[k],
                                   precision=hi)
        y = jnp.maximum(acc * s + t, 0.0)
        Lout = L // 2
        h = jnp.maximum(y[:, 0:2 * Lout:2, :], y[:, 1:2 * Lout:2, :])
    # Kernel stores layer-3 pooled output as bf16.
    h = h.astype(jnp.bfloat16).astype(jnp.float32)
    # PyTorch flatten of (B, C, L): channel-major.
    flat = jnp.transpose(h, (0, 2, 1)).reshape(h.shape[0], -1)
    w1_q = params["w1"].astype(jnp.bfloat16).astype(jnp.float32)
    h1 = jnp.maximum(jnp.dot(flat, w1_q, precision=hi) + params["b1"], 0.0)
    return jnp.dot(h1, params["w2"], precision=hi) + params["b2"]


if __name__ == "__main__":
    key = jax.random.PRNGKey(0)
    kx, kp = jax.random.split(key)

    # Input length must be 500 so 500 -> 250 -> 125 -> 62 matches
    # fc1 = Linear(256 * 62, 128) in the PyTorch module.  Small batch = 2.
    B = 2
    x = jax.random.normal(kx, (B, C0, L1), jnp.float32)   # NCL, like PyTorch

    params = make_params(kp, num_classes=NUM_CLASSES)

    out = jax.block_until_ready(forward_pallas_jit(x, params))
    assert out.shape == (B, NUM_CLASSES), out.shape

    ref = jax.block_until_ready(forward_ref(x, params))
    np.testing.assert_allclose(np.asarray(out), np.asarray(ref),
                               rtol=5e-3, atol=5e-3)

    print("KERNEL_OK")
</pallas_src>

<mosaic_0001>
module attributes {stable_mosaic.version = 11 : i64} {
  func.func @_conv_stack_kernel(%arg0: i32, %arg1: memref<1x506x22xf32, #tpu.memory_space<vmem>>, %arg2: memref<7x22x64xbf16, #tpu.memory_space<vmem>>, %arg3: memref<1x64xf32, #tpu.memory_space<vmem>>, %arg4: memref<1x64xf32, #tpu.memory_space<vmem>>, %arg5: memref<5x64x128xbf16, #tpu.memory_space<vmem>>, %arg6: memref<1x128xf32, #tpu.memory_space<vmem>>, %arg7: memref<1x128xf32, #tpu.memory_space<vmem>>, %arg8: memref<3x128x256xbf16, #tpu.memory_space<vmem>>, %arg9: memref<1x256xf32, #tpu.memory_space<vmem>>, %arg10: memref<1x256xf32, #tpu.memory_space<vmem>>, %arg11: memref<1x62x256xbf16, #tpu.memory_space<vmem>>, %arg12: memref<254x64xf32, #tpu.memory_space<vmem>>, %arg13: memref<127x128xf32, #tpu.memory_space<vmem>>) attributes {dimension_semantics = [#tpu.dimension_semantics<parallel>], iteration_bounds = array<i64: 2>, scalar_prefetch = 0 : i64, scratch_operands = 2 : i64, tpu.core_type = #tpu.core_type<tc>, window_params = [{transform_indices = @transform_0, window_bounds = array<i64: 1, 506, 22>}, {pipeline_mode = #tpu.pipeline_mode<synchronous>, transform_indices = @transform_1, window_bounds = array<i64: 7, 22, 64>}, {pipeline_mode = #tpu.pipeline_mode<synchronous>, transform_indices = @transform_2, window_bounds = array<i64: 1, 64>}, {pipeline_mode = #tpu.pipeline_mode<synchronous>, transform_indices = @transform_3, window_bounds = array<i64: 1, 64>}, {pipeline_mode = #tpu.pipeline_mode<synchronous>, transform_indices = @transform_4, window_bounds = array<i64: 5, 64, 128>}, {pipeline_mode = #tpu.pipeline_mode<synchronous>, transform_indices = @transform_5, window_bounds = array<i64: 1, 128>}, {pipeline_mode = #tpu.pipeline_mode<synchronous>, transform_indices = @transform_6, window_bounds = array<i64: 1, 128>}, {pipeline_mode = #tpu.pipeline_mode<synchronous>, transform_indices = @transform_7, window_bounds = array<i64: 3, 128, 256>}, {pipeline_mode = #tpu.pipeline_mode<synchronous>, transform_indices = @transform_8, window_bounds = array<i64: 1, 256>}, {pipeline_mode = #tpu.pipeline_mode<synchronous>, transform_indices = @transform_9, window_bounds = array<i64: 1, 256>}, {transform_indices = @transform_10, window_bounds = array<i64: 1, 62, 256>}]} {
    %cst = arith.constant 0.000000e+00 : f32
    %0 = vector.broadcast %cst : f32 to vector<2x64xf32>
    %c0 = arith.constant 0 : index
    %c0_0 = arith.constant 0 : index
    %1 = vector.load %arg12[%c0, %c0_0] : memref<254x64xf32, #tpu.memory_space<vmem>>, vector<2x64xf32>
    tpu.vector_store %arg12[%c0, %c0_0], %0 {strides = array<i32>} : memref<254x64xf32, #tpu.memory_space<vmem>>, vector<2x64xf32>,
    %cst_1 = arith.constant 0.000000e+00 : f32
    %2 = vector.broadcast %cst_1 : f32 to vector<2x64xf32>
    %c252 = arith.constant 252 : index
    %c0_2 = arith.constant 0 : index
    %3 = vector.load %arg12[%c252, %c0_2] : memref<254x64xf32, #tpu.memory_space<vmem>>, vector<2x64xf32>
    tpu.vector_store %arg12[%c252, %c0_2], %2 {strides = array<i32>} : memref<254x64xf32, #tpu.memory_space<vmem>>, vector<2x64xf32>,
    %cst_3 = arith.constant 0.000000e+00 : f32
    %4 = vector.broadcast %cst_3 : f32 to vector<1x128xf32>
    %c0_4 = arith.constant 0 : index
    %c0_5 = arith.constant 0 : index
    %5 = vector.load %arg13[%c0_4, %c0_5] : memref<127x128xf32, #tpu.memory_space<vmem>>, vector<1x128xf32>
    tpu.vector_store %arg13[%c0_4, %c0_5], %4 {strides = array<i32>} : memref<127x128xf32, #tpu.memory_space<vmem>>, vector<1x128xf32>,
    %cst_6 = arith.constant 0.000000e+00 : f32
    %6 = vector.broadcast %cst_6 : f32 to vector<1x128xf32>
    %c126 = arith.constant 126 : index
    %c0_7 = arith.constant 0 : index
    %7 = vector.load %arg13[%c126, %c0_7] : memref<127x128xf32, #tpu.memory_space<vmem>>, vector<1x128xf32>
    tpu.vector_store %arg13[%c126, %c0_7], %6 {strides = array<i32>} : memref<127x128xf32, #tpu.memory_space<vmem>>, vector<1x128xf32>,
    %c0_8 = arith.constant 0 : index
    %c0_9 = arith.constant 0 : index
    %8 = vector.load %arg3[%c0_8, %c0_9] : memref<1x64xf32, #tpu.memory_space<vmem>>, vector<1x64xf32>
    %c0_10 = arith.constant 0 : index
    %c0_11 = arith.constant 0 : index
    %9 = vector.load %arg4[%c0_10, %c0_11] : memref<1x64xf32, #tpu.memory_space<vmem>>, vector<1x64xf32>
    %cst_12 = arith.constant 0.000000e+00 : f32
    %10 = vector.broadcast %cst_12 : f32 to vector<125x64xf32>
    %cst_13 = arith.constant 0.000000e+00 : f32
    %11 = vector.broadcast %cst_13 : f32 to vector<125x64xf32>
    %c0_14 = arith.constant 0 : index
    %c0_15 = arith.constant 0 : index
    %c0_16 = arith.constant 0 : index
    %12 = vector.load %arg2[%c0_14, %c0_15, %c0_16] : memref<7x22x64xbf16, #tpu.memory_space<vmem>>, vector<1x22x64xbf16>
    %13 = vector.shape_cast %12 : vector<1x22x64xbf16> to vector<22x64xbf16>
    %c0_17 = arith.constant 0 : index
    %c0_18 = arith.constant 0 : index
    %c0_19 = arith.constant 0 : index
    %14 = tpu.strided_load %arg1[%c0_17, %c0_18, %c0_19] {strides = array<i32: 1, 2, 1>} : memref<1x506x22xf32, #tpu.memory_space<vmem>>, vector<1x125x22xf32>
    %15 = vector.shape_cast %14 : vector<1x125x22xf32> to vector<125x22xf32>
    %16 = arith.truncf %15 : vector<125x22xf32> to vector<125x22xbf16>
    %c0_20 = arith.constant 0 : index
    %c1 = arith.constant 1 : index
    %c0_21 = arith.constant 0 : index
    %17 = tpu.strided_load %arg1[%c0_20, %c1, %c0_21] {strides = array<i32: 1, 2, 1>} : memref<1x506x22xf32, #tpu.memory_space<vmem>>, vector<1x125x22xf32>
    %18 = vector.shape_cast %17 : vector<1x125x22xf32> to vector<125x22xf32>
    %19 = arith.truncf %18 : vector<125x22xf32> to vector<125x22xbf16>
    %cst_22 = arith.constant dense<0.000000e+00> : vector<125x64xf32>
    %20 = tpu.matmul %16, %13, %cst_22 {dimension_numbers = #tpu.dot_dimension_numbers<[1], [0], [0], [1], [0, 0, 1, 1], [], []>} : vector<125x22xbf16>, vector<22x64xbf16>, vector<125x64xf32> -> vector<125x64xf32>
    %21 = arith.addf %10, %20 : vector<125x64xf32>
    %cst_23 = arith.constant dense<0.000000e+00> : vector<125x64xf32>
    %22 = tpu.matmul %19, %13, %cst_23 {dimension_numbers = #tpu.dot_dimension_numbers<[1], [0], [0], [1], [0, 0, 1, 1], [], []>} : vector<125x22xbf16>, vector<22x64xbf16>, vector<125x64xf32> -> vector<125x64xf32>
    %23 = arith.addf %11, %22 : vector<125x64xf32>
    %c1_24 = arith.constant 1 : index
    %c0_25 = arith.constant 0 : index
    %c0_26 = arith.constant 0 : index
    %24 = vector.load %arg2[%c1_24, %c0_25, %c0_26] : memref<7x22x64xbf16, #tpu.memory_space<vmem>>, vector<1x22x64xbf16>
    %25 = vector.shape_cast %24 : vector<1x22x64xbf16> to vector<22x64xbf16>
    %c0_27 = arith.constant 0 : index
    %c1_28 = arith.constant 1 : index
    %c0_29 = arith.constant 0 : index
    %26 = tpu.strided_load %arg1[%c0_27, %c1_28, %c0_29] {strides = array<i32: 1, 2, 1>} : memref<1x506x22xf32, #tpu.memory_space<vmem>>, vector<1x125x22xf32>
    %27 = vector.shape_cast %26 : vector<1x125x22xf32> to vector<125x22xf32>
    %28 = arith.truncf %27 : vector<125x22xf32> to vector<125x22xbf16>
    %c0_30 = arith.constant 0 : index
    %c2 = arith.constant 2 : index
    %c0_31 = arith.constant 0 : index
    %29 = tpu.strided_load %arg1[%c0_30, %c2, %c0_31] {strides = array<i32: 1, 2, 1>} : memref<1x506x22xf32, #tpu.memory_space<vmem>>, vector<1x125x22xf32>
    %30 = vector.shape_cast %29 : vector<1x125x22xf32> to vector<125x22xf32>
    %31 = arith.truncf %30 : vector<125x22xf32> to vector<125x22xbf16>
    %cst_32 = arith.constant dense<0.000000e+00> : vector<125x64xf32>
    %32 = tpu.matmul %28, %25, %cst_32 {dimension_numbers = #tpu.dot_dimension_numbers<[1], [0], [0], [1], [0, 0, 1, 1], [], []>} : vector<125x22xbf16>, vector<22x64xbf16>, vector<125x64xf32> -> vector<125x64xf32>
    %33 = arith.addf %21, %32 : vector<125x64xf32>
    %cst_33 = arith.constant dense<0.000000e+00> : vector<125x64xf32>
    %34 = tpu.matmul %31, %25, %cst_33 {dimension_numbers = #tpu.dot_dimension_numbers<[1], [0], [0], [1], [0, 0, 1, 1], [], []>} : vector<125x22xbf16>, vector<22x64xbf16>, vector<125x64xf32> -> vector<125x64xf32>
    %35 = arith.addf %23, %34 : vector<125x64xf32>
    %c2_34 = arith.constant 2 : index
    %c0_35 = arith.constant 0 : index
    %c0_36 = arith.constant 0 : index
    %36 = vector.load %arg2[%c2_34, %c0_35, %c0_36] : memref<7x22x64xbf16, #tpu.memory_space<vmem>>, vector<1x22x64xbf16>
    %37 = vector.shape_cast %36 : vector<1x22x64xbf16> to vector<22x64xbf16>
    %c0_37 = arith.constant 0 : index
    %c2_38 = arith.constant 2 : index
    %c0_39 = arith.constant 0 : index
    %38 = tpu.strided_load %arg1[%c0_37, %c2_38, %c0_39] {strides = array<i32: 1, 2, 1>} : memref<1x506x22xf32, #tpu.memory_space<vmem>>, vector<1x125x22xf32>
    %39 = vector.shape_cast %38 : vector<1x125x22xf32> to vector<125x22xf32>
    %40 = arith.truncf %39 : vector<125x22xf32> to vector<125x22xbf16>
    %c0_40 = arith.constant 0 : index
    %c3 = arith.constant 3 : index
    %c0_41 = arith.constant 0 : index
    %41 = tpu.strided_load %arg1[%c0_40, %c3, %c0_41] {strides = array<i32: 1, 2, 1>} : memref<1x506x22xf32, #tpu.memory_space<vmem>>, vector<1x125x22xf32>
    %42 = vector.shape_cast %41 : vector<1x125x22xf32> to vector<125x22xf32>
    %43 = arith.truncf %42 : vector<125x22xf32> to vector<125x22xbf16>
    %cst_42 = arith.constant dense<0.000000e+00> : vector<125x64xf32>
    %44 = tpu.matmul %40, %37, %cst_42 {dimension_numbers = #tpu.dot_dimension_numbers<[1], [0], [0], [1], [0, 0, 1, 1], [], []>} : vector<125x22xbf16>, vector<22x64xbf16>, vector<125x64xf32> -> vector<125x64xf32>
    %45 = arith.addf %33, %44 : vector<125x64xf32>
    %cst_43 = arith.constant dense<0.000000e+00> : vector<125x64xf32>
    %46 = tpu.matmul %43, %37, %cst_43 {dimension_numbers = #tpu.dot_dimension_numbers<[1], [0], [0], [1], [0, 0, 1, 1], [], []>} : vector<125x22xbf16>, vector<22x64xbf16>, vector<125x64xf32> -> vector<125x64xf32>
    %47 = arith.addf %35, %46 : vector<125x64xf32>
    %c3_44 = arith.constant 3 : index
    %c0_45 = arith.constant 0 : index
    %c0_46 = arith.constant 0 : index
    %48 = vector.load %arg2[%c3_44, %c0_45, %c0_46] : memref<7x22x64xbf16, #tpu.memory_space<vmem>>, vector<1x22x64xbf16>
    %49 = vector.shape_cast %48 : vector<1x22x64xbf16> to vector<22x64xbf16>
    %c0_47 = arith.constant 0 : index
    %c3_48 = arith.constant 3 : index
    %c0_49 = arith.constant 0 : index
    %50 = tpu.strided_load %arg1[%c0_47, %c3_48, %c0_49] {strides = array<i32: 1, 2, 1>} : memref<1x506x22xf32, #tpu.memory_space<vmem>>, vector<1x125x22xf32>
    %51 = vector.shape_cast %50 : vector<1x125x22xf32> to vector<125x22xf32>
    %52 = arith.truncf %51 : vector<125x22xf32> to vector<125x22xbf16>
    %c0_50 = arith.constant 0 : index
    %c4 = arith.constant 4 : index
    %c0_51 = arith.constant 0 : index
    %53 = tpu.strided_load %arg1[%c0_50, %c4, %c0_51] {strides = array<i32: 1, 2, 1>} : memref<1x506x22xf32, #tpu.memory_space<vmem>>, vector<1x125x22xf32>
    %54 = vector.shape_cast %53 : vector<1x125x22xf32> to vector<125x22xf32>
    %55 = arith.truncf %54 : vector<125x22xf32> to vector<125x22xbf16>
    %cst_52 = arith.constant dense<0.000000e+00> : vector<125x64xf32>
    %56 = tpu.matmul %52, %49, %cst_52 {dimension_numbers = #tpu.dot_dimension_numbers<[1], [0], [0], [1], [0, 0, 1, 1], [], []>} : vector<125x22xbf16>, vector<22x64xbf16>, vector<125x64xf32> -> vector<125x64xf32>
    %57 = arith.addf %45, %56 : vector<125x64xf32>
    %cst_53 = arith.constant dense<0.000000e+00> : vector<125x64xf32>
    %58 = tpu.matmul %55, %49, %cst_53 {dimension_numbers = #tpu.dot_dimension_numbers<[1], [0], [0], [1], [0, 0, 1, 1], [], []>} : vector<125x22xbf16>, vector<22x64xbf16>, vector<125x64xf32> -> vector<125x64xf32>
    %59 = arith.addf %47, %58 : vector<125x64xf32>
    %c4_54 = arith.constant 4 : index
    %c0_55 = arith.constant 0 : index
    %c0_56 = arith.constant 0 : index
    %60 = vector.load %arg2[%c4_54, %c0_55, %c0_56] : memref<7x22x64xbf16, #tpu.memory_space<vmem>>, vector<1x22x64xbf16>
    %61 = vector.shape_cast %60 : vector<1x22x64xbf16> to vector<22x64xbf16>
    %c0_57 = arith.constant 0 : index
    %c4_58 = arith.constant 4 : index
    %c0_59 = arith.constant 0 : index
    %62 = tpu.strided_load %arg1[%c0_57, %c4_58, %c0_59] {strides = array<i32: 1, 2, 1>} : memref<1x506x22xf32, #tpu.memory_space<vmem>>, vector<1x125x22xf32>
    %63 = vector.shape_cast %62 : vector<1x125x22xf32> to vector<125x22xf32>
    %64 = arith.truncf %63 : vector<125x22xf32> to vector<125x22xbf16>
    %c0_60 = arith.constant 0 : index
    %c5 = arith.constant 5 : index
    %c0_61 = arith.constant 0 : index
    %65 = tpu.strided_load %arg1[%c0_60, %c5, %c0_61] {strides = array<i32: 1, 2, 1>} : memref<1x506x22xf32, #tpu.memory_space<vmem>>, vector<1x125x22xf32>
    %66 = vector.shape_cast %65 : vector<1x125x22xf32> to vector<125x22xf32>
    %67 = arith.truncf %66 : vector<125x22xf32> to vector<125x22xbf16>
    %cst_62 = arith.constant dense<0.000000e+00> : vector<125x64xf32>
    %68 = tpu.matmul %64, %61, %cst_62 {dimension_numbers = #tpu.dot_dimension_numbers<[1], [0], [0], [1], [0, 0, 1, 1], [], []>} : vector<125x22xbf16>, vector<22x64xbf16>, vector<125x64xf32> -> vector<125x64xf32>
    %69 = arith.addf %57, %68 : vector<125x64xf32>
    %cst_63 = arith.constant dense<0.000000e+00> : vector<125x64xf32>
    %70 = tpu.matmul %67, %61, %cst_63 {dimension_numbers = #tpu.dot_dimension_numbers<[1], [0], [0], [1], [0, 0, 1, 1], [], []>} : vector<125x22xbf16>, vector<22x64xbf16>, vector<125x64xf32> -> vector<125x64xf32>
    %71 = arith.addf %59, %70 : vector<125x64xf32>
    %c5_64 = arith.constant 5 : index
    %c0_65 = arith.constant 0 : index
    %c0_66 = arith.constant 0 : index
    %72 = vector.load %arg2[%c5_64, %c0_65, %c0_66] : memref<7x22x64xbf16, #tpu.memory_space<vmem>>, vector<1x22x64xbf16>
    %73 = vector.shape_cast %72 : vector<1x22x64xbf16> to vector<22x64xbf16>
    %c0_67 = arith.constant 0 : index
    %c5_68 = arith.constant 5 : index
    %c0_69 = arith.constant 0 : index
    %74 = tpu.strided_load %arg1[%c0_67, %c5_68, %c0_69] {strides = array<i32: 1, 2, 1>} : memref<1x506x22xf32, #tpu.memory_space<vmem>>, vector<1x125x22xf32>
    %75 = vector.shape_cast %74 : vector<1x125x22xf32> to vector<125x22xf32>
    %76 = arith.truncf %75 : vector<125x22xf32> to vector<125x22xbf16>
    %c0_70 = arith.constant 0 : index
    %c6 = arith.constant 6 : index
    %c0_71 = arith.constant 0 : index
    %77 = tpu.strided_load %arg1[%c0_70, %c6, %c0_71] {strides = array<i32: 1, 2, 1>} : memref<1x506x22xf32, #tpu.memory_space<vmem>>, vector<1x125x22xf32>
    %78 = vector.shape_cast %77 : vector<1x125x22xf32> to vector<125x22xf32>
    %79 = arith.truncf %78 : vector<125x22xf32> to vector<125x22xbf16>
    %cst_72 = arith.constant dense<0.000000e+00> : vector<125x64xf32>
    %80 = tpu.matmul %76, %73, %cst_72 {dimension_numbers = #tpu.dot_dimension_numbers<[1], [0], [0], [1], [0, 0, 1, 1], [], []>} : vector<125x22xbf16>, vector<22x64xbf16>, vector<125x64xf32> -> vector<125x64xf32>
    %81 = arith.addf %69, %80 : vector<125x64xf32>
    %cst_73 = arith.constant dense<0.000000e+00> : vector<125x64xf32>
    %82 = tpu.matmul %79, %73, %cst_73 {dimension_numbers = #tpu.dot_dimension_numbers<[1], [0], [0], [1], [0, 0, 1, 1], [], []>} : vector<125x22xbf16>, vector<22x64xbf16>, vector<125x64xf32> -> vector<125x64xf32>
    %83 = arith.addf %71, %82 : vector<125x64xf32>
    %c6_74 = arith.constant 6 : index
    %c0_75 = arith.constant 0 : index
    %c0_76 = arith.constant 0 : index
    %84 = vector.load %arg2[%c6_74, %c0_75, %c0_76] : memref<7x22x64xbf16, #tpu.memory_space<vmem>>, vector<1x22x64xbf16>
    %85 = vector.shape_cast %84 : vector<1x22x64xbf16> to vector<22x64xbf16>
    %c0_77 = arith.constant 0 : index
    %c6_78 = arith.constant 6 : index
    %c0_79 = arith.constant 0 : index
    %86 = tpu.strided_load %arg1[%c0_77, %c6_78, %c0_79] {strides = array<i32: 1, 2, 1>} : memref<1x506x22xf32, #tpu.memory_space<vmem>>, vector<1x125x22xf32>
    %87 = vector.shape_cast %86 : vector<1x125x22xf32> to vector<125x22xf32>
    %88 = arith.truncf %87 : vector<125x22xf32> to vector<125x22xbf16>
    %c0_80 = arith.constant 0 : index
    %c7 = arith.constant 7 : index
    %c0_81 = arith.constant 0 : index
    %89 = tpu.strided_load %arg1[%c0_80, %c7, %c0_81] {strides = array<i32: 1, 2, 1>} : memref<1x506x22xf32, #tpu.memory_space<vmem>>, vector<1x125x22xf32>
    %90 = vector.shape_cast %89 : vector<1x125x22xf32> to vector<125x22xf32>
    %91 = arith.truncf %90 : vector<125x22xf32> to vector<125x22xbf16>
    %cst_82 = arith.constant dense<0.000000e+00> : vector<125x64xf32>
    %92 = tpu.matmul %88, %85, %cst_82 {dimension_numbers = #tpu.dot_dimension_numbers<[1], [0], [0], [1], [0, 0, 1, 1], [], []>} : vector<125x22xbf16>, vector<22x64xbf16>, vector<125x64xf32> -> vector<125x64xf32>
    %93 = arith.addf %81, %92 : vector<125x64xf32>
    %cst_83 = arith.constant dense<0.000000e+00> : vector<125x64xf32>
    %94 = tpu.matmul %91, %85, %cst_83 {dimension_numbers = #tpu.dot_dimension_numbers<[1], [0], [0], [1], [0, 0, 1, 1], [], []>} : vector<125x22xbf16>, vector<22x64xbf16>, vector<125x64xf32> -> vector<125x64xf32>
    %95 = arith.addf %83, %94 : vector<125x64xf32>
    %96 = vector.broadcast %8 : vector<1x64xf32> to vector<125x64xf32>
    %97 = arith.mulf %93, %96 : vector<125x64xf32>
    %98 = vector.broadcast %9 : vector<1x64xf32> to vector<125x64xf32>
    %99 = arith.addf %97, %98 : vector<125x64xf32>
    %cst_84 = arith.constant 0.000000e+00 : f32
    %100 = vector.broadcast %cst_84 : f32 to vector<125x64xf32>
    %101 = arith.maximumf %99, %100 : vector<125x64xf32>
    %102 = vector.broadcast %8 : vector<1x64xf32> to vector<125x64xf32>
    %103 = arith.mulf %95, %102 : vector<125x64xf32>
    %104 = vector.broadcast %9 : vector<1x64xf32> to vector<125x64xf32>
    %105 = arith.addf %103, %104 : vector<125x64xf32>
    %cst_85 = arith.constant 0.000000e+00 : f32
    %106 = vector.broadcast %cst_85 : f32 to vector<125x64xf32>
    %107 = arith.maximumf %105, %106 : vector<125x64xf32>
    %108 = arith.maximumf %101, %107 : vector<125x64xf32>
    %c2_86 = arith.constant 2 : index
    %c0_87 = arith.constant 0 : index
    %109 = vector.load %arg12[%c2_86, %c0_87] : memref<254x64xf32, #tpu.memory_space<vmem>>, vector<125x64xf32>
    tpu.vector_store %arg12[%c2_86, %c0_87], %108 {strides = array<i32>} : memref<254x64xf32, #tpu.memory_space<vmem>>, vector<125x64xf32>,
    %cst_88 = arith.constant 0.000000e+00 : f32
    %110 = vector.broadcast %cst_88 : f32 to vector<125x64xf32>
    %cst_89 = arith.constant 0.000000e+00 : f32
    %111 = vector.broadcast %cst_89 : f32 to vector<125x64xf32>
    %c0_90 = arith.constant 0 : index
    %c0_91 = arith.constant 0 : index
    %c0_92 = arith.constant 0 : index
    %112 = vector.load %arg2[%c0_90, %c0_91, %c0_92] : memref<7x22x64xbf16, #tpu.memory_space<vmem>>, vector<1x22x64xbf16>
    %113 = vector.shape_cast %112 : vector<1x22x64xbf16> to vector<22x64xbf16>
    %c0_93 = arith.constant 0 : index
    %c250 = arith.constant 250 : index
    %c0_94 = arith.constant 0 : index
    %114 = tpu.strided_load %arg1[%c0_93, %c250, %c0_94] {strides = array<i32: 1, 2, 1>} : memref<1x506x22xf32, #tpu.memory_space<vmem>>, vector<1x125x22xf32>
    %115 = vector.shape_cast %114 : vector<1x125x22xf32> to vector<125x22xf32>
    %116 = arith.truncf %115 : vector<125x22xf32> to vector<125x22xbf16>
    %c0_95 = arith.constant 0 : index
    %c251 = arith.constant 251 : index
    %c0_96 = arith.constant 0 : index
    %117 = tpu.strided_load %arg1[%c0_95, %c251, %c0_96] {strides = array<i32: 1, 2, 1>} : memref<1x506x22xf32, #tpu.memory_space<vmem>>, vector<1x125x22xf32>
    %118 = vector.shape_cast %117 : vector<1x125x22xf32> to vector<125x22xf32>
    %119 = arith.truncf %118 : vector<125x22xf32> to vector<125x22xbf16>
    %cst_97 = arith.constant dense<0.000000e+00> : vector<125x64xf32>
    %120 = tpu.matmul %116, %113, %cst_97 {dimension_numbers = #tpu.dot_dimension_numbers<[1], [0], [0], [1], [0, 0, 1, 1], [], []>} : vector<125x22xbf16>, vector<22x64xbf16>, vector<125x64xf32> -> vector<125x64xf32>
    %121 = arith.addf %110, %120 : vector<125x64xf32>
    %cst_98 = arith.constant dense<0.000000e+00> : vector<125x64xf32>
    %122 = tpu.matmul %119, %113, %cst_98 {dimension_numbers = #tpu.dot_dimension_numbers<[1], [0], [0], [1], [0, 0, 1, 1], [], []>} : vector<125x22xbf16>, vector<22x64xbf16>, vector<125x64xf32> -> vector<125x64xf32>
    %123 = arith.addf %111, %122 : vector<125x64xf32>
    %c1_99 = arith.constant 1 : index
    %c0_100 = arith.constant 0 : index
    %c0_101 = arith.constant 0 : index
    %124 = vector.load %arg2[%c1_99, %c0_100, %c0_101] : memref<7x22x64xbf16, #tpu.memory_space<vmem>>, vector<1x22x64xbf16>
    %125 = vector.shape_cast %124 : vector<1x22x64xbf16> to vector<22x64xbf16>
    %c0_102 = arith.constant 0 : index
    %c251_103 = arith.constant 251 : index
    %c0_104 = arith.constant 0 : index
    %126 = tpu.strided_load %arg1[%c0_102, %c251_103, %c0_104] {strides = array<i32: 1, 2, 1>} : memref<1x506x22xf32, #tpu.memory_space<vmem>>, vector<1x125x22xf32>
    %127 = vector.shape_cast %126 : vector<1x125x22xf32> to vector<125x22xf32>
    %128 = arith.truncf %127 : vector<125x22xf32> to vector<125x22xbf16>
    %c0_105 = arith.constant 0 : index
    %c252_106 = arith.constant 252 : index
    %c0_107 = arith.constant 0 : index
    %129 = tpu.strided_load %arg1[%c0_105, %c252_106, %c0_107] {strides = array<i32: 1, 2, 1>} : memref<1x506x22xf32, #tpu.memory_space<vmem>>, vector<1x125x22xf32>
    %130 = vector.shape_cast %129 : vector<1x125x22xf32> to vector<125x22xf32>
    %131 = arith.truncf %130 : vector<125x22xf32> to vector<125x22xbf16>
    %cst_108 = arith.constant dense<0.000000e+00> : vector<125x64xf32>
    %132 = tpu.matmul %128, %125, %cst_108 {dimension_numbers = #tpu.dot_dimension_numbers<[1], [0], [0], [1], [0, 0, 1, 1], [], []>} : vector<125x22xbf16>, vector<22x64xbf16>, vector<125x64xf32> -> vector<125x64xf32>
    %133 = arith.addf %121, %132 : vector<125x64xf32>
    %cst_109 = arith.constant dense<0.000000e+00> : vector<125x64xf32>
    %134 = tpu.matmul %131, %125, %cst_109 {dimension_numbers = #tpu.dot_dimension_numbers<[1], [0], [0], [1], [0, 0, 1, 1], [], []>} : vector<125x22xbf16>, vector<22x64xbf16>, vector<125x64xf32> -> vector<125x64xf32>
    %135 = arith.addf %123, %134 : vector<125x64xf32>
    %c2_110 = arith.constant 2 : index
    %c0_111 = arith.constant 0 : index
    %c0_112 = arith.constant 0 : index
    %136 = vector.load %arg2[%c2_110, %c0_111, %c0_112] : memref<7x22x64xbf16, #tpu.memory_space<vmem>>, vector<1x22x64xbf16>
    %137 = vector.shape_cast %136 : vector<1x22x64xbf16> to vector<22x64xbf16>
    %c0_113 = arith.constant 0 : index
    %c252_114 = arith.constant 252 : index
    %c0_115 = arith.constant 0 : index
    %138 = tpu.strided_load %arg1[%c0_113, %c252_114, %c0_115] {strides = array<i32: 1, 2, 1>} : memref<1x506x22xf32, #tpu.memory_space<vmem>>, vector<1x125x22xf32>
    %139 = vector.shape_cast %138 : vector<1x125x22xf32> to vector<125x22xf32>
    %140 = arith.truncf %139 : vector<125x22xf32> to vector<125x22xbf16>
    %c0_116 = arith.constant 0 : index
    %c253 = arith.constant 253 : index
    %c0_117 = arith.constant 0 : index
    %141 = tpu.strided_load %arg1[%c0_116, %c253, %c0_117] {strides = array<i32: 1, 2, 1>} : memref<1x506x22xf32, #tpu.memory_space<vmem>>, vector<1x125x22xf32>
    %142 = vector.shape_cast %141 : vector<1x125x22xf32> to vector<125x22xf32>
    %143 = arith.truncf %142 : vector<125x22xf32> to vector<125x22xbf16>
    %cst_118 = arith.constant dense<0.000000e+00> : vector<125x64xf32>
    %144 = tpu.matmul %140, %137, %cst_118 {dimension_numbers = #tpu.dot_dimension_numbers<[1], [0], [0], [1], [0, 0, 1, 1], [], []>} : vector<125x22xbf16>, vector<22x64xbf16>, vector<125x64xf32> -> vector<125x64xf32>
    %145 = arith.addf %133, %144 : vector<125x64xf32>
    %cst_119 = arith.constant dense<0.000000e+00> : vector<125x64xf32>
    %146 = tpu.matmul %143, %137, %cst_119 {dimension_numbers = #tpu.dot_dimension_numbers<[1], [0], [0], [1], [0, 0, 1, 1], [], []>} : vector<125x22xbf16>, vector<22x64xbf16>, vector<125x64xf32> -> vector<125x64xf32>
    %147 = arith.addf %135, %146 : vector<125x64xf32>
    %c3_120 = arith.constant 3 : index
    %c0_121 = arith.constant 0 : index
    %c0_122 = arith.constant 0 : index
    %148 = vector.load %arg2[%c3_120, %c0_121, %c0_122] : memref<7x22x64xbf16, #tpu.memory_space<vmem>>, vector<1x22x64xbf16>
    %149 = vector.shape_cast %148 : vector<1x22x64xbf16> to vector<22x64xbf16>
    %c0_123 = arith.constant 0 : index
    %c253_124 = arith.constant 253 : index
    %c0_125 = arith.constant 0 : index
    %150 = tpu.strided_load %arg1[%c0_123, %c253_124, %c0_125] {strides = array<i32: 1, 2, 1>} : memref<1x506x22xf32, #tpu.memory_space<vmem>>, vector<1x125x22xf32>
    %151 = vector.shape_cast %150 : vector<1x125x22xf32> to vector<125x22xf32>
    %152 = arith.truncf %151 : vector<125x22xf32> to vector<125x22xbf16>
    %c0_126 = arith.constant 0 : index
    %c254 = arith.constant 254 : index
    %c0_127 = arith.constant 0 : index
    %153 = tpu.strided_load %arg1[%c0_126, %c254, %c0_127] {strides = array<i32: 1, 2, 1>} : memref<1x506x22xf32, #tpu.memory_space<vmem>>, vector<1x125x22xf32>
    %154 = vector.shape_cast %153 : vector<1x125x22xf32> to vector<125x22xf32>
    %155 = arith.truncf %154 : vector<125x22xf32> to vector<125x22xbf16>
    %cst_128 = arith.constant dense<0.000000e+00> : vector<125x64xf32>
    %156 = tpu.matmul %152, %149, %cst_128 {dimension_numbers = #tpu.dot_dimension_numbers<[1], [0], [0], [1], [0, 0, 1, 1], [], []>} : vector<125x22xbf16>, vector<22x64xbf16>, vector<125x64xf32> -> vector<125x64xf32>
    %157 = arith.addf %145, %156 : vector<125x64xf32>
    %cst_129 = arith.constant dense<0.000000e+00> : vector<125x64xf32>
    %158 = tpu.matmul %155, %149, %cst_129 {dimension_numbers = #tpu.dot_dimension_numbers<[1], [0], [0], [1], [0, 0, 1, 1], [], []>} : vector<125x22xbf16>, vector<22x64xbf16>, vector<125x64xf32> -> vector<125x64xf32>
    %159 = arith.addf %147, %158 : vector<125x64xf32>
    %c4_130 = arith.constant 4 : index
    %c0_131 = arith.constant 0 : index
    %c0_132 = arith.constant 0 : index
    %160 = vector.load %arg2[%c4_130, %c0_131, %c0_132] : memref<7x22x64xbf16, #tpu.memory_space<vmem>>, vector<1x22x64xbf16>
    %161 = vector.shape_cast %160 : vector<1x22x64xbf16> to vector<22x64xbf16>
    %c0_133 = arith.constant 0 : index
    %c254_134 = arith.constant 254 : index
    %c0_135 = arith.constant 0 : index
    %162 = tpu.strided_load %arg1[%c0_133, %c254_134, %c0_135] {strides = array<i32: 1, 2, 1>} : memref<1x506x22xf32, #tpu.memory_space<vmem>>, vector<1x125x22xf32>
    %163 = vector.shape_cast %162 : vector<1x125x22xf32> to vector<125x22xf32>
    %164 = arith.truncf %163 : vector<125x22xf32> to vector<125x22xbf16>
    %c0_136 = arith.constant 0 : index
    %c255 = arith.constant 255 : index
    %c0_137 = arith.constant 0 : index
    %165 = tpu.strided_load %arg1[%c0_136, %c255, %c0_137] {strides = array<i32: 1, 2, 1>} : memref<1x506x22xf32, #tpu.memory_space<vmem>>, vector<1x125x22xf32>
    %166 = vector.shape_cast %165 : vector<1x125x22xf32> to vector<125x22xf32>
    %167 = arith.truncf %166 : vector<125x22xf32> to vector<125x22xbf16>
    %cst_138 = arith.constant dense<0.000000e+00> : vector<125x64xf32>
    %168 = tpu.matmul %164, %161, %cst_138 {dimension_numbers = #tpu.dot_dimension_numbers<[1], [0], [0], [1], [0, 0, 1, 1], [], []>} : vector<125x22xbf16>, vector<22x64xbf16>, vector<125x64xf32> -> vector<125x64xf32>
    %169 = arith.addf %157, %168 : vector<125x64xf32>
    %cst_139 = arith.constant dense<0.000000e+00> : vector<125x64xf32>
    %170 = tpu.matmul %167, %161, %cst_139 {dimension_numbers = #tpu.dot_dimension_numbers<[1], [0], [0], [1], [0, 0, 1, 1], [], []>} : vector<125x22xbf16>, vector<22x64xbf16>, vector<125x64xf32> -> vector<125x64xf32>
    %171 = arith.addf %159, %170 : vector<125x64xf32>
    %c5_140 = arith.constant 5 : index
    %c0_141 = arith.constant 0 : index
    %c0_142 = arith.constant 0 : index
    %172 = vector.load %arg2[%c5_140, %c0_141, %c0_142] : memref<7x22x64xbf16, #tpu.memory_space<vmem>>, vector<1x22x64xbf16>
    %173 = vector.shape_cast %172 : vector<1x22x64xbf16> to vector<22x64xbf16>
    %c0_143 = arith.constant 0 : index
    %c255_144 = arith.constant 255 : index
    %c0_145 = arith.constant 0 : index
    %174 = tpu.strided_load %arg1[%c0_143, %c255_144, %c0_145] {strides = array<i32: 1, 2, 1>} : memref<1x506x22xf32, #tpu.memory_space<vmem>>, vector<1x125x22xf32>
    %175 = vector.shape_cast %174 : vector<1x125x22xf32> to vector<125x22xf32>
    %176 = arith.truncf %175 : vector<125x22xf32> to vector<125x22xbf16>
    %c0_146 = arith.constant 0 : index
    %c256 = arith.constant 256 : index
    %c0_147 = arith.constant 0 : index
    %177 = tpu.strided_load %arg1[%c0_146, %c256, %c0_147] {strides = array<i32: 1, 2, 1>} : memref<1x506x22xf32, #tpu.memory_space<vmem>>, vector<1x125x22xf32>
    %178 = vector.shape_cast %177 : vector<1x125x22xf32> to vector<125x22xf32>
    %179 = arith.truncf %178 : vector<125x22xf32> to vector<125x22xbf16>
    %cst_148 = arith.constant dense<0.000000e+00> : vector<125x64xf32>
    %180 = tpu.matmul %176, %173, %cst_148 {dimension_numbers = #tpu.dot_dimension_numbers<[1], [0], [0], [1], [0, 0, 1, 1], [], []>} : vector<125x22xbf16>, vector<22x64xbf16>, vector<125x64xf32> -> vector<125x64xf32>
    %181 = arith.addf %169, %180 : vector<125x64xf32>
    %cst_149 = arith.constant dense<0.000000e+00> : vector<125x64xf32>
    %182 = tpu.matmul %179, %173, %cst_149 {dimension_numbers = #tpu.dot_dimension_numbers<[1], [0], [0], [1], [0, 0, 1, 1], [], []>} : vector<125x22xbf16>, vector<22x64xbf16>, vector<125x64xf32> -> vector<125x64xf32>
    %183 = arith.addf %171, %182 : vector<125x64xf32>
    %c6_150 = arith.constant 6 : index
    %c0_151 = arith.constant 0 : index
    %c0_152 = arith.constant 0 : index
    %184 = vector.load %arg2[%c6_150, %c0_151, %c0_152] : memref<7x22x64xbf16, #tpu.memory_space<vmem>>, vector<1x22x64xbf16>
    %185 = vector.shape_cast %184 : vector<1x22x64xbf16> to vector<22x64xbf16>
    %c0_153 = arith.constant 0 : index
    %c256_154 = arith.constant 256 : index
    %c0_155 = arith.constant 0 : index
    %186 = tpu.strided_load %arg1[%c0_153, %c256_154, %c0_155] {strides = array<i32: 1, 2, 1>} : memref<1x506x22xf32, #tpu.memory_space<vmem>>, vector<1x125x22xf32>
    %187 = vector.shape_cast %186 : vector<1x125x22xf32> to vector<125x22xf32>
    %188 = arith.truncf %187 : vector<125x22xf32> to vector<125x22xbf16>
    %c0_156 = arith.constant 0 : index
    %c257 = arith.constant 257 : index
    %c0_157 = arith.constant 0 : index
    %189 = tpu.strided_load %arg1[%c0_156, %c257, %c0_157] {strides = array<i32: 1, 2, 1>} : memref<1x506x22xf32, #tpu.memory_space<vmem>>, vector<1x125x22xf32>
    %190 = vector.shape_cast %189 : vector<1x125x22xf32> to vector<125x22xf32>
    %191 = arith.truncf %190 : vector<125x22xf32> to vector<125x22xbf16>
    %cst_158 = arith.constant dense<0.000000e+00> : vector<125x64xf32>
    %192 = tpu.matmul %188, %185, %cst_158 {dimension_numbers = #tpu.dot_dimension_numbers<[1], [0], [0], [1], [0, 0, 1, 1], [], []>} : vector<125x22xbf16>, vector<22x64xbf16>, vector<125x64xf32> -> vector<125x64xf32>
    %193 = arith.addf %181, %192 : vector<125x64xf32>
    %cst_159 = arith.constant dense<0.000000e+00> : vector<125x64xf32>
    %194 = tpu.matmul %191, %185, %cst_159 {dimension_numbers = #tpu.dot_dimension_numbers<[1], [0], [0], [1], [0, 0, 1, 1], [], []>} : vector<125x22xbf16>, vector<22x64xbf16>, vector<125x64xf32> -> vector<125x64xf32>
    %195 = arith.addf %183, %194 : vector<125x64xf32>
    %196 = vector.broadcast %8 : vector<1x64xf32> to vector<125x64xf32>
    %197 = arith.mulf %193, %196 : vector<125x64xf32>
    %198 = vector.broadcast %9 : vector<1x64xf32> to vector<125x64xf32>
    %199 = arith.addf %197, %198 : vector<125x64xf32>
    %cst_160 = arith.constant 0.000000e+00 : f32
    %200 = vector.broadcast %cst_160 : f32 to vector<125x64xf32>
    %201 = arith.maximumf %199, %200 : vector<125x64xf32>
    %202 = vector.broadcast %8 : vector<1x64xf32> to vector<125x64xf32>
    %203 = arith.mulf %195, %202 : vector<125x64xf32>
    %204 = vector.broadcast %9 : vector<1x64xf32> to vector<125x64xf32>
    %205 = arith.addf %203, %204 : vector<125x64xf32>
    %cst_161 = arith.constant 0.000000e+00 : f32
    %206 = vector.broadcast %cst_161 : f32 to vector<125x64xf32>
    %207 = arith.maximumf %205, %206 : vector<125x64xf32>
    %208 = arith.maximumf %201, %207 : vector<125x64xf32>
    %c127 = arith.constant 127 : index
    %c0_162 = arith.constant 0 : index
    %209 = vector.load %arg12[%c127, %c0_162] : memref<254x64xf32, #tpu.memory_space<vmem>>, vector<125x64xf32>
    tpu.vector_store %arg12[%c127, %c0_162], %208 {strides = array<i32>} : memref<254x64xf32, #tpu.memory_space<vmem>>, vector<125x64xf32>,
    %c0_163 = arith.constant 0 : index
    %c0_164 = arith.constant 0 : index
    %210 = vector.load %arg6[%c0_163, %c0_164] : memref<1x128xf32, #tpu.memory_space<vmem>>, vector<1x128xf32>
    %c0_165 = arith.constant 0 : index
    %c0_166 = arith.constant 0 : index
    %211 = vector.load %arg7[%c0_165, %c0_166] : memref<1x128xf32, #tpu.memory_space<vmem>>, vector<1x128xf32>
    %cst_167 = arith.constant 0.000000e+00 : f32
    %212 = vector.broadcast %cst_167 : f32 to vector<125x128xf32>
    %cst_168 = arith.constant 0.000000e+00 : f32
    %213 = vector.broadcast %cst_168 : f32 to vector<125x128xf32>
    %c0_169 = arith.constant 0 : index
    %c0_170 = arith.constant 0 : index
    %c0_171 = arith.constant 0 : index
    %214 = vector.load %arg5[%c0_169, %c0_170, %c0_171] : memref<5x64x128xbf16, #tpu.memory_space<vmem>>, vector<1x64x128xbf16>
    %215 = vector.shape_cast %214 : vector<1x64x128xbf16> to vector<64x128xbf16>
    %c0_172 = arith.constant 0 : index
    %c0_173 = arith.constant 0 : index
    %216 = tpu.strided_load %arg12[%c0_172, %c0_173] {strides = array<i32: 2, 1>} : memref<254x64xf32, #tpu.memory_space<vmem>>, vector<125x64xf32>
    %217 = arith.truncf %216 : vector<125x64xf32> to vector<125x64xbf16>
    %c1_174 = arith.constant 1 : index
    %c0_175 = arith.constant 0 : index
    %218 = tpu.strided_load %arg12[%c1_174, %c0_175] {strides = array<i32: 2, 1>} : memref<254x64xf32, #tpu.memory_space<vmem>>, vector<125x64xf32>
    %219 = arith.truncf %218 : vector<125x64xf32> to vector<125x64xbf16>
    %cst_176 = arith.constant dense<0.000000e+00> : vector<125x128xf32>
    %220 = tpu.matmul %217, %215, %cst_176 {dimension_numbers = #tpu.dot_dimension_numbers<[1], [0], [0], [1], [0, 0, 1, 1], [], []>} : vector<125x64xbf16>, vector<64x128xbf16>, vector<125x128xf32> -> vector<125x128xf32>
    %221 = arith.addf %212, %220 : vector<125x128xf32>
    %cst_177 = arith.constant dense<0.000000e+00> : vector<125x128xf32>
    %222 = tpu.matmul %219, %215, %cst_177 {dimension_numbers = #tpu.dot_dimension_numbers<[1], [0], [0], [1], [0, 0, 1, 1], [], []>} : vector<125x64xbf16>, vector<64x128xbf16>, vector<125x128xf32> -> vector<125x128xf32>
    %223 = arith.addf %213, %222 : vector<125x128xf32>
    %c1_178 = arith.constant 1 : index
    %c0_179 = arith.constant 0 : index
    %c0_180 = arith.constant 0 : index
    %224 = vector.load %arg5[%c1_178, %c0_179, %c0_180] : memref<5x64x128xbf16, #tpu.memory_space<vmem>>, vector<1x64x128xbf16>
    %225 = vector.shape_cast %224 : vector<1x64x128xbf16> to vector<64x128xbf16>
    %c1_181 = arith.constant 1 : index
    %c0_182 = arith.constant 0 : index
    %226 = tpu.strided_load %arg12[%c1_181, %c0_182] {strides = array<i32: 2, 1>} : memref<254x64xf32, #tpu.memory_space<vmem>>, vector<125x64xf32>
    %227 = arith.truncf %226 : vector<125x64xf32> to vector<125x64xbf16>
    %c2_183 = arith.constant 2 : index
    %c0_184 = arith.constant 0 : index
    %228 = tpu.strided_load %arg12[%c2_183, %c0_184] {strides = array<i32: 2, 1>} : memref<254x64xf32, #tpu.memory_space<vmem>>, vector<125x64xf32>
    %229 = arith.truncf %228 : vector<125x64xf32> to vector<125x64xbf16>
    %cst_185 = arith.constant dense<0.000000e+00> : vector<125x128xf32>
    %230 = tpu.matmul %227, %225, %cst_185 {dimension_numbers = #tpu.dot_dimension_numbers<[1], [0], [0], [1], [0, 0, 1, 1], [], []>} : vector<125x64xbf16>, vector<64x128xbf16>, vector<125x128xf32> -> vector<125x128xf32>
    %231 = arith.addf %221, %230 : vector<125x128xf32>
    %cst_186 = arith.constant dense<0.000000e+00> : vector<125x128xf32>
    %232 = tpu.matmul %229, %225, %cst_186 {dimension_numbers = #tpu.dot_dimension_numbers<[1], [0], [0], [1], [0, 0, 1, 1], [], []>} : vector<125x64xbf16>, vector<64x128xbf16>, vector<125x128xf32> -> vector<125x128xf32>
    %233 = arith.addf %223, %232 : vector<125x128xf32>
    %c2_187 = arith.constant 2 : index
    %c0_188 = arith.constant 0 : index
    %c0_189 = arith.constant 0 : index
    %234 = vector.load %arg5[%c2_187, %c0_188, %c0_189] : memref<5x64x128xbf16, #tpu.memory_space<vmem>>, vector<1x64x128xbf16>
    %235 = vector.shape_cast %234 : vector<1x64x128xbf16> to vector<64x128xbf16>
    %c2_190 = arith.constant 2 : index
    %c0_191 = arith.constant 0 : index
    %236 = tpu.strided_load %arg12[%c2_190, %c0_191] {strides = array<i32: 2, 1>} : memref<254x64xf32, #tpu.memory_space<vmem>>, vector<125x64xf32>
    %237 = arith.truncf %236 : vector<125x64xf32> to vector<125x64xbf16>
    %c3_192 = arith.constant 3 : index
    %c0_193 = arith.constant 0 : index
    %238 = tpu.strided_load %arg12[%c3_192, %c0_193] {strides = array<i32: 2, 1>} : memref<254x64xf32, #tpu.memory_space<vmem>>, vector<125x64xf32>
    %239 = arith.truncf %238 : vector<125x64xf32> to vector<125x64xbf16>
    %cst_194 = arith.constant dense<0.000000e+00> : vector<125x128xf32>
    %240 = tpu.matmul %237, %235, %cst_194 {dimension_numbers = #tpu.dot_dimension_numbers<[1], [0], [0], [1], [0, 0, 1, 1], [], []>} : vector<125x64xbf16>, vector<64x128xbf16>, vector<125x128xf32> -> vector<125x128xf32>
    %241 = arith.addf %231, %240 : vector<125x128xf32>
    %cst_195 = arith.constant dense<0.000000e+00> : vector<125x128xf32>
    %242 = tpu.matmul %239, %235, %cst_195 {dimension_numbers = #tpu.dot_dimension_numbers<[1], [0], [0], [1], [0, 0, 1, 1], [], []>} : vector<125x64xbf16>, vector<64x128xbf16>, vector<125x128xf32> -> vector<125x128xf32>
    %243 = arith.addf %233, %242 : vector<125x128xf32>
    %c3_196 = arith.constant 3 : index
    %c0_197 = arith.constant 0 : index
    %c0_198 = arith.constant 0 : index
    %244 = vector.load %arg5[%c3_196, %c0_197, %c0_198] : memref<5x64x128xbf16, #tpu.memory_space<vmem>>, vector<1x64x128xbf16>
    %245 = vector.shape_cast %244 : vector<1x64x128xbf16> to vector<64x128xbf16>
    %c3_199 = arith.constant 3 : index
    %c0_200 = arith.constant 0 : index
    %246 = tpu.strided_load %arg12[%c3_199, %c0_200] {strides = array<i32: 2, 1>} : memref<254x64xf32, #tpu.memory_space<vmem>>, vector<125x64xf32>
    %247 = arith.truncf %246 : vector<125x64xf32> to vector<125x64xbf16>
    %c4_201 = arith.constant 4 : index
    %c0_202 = arith.constant 0 : index
    %248 = tpu.strided_load %arg12[%c4_201, %c0_202] {strides = array<i32: 2, 1>} : memref<254x64xf32, #tpu.memory_space<vmem>>, vector<125x64xf32>
    %249 = arith.truncf %248 : vector<125x64xf32> to vector<125x64xbf16>
    %cst_203 = arith.constant dense<0.000000e+00> : vector<125x128xf32>
    %250 = tpu.matmul %247, %245, %cst_203 {dimension_numbers = #tpu.dot_dimension_numbers<[1], [0], [0], [1], [0, 0, 1, 1], [], []>} : vector<125x64xbf16>, vector<64x128xbf16>, vector<125x128xf32> -> vector<125x128xf32>
    %251 = arith.addf %241, %250 : vector<125x128xf32>
    %cst_204 = arith.constant dense<0.000000e+00> : vector<125x128xf32>
    %252 = tpu.matmul %249, %245, %cst_204 {dimension_numbers = #tpu.dot_dimension_numbers<[1], [0], [0], [1], [0, 0, 1, 1], [], []>} : vector<125x64xbf16>, vector<64x128xbf16>, vector<125x128xf32> -> vector<125x128xf32>
    %253 = arith.addf %243, %252 : vector<125x128xf32>
    %c4_205 = arith.constant 4 : index
    %c0_206 = arith.constant 0 : index
    %c0_207 = arith.constant 0 : index
    %254 = vector.load %arg5[%c4_205, %c0_206, %c0_207] : memref<5x64x128xbf16, #tpu.memory_space<vmem>>, vector<1x64x128xbf16>
    %255 = vector.shape_cast %254 : vector<1x64x128xbf16> to vector<64x128xbf16>
    %c4_208 = arith.constant 4 : index
    %c0_209 = arith.constant 0 : index
    %256 = tpu.strided_load %arg12[%c4_208, %c0_209] {strides = array<i32: 2, 1>} : memref<254x64xf32, #tpu.memory_space<vmem>>, vector<125x64xf32>
    %257 = arith.truncf %256 : vector<125x64xf32> to vector<125x64xbf16>
    %c5_210 = arith.constant 5 : index
    %c0_211 = arith.constant 0 : index
    %258 = tpu.strided_load %arg12[%c5_210, %c0_211] {strides = array<i32: 2, 1>} : memref<254x64xf32, #tpu.memory_space<vmem>>, vector<125x64xf32>
    %259 = arith.truncf %258 : vector<125x64xf32> to vector<125x64xbf16>
    %cst_212 = arith.constant dense<0.000000e+00> : vector<125x128xf32>
    %260 = tpu.matmul %257, %255, %cst_212 {dimension_numbers = #tpu.dot_dimension_numbers<[1], [0], [0], [1], [0, 0, 1, 1], [], []>} : vector<125x64xbf16>, vector<64x128xbf16>, vector<125x128xf32> -> vector<125x128xf32>
    %261 = arith.addf %251, %260 : vector<125x128xf32>
    %cst_213 = arith.constant dense<0.000000e+00> : vector<125x128xf32>
    %262 = tpu.matmul %259, %255, %cst_213 {dimension_numbers = #tpu.dot_dimension_numbers<[1], [0], [0], [1], [0, 0, 1, 1], [], []>} : vector<125x64xbf16>, vector<64x128xbf16>, vector<125x128xf32> -> vector<125x128xf32>
    %263 = arith.addf %253, %262 : vector<125x128xf32>
    %264 = vector.broadcast %210 : vector<1x128xf32> to vector<125x128xf32>
    %265 = arith.mulf %261, %264 : vector<125x128xf32>
    %266 = vector.broadcast %211 : vector<1x128xf32> to vector<125x128xf32>
    %267 = arith.addf %265, %266 : vector<125x128xf32>
    %cst_214 = arith.constant 0.000000e+00 : f32
    %268 = vector.broadcast %cst_214 : f32 to vector<125x128xf32>
    %269 = arith.maximumf %267, %268 : vector<125x128xf32>
    %270 = vector.broadcast %210 : vector<1x128xf32> to vector<125x128xf32>
    %271 = arith.mulf %263, %270 : vector<125x128xf32>
    %272 = vector.broadcast %211 : vector<1x128xf32> to vector<125x128xf32>
    %273 = arith.addf %271, %272 : vector<125x128xf32>
    %cst_215 = arith.constant 0.000000e+00 : f32
    %274 = vector.broadcast %cst_215 : f32 to vector<125x128xf32>
    %275 = arith.maximumf %273, %274 : vector<125x128xf32>
    %276 = arith.maximumf %269, %275 : vector<125x128xf32>
    %c1_216 = arith.constant 1 : index
    %c0_217 = arith.constant 0 : index
    %277 = vector.load %arg13[%c1_216, %c0_217] : memref<127x128xf32, #tpu.memory_space<vmem>>, vector<125x128xf32>
    tpu.vector_store %arg13[%c1_216, %c0_217], %276 {strides = array<i32>} : memref<127x128xf32, #tpu.memory_space<vmem>>, vector<125x128xf32>,
    %c0_218 = arith.constant 0 : index
    %c0_219 = arith.constant 0 : index
    %278 = vector.load %arg9[%c0_218, %c0_219] : memref<1x256xf32, #tpu.memory_space<vmem>>, vector<1x256xf32>
    %c0_220 = arith.constant 0 : index
    %c0_221 = arith.constant 0 : index
    %279 = vector.load %arg10[%c0_220, %c0_221] : memref<1x256xf32, #tpu.memory_space<vmem>>, vector<1x256xf32>
    %cst_222 = arith.constant 0.000000e+00 : f32
    %280 = vector.broadcast %cst_222 : f32 to vector<62x256xf32>
    %cst_223 = arith.constant 0.000000e+00 : f32
    %281 = vector.broadcast %cst_223 : f32 to vector<62x256xf32>
    %c0_224 = arith.constant 0 : index
    %c0_225 = arith.constant 0 : index
    %c0_226 = arith.constant 0 : index
    %282 = vector.load %arg8[%c0_224, %c0_225, %c0_226] : memref<3x128x256xbf16, #tpu.memory_space<vmem>>, vector<1x128x256xbf16>
    %283 = vector.shape_cast %282 : vector<1x128x256xbf16> to vector<128x256xbf16>
    %c0_227 = arith.constant 0 : index
    %c0_228 = arith.constant 0 : index
    %284 = tpu.strided_load %arg13[%c0_227, %c0_228] {strides = array<i32: 2, 1>} : memref<127x128xf32, #tpu.memory_space<vmem>>, vector<62x128xf32>
    %285 = arith.truncf %284 : vector<62x128xf32> to vector<62x128xbf16>
    %c1_229 = arith.constant 1 : index
    %c0_230 = arith.constant 0 : index
    %286 = tpu.strided_load %arg13[%c1_229, %c0_230] {strides = array<i32: 2, 1>} : memref<127x128xf32, #tpu.memory_space<vmem>>, vector<62x128xf32>
    %287 = arith.truncf %286 : vector<62x128xf32> to vector<62x128xbf16>
    %cst_231 = arith.constant dense<0.000000e+00> : vector<62x256xf32>
    %288 = tpu.matmul %285, %283, %cst_231 {dimension_numbers = #tpu.dot_dimension_numbers<[1], [0], [0], [1], [0, 0, 1, 1], [], []>} : vector<62x128xbf16>, vector<128x256xbf16>, vector<62x256xf32> -> vector<62x256xf32>
    %289 = arith.addf %280, %288 : vector<62x256xf32>
    %cst_232 = arith.constant dense<0.000000e+00> : vector<62x256xf32>
    %290 = tpu.matmul %287, %283, %cst_232 {dimension_numbers = #tpu.dot_dimension_numbers<[1], [0], [0], [1], [0, 0, 1, 1], [], []>} : vector<62x128xbf16>, vector<128x256xbf16>, vector<62x256xf32> -> vector<62x256xf32>
    %291 = arith.addf %281, %290 : vector<62x256xf32>
    %c1_233 = arith.constant 1 : index
    %c0_234 = arith.constant 0 : index
    %c0_235 = arith.constant 0 : index
    %292 = vector.load %arg8[%c1_233, %c0_234, %c0_235] : memref<3x128x256xbf16, #tpu.memory_space<vmem>>, vector<1x128x256xbf16>
    %293 = vector.shape_cast %292 : vector<1x128x256xbf16> to vector<128x256xbf16>
    %c1_236 = arith.constant 1 : index
    %c0_237 = arith.constant 0 : index
    %294 = tpu.strided_load %arg13[%c1_236, %c0_237] {strides = array<i32: 2, 1>} : memref<127x128xf32, #tpu.memory_space<vmem>>, vector<62x128xf32>
    %295 = arith.truncf %294 : vector<62x128xf32> to vector<62x128xbf16>
    %c2_238 = arith.constant 2 : index
    %c0_239 = arith.constant 0 : index
    %296 = tpu.strided_load %arg13[%c2_238, %c0_239] {strides = array<i32: 2, 1>} : memref<127x128xf32, #tpu.memory_space<vmem>>, vector<62x128xf32>
    %297 = arith.truncf %296 : vector<62x128xf32> to vector<62x128xbf16>
    %cst_240 = arith.constant dense<0.000000e+00> : vector<62x256xf32>
    %298 = tpu.matmul %295, %293, %cst_240 {dimension_numbers = #tpu.dot_dimension_numbers<[1], [0], [0], [1], [0, 0, 1, 1], [], []>} : vector<62x128xbf16>, vector<128x256xbf16>, vector<62x256xf32> -> vector<62x256xf32>
    %299 = arith.addf %289, %298 : vector<62x256xf32>
    %cst_241 = arith.constant dense<0.000000e+00> : vector<62x256xf32>
    %300 = tpu.matmul %297, %293, %cst_241 {dimension_numbers = #tpu.dot_dimension_numbers<[1], [0], [0], [1], [0, 0, 1, 1], [], []>} : vector<62x128xbf16>, vector<128x256xbf16>, vector<62x256xf32> -> vector<62x256xf32>
    %301 = arith.addf %291, %300 : vector<62x256xf32>
    %c2_242 = arith.constant 2 : index
    %c0_243 = arith.constant 0 : index
    %c0_244 = arith.constant 0 : index
    %302 = vector.load %arg8[%c2_242, %c0_243, %c0_244] : memref<3x128x256xbf16, #tpu.memory_space<vmem>>, vector<1x128x256xbf16>
    %303 = vector.shape_cast %302 : vector<1x128x256xbf16> to vector<128x256xbf16>
    %c2_245 = arith.constant 2 : index
    %c0_246 = arith.constant 0 : index
    %304 = tpu.strided_load %arg13[%c2_245, %c0_246] {strides = array<i32: 2, 1>} : memref<127x128xf32, #tpu.memory_space<vmem>>, vector<62x128xf32>
    %305 = arith.truncf %304 : vector<62x128xf32> to vector<62x128xbf16>
    %c3_247 = arith.constant 3 : index
    %c0_248 = arith.constant 0 : index
    %306 = tpu.strided_load %arg13[%c3_247, %c0_248] {strides = array<i32: 2, 1>} : memref<127x128xf32, #tpu.memory_space<vmem>>, vector<62x128xf32>
    %307 = arith.truncf %306 : vector<62x128xf32> to vector<62x128xbf16>
    %cst_249 = arith.constant dense<0.000000e+00> : vector<62x256xf32>
    %308 = tpu.matmul %305, %303, %cst_249 {dimension_numbers = #tpu.dot_dimension_numbers<[1], [0], [0], [1], [0, 0, 1, 1], [], []>} : vector<62x128xbf16>, vector<128x256xbf16>, vector<62x256xf32> -> vector<62x256xf32>
    %309 = arith.addf %299, %308 : vector<62x256xf32>
    %cst_250 = arith.constant dense<0.000000e+00> : vector<62x256xf32>
    %310 = tpu.matmul %307, %303, %cst_250 {dimension_numbers = #tpu.dot_dimension_numbers<[1], [0], [0], [1], [0, 0, 1, 1], [], []>} : vector<62x128xbf16>, vector<128x256xbf16>, vector<62x256xf32> -> vector<62x256xf32>
    %311 = arith.addf %301, %310 : vector<62x256xf32>
    %312 = vector.broadcast %278 : vector<1x256xf32> to vector<62x256xf32>
    %313 = arith.mulf %309, %312 : vector<62x256xf32>
    %314 = vector.broadcast %279 : vector<1x256xf32> to vector<62x256xf32>
    %315 = arith.addf %313, %314 : vector<62x256xf32>
    %cst_251 = arith.constant 0.000000e+00 : f32
    %316 = vector.broadcast %cst_251 : f32 to vector<62x256xf32>
    %317 = arith.maximumf %315, %316 : vector<62x256xf32>
    %318 = vector.broadcast %278 : vector<1x256xf32> to vector<62x256xf32>
    %319 = arith.mulf %311, %318 : vector<62x256xf32>
    %320 = vector.broadcast %279 : vector<1x256xf32> to vector<62x256xf32>
    %321 = arith.addf %319, %320 : vector<62x256xf32>
    %cst_252 = arith.constant 0.000000e+00 : f32
    %322 = vector.broadcast %cst_252 : f32 to vector<62x256xf32>
    %323 = arith.maximumf %321, %322 : vector<62x256xf32>
    %324 = arith.maximumf %317, %323 : vector<62x256xf32>
    %325 = arith.truncf %324 : vector<62x256xf32> to vector<62x256xbf16>
    %c0_253 = arith.constant 0 : index
    %c0_254 = arith.constant 0 : index
    %c0_255 = arith.constant 0 : index
    %326 = vector.load %arg11[%c0_253, %c0_254, %c0_255] : memref<1x62x256xbf16, #tpu.memory_space<vmem>>, vector<1x62x256xbf16>
    %327 = vector.shape_cast %326 : vector<1x62x256xbf16> to vector<62x256xbf16>
    %328 = vector.shape_cast %325 : vector<62x256xbf16> to vector<1x62x256xbf16>
    tpu.vector_store %arg11[%c0_253, %c0_254, %c0_255], %328 {strides = array<i32>} : memref<1x62x256xbf16, #tpu.memory_space<vmem>>, vector<1x62x256xbf16>,
    return
  }
  func.func @transform_0(%arg0: i32) -> (i32, i32, i32) {
    %c0_i32 = arith.constant 0 : i32
    %c0_i32_0 = arith.constant 0 : i32
    %c0_i32_1 = arith.constant 0 : i32
    return %arg0, %c0_i32, %c0_i32_0 : i32, i32, i32
  }
  func.func @transform_1(%arg0: i32) -> (i32, i32, i32) {
    %c0_i32 = arith.constant 0 : i32
    %c0_i32_0 = arith.constant 0 : i32
    %c0_i32_1 = arith.constant 0 : i32
    %c0_i32_2 = arith.constant 0 : i32
    return %c0_i32, %c0_i32_0, %c0_i32_1 : i32, i32, i32
  }
  func.func @transform_2(%arg0: i32) -> (i32, i32) {
    %c0_i32 = arith.constant 0 : i32
    %c0_i32_0 = arith.constant 0 : i32
    %c0_i32_1 = arith.constant 0 : i32
    return %c0_i32, %c0_i32_0 : i32, i32
  }
  func.func @transform_3(%arg0: i32) -> (i32, i32) {
    %c0_i32 = arith.constant 0 : i32
    %c0_i32_0 = arith.constant 0 : i32
    %c0_i32_1 = arith.constant 0 : i32
    return %c0_i32, %c0_i32_0 : i32, i32
  }
  func.func @transform_4(%arg0: i32) -> (i32, i32, i32) {
    %c0_i32 = arith.constant 0 : i32
    %c0_i32_0 = arith.constant 0 : i32
    %c0_i32_1 = arith.constant 0 : i32
    %c0_i32_2 = arith.constant 0 : i32
    return %c0_i32, %c0_i32_0, %c0_i32_1 : i32, i32, i32
  }
  func.func @transform_5(%arg0: i32) -> (i32, i32) {
    %c0_i32 = arith.constant 0 : i32
    %c0_i32_0 = arith.constant 0 : i32
    %c0_i32_1 = arith.constant 0 : i32
    return %c0_i32, %c0_i32_0 : i32, i32
  }
  func.func @transform_6(%arg0: i32) -> (i32, i32) {
    %c0_i32 = arith.constant 0 : i32
    %c0_i32_0 = arith.constant 0 : i32
    %c0_i32_1 = arith.constant 0 : i32
    return %c0_i32, %c0_i32_0 : i32, i32
  }
  func.func @transform_7(%arg0: i32) -> (i32, i32, i32) {
    %c0_i32 = arith.constant 0 : i32
    %c0_i32_0 = arith.constant 0 : i32
    %c0_i32_1 = arith.constant 0 : i32
    %c0_i32_2 = arith.constant 0 : i32
    return %c0_i32, %c0_i32_0, %c0_i32_1 : i32, i32, i32
  }
  func.func @transform_8(%arg0: i32) -> (i32, i32) {
    %c0_i32 = arith.constant 0 : i32
    %c0_i32_0 = arith.constant 0 : i32
    %c0_i32_1 = arith.constant 0 : i32
    return %c0_i32, %c0_i32_0 : i32, i32
  }
  func.func @transform_9(%arg0: i32) -> (i32, i32) {
    %c0_i32 = arith.constant 0 : i32
    %c0_i32_0 = arith.constant 0 : i32
    %c0_i32_1 = arith.constant 0 : i32
    return %c0_i32, %c0_i32_0 : i32, i32
  }
  func.func @transform_10(%arg0: i32) -> (i32, i32, i32) {
    %c0_i32 = arith.constant 0 : i32
    %c0_i32_0 = arith.constant 0 : i32
    %c0_i32_1 = arith.constant 0 : i32
    return %arg0, %c0_i32, %c0_i32_0 : i32, i32, i32
  }
}

module attributes {stable_mosaic.version = 11 : i64} {
  func.func @_fc_head_kernel(%arg0: i32, %arg1: memref<2x15872xbf16, #tpu.memory_space<vmem>>, %arg2: memref<15872x128xbf16, #tpu.memory_space<vmem>>, %arg3: memref<1x128xf32, #tpu.memory_space<vmem>>, %arg4: memref<128x4xf32, #tpu.memory_space<vmem>>, %arg5: memref<1x4xf32, #tpu.memory_space<vmem>>, %arg6: memref<2x4xf32, #tpu.memory_space<vmem>>) attributes {dimension_semantics = [#tpu.dimension_semantics<arbitrary>], iteration_bounds = array<i64: 1>, scalar_prefetch = 0 : i64, scratch_operands = 0 : i64, tpu.core_type = #tpu.core_type<tc>, window_params = [{pipeline_mode = #tpu.pipeline_mode<synchronous>, transform_indices = @transform_0, window_bounds = array<i64: 2, 15872>}, {pipeline_mode = #tpu.pipeline_mode<synchronous>, transform_indices = @transform_1, window_bounds = array<i64: 15872, 128>}, {pipeline_mode = #tpu.pipeline_mode<synchronous>, transform_indices = @transform_2, window_bounds = array<i64: 1, 128>}, {pipeline_mode = #tpu.pipeline_mode<synchronous>, transform_indices = @transform_3, window_bounds = array<i64: 128, 4>}, {pipeline_mode = #tpu.pipeline_mode<synchronous>, transform_indices = @transform_4, window_bounds = array<i64: 1, 4>}, {pipeline_mode = #tpu.pipeline_mode<synchronous>, transform_indices = @transform_5, window_bounds = array<i64: 2, 4>}]} {
    %c0 = arith.constant 0 : index
    %c0_0 = arith.constant 0 : index
    %0 = vector.load %arg1[%c0, %c0_0] : memref<2x15872xbf16, #tpu.memory_space<vmem>>, vector<2x15872xbf16>
    %c0_1 = arith.constant 0 : index
    %c0_2 = arith.constant 0 : index
    %1 = vector.load %arg2[%c0_1, %c0_2] : memref<15872x128xbf16, #tpu.memory_space<vmem>>, vector<15872x128xbf16>
    %cst = arith.constant dense<0.000000e+00> : vector<2x128xf32>
    %2 = tpu.matmul %0, %1, %cst {dimension_numbers = #tpu.dot_dimension_numbers<[1], [0], [0], [1], [0, 0, 1, 1], [], []>} : vector<2x15872xbf16>, vector<15872x128xbf16>, vector<2x128xf32> -> vector<2x128xf32>
    %c0_3 = arith.constant 0 : index
    %c0_4 = arith.constant 0 : index
    %3 = vector.load %arg3[%c0_3, %c0_4] : memref<1x128xf32, #tpu.memory_space<vmem>>, vector<1x128xf32>
    %4 = vector.broadcast %3 : vector<1x128xf32> to vector<2x128xf32>
    %5 = arith.addf %2, %4 : vector<2x128xf32>
    %cst_5 = arith.constant 0.000000e+00 : f32
    %6 = vector.broadcast %cst_5 : f32 to vector<2x128xf32>
    %7 = arith.maximumf %5, %6 : vector<2x128xf32>
    %c0_6 = arith.constant 0 : index
    %c0_7 = arith.constant 0 : index
    %8 = vector.load %arg4[%c0_6, %c0_7] : memref<128x4xf32, #tpu.memory_space<vmem>>, vector<128x4xf32>
    %cst_8 = arith.constant dense<0.000000e+00> : vector<2x4xf32>
    %9 = tpu.matmul %7, %8, %cst_8 {dimension_numbers = #tpu.dot_dimension_numbers<[1], [0], [0], [1], [0, 0, 1, 1], [], []>} : vector<2x128xf32>, vector<128x4xf32>, vector<2x4xf32> -> vector<2x4xf32>
    %c0_9 = arith.constant 0 : index
    %c0_10 = arith.constant 0 : index
    %10 = vector.load %arg5[%c0_9, %c0_10] : memref<1x4xf32, #tpu.memory_space<vmem>>, vector<1x4xf32>
    %11 = vector.broadcast %10 : vector<1x4xf32> to vector<2x4xf32>
    %12 = arith.addf %9, %11 : vector<2x4xf32>
    %c0_11 = arith.constant 0 : index
    %c0_12 = arith.constant 0 : index
    %13 = vector.load %arg6[%c0_11, %c0_12] : memref<2x4xf32, #tpu.memory_space<vmem>>, vector<2x4xf32>
    tpu.vector_store %arg6[%c0_11, %c0_12], %12 {strides = array<i32>} : memref<2x4xf32, #tpu.memory_space<vmem>>, vector<2x4xf32>,
    return
  }
  func.func @transform_0(%arg0: i32) -> (i32, i32) {
    %c0_i32 = arith.constant 0 : i32
    %c0_i32_0 = arith.constant 0 : i32
    %c0_i32_1 = arith.constant 0 : i32
    return %c0_i32, %c0_i32_0 : i32, i32
  }
  func.func @transform_1(%arg0: i32) -> (i32, i32) {
    %c0_i32 = arith.constant 0 : i32
    %c0_i32_0 = arith.constant 0 : i32
    %c0_i32_1 = arith.constant 0 : i32
    return %c0_i32, %c0_i32_0 : i32, i32
  }
  func.func @transform_2(%arg0: i32) -> (i32, i32) {
    %c0_i32 = arith.constant 0 : i32
    %c0_i32_0 = arith.constant 0 : i32
    %c0_i32_1 = arith.constant 0 : i32
    return %c0_i32, %c0_i32_0 : i32, i32
  }
  func.func @transform_3(%arg0: i32) -> (i32, i32) {
    %c0_i32 = arith.constant 0 : i32
    %c0_i32_0 = arith.constant 0 : i32
    %c0_i32_1 = arith.constant 0 : i32
    return %c0_i32, %c0_i32_0 : i32, i32
  }
  func.func @transform_4(%arg0: i32) -> (i32, i32) {
    %c0_i32 = arith.constant 0 : i32
    %c0_i32_0 = arith.constant 0 : i32
    %c0_i32_1 = arith.constant 0 : i32
    return %c0_i32, %c0_i32_0 : i32, i32
  }
  func.func @transform_5(%arg0: i32) -> (i32, i32) {
    %c0_i32 = arith.constant 0 : i32
    %c0_i32_0 = arith.constant 0 : i32
    %c0_i32_1 = arith.constant 0 : i32
    return %c0_i32, %c0_i32_0 : i32, i32
  }
}

</mosaic_0001>

<bundles_post_ra>
// kernel: forward_pallas.2
= control target key start
LH: loop header
LB: loop body
LE: loop exit
PB: predicated region body
PF: predicated region fallthrough
CT: control target
= control target key end

     0   :  { %15 = vsyncpa [#allocation5], 0  ;;  %s12563_s0 = inlined_call_operand.vmem [shape: f32[2,506,22], index: 0, kind: input, shape index: {}]   ;;  %s12564_s1 = inlined_call_operand.hbm [shape: bf16[7,22,64], index: 1, kind: input, shape index: {}]   ;;  %s12565_s2 = inlined_call_operand.hbm [shape: f32[1,64], index: 2, kind: input, shape index: {}]   ;;  %s12566_s3 = inlined_call_operand.hbm [shape: f32[1,64], index: 3, kind: input, shape index: {}]   ;;  %s12567_s4 = inlined_call_operand.hbm [shape: bf16[5,64,128], index: 4, kind: input, shape index: {}]   ;;  %s12568_s5 = inlined_call_operand.hbm [shape: f32[1,128], index: 5, kind: input, shape index: {}]   ;;  %s12569_s6 = inlined_call_operand.hbm [shape: f32[1,128], index: 6, kind: input, shape index: {}]   ;;  %s12570_s7 = inlined_call_operand.hbm [shape: bf16[3,128,256], index: 7, kind: input, shape index: {}]   ;;  %s12571_s8 = inlined_call_operand.hbm [shape: f32[1,256], index: 8, kind: input, shape index: {}]   ;;  %s12572_s9 = inlined_call_operand.hbm [shape: f32[1,256], index: 9, kind: input, shape index: {}]   ;;  %s12573_s10 = inlined_call_operand.vmem [shape: bf16[2,62,256], index: 10, kind: output, shape index: {}]  }
   0x1   :  { %16 = vsyncpa [#allocation7], 0 }
   0x2   :  { %17 = vsyncpa [#allocation10], 0 }
   0x3   :  { %18 = vsyncpa [#allocation13], 0 }
   0x4   :  { %19 = vsyncpa [#allocation16], 0  ;;  %s11048_s13 = smov 0  }
   0x5 LB: > { %s10978_s14 = smov [#allocation6]   ;;  %s11054_s16 = sadd.s32 4294967295, %s10976_s13   ;;  %s10976_s13 = sphi %s11048_s13, %s25_s13  }
   0x6   : > { %s297_s15 = sshll.u32 %s10978_s14, 4  ;;  %p7965_p0 = scmp.ge.s32.totalorder %s10976_s13, 1  ;;  %s11059_s15 = int_to_ptr.vmem [resolvable:$true] %s297_s15 }
   0x7   : > { %p271_p1 = scmp.lt.s32.totalorder %s10976_s13, 3  ;;  %p12574_p2 = scmp.eq.s32.totalorder %s11054_s16, 0 }
   0x8   : > { %s10979_s18 = smov [#allocation9]   ;;  %s10980_s21 = smov [#allocation12]  }
   0x9   : > { %p11061_p3 = pnand %p7965_p0, %p271_p1  ;;  %s318_s19 = sshll.u32 %s10979_s18, 4  ;;  %s11067_s19 = int_to_ptr.vmem [resolvable:$true] %s318_s19 }
   0xa   : > { %s343_s22 = sshll.u32 %s10980_s21, 4  ;;  %s10981_s23 = smov [#allocation15]   ;;  %s11075_s22 = int_to_ptr.vmem [resolvable:$true] %s343_s22 }
   0xb   : > { %s12576_s17 = scalar_select %p11061_p3, 1, 0 }
   0xc   : > { %p10509_p4 = pneg %p11061_p3  ;;  %s11077_s24 = sshll.u32 %s10981_s23, 4  ;;  %s368_s24 = int_to_ptr.vmem [resolvable:$true] %s11077_s24 }
   0xd   : > { %s10698_s27 = scalar_lea.hbm %s12565_s2, 16 }
   0xe   : > { %p11071_p5 = pnand %p12574_p2, %p10509_p4  ;;  %p10699_p6 = scmp.ne.s32.totalorder %s12565_s2, %s10698_s27 }
   0xf   : > { %p10705_p10 = scmp.lt.u32.totalorder %s10698_s27, %s12565_s2 }
  0x10   : > { %p11087_p7 = pneg %p11071_p5 }
  0x12   : > { %p10701_p8 = pnand %p11087_p7, %p10699_p6 }
  0x14   : > { %p10702_p9 = pneg %p10701_p8 }
  0x16   : > { %p10707_p11 = pnand %p10705_p10, %p10702_p9 }
  0x18   : > { %10710 = shalt.err (!%p10707_p11)
}
  0x19   : > { %s10711_s14 = scalar_lea.vmem %s11059_s15, 16  ;;  %s10718_s18 = scalar_lea.vmem %s11059_s15, 32 }
  0x1a   : > { %p10712_p12 = scmp.ne.s32.totalorder %s11059_s15, %s10711_s14  ;;  %p10719_p1 = scmp.lt.s32.totalorder %s11059_s15, %s11059_s15 }
  0x1b   : > { %p10720_p4 = scmp.lt.s32.totalorder %s10718_s18, %s10711_s14 }
  0x1c   : > { %p10714_p13 = pnand %p10712_p12, %p11087_p7 }
  0x1d   : > { %p10721_p6 = por %p10720_p4, %p10719_p1 }
  0x1e   : > { %p10715_p0 = pneg %p10714_p13 }
  0x20   : > { %p10722_p8 = pnand %p10721_p6, %p10715_p0 }
  0x22   : > { %10725 = shalt.err (!%p10722_p8)
}
  0x23   : > { %10515 = dma.hbm_to_vmem [thread:$0]  (!%p11071_p5), %s12565_s2, 16, %s11059_s15, [#allocation7]  }
  0x24   : > { %s10726_s27 = scalar_lea.hbm %s12567_s4, 2560 }
  0x25   : > { %p10727_p9 = scmp.ne.s32.totalorder %s12567_s4, %s10726_s27  ;;  %p10733_p12 = scmp.lt.u32.totalorder %s10726_s27, %s12567_s4 }
  0x27   : > { %p10729_p10 = pnand %p10727_p9, %p11087_p7 }
  0x29   : > { %p10730_p11 = pneg %p10729_p10 }
  0x2b   : > { %p10735_p13 = pnand %p10733_p12, %p10730_p11 }
  0x2d   : > { %10738 = shalt.err (!%p10735_p13)
}
  0x2e   : > { %s10739_s15 = scalar_lea.vmem %s11067_s19, 2560  ;;  %p10747_p6 = scmp.lt.s32.totalorder %s11067_s19, %s11067_s19 }
  0x2f   : > { %p10740_p0 = scmp.ne.s32.totalorder %s11067_s19, %s10739_s15  ;;  %p10748_p8 = scmp.lt.s32.totalorder %s10739_s15, %s10739_s15 }
  0x31   : > { %p10742_p1 = pnand %p10740_p0, %p11087_p7  ;;  %p10749_p9 = por %p10748_p8, %p10747_p6 }
  0x33   : > { %p10743_p4 = pneg %p10742_p1 }
  0x35   : > { %p10750_p10 = pnand %p10749_p9, %p10743_p4 }
  0x37   : > { %10753 = shalt.err (!%p10750_p10)
}
  0x38   : > { %s10982_s14 = smov 64   ;;  %s10983_s18 = smov 4  }
  0x39   : > { %10521 = dma.hbm_to_vmem [thread:$0]  (!%p11071_p5), %s12567_s4, 2560, %s11067_s19, [#allocation10], %s10982_s14, %s10982_s14, %s10983_s18  }
  0x3a   : > { %s10754_s27 = scalar_lea.hbm %s12569_s6, 16 }
  0x3b   : > { %p10755_p11 = scmp.ne.s32.totalorder %s12569_s6, %s10754_s27  ;;  %p10761_p0 = scmp.lt.u32.totalorder %s10754_s27, %s12569_s6 }
  0x3d   : > { %p10757_p12 = pnand %p10755_p11, %p11087_p7 }
  0x3f   : > { %p10758_p13 = pneg %p10757_p12 }
  0x41   : > { %p10763_p1 = pnand %p10761_p0, %p10758_p13 }
  0x43   : > { %10766 = shalt.err (!%p10763_p1)
}
  0x44   : > { %s10767_s19 = scalar_lea.vmem %s11075_s22, 16  ;;  %s10774_s15 = scalar_lea.vmem %s11075_s22, 32 }
  0x45   : > { %p10768_p4 = scmp.ne.s32.totalorder %s11075_s22, %s10767_s19  ;;  %p10775_p9 = scmp.lt.s32.totalorder %s11075_s22, %s11075_s22 }
  0x46   : > { %p10776_p10 = scmp.lt.s32.totalorder %s10774_s15, %s10767_s19 }
  0x47   : > { %p10770_p6 = pnand %p10768_p4, %p11087_p7 }
  0x48   : > { %p10777_p11 = por %p10776_p10, %p10775_p9 }
  0x49   : > { %p10771_p8 = pneg %p10770_p6 }
  0x4b   : > { %p10778_p12 = pnand %p10777_p11, %p10771_p8 }
  0x4d   : > { %10781 = shalt.err (!%p10778_p12)
}
  0x4e   : > { %10527 = dma.hbm_to_vmem [thread:$0]  (!%p11071_p5), %s12569_s6, 16, %s11075_s22, [#allocation13]  }
  0x4f   : > { %s10782_s27 = scalar_lea.hbm %s12571_s8, 32 }
  0x50   : > { %p10783_p13 = scmp.ne.s32.totalorder %s12571_s8, %s10782_s27  ;;  %p10789_p4 = scmp.lt.u32.totalorder %s10782_s27, %s12571_s8 }
  0x52   : > { %p10785_p0 = pnand %p10783_p13, %p11087_p7 }
  0x54   : > { %p10786_p1 = pneg %p10785_p0 }
  0x56   : > { %p10791_p6 = pnand %p10789_p4, %p10786_p1 }
  0x58   : > { %10794 = shalt.err (!%p10791_p6)
}
  0x59   : > { %s10795_s19 = scalar_lea.vmem %s368_s24, 32  ;;  %p10803_p11 = scmp.lt.s32.totalorder %s368_s24, %s368_s24 }
  0x5a   : > { %p10796_p8 = scmp.ne.s32.totalorder %s368_s24, %s10795_s19  ;;  %p10804_p12 = scmp.lt.s32.totalorder %s10795_s19, %s10795_s19 }
  0x5c   : > { %p10798_p9 = pnand %p10796_p8, %p11087_p7  ;;  %p10805_p2 = por %p10804_p12, %p10803_p11 }
  0x5e   : > { %p10799_p10 = pneg %p10798_p9 }
  0x60   : > { %p10806_p3 = pnand %p10805_p2, %p10799_p10 }
  0x62   : > { %10809 = shalt.err (!%p10806_p3)
}
  0x63   : > { %10533 = dma.hbm_to_vmem [thread:$0]  (!%p11071_p5), %s12571_s8, 32, %s368_s24, [#allocation16]  }
  0x64   : > { %s10984_s21 = smov [#allocation4]   ;;  %s10985_s25 = smov [#allocation8]  }
  0x65   : > { %s283_s23 = sshll.u32 %s10984_s21, 4  ;;  %s308_s26 = sshll.u32 %s10985_s25, 4  ;;  %s284_s23 = int_to_ptr.vmem [resolvable:$true] %s283_s23  ;;  %s309_s26 = int_to_ptr.vmem [resolvable:$true] %s308_s26 }
  0x66   : > { %s10810_s29 = scalar_lea.hbm %s12564_s1, 1344 }
  0x67   : > { %p10811_p2 = scmp.ne.s32.totalorder %s12564_s1, %s10810_s29  ;;  %p10817_p0 = scmp.lt.u32.totalorder %s10810_s29, %s12564_s1 }
  0x69   : > { %p10813_p3 = pnand %p10811_p2, %p11087_p7 }
  0x6b   : > { %p10814_p13 = pneg %p10813_p3 }
  0x6d   : > { %p10819_p1 = pnand %p10817_p0, %p10814_p13 }
  0x6f   : > { %10822 = shalt.err (!%p10819_p1)
}
  0x70   : > { %s10823_s24 = scalar_lea.vmem %s284_s23, 1344  ;;  %p10831_p9 = scmp.lt.s32.totalorder %s284_s23, %s284_s23 }
  0x71   : > { %p10824_p4 = scmp.ne.s32.totalorder %s284_s23, %s10823_s24  ;;  %p10832_p10 = scmp.lt.s32.totalorder %s10823_s24, %s10823_s24 }
  0x73   : > { %p10826_p6 = pnand %p10824_p4, %p11087_p7  ;;  %p10833_p11 = por %p10832_p10, %p10831_p9 }
  0x75   : > { %p10827_p8 = pneg %p10826_p6 }
  0x77   : > { %p10834_p12 = pnand %p10833_p11, %p10827_p8 }
  0x79   : > { %10837 = shalt.err (!%p10834_p12)
}
  0x7a   : > { %10512 = dma.hbm_to_vmem [thread:$0]  (!%p11071_p5), %s12564_s1, 1344, %s284_s23, [#allocation5], %s10982_s14, %s10982_s14, %s10983_s18  }
  0x7b   : > { %s10838_s28 = scalar_lea.hbm %s12566_s3, 16 }
  0x7c   : > { %p10839_p2 = scmp.ne.s32.totalorder %s12566_s3, %s10838_s28  ;;  %p10845_p0 = scmp.lt.u32.totalorder %s10838_s28, %s12566_s3 }
  0x7e   : > { %p10841_p3 = pnand %p10839_p2, %p11087_p7 }
  0x80   : > { %p10842_p13 = pneg %p10841_p3 }
  0x82   : > { %p10847_p1 = pnand %p10845_p0, %p10842_p13 }
  0x84   : > { %10850 = shalt.err (!%p10847_p1)
}
  0x85   : > { %s10851_s22 = scalar_lea.vmem %s309_s26, 16  ;;  %s10858_s14 = scalar_lea.vmem %s309_s26, 32 }
  0x86   : > { %p10852_p4 = scmp.ne.s32.totalorder %s309_s26, %s10851_s22  ;;  %p10859_p9 = scmp.lt.s32.totalorder %s309_s26, %s309_s26 }
  0x87   : > { %p10860_p10 = scmp.lt.s32.totalorder %s10858_s14, %s10851_s22 }
  0x88   : > { %p10854_p6 = pnand %p10852_p4, %p11087_p7 }
  0x89   : > { %p10861_p11 = por %p10860_p10, %p10859_p9 }
  0x8a   : > { %p10855_p8 = pneg %p10854_p6 }
  0x8c   : > { %p10862_p12 = pnand %p10861_p11, %p10855_p8 }
  0x8e   : > { %10865 = shalt.err (!%p10862_p12)
}
  0x8f   : > { %10518 = dma.hbm_to_vmem [thread:$0]  (!%p11071_p5), %s12566_s3, 16, %s309_s26, [#allocation7]  }
  0x90   : > { %s10986_s24 = smov [#allocation11]   ;;  %s10987_s21 = smov [#allocation14]  }
  0x91   : > { %s332_s15 = sshll.u32 %s10986_s24, 4  ;;  %s353_s25 = sshll.u32 %s10987_s21, 4  ;;  %s333_s15 = int_to_ptr.vmem [resolvable:$true] %s332_s15  ;;  %s354_s25 = int_to_ptr.vmem [resolvable:$true] %s353_s25 }
  0x92   : > { %s10866_s29 = scalar_lea.hbm %s12568_s5, 16 }
  0x93   : > { %p10867_p2 = scmp.ne.s32.totalorder %s12568_s5, %s10866_s29  ;;  %p10873_p0 = scmp.lt.u32.totalorder %s10866_s29, %s12568_s5 }
  0x95   : > { %p10869_p3 = pnand %p10867_p2, %p11087_p7 }
  0x97   : > { %p10870_p13 = pneg %p10869_p3 }
  0x99   : > { %p10875_p1 = pnand %p10873_p0, %p10870_p13 }
  0x9b   : > { %10878 = shalt.err (!%p10875_p1)
}
  0x9c   : > { %s10879_s26 = scalar_lea.vmem %s333_s15, 16  ;;  %s10886_s14 = scalar_lea.vmem %s333_s15, 32 }
  0x9d   : > { %p10880_p4 = scmp.ne.s32.totalorder %s333_s15, %s10879_s26  ;;  %p10887_p9 = scmp.lt.s32.totalorder %s333_s15, %s333_s15 }
  0x9e   : > { %p10888_p10 = scmp.lt.s32.totalorder %s10886_s14, %s10879_s26 }
  0x9f   : > { %p10882_p6 = pnand %p10880_p4, %p11087_p7 }
  0xa0   : > { %p10889_p11 = por %p10888_p10, %p10887_p9 }
  0xa1   : > { %p10883_p8 = pneg %p10882_p6 }
  0xa3   : > { %p10890_p12 = pnand %p10889_p11, %p10883_p8 }
  0xa5   : > { %10893 = shalt.err (!%p10890_p12)
}
  0xa6   : > { %10524 = dma.hbm_to_vmem [thread:$0]  (!%p11071_p5), %s12568_s5, 16, %s333_s15, [#allocation10]  }
  0xa7   : > { %s10894_s27 = scalar_lea.hbm %s12570_s7, 6144 }
  0xa8   : > { %p10895_p2 = scmp.ne.s32.totalorder %s12570_s7, %s10894_s27  ;;  %p10901_p0 = scmp.lt.u32.totalorder %s10894_s27, %s12570_s7 }
  0xaa   : > { %p10897_p3 = pnand %p10895_p2, %p11087_p7 }
  0xac   : > { %p10898_p13 = pneg %p10897_p3 }
  0xae   : > { %p10903_p1 = pnand %p10901_p0, %p10898_p13 }
  0xb0   : > { %10906 = shalt.err (!%p10903_p1)
}
  0xb1   : > { %s10907_s19 = scalar_lea.vmem %s354_s25, 6144  ;;  %p10915_p9 = scmp.lt.s32.totalorder %s354_s25, %s354_s25 }
  0xb2   : > { %p10908_p4 = scmp.ne.s32.totalorder %s354_s25, %s10907_s19  ;;  %p10916_p10 = scmp.lt.s32.totalorder %s10907_s19, %s10907_s19 }
  0xb4   : > { %p10910_p6 = pnand %p10908_p4, %p11087_p7  ;;  %p10917_p11 = por %p10916_p10, %p10915_p9 }
  0xb6   : > { %p10911_p8 = pneg %p10910_p6 }
  0xb8   : > { %p10918_p12 = pnand %p10917_p11, %p10911_p8 }
  0xba   : > { %10921 = shalt.err (!%p10918_p12)
}
  0xbb   : > { %s10988_s15 = smov 128   ;;  %s10989_s22 = smov 8  }
  0xbc   : > { %10530 = dma.hbm_to_vmem [thread:$0]  (!%p11071_p5), %s12570_s7, 6144, %s354_s25, [#allocation13], %s10988_s15, %s10988_s15, %s10989_s22  }
  0xbd   : > { %s10990_s18 = smov [#allocation17]   ;;  %s10922_s27 = scalar_lea.hbm %s12572_s9, 32 }
  0xbe   : > { %s378_s23 = sshll.u32 %s10990_s18, 4  ;;  %p10923_p2 = scmp.ne.s32.totalorder %s12572_s9, %s10922_s27  ;;  %s379_s23 = int_to_ptr.vmem [resolvable:$true] %s378_s23 }
  0xbf   : > { %p10929_p0 = scmp.lt.u32.totalorder %s10922_s27, %s12572_s9 }
  0xc0   : > { %p10925_p3 = pnand %p10923_p2, %p11087_p7 }
  0xc2   : > { %p10926_p13 = pneg %p10925_p3 }
  0xc4   : > { %p10931_p1 = pnand %p10929_p0, %p10926_p13 }
  0xc6   : > { %10934 = shalt.err (!%p10931_p1)
}
  0xc7   : > { %s10935_s25 = scalar_lea.vmem %s379_s23, 32  ;;  %p10943_p9 = scmp.lt.s32.totalorder %s379_s23, %s379_s23 }
  0xc8   : > { %p10936_p4 = scmp.ne.s32.totalorder %s379_s23, %s10935_s25  ;;  %p10944_p10 = scmp.lt.s32.totalorder %s10935_s25, %s10935_s25 }
  0xca   : > { %p10938_p6 = pnand %p10936_p4, %p11087_p7  ;;  %p10945_p11 = por %p10944_p10, %p10943_p9 }
  0xcc   : > { %p10939_p8 = pneg %p10938_p6 }
  0xce   : > { %p10946_p12 = pnand %p10945_p11, %p10939_p8 }
  0xd0   : > { %10949 = shalt.err (!%p10946_p12)
}
  0xd1   : > { %10536 = dma.hbm_to_vmem [thread:$0]  (!%p11071_p5), %s12572_s9, 32, %s379_s23, [#allocation16]  }
  0xd2   : > { %p12579_p2 = scmp.ne.s32.totalorder %s12576_s17, 0 }
  0xd3   : > { %p12580_p3 = scmp.eq.s32.totalorder (!%p12579_p2), %s11054_s16, 0 }
  0xd4   : > { %399 = sbr.rel (%p12579_p2) target bundleno = 1573 (0x625), region = 60 }
  0xdb   : > { %10955 = dma.done.wait (%p12580_p3), [#allocation5], 1344   ;;  %p12581_p7 = pmov %p12580_p3 }
  0xdc   : > { %p12582_p13 = pmov %p12580_p3 }
  0xdd   : > { %10957 = vsyncadd (%p12581_p7), [#allocation5], 4294965952 }
  0xde   : > { %10959 = dma.done.wait (%p12582_p13), [#allocation7], 32   ;;  %p12583_p0 = pmov %p12580_p3 }
  0xe0   : > { %10961 = vsyncadd (%p12583_p0), [#allocation7], 4294967264  ;;  %p12584_p1 = pmov %p12583_p0 }
  0xe1   : > { %p12585_p5 = pmov %p12583_p0 }
  0xe2   : > { %10963 = dma.done.wait (%p12584_p1), [#allocation10], 2576  }
  0xe3   : > { %10965 = vsyncadd (%p12585_p5), [#allocation10], 4294964720  ;;  %p12586_p4 = pmov %p12583_p0 }
  0xe4   : > { %p12587_p6 = pmov %p12583_p0 }
  0xe5   : > { %10967 = dma.done.wait (%p12586_p4), [#allocation13], 6160  }
  0xe6   : > { %10969 = vsyncadd (%p12587_p6), [#allocation13], 4294961136  ;;  %p12588_p8 = pmov %p12583_p0 }
  0xe7   : > { %p12589_p9 = pmov %p12583_p0 }
  0xe8   : > { %10971 = dma.done.wait (%p12588_p8), [#allocation16], 64  }
  0xe9   : > { %10973 = vsyncadd (%p12589_p9), [#allocation16], 4294967232  ;;  %p469_p10 = scmp.lt.s32.totalorder %s11054_s16, 1  ;;  %v10578_v0 = vld [vmem:[#allocation4 + $0xc] sm:$0xff]   ;;  %vm647_vm0 = vcmask 1042432   ;;  %vm622_vm1 = vcmask 179200  }
  0xea   : > { %v10579_v1 = vld [vmem:[#allocation4 + $0x14] ss:$0 sps:$4 sm:$0x77]   ;;  %9069 = vmatprep.subr.bf16.mxu0 %v10578_v0  ;;  %9109 = vmatprep.subr.bf16.mxu1 %v10578_v0  ;;  %v10580_v9 = vld [vmem:[#allocation4] sm:$0xff]   ;;  %v10582_v28 = vld [vmem:[#allocation4 + $0x18] sm:$0xff]   ;;  %vm480_vm2 = vcmask 517120  }
  0xeb   : > { %s12591_s16 = smov (!%p469_p10, %s11054_s16), 1  ;;  %9070 = vmatpush3.bf16.msra.mxu0 %v10578_v0  ;;  %9110 = vmatpush3.bf16.msra.mxu1 %v10578_v0  ;;  %v649_v5 = vsel %vm647_vm0, %v10579_v1, 0  ;;  %v10581_v27 = vld [vmem:[#allocation4 + $0x8] ss:$0 sps:$4 sm:$0x77]   ;;  %vm2753_vm3 = vcmask 523264  }
  0xec   : > { %s8659_s17 = sshll.u32 %s12591_s16, 9  ;;  %10445 = vmatprep.subr.msk.bf16.mxu0 %vm647_vm0, %v10579_v1  ;;  %10447 = vmatprep.subr.msk.bf16.mxu1 %vm647_vm0, %v10579_v1  ;;  %v782_v32 = vsel %vm647_vm0, %v10581_v27, 0  ;;  %v10583_v0 = vld [vmem:[#allocation4 + $0x20] ss:$0 sps:$4 sm:$0x77]   ;;  %vm2769_vm4 = vcmask 520192  }
  0xed   : > { %s11301_s22 = scalar_lea.vmem %s12563_s0, %s8659_s17  ;;  %s8660_s26 = sshll.u32 %s12591_s16, 6 }
  0xee   : > { %v8005_v2 = vld [vmem:[%s11301_s22 + $0x1] ss:$2 sm:$0xff]  ;;  %v8006_v3 = vld [vmem:[%s11301_s22 + $0x11] ss:$2 sm:$0xff]  ;;  %v8021_v4 = vld [vmem:[%s11301_s22 + $0x2] ss:$2 sm:$0xff]  ;;  %s12503_s23 = scalar_lea.vmem %s12573_s10, %s8660_s26 }
  0xef   : > { %v11307_v6 = vpack.c.bf16 %v8006_v3, %v8005_v2  ;;  %v8022_v7 = vld [vmem:[%s11301_s22 + $0x12] ss:$2 sm:$0xff]  ;;  %v8007_v8 = vld [vmem:[%s11301_s22 + $0x21] ss:$2 sm:$0xff]  ;;  %v8008_v11 = vld [vmem:[%s11301_s22 + $0x31] ss:$2 sm:$0xff]  ;;  %9072 = vmatpush3.bf16.msra.mxu0 %v649_v5  ;;  %9112 = vmatpush3.bf16.msra.mxu1 %v649_v5 }
  0xf0   : > { %v11313_v10 = vpack.c.bf16 %v8022_v7, %v8021_v4  ;;  %v8023_v12 = vld [vmem:[%s11301_s22 + $0x22] ss:$2 sm:$0xff]  ;;  %v8024_v13 = vld [vmem:[%s11301_s22 + $0x32] ss:$2 sm:$0xff]  ;;  %v8009_v14 = vld [vmem:[%s11301_s22 + $0x41] ss:$2 sm:$0xff]  ;;  %v11323_v15 = vpack.c.bf16 %v8008_v11, %v8007_v8  ;;  %9089 = vmatprep.subr.bf16.mxu0 %v10580_v9  ;;  %9129 = vmatprep.subr.bf16.mxu1 %v10580_v9 }
  0xf1   : > { %9073 = vmatprep.mubr.msk.bf16.mxu0 %vm622_vm1, %v11307_v6  ;;  %v11325_v16 = vpack.c.bf16 %v8024_v13, %v8023_v12  ;;  %v8010_v17 = vld [vmem:[%s11301_s22 + $0x51] ss:$2 sm:$0xff]  ;;  %v8025_v18 = vld [vmem:[%s11301_s22 + $0x42] ss:$2 sm:$0xff]  ;;  %v8026_v19 = vld [vmem:[%s11301_s22 + $0x52] ss:$2 sm:$0xff] }
  0xf2   : > { %9113 = vmatprep.mubr.msk.bf16.mxu1 %vm622_vm1, %v11313_v10  ;;  %v11330_v20 = vpack.c.bf16 %v8010_v17, %v8009_v14  ;;  %v11332_v21 = vpack.c.bf16 %v8026_v19, %v8025_v18  ;;  %v8011_v22 = vld [vmem:[%s11301_s22 + $0x61] ss:$2 sm:$0xff]  ;;  %v8012_v23 = vld [vmem:[%s11301_s22 + $0x71] ss:$2 sm:$0xff]  ;;  %9074 = vmatmul.mubr.msk.bf16.vlgmr.msra.gmra.mrb[0].mxu0 %vm622_vm1, %v11323_v15  ;;  %v8027_v24 = vld [vmem:[%s11301_s22 + $0x62] ss:$2 sm:$0xff] }
  0xf3   : > { %9114 = vmatmul.mubr.msk.bf16.vlgmr.msra.gmra.mrb[0].mxu1 %vm622_vm1, %v11325_v16  ;;  %v8028_v25 = vld [vmem:[%s11301_s22 + $0x72] ss:$2 sm:$0xff]  ;;  %9090 = vmatpush3.bf16.msra.mxu0 %v10580_v9  ;;  %v8013_v26 = vld [vmem:[%s11301_s22 + $0x81] ss:$2 sm:$0xff]  ;;  %v8014_v29 = vld [vmem:[%s11301_s22 + $0x91] ss:$2 sm:$0xff]  ;;  %v11353_v33 = vpack.c.bf16 %v8012_v23, %v8011_v22 }
  0xf4   : > { %9130 = vmatpush3.bf16.msra.mxu1 %v10580_v9  ;;  %9077 = vmatprep.mubr.msk.bf16.mxu0 %vm622_vm1, %v11330_v20  ;;  %v8029_v30 = vld [vmem:[%s11301_s22 + $0x82] ss:$2 sm:$0xff]  ;;  %v8030_v31 = vld [vmem:[%s11301_s22 + $0x92] ss:$2 sm:$0xff]  ;;  %v11355_v34 = vpack.c.bf16 %v8028_v25, %v8027_v24  ;;  %v11357_v35 = vpack.c.bf16 %v8014_v29, %v8013_v26  ;;  %v8015_v37 = vld [vmem:[%s11301_s22 + $0xa1] ss:$2 sm:$0xff] }
  0xf5   : > { %9117 = vmatprep.mubr.msk.bf16.mxu1 %vm622_vm1, %v11332_v21  ;;  %10446 = vmatprep.subr.msk.bf16.mxu0 %vm647_vm0, %v10581_v27  ;;  %v11359_v36 = vpack.c.bf16 %v8030_v31, %v8029_v30  ;;  %v8016_v38 = vld [vmem:[%s11301_s22 + $0xb1] ss:$2 sm:$0xff]  ;;  %v8031_v39 = vld [vmem:[%s11301_s22 + $0xa2] ss:$2 sm:$0xff]  ;;  %v8032_v40 = vld [vmem:[%s11301_s22 + $0xb2] ss:$2 sm:$0xff] }
  0xf6   : > { %10448 = vmatprep.subr.msk.bf16.mxu1 %vm647_vm0, %v10581_v27  ;;  %v8017_v41 = vld [vmem:[%s11301_s22 + $0xc1] ss:$2 sm:$0xff]  ;;  %v8018_v42 = vld [vmem:[%s11301_s22 + $0xd1] ss:$2 sm:$0xff]  ;;  %v8033_v43 = vld [vmem:[%s11301_s22 + $0xc2] ss:$2 sm:$0xff]  ;;  %v566_v45 = vpack.c.bf16 %v8016_v38, %v8015_v37  ;;  %v11377_v46 = vpack.c.bf16 %v8032_v40, %v8031_v39 }
  0xf7   : > { %9092 = vmatpush3.bf16.msra.mxu0 %v782_v32  ;;  %v8034_v44 = vld [vmem:[%s11301_s22 + $0xd2] ss:$2 sm:$0xff]  ;;  %v567_v47 = vpack.c.bf16 %v8018_v42, %v8017_v41  ;;  %v8019_v49 = vld [vmem:[%s11301_s22 + $0xe1] ss:$2 sm:$0xff]  ;;  %v8035_v51 = vld [vmem:[%s11301_s22 + $0xe2] ss:$2 sm:$0xff] }
  0xf8   : > { %9132 = vmatpush3.bf16.msra.mxu1 %v782_v32  ;;  %9149 = vmatprep.subr.bf16.mxu0 %v10582_v28  ;;  %v11379_v48 = vpack.c.bf16 %v8034_v44, %v8033_v43  ;;  %v8020_v50 = vld [vmem:[%s11301_s22 + $0xf1] ss:$2 sm:$0x1f]  ;;  %v8036_v52 = vld [vmem:[%s11301_s22 + $0xf2] ss:$2 sm:$0x1f] }
  0xf9   : > { %9169 = vmatprep.subr.bf16.mxu1 %v10582_v28  ;;  %v490_v53 = vld [vmem:[%s11301_s22] ss:$2 sm:$0xff]  ;;  %v7990_v54 = vld [vmem:[%s11301_s22 + $0x10] ss:$2 sm:$0xff]  ;;  %v568_v55 = vpack.c.bf16 %v8020_v50, %v8019_v49  ;;  %v11393_v56 = vpack.c.bf16 %v8036_v52, %v8035_v51  ;;  %v1153_v5 = vsel %vm647_vm0, %v10583_v0, 0 }
  0xfa   : > { %9078 = vmatmul.mubr.msk.bf16.gmra.mrb[4].mxu0 %vm622_vm1, %v11353_v33  ;;  %v521_v57 = vpack.c.bf16 %v7990_v54, %v490_v53  ;;  %v7991_v58 = vld [vmem:[%s11301_s22 + $0x20] ss:$2 sm:$0xff]  ;;  %v7992_v59 = vld [vmem:[%s11301_s22 + $0x30] ss:$2 sm:$0xff]  ;;  %v8073_v19 = vld [vmem:[%s11301_s22 + $0x3] ss:$2 sm:$0xff] }
  0xfb   : > { %9118 = vmatmul.mubr.msk.bf16.gmra.mrb[4].mxu1 %vm622_vm1, %v11355_v34  ;;  %9081 = vmatprep.mubr.msk.bf16.mxu0 %vm622_vm1, %v11357_v35  ;;  %v7993_v60 = vld [vmem:[%s11301_s22 + $0x40] ss:$2 sm:$0xff]  ;;  %v7994_v61 = vld [vmem:[%s11301_s22 + $0x50] ss:$2 sm:$0xff]  ;;  %v522_v62 = vpack.c.bf16 %v7992_v59, %v7991_v58  ;;  %v8075_v24 = vld [vmem:[%s11301_s22 + $0x23] ss:$2 sm:$0xff] }
  0xfc   : > { %9121 = vmatprep.mubr.msk.bf16.mxu1 %vm622_vm1, %v11359_v36  ;;  %v523_v63 = vpack.c.bf16 %v7994_v61, %v7993_v60  ;;  %v7995_v1 = vld [vmem:[%s11301_s22 + $0x60] ss:$2 sm:$0xff]  ;;  %v7996_v2 = vld [vmem:[%s11301_s22 + $0x70] ss:$2 sm:$0xff]  ;;  %v8076_v25 = vld [vmem:[%s11301_s22 + $0x33] ss:$2 sm:$0xff] }
  0xfd   : > { %v7997_v3 = vld [vmem:[%s11301_s22 + $0x80] ss:$2 sm:$0xff]  ;;  %v7998_v4 = vld [vmem:[%s11301_s22 + $0x90] ss:$2 sm:$0xff]  ;;  %v524_v7 = vpack.c.bf16 %v7996_v2, %v7995_v1  ;;  %v8077_v26 = vld [vmem:[%s11301_s22 + $0x43] ss:$2 sm:$0xff] }
  0xfe   : > { %v525_v8 = vpack.c.bf16 %v7998_v4, %v7997_v3  ;;  %v7999_v9 = vld [vmem:[%s11301_s22 + $0xa0] ss:$2 sm:$0xff]  ;;  %v8000_v11 = vld [vmem:[%s11301_s22 + $0xb0] ss:$2 sm:$0xff]  ;;  %v8078_v27 = vld [vmem:[%s11301_s22 + $0x53] ss:$2 sm:$0xff] }
  0xff   : > { %v8001_v12 = vld [vmem:[%s11301_s22 + $0xc0] ss:$2 sm:$0xff]  ;;  %v8002_v13 = vld [vmem:[%s11301_s22 + $0xd0] ss:$2 sm:$0xff]  ;;  %v526_v14 = vpack.c.bf16 %v8000_v11, %v7999_v9  ;;  %v1137_v30 = vpack.c.bf16 %v8078_v27, %v8077_v26  ;;  %v8079_v31 = vld [vmem:[%s11301_s22 + $0x63] ss:$2 sm:$0xff] }
 0x100   : > { %v8003_v17 = vld [vmem:[%s11301_s22 + $0xe0] ss:$2 sm:$0xff]  ;;  %v8004_v18 = vld [vmem:[%s11301_s22 + $0xf0] ss:$2 sm:$0x1f] }
 0x101   : > { %v528_v22 = vpack.c.bf16 %v8004_v18, %v8003_v17  ;;  %v10585_v29 = vld [vmem:[#allocation4 + $0x2c] ss:$0 sps:$4 sm:$0x77]   ;;  %v8080_v32 = vld [vmem:[%s11301_s22 + $0x73] ss:$2 sm:$0xff] }
 0x102   : > { %9082 = vmatmul.mubr.msk.bf16.gmra.mrb[8].mxu0 %vm622_vm1, %v566_v45  ;;  %v1459_v37 = vsel %vm647_vm0, %v10585_v29, 0  ;;  %v8084_v39 = vld [vmem:[%s11301_s22 + $0xb3] ss:$2 sm:$0xff]  ;;  %v8085_v40 = vld [vmem:[%s11301_s22 + $0xc3] ss:$2 sm:$0xff] }
 0x103   : > { %9122 = vmatmul.mubr.msk.bf16.gmra.mrb[8].mxu1 %vm622_vm1, %v11377_v46  ;;  %9085 = vmatprep.mubr.msk.bf16.mxu0 %vm622_vm1, %v567_v47  ;;  %v8086_v41 = vld [vmem:[%s11301_s22 + $0xd3] ss:$2 sm:$0xff]  ;;  %v8107_v44 = vld [vmem:[%s11301_s22 + $0x4] ss:$2 sm:$0xff]  ;;  %v8112_v51 = vld [vmem:[%s11301_s22 + $0x54] ss:$2 sm:$0xff] }
 0x104   : > { %9125 = vmatprep.mubr.msk.bf16.mxu1 %vm622_vm1, %v11379_v48  ;;  %v1141_v43 = vpack.c.bf16 %v8086_v41, %v8085_v40  ;;  %v8111_v50 = vld [vmem:[%s11301_s22 + $0x44] ss:$2 sm:$0xff]  ;;  %v10587_v54 = vld [vmem:[#allocation4 + $0x38] ss:$0 sps:$4 sm:$0x77]   ;;  %v10588_v60 = vld [vmem:[#allocation4 + $0x3c] sm:$0xff]  }
 0x105   : > { %v1443_v53 = vpack.c.bf16 %v8112_v51, %v8111_v50  ;;  %v8116_v58 = vld [vmem:[%s11301_s22 + $0x94] ss:$2 sm:$0xff]  ;;  %v1765_v59 = vsel %vm647_vm0, %v10587_v54, 0  ;;  %v8119_v1 = vld [vmem:[%s11301_s22 + $0xc4] ss:$2 sm:$0xff] }
 0x106   : > { %v8120_v2 = vld [vmem:[%s11301_s22 + $0xd4] ss:$2 sm:$0xff]  ;;  %v10590_v26 = vld [vmem:[#allocation4 + $0x48] sm:$0xff]  }
 0x107   : > { %v1447_v4 = vpack.c.bf16 %v8120_v2, %v8119_v1  ;;  %v8177_v40 = vld [vmem:[%s11301_s22 + $0x26] ss:$2 sm:$0xff]  ;;  %v8178_v41 = vld [vmem:[%s11301_s22 + $0x36] ss:$2 sm:$0xff]  ;;  %v8211_v1 = vld [vmem:[%s11301_s22 + $0x27] ss:$2 sm:$0xff] }
 0x108   : > { %v10592_v50 = vld [vmem:[#allocation4 + $0xc] sm:$0xff]   ;;  %v8212_v2 = vld [vmem:[%s11301_s22 + $0x37] ss:$2 sm:$0xff] }
 0x10a   : > { %9086 = vmatmul.mubr.msk.bf16.gmra.mrb[12].mxu0 %vm622_vm1, %v568_v55 }
 0x10b   : > { %9126 = vmatmul.mubr.msk.bf16.gmra.mrb[12].mxu1 %vm622_vm1, %v11393_v56  ;;  %9093 = vmatprep.mubr.msk.bf16.mxu0 %vm622_vm1, %v521_v57  ;;  %v8115_v57 = vld [vmem:[%s11301_s22 + $0x84] ss:$2 sm:$0xff] }
 0x10c   : > { %9133 = vmatprep.mubr.msk.bf16.mxu1 %vm622_vm1, %v11307_v6  ;;  %v10584_v6 = vld [vmem:[#allocation4 + $0x24] sm:$0xff]  }
 0x112   : > { %9094 = vmatmul.mubr.msk.bf16.vlgmr.msra.gmra.mrb[0].mxu0 %vm622_vm1, %v522_v62  ;;  %v1445_v62 = vpack.c.bf16 %v8116_v58, %v8115_v57 }
 0x113   : > { %9134 = vmatmul.mubr.msk.bf16.vlgmr.msra.gmra.mrb[0].mxu1 %vm622_vm1, %v11323_v15  ;;  %9150 = vmatpush3.bf16.msra.mxu0 %v10582_v28  ;;  %v527_v15 = vpack.c.bf16 %v8002_v13, %v8001_v12  ;;  %v8143_v12 = vld [vmem:[%s11301_s22 + $0x25] ss:$2 sm:$0xff]  ;;  %v8144_v13 = vld [vmem:[%s11301_s22 + $0x35] ss:$2 sm:$0xff] }
 0x114   : > { %9170 = vmatpush3.bf16.msra.mxu1 %v10582_v28  ;;  %9097 = vmatprep.mubr.msk.bf16.mxu0 %vm622_vm1, %v523_v63  ;;  %v1136_v28 = vpack.c.bf16 %v8076_v25, %v8075_v24  ;;  %v8117_v63 = vld [vmem:[%s11301_s22 + $0xa4] ss:$2 sm:$0xff]  ;;  %v1748_v17 = vpack.c.bf16 %v8144_v13, %v8143_v12  ;;  %v8150_v24 = vld [vmem:[%s11301_s22 + $0x95] ss:$2 sm:$0xff] }
 0x115   : > { %9137 = vmatprep.mubr.msk.bf16.mxu1 %vm622_vm1, %v11330_v20  ;;  %10449 = vmatprep.subr.msk.bf16.mxu0 %vm647_vm0, %v10583_v0  ;;  %v8074_v20 = vld [vmem:[%s11301_s22 + $0x13] ss:$2 sm:$0xff] }
 0x116   : > { %10450 = vmatprep.subr.msk.bf16.mxu1 %vm647_vm0, %v10583_v0  ;;  %v1135_v23 = vpack.c.bf16 %v8074_v20, %v8073_v19  ;;  %v8118_v0 = vld [vmem:[%s11301_s22 + $0xb4] ss:$2 sm:$0xff]  ;;  %v10589_v19 = vld [vmem:[#allocation4 + $0x44] ss:$0 sps:$4 sm:$0x77]  }
 0x117   : > { %9152 = vmatpush3.bf16.msra.mxu0 %v1153_v5  ;;  %v1446_v3 = vpack.c.bf16 %v8118_v0, %v8117_v63  ;;  %v8147_v20 = vld [vmem:[%s11301_s22 + $0x65] ss:$2 sm:$0xff]  ;;  %v2071_v25 = vsel %vm647_vm0, %v10589_v19, 0 }
 0x118   : > { %9172 = vmatpush3.bf16.msra.mxu1 %v1153_v5  ;;  %9189 = vmatprep.subr.bf16.mxu0 %v10584_v6  ;;  %v8121_v5 = vld [vmem:[%s11301_s22 + $0xe4] ss:$2 sm:$0xff]  ;;  %v8218_v12 = vld [vmem:[%s11301_s22 + $0x97] ss:$2 sm:$0xff] }
 0x119   : > { %9209 = vmatprep.subr.bf16.mxu1 %v10584_v6 }
 0x11a   : > { %9098 = vmatmul.mubr.msk.bf16.gmra.mrb[4].mxu0 %vm622_vm1, %v524_v7  ;;  %v8141_v7 = vld [vmem:[%s11301_s22 + $0x5] ss:$2 sm:$0xff] }
 0x11b   : > { %9138 = vmatmul.mubr.msk.bf16.gmra.mrb[4].mxu1 %vm622_vm1, %v11353_v33  ;;  %9101 = vmatprep.mubr.msk.bf16.mxu0 %vm622_vm1, %v525_v8  ;;  %v10586_v33 = vld [vmem:[#allocation4 + $0x30] sm:$0xff]  }
 0x11c   : > { %9141 = vmatprep.mubr.msk.bf16.mxu1 %vm622_vm1, %v11357_v35  ;;  %v8082_v35 = vld [vmem:[%s11301_s22 + $0x93] ss:$2 sm:$0xff] }
 0x11d   : > { %v8142_v8 = vld [vmem:[%s11301_s22 + $0x15] ss:$2 sm:$0xff] }
 0x11e   : > { %v1747_v11 = vpack.c.bf16 %v8142_v8, %v8141_v7  ;;  %v10593_v7 = vld [vmem:[#allocation4 + $0x14] ss:$0 sps:$4 sm:$0x77]   ;;  %v8215_v8 = vld [vmem:[%s11301_s22 + $0x67] ss:$2 sm:$0xff] }
 0x11f   : > { %v2931_v13 = vsel %vm647_vm0, %v10593_v7, 0 }
 0x122   : > { %9102 = vmatmul.mubr.msk.bf16.gmra.mrb[8].mxu0 %vm622_vm1, %v526_v14  ;;  %v8145_v14 = vld [vmem:[%s11301_s22 + $0x45] ss:$2 sm:$0xff] }
 0x123   : > { %9142 = vmatmul.mubr.msk.bf16.gmra.mrb[8].mxu1 %vm622_vm1, %v566_v45  ;;  %9105 = vmatprep.mubr.msk.bf16.mxu0 %vm622_vm1, %v527_v15  ;;  %v8108_v45 = vld [vmem:[%s11301_s22 + $0x14] ss:$2 sm:$0xff]  ;;  %v8146_v15 = vld [vmem:[%s11301_s22 + $0x55] ss:$2 sm:$0xff] }
 0x124   : > { %9145 = vmatprep.mubr.msk.bf16.mxu1 %vm622_vm1, %v567_v47  ;;  %v1441_v49 = vpack.c.bf16 %v8108_v45, %v8107_v44  ;;  %v1749_v18 = vpack.c.bf16 %v8146_v15, %v8145_v14  ;;  %v10591_v44 = vld [vmem:[#allocation4 + $0x50] ss:$0 sps:$4 sm:$0x77]   ;;  %v10594_v14 = vld [vmem:[#allocation4] sm:$0xff]  }
 0x125   : > { %v8181_v45 = vld [vmem:[%s11301_s22 + $0x66] ss:$2 sm:$0xff] }
 0x12a   : > { %9106 = vmatmul.mubr.msk.bf16.gmra.mrb[12].mxu0 %vm622_vm1, %v528_v22  ;;  %v8148_v22 = vld [vmem:[%s11301_s22 + $0x75] ss:$2 sm:$0xff] }
 0x12b   : > { %9146 = vmatmul.mubr.msk.bf16.gmra.mrb[12].mxu1 %vm622_vm1, %v568_v55  ;;  %9153 = vmatprep.mubr.msk.bf16.mxu0 %vm622_vm1, %v11313_v10  ;;  %v8081_v10 = vld [vmem:[%s11301_s22 + $0x83] ss:$2 sm:$0xff]  ;;  %v8113_v55 = vld [vmem:[%s11301_s22 + $0x64] ss:$2 sm:$0xff]  ;;  %v1750_v27 = vpack.c.bf16 %v8148_v22, %v8147_v20 }
 0x12c   : > { %9173 = vmatprep.mubr.msk.bf16.mxu1 %vm622_vm1, %v1135_v23  ;;  %v1139_v38 = vpack.c.bf16 %v8082_v35, %v8081_v10  ;;  %v8155_v35 = vld [vmem:[%s11301_s22 + $0xe5] ss:$2 sm:$0xff] }
 0x12d   : > { %v8221_v20 = vld [vmem:[%s11301_s22 + $0xc7] ss:$2 sm:$0xff]  ;;  %v8222_v22 = vld [vmem:[%s11301_s22 + $0xd7] ss:$2 sm:$0xff] }
 0x132   : > { %9154 = vmatmul.mubr.msk.bf16.vlgmr.msra.gmra.mrb[0].mxu0 %vm622_vm1, %v11325_v16  ;;  %v1138_v16 = vpack.c.bf16 %v8080_v32, %v8079_v31  ;;  %v8153_v31 = vld [vmem:[%s11301_s22 + $0xc5] ss:$2 sm:$0xff]  ;;  %v8154_v32 = vld [vmem:[%s11301_s22 + $0xd5] ss:$2 sm:$0xff] }
 0x133   : > { %9174 = vmatmul.mubr.msk.bf16.vlgmr.msra.gmra.mrb[0].mxu1 %vm622_vm1, %v1136_v28  ;;  %9190 = vmatpush3.bf16.msra.mxu0 %v10584_v6  ;;  %v1753_v10 = vpack.c.bf16 %v8154_v32, %v8153_v31 }
 0x134   : > { %9210 = vmatpush3.bf16.msra.mxu1 %v10584_v6  ;;  %9157 = vmatprep.mubr.msk.bf16.mxu0 %vm622_vm1, %v11332_v21  ;;  %v8083_v21 = vld [vmem:[%s11301_s22 + $0xa3] ss:$2 sm:$0xff]  ;;  %v8122_v6 = vld [vmem:[%s11301_s22 + $0xf4] ss:$2 sm:$0x1f] }
 0x135   : > { %9177 = vmatprep.mubr.msk.bf16.mxu1 %vm622_vm1, %v1137_v30  ;;  %10451 = vmatprep.subr.msk.bf16.mxu0 %vm647_vm0, %v10585_v29  ;;  %v1140_v42 = vpack.c.bf16 %v8084_v39, %v8083_v21  ;;  %v1448_v9 = vpack.c.bf16 %v8122_v6, %v8121_v5  ;;  %v2360_v5 = vpack.c.bf16 %v8212_v2, %v8211_v1  ;;  %v8290_v1 = vld [vmem:[%s11301_s22 + $0x1cc] ss:$2 sm:$0xff] }
 0x136   : > { %10452 = vmatprep.subr.msk.bf16.mxu1 %vm647_vm0, %v10585_v29  ;;  %v8151_v29 = vld [vmem:[%s11301_s22 + $0xa5] ss:$2 sm:$0xff] }
 0x137   : > { %9192 = vmatpush3.bf16.msra.mxu0 %v1459_v37 }
 0x138   : > { %9212 = vmatpush3.bf16.msra.mxu1 %v1459_v37  ;;  %9229 = vmatprep.subr.bf16.mxu0 %v10586_v33  ;;  %v8156_v37 = vld [vmem:[%s11301_s22 + $0xf5] ss:$2 sm:$0x1f] }
 0x139   : > { %9249 = vmatprep.subr.bf16.mxu1 %v10586_v33  ;;  %v1754_v21 = vpack.c.bf16 %v8156_v37, %v8155_v35  ;;  %v8264_v35 = vld [vmem:[%s11301_s22 + $0x12b] ss:$2 sm:$0xff]  ;;  %v8279_v37 = vld [vmem:[%s11301_s22 + $0x11c] ss:$2 sm:$0xff] }
 0x13a   : > { %9158 = vmatmul.mubr.msk.bf16.gmra.mrb[4].mxu0 %vm622_vm1, %v11355_v34  ;;  %v8087_v34 = vld [vmem:[%s11301_s22 + $0xe3] ss:$2 sm:$0xff] }
 0x13b   : > { %9178 = vmatmul.mubr.msk.bf16.gmra.mrb[4].mxu1 %vm622_vm1, %v1138_v16  ;;  %9161 = vmatprep.mubr.msk.bf16.mxu0 %vm622_vm1, %v11359_v36  ;;  %v8088_v36 = vld [vmem:[%s11301_s22 + $0xf3] ss:$2 sm:$0x1f] }
 0x13c   : > { %9181 = vmatprep.mubr.msk.bf16.mxu1 %vm622_vm1, %v1139_v38  ;;  %v1142_v47 = vpack.c.bf16 %v8088_v36, %v8087_v34  ;;  %v2054_v34 = vpack.c.bf16 %v8178_v41, %v8177_v40  ;;  %v8282_v40 = vld [vmem:[%s11301_s22 + $0x14c] ss:$2 sm:$0xff] }
 0x142   : > { %9162 = vmatmul.mubr.msk.bf16.gmra.mrb[8].mxu0 %vm622_vm1, %v11377_v46  ;;  %v8109_v46 = vld [vmem:[%s11301_s22 + $0x24] ss:$2 sm:$0xff] }
 0x143   : > { %9182 = vmatmul.mubr.msk.bf16.gmra.mrb[8].mxu1 %vm622_vm1, %v1140_v42  ;;  %9165 = vmatprep.mubr.msk.bf16.mxu0 %vm622_vm1, %v11379_v48  ;;  %v8110_v48 = vld [vmem:[%s11301_s22 + $0x34] ss:$2 sm:$0xff] }
 0x144   : > { %9185 = vmatprep.mubr.msk.bf16.mxu1 %vm622_vm1, %v1141_v43  ;;  %v1442_v52 = vpack.c.bf16 %v8110_v48, %v8109_v46  ;;  %v8184_v46 = vld [vmem:[%s11301_s22 + $0x96] ss:$2 sm:$0xff]  ;;  %v2377_v48 = vsel %vm647_vm0, %v10591_v44, 0 }
 0x14a   : > { %9166 = vmatmul.mubr.msk.bf16.gmra.mrb[12].mxu0 %vm622_vm1, %v11393_v56  ;;  %v8114_v56 = vld [vmem:[%s11301_s22 + $0x74] ss:$2 sm:$0xff] }
 0x14b   : > { %9186 = vmatmul.mubr.msk.bf16.gmra.mrb[12].mxu1 %vm622_vm1, %v1142_v47  ;;  %9193 = vmatprep.mubr.msk.bf16.mxu0 %vm622_vm1, %v1135_v23  ;;  %v1444_v61 = vpack.c.bf16 %v8114_v56, %v8113_v55  ;;  %v8149_v23 = vld [vmem:[%s11301_s22 + $0x85] ss:$2 sm:$0xff]  ;;  %v8187_v55 = vld [vmem:[%s11301_s22 + $0xc6] ss:$2 sm:$0xff]  ;;  %v8188_v56 = vld [vmem:[%s11301_s22 + $0xd6] ss:$2 sm:$0xff] }
 0x14c   : > { %9213 = vmatprep.mubr.msk.bf16.mxu1 %vm622_vm1, %v1441_v49  ;;  %v2059_v58 = vpack.c.bf16 %v8188_v56, %v8187_v55 }
 0x152   : > { %9194 = vmatmul.mubr.msk.bf16.vlgmr.msra.gmra.mrb[0].mxu0 %vm622_vm1, %v1136_v28  ;;  %v1751_v28 = vpack.c.bf16 %v8150_v24, %v8149_v23  ;;  %v2365_v24 = vpack.c.bf16 %v8222_v22, %v8221_v20  ;;  %v8250_v20 = vld [vmem:[%s11301_s22 + $0x14a] ss:$2 sm:$0xff] }
 0x153   : > { %9214 = vmatmul.mubr.msk.bf16.vlgmr.msra.gmra.mrb[0].mxu1 %vm622_vm1, %v1442_v52  ;;  %9230 = vmatpush3.bf16.msra.mxu0 %v10586_v33 }
 0x154   : > { %9250 = vmatpush3.bf16.msra.mxu1 %v10586_v33  ;;  %9197 = vmatprep.mubr.msk.bf16.mxu0 %vm622_vm1, %v1137_v30  ;;  %v8152_v30 = vld [vmem:[%s11301_s22 + $0xb5] ss:$2 sm:$0xff] }
 0x155   : > { %9217 = vmatprep.mubr.msk.bf16.mxu1 %vm622_vm1, %v1443_v53  ;;  %10453 = vmatprep.subr.msk.bf16.mxu0 %vm647_vm0, %v10587_v54  ;;  %v1752_v33 = vpack.c.bf16 %v8152_v30, %v8151_v29  ;;  %v8277_v29 = vld [vmem:[%s11301_s22 + $0xfc] ss:$2 sm:$0xff]  ;;  %v8278_v30 = vld [vmem:[%s11301_s22 + $0x10c] ss:$2 sm:$0xff] }
 0x156   : > { %10454 = vmatprep.subr.msk.bf16.mxu1 %vm647_vm0, %v10587_v54  ;;  %v8186_v54 = vld [vmem:[%s11301_s22 + $0xb6] ss:$2 sm:$0xff] }
 0x157   : > { %9232 = vmatpush3.bf16.msra.mxu0 %v1765_v59 }
 0x158   : > { %9252 = vmatpush3.bf16.msra.mxu1 %v1765_v59  ;;  %9269 = vmatprep.subr.bf16.mxu0 %v10588_v60  ;;  %v8189_v59 = vld [vmem:[%s11301_s22 + $0xe6] ss:$2 sm:$0xff] }
 0x159   : > { %9289 = vmatprep.subr.bf16.mxu1 %v10588_v60 }
 0x15a   : > { %9198 = vmatmul.mubr.msk.bf16.gmra.mrb[4].mxu0 %vm622_vm1, %v1138_v16  ;;  %v8175_v16 = vld [vmem:[%s11301_s22 + $0x6] ss:$2 sm:$0xff] }
 0x15b   : > { %9218 = vmatmul.mubr.msk.bf16.gmra.mrb[4].mxu1 %vm622_vm1, %v1444_v61  ;;  %9201 = vmatprep.mubr.msk.bf16.mxu0 %vm622_vm1, %v1139_v38  ;;  %v8176_v38 = vld [vmem:[%s11301_s22 + $0x16] ss:$2 sm:$0xff] }
 0x15c   : > { %9221 = vmatprep.mubr.msk.bf16.mxu1 %vm622_vm1, %v1445_v62  ;;  %v2053_v39 = vpack.c.bf16 %v8176_v38, %v8175_v16  ;;  %v8280_v16 = vld [vmem:[%s11301_s22 + $0x12c] ss:$2 sm:$0xff]  ;;  %v8265_v38 = vld [vmem:[%s11301_s22 + $0x13b] ss:$2 sm:$0xff] }
 0x162   : > { %9202 = vmatmul.mubr.msk.bf16.gmra.mrb[8].mxu0 %vm622_vm1, %v1140_v42  ;;  %v8179_v42 = vld [vmem:[%s11301_s22 + $0x46] ss:$2 sm:$0xff] }
 0x163   : > { %9222 = vmatmul.mubr.msk.bf16.gmra.mrb[8].mxu1 %vm622_vm1, %v1446_v3  ;;  %9205 = vmatprep.mubr.msk.bf16.mxu0 %vm622_vm1, %v1141_v43  ;;  %v8180_v43 = vld [vmem:[%s11301_s22 + $0x56] ss:$2 sm:$0xff] }
 0x164   : > { %9225 = vmatprep.mubr.msk.bf16.mxu1 %vm622_vm1, %v1447_v4  ;;  %v2055_v36 = vpack.c.bf16 %v8180_v43, %v8179_v42  ;;  %v11641_v42 = vpack.c.bf16 %v8280_v16, %v8279_v37  ;;  %v8257_v37 = vld [vmem:[%s11301_s22 + $0x1ba] ss:$2 sm:$0xff]  ;;  %v8258_v16 = vld [vmem:[%s11301_s22 + $0x1ca] ss:$2 sm:$0xff] }
 0x16a   : > { %9206 = vmatmul.mubr.msk.bf16.gmra.mrb[12].mxu0 %vm622_vm1, %v1142_v47  ;;  %v8182_v47 = vld [vmem:[%s11301_s22 + $0x76] ss:$2 sm:$0xff] }
 0x16b   : > { %9226 = vmatmul.mubr.msk.bf16.gmra.mrb[12].mxu1 %vm622_vm1, %v1448_v9  ;;  %9233 = vmatprep.mubr.msk.bf16.mxu0 %vm622_vm1, %v1441_v49  ;;  %v8183_v49 = vld [vmem:[%s11301_s22 + $0x86] ss:$2 sm:$0xff]  ;;  %v2056_v51 = vpack.c.bf16 %v8182_v47, %v8181_v45  ;;  %v8268_v45 = vld [vmem:[%s11301_s22 + $0x16b] ss:$2 sm:$0xff] }
 0x16c   : > { %9253 = vmatprep.mubr.msk.bf16.mxu1 %vm622_vm1, %v1747_v11  ;;  %v8283_v47 = vld [vmem:[%s11301_s22 + $0x15c] ss:$2 sm:$0xff] }
 0x172   : > { %9234 = vmatmul.mubr.msk.bf16.vlgmr.msra.gmra.mrb[0].mxu0 %vm622_vm1, %v1442_v52  ;;  %v2057_v52 = vpack.c.bf16 %v8184_v46, %v8183_v49  ;;  %v8284_v49 = vld [vmem:[%s11301_s22 + $0x16c] ss:$2 sm:$0xff]  ;;  %v8269_v46 = vld [vmem:[%s11301_s22 + $0x17b] ss:$2 sm:$0xff] }
 0x173   : > { %9254 = vmatmul.mubr.msk.bf16.vlgmr.msra.gmra.mrb[0].mxu1 %vm622_vm1, %v1748_v17  ;;  %9270 = vmatpush3.bf16.msra.mxu0 %v10588_v60  ;;  %v11668_v55 = vpack.c.bf16 %v8284_v49, %v8283_v47  ;;  %v8332_v47 = vld [vmem:[%s11301_s22 + $0x12d] ss:$2 sm:$0xff]  ;;  %v8333_v49 = vld [vmem:[%s11301_s22 + $0x13d] ss:$2 sm:$0xff] }
 0x174   : > { %9290 = vmatpush3.bf16.msra.mxu1 %v10588_v60  ;;  %9237 = vmatprep.mubr.msk.bf16.mxu0 %vm622_vm1, %v1443_v53  ;;  %v8185_v53 = vld [vmem:[%s11301_s22 + $0xa6] ss:$2 sm:$0xff]  ;;  %v8190_v60 = vld [vmem:[%s11301_s22 + $0xf6] ss:$2 sm:$0x1f] }
 0x175   : > { %9257 = vmatprep.mubr.msk.bf16.mxu1 %vm622_vm1, %v1749_v18  ;;  %10455 = vmatprep.subr.msk.bf16.mxu0 %vm647_vm0, %v10589_v19  ;;  %v2058_v57 = vpack.c.bf16 %v8186_v54, %v8185_v53  ;;  %v2060_v63 = vpack.c.bf16 %v8190_v60, %v8189_v59  ;;  %v10596_v53 = vld [vmem:[#allocation4 + $0x18] sm:$0xff]  }
 0x176   : > { %10456 = vmatprep.subr.msk.bf16.mxu1 %vm647_vm0, %v10589_v19  ;;  %v8220_v19 = vld [vmem:[%s11301_s22 + $0xb7] ss:$2 sm:$0xff]  ;;  %v8287_v60 = vld [vmem:[%s11301_s22 + $0x19c] ss:$2 sm:$0xff] }
 0x177   : > { %9272 = vmatpush3.bf16.msra.mxu0 %v2071_v25  ;;  %v8272_v59 = vld [vmem:[%s11301_s22 + $0x1ab] ss:$2 sm:$0xff] }
 0x178   : > { %9292 = vmatpush3.bf16.msra.mxu1 %v2071_v25  ;;  %9309 = vmatprep.subr.bf16.mxu0 %v10590_v26  ;;  %v8223_v25 = vld [vmem:[%s11301_s22 + $0xe7] ss:$2 sm:$0xff] }
 0x179   : > { %9329 = vmatprep.subr.bf16.mxu1 %v10590_v26 }
 0x17a   : > { %9238 = vmatmul.mubr.msk.bf16.gmra.mrb[4].mxu0 %vm622_vm1, %v1444_v61  ;;  %v8209_v61 = vld [vmem:[%s11301_s22 + $0x7] ss:$2 sm:$0xff] }
 0x17b   : > { %9258 = vmatmul.mubr.msk.bf16.gmra.mrb[4].mxu1 %vm622_vm1, %v1750_v27  ;;  %9241 = vmatprep.mubr.msk.bf16.mxu0 %vm622_vm1, %v1445_v62  ;;  %v8210_v62 = vld [vmem:[%s11301_s22 + $0x17] ss:$2 sm:$0xff] }
 0x17c   : > { %9261 = vmatprep.mubr.msk.bf16.mxu1 %vm622_vm1, %v1751_v28  ;;  %v2359_v0 = vpack.c.bf16 %v8210_v62, %v8209_v61  ;;  %v8288_v61 = vld [vmem:[%s11301_s22 + $0x1ac] ss:$2 sm:$0xff]  ;;  %v8273_v62 = vld [vmem:[%s11301_s22 + $0x1bb] ss:$2 sm:$0xff] }
 0x182   : > { %9242 = vmatmul.mubr.msk.bf16.gmra.mrb[8].mxu0 %vm622_vm1, %v1446_v3  ;;  %v8213_v3 = vld [vmem:[%s11301_s22 + $0x47] ss:$2 sm:$0xff] }
 0x183   : > { %9262 = vmatmul.mubr.msk.bf16.gmra.mrb[8].mxu1 %vm622_vm1, %v1752_v33  ;;  %9245 = vmatprep.mubr.msk.bf16.mxu0 %vm622_vm1, %v1447_v4  ;;  %v8214_v4 = vld [vmem:[%s11301_s22 + $0x57] ss:$2 sm:$0xff] }
 0x184   : > { %9265 = vmatprep.mubr.msk.bf16.mxu1 %vm622_vm1, %v1753_v10  ;;  %v2361_v6 = vpack.c.bf16 %v8214_v4, %v8213_v3  ;;  %v11690_v3 = vpack.c.bf16 %v8288_v61, %v8287_v60  ;;  %v8340_v61 = vld [vmem:[%s11301_s22 + $0x1ad] ss:$2 sm:$0xff] }
 0x18a   : > { %9246 = vmatmul.mubr.msk.bf16.gmra.mrb[12].mxu0 %vm622_vm1, %v1448_v9  ;;  %v8216_v9 = vld [vmem:[%s11301_s22 + $0x77] ss:$2 sm:$0xff] }
 0x18b   : > { %9266 = vmatmul.mubr.msk.bf16.gmra.mrb[12].mxu1 %vm622_vm1, %v1754_v21  ;;  %9273 = vmatprep.mubr.msk.bf16.mxu0 %vm622_vm1, %v1747_v11  ;;  %v8217_v11 = vld [vmem:[%s11301_s22 + $0x87] ss:$2 sm:$0xff]  ;;  %v2362_v15 = vpack.c.bf16 %v8216_v9, %v8215_v8  ;;  %v8291_v8 = vld [vmem:[%s11301_s22 + $0x1dc] ss:$2 sm:$0xff] }
 0x18c   : > { %9293 = vmatprep.mubr.msk.bf16.mxu1 %vm622_vm1, %v2053_v39  ;;  %v8292_v9 = vld [vmem:[%s11301_s22 + $0x1ec] ss:$2 sm:$0x1f] }
 0x192   : > { %9274 = vmatmul.mubr.msk.bf16.vlgmr.msra.gmra.mrb[0].mxu0 %vm622_vm1, %v1748_v17  ;;  %v2363_v17 = vpack.c.bf16 %v8218_v12, %v8217_v11  ;;  %v8245_v11 = vld [vmem:[%s11301_s22 + $0xfa] ss:$2 sm:$0xff]  ;;  %v8246_v12 = vld [vmem:[%s11301_s22 + $0x10a] ss:$2 sm:$0xff] }
 0x193   : > { %9294 = vmatmul.mubr.msk.bf16.vlgmr.msra.gmra.mrb[0].mxu1 %vm622_vm1, %v2054_v34  ;;  %9310 = vmatpush3.bf16.msra.mxu0 %v10590_v26 }
 0x194   : > { %9330 = vmatpush3.bf16.msra.mxu1 %v10590_v26  ;;  %9277 = vmatprep.mubr.msk.bf16.mxu0 %vm622_vm1, %v1749_v18  ;;  %v8219_v18 = vld [vmem:[%s11301_s22 + $0xa7] ss:$2 sm:$0xff]  ;;  %v8224_v26 = vld [vmem:[%s11301_s22 + $0xf7] ss:$2 sm:$0x1f] }
 0x195   : > { %9297 = vmatprep.mubr.msk.bf16.mxu1 %vm622_vm1, %v2055_v36  ;;  %10457 = vmatprep.subr.msk.bf16.mxu0 %vm647_vm0, %v10591_v44  ;;  %v2364_v23 = vpack.c.bf16 %v8220_v19, %v8219_v18  ;;  %v2366_v31 = vpack.c.bf16 %v8224_v26, %v8223_v25  ;;  %v8248_v18 = vld [vmem:[%s11301_s22 + $0x12a] ss:$2 sm:$0xff]  ;;  %v8249_v19 = vld [vmem:[%s11301_s22 + $0x13a] ss:$2 sm:$0xff] }
 0x196   : > { %10458 = vmatprep.subr.msk.bf16.mxu1 %vm647_vm0, %v10591_v44  ;;  %v8267_v44 = vld [vmem:[%s11301_s22 + $0x15b] ss:$2 sm:$0xff]  ;;  %v8251_v25 = vld [vmem:[%s11301_s22 + $0x15a] ss:$2 sm:$0xff]  ;;  %v8252_v26 = vld [vmem:[%s11301_s22 + $0x16a] ss:$2 sm:$0xff] }
 0x197   : > { %9312 = vmatpush3.bf16.msra.mxu0 %v2377_v48  ;;  %v11666_v54 = vpack.c.bf16 %v8268_v45, %v8267_v44  ;;  %v8331_v45 = vld [vmem:[%s11301_s22 + $0x11d] ss:$2 sm:$0xff] }
 0x198   : > { %9332 = vmatpush3.bf16.msra.mxu1 %v2377_v48  ;;  %9349 = vmatprep.subr.bf16.mxu0 %v10592_v50  ;;  %v8270_v48 = vld [vmem:[%s11301_s22 + $0x18b] ss:$2 sm:$0xff] }
 0x199   : > { %9389 = vmatprep.subr.bf16.mxu1 %v10592_v50  ;;  %v11670_v56 = vpack.c.bf16 %v8270_v48, %v8269_v46  ;;  %v8334_v46 = vld [vmem:[%s11301_s22 + $0x14d] ss:$2 sm:$0xff]  ;;  %v3417_v48 = vpack.c.bf16 %v8332_v47, %v8331_v45 }
 0x19a   : > { %9278 = vmatmul.mubr.msk.bf16.gmra.mrb[4].mxu0 %vm622_vm1, %v1750_v27  ;;  %v8261_v27 = vld [vmem:[%s11301_s22 + $0xfb] ss:$2 sm:$0xff] }
 0x19b   : > { %9298 = vmatmul.mubr.msk.bf16.gmra.mrb[4].mxu1 %vm622_vm1, %v2056_v51  ;;  %9281 = vmatprep.mubr.msk.bf16.mxu0 %vm622_vm1, %v1751_v28  ;;  %v8262_v28 = vld [vmem:[%s11301_s22 + $0x10b] ss:$2 sm:$0xff] }
 0x19c   : > { %9301 = vmatprep.mubr.msk.bf16.mxu1 %vm622_vm1, %v2057_v52  ;;  %v11621_v32 = vpack.c.bf16 %v8262_v28, %v8261_v27  ;;  %v8253_v27 = vld [vmem:[%s11301_s22 + $0x17a] ss:$2 sm:$0xff]  ;;  %v8254_v28 = vld [vmem:[%s11301_s22 + $0x18a] ss:$2 sm:$0xff]  ;;  %v8405_v45 = vld [vmem:[%s11301_s22 + $0x17f] ss:$2 sm:$0xff] }
 0x19d   : > { %v8406_v47 = vld [vmem:[%s11301_s22 + $0x18f] ss:$2 sm:$0xff] }
 0x1a2   : > { %9282 = vmatmul.mubr.msk.bf16.gmra.mrb[8].mxu0 %vm622_vm1, %v1752_v33  ;;  %v11623_v33 = vpack.c.bf16 %v8278_v30, %v8277_v29  ;;  %v10598_v30 = vld [vmem:[#allocation4 + $0x24] sm:$0xff]  }
 0x1a3   : > { %9302 = vmatmul.mubr.msk.bf16.gmra.mrb[8].mxu1 %vm622_vm1, %v2058_v57  ;;  %9285 = vmatprep.mubr.msk.bf16.mxu0 %vm622_vm1, %v1753_v10  ;;  %v8263_v10 = vld [vmem:[%s11301_s22 + $0x11b] ss:$2 sm:$0xff] }
 0x1a4   : > { %9305 = vmatprep.mubr.msk.bf16.mxu1 %vm622_vm1, %v2059_v58  ;;  %v11639_v41 = vpack.c.bf16 %v8264_v35, %v8263_v10  ;;  %v8255_v10 = vld [vmem:[%s11301_s22 + $0x19a] ss:$2 sm:$0xff]  ;;  %v8256_v35 = vld [vmem:[%s11301_s22 + $0x1aa] ss:$2 sm:$0xff] }
 0x1aa   : > { %9286 = vmatmul.mubr.msk.bf16.gmra.mrb[12].mxu0 %vm622_vm1, %v1754_v21  ;;  %v8266_v21 = vld [vmem:[%s11301_s22 + $0x14b] ss:$2 sm:$0xff] }
 0x1ab   : > { %9306 = vmatmul.mubr.msk.bf16.gmra.mrb[12].mxu1 %vm622_vm1, %v2060_v63  ;;  %9313 = vmatprep.mubr.msk.bf16.mxu0 %vm622_vm1, %v2053_v39  ;;  %v8281_v39 = vld [vmem:[%s11301_s22 + $0x13c] ss:$2 sm:$0xff]  ;;  %v11643_v43 = vpack.c.bf16 %v8266_v21, %v8265_v38  ;;  %v2811_v38 = vpack.c.bf16 %v8256_v35, %v8255_v10  ;;  %v2812_v21 = vpack.c.bf16 %v8258_v16, %v8257_v37  ;;  %v8398_v10 = vld [vmem:[%s11301_s22 + $0x10f] ss:$2 sm:$0xff]  ;;  %v8399_v16 = vld [vmem:[%s11301_s22 + $0x11f] ss:$2 sm:$0xff] }
 0x1ac   : > { %9333 = vmatprep.mubr.msk.bf16.mxu1 %vm622_vm1, %v2359_v0  ;;  %v8289_v0 = vld [vmem:[%s11301_s22 + $0x1bc] ss:$2 sm:$0xff] }
 0x1b2   : > { %9314 = vmatmul.mubr.msk.bf16.vlgmr.msra.gmra.mrb[0].mxu0 %vm622_vm1, %v2054_v34  ;;  %v11645_v34 = vpack.c.bf16 %v8282_v40, %v8281_v39  ;;  %v8259_v39 = vld [vmem:[%s11301_s22 + $0x1da] ss:$2 sm:$0xff]  ;;  %v8260_v40 = vld [vmem:[%s11301_s22 + $0x1ea] ss:$2 sm:$0x1f] }
 0x1b3   : > { %9334 = vmatmul.mubr.msk.bf16.vlgmr.msra.gmra.mrb[0].mxu1 %vm622_vm1, %v2360_v5  ;;  %9350 = vmatpush3.bf16.msra.mxu0 %v10592_v50  ;;  %v11692_v5 = vpack.c.bf16 %v8290_v1, %v8289_v0 }
 0x1b4   : > { %9390 = vmatpush3.bf16.msra.mxu1 %v10592_v50  ;;  %9317 = vmatprep.mubr.msk.bf16.mxu0 %vm622_vm1, %v2055_v36  ;;  %v10595_v36 = vld [vmem:[#allocation4 + $0x8] ss:$0 sps:$4 sm:$0x77]  }
 0x1b5   : > { %9337 = vmatprep.mubr.msk.bf16.mxu1 %vm622_vm1, %v2361_v6  ;;  %10459 = vmatprep.subr.msk.bf16.mxu0 %vm647_vm0, %v10593_v7  ;;  %v8285_v50 = vld [vmem:[%s11301_s22 + $0x17c] ss:$2 sm:$0xff]  ;;  %v8275_v6 = vld [vmem:[%s11301_s22 + $0x1db] ss:$2 sm:$0xff] }
 0x1b6   : > { %10461 = vmatprep.subr.msk.bf16.mxu1 %vm647_vm0, %v10593_v7  ;;  %v8276_v7 = vld [vmem:[%s11301_s22 + $0x1eb] ss:$2 sm:$0x1f] }
 0x1b7   : > { %9352 = vmatpush3.bf16.msra.mxu0 %v2931_v13 }
 0x1b8   : > { %9392 = vmatpush3.bf16.msra.mxu1 %v2931_v13  ;;  %9369 = vmatprep.subr.bf16.mxu0 %v10594_v14  ;;  %v2853_v13 = vpack.c.bf16 %v8276_v7, %v8275_v6 }
 0x1b9   : > { %9409 = vmatprep.subr.bf16.mxu1 %v10594_v14 }
 0x1ba   : > { %9318 = vmatmul.mubr.msk.bf16.gmra.mrb[4].mxu0 %vm622_vm1, %v2056_v51  ;;  %v8286_v51 = vld [vmem:[%s11301_s22 + $0x18c] ss:$2 sm:$0xff] }
 0x1bb   : > { %9338 = vmatmul.mubr.msk.bf16.gmra.mrb[4].mxu1 %vm622_vm1, %v2362_v15  ;;  %9321 = vmatprep.mubr.msk.bf16.mxu0 %vm622_vm1, %v2057_v52  ;;  %v3064_v52 = vsel %vm647_vm0, %v10595_v36, 0  ;;  %v2806_v15 = vpack.c.bf16 %v8246_v12, %v8245_v11 }
 0x1bc   : > { %9341 = vmatprep.mubr.msk.bf16.mxu1 %vm622_vm1, %v2363_v17  ;;  %v8247_v17 = vld [vmem:[%s11301_s22 + $0x11a] ss:$2 sm:$0xff] }
 0x1bd   : > { %v2807_v22 = vpack.c.bf16 %v8248_v18, %v8247_v17  ;;  %v8371_v17 = vld [vmem:[%s11301_s22 + $0x17e] ss:$2 sm:$0xff]  ;;  %v8372_v18 = vld [vmem:[%s11301_s22 + $0x18e] ss:$2 sm:$0xff] }
 0x1c2   : > { %9322 = vmatmul.mubr.msk.bf16.gmra.mrb[8].mxu0 %vm622_vm1, %v2058_v57  ;;  %v11672_v57 = vpack.c.bf16 %v8286_v51, %v8285_v50  ;;  %v11758_v50 = vpack.c.bf16 %v8334_v46, %v8333_v49  ;;  %v10599_v51 = vld [vmem:[#allocation4 + $0x2c] ss:$0 sps:$4 sm:$0x77]  }
 0x1c3   : > { %9342 = vmatmul.mubr.msk.bf16.gmra.mrb[8].mxu1 %vm622_vm1, %v2364_v23  ;;  %9325 = vmatprep.mubr.msk.bf16.mxu0 %vm622_vm1, %v2059_v58  ;;  %v8271_v58 = vld [vmem:[%s11301_s22 + $0x19b] ss:$2 sm:$0xff]  ;;  %v2808_v23 = vpack.c.bf16 %v8250_v20, %v8249_v19 }
 0x1c4   : > { %9345 = vmatprep.mubr.msk.bf16.mxu1 %vm622_vm1, %v2365_v24  ;;  %v2851_v2 = vpack.c.bf16 %v8272_v59, %v8271_v58  ;;  %v10597_v24 = vld [vmem:[#allocation4 + $0x20] ss:$0 sps:$4 sm:$0x77]   ;;  %v3739_v58 = vsel %vm647_vm0, %v10599_v51, 0  ;;  %v10604_v46 = vld [vmem:[#allocation4 + $0x48] sm:$0xff]  }
 0x1c5   : > { %v3434_v29 = vsel %vm647_vm0, %v10597_v24, 0  ;;  %v10602_v20 = vld [vmem:[#allocation4 + $0x3c] sm:$0xff]  }
 0x1ca   : > { %9326 = vmatmul.mubr.msk.bf16.gmra.mrb[12].mxu0 %vm622_vm1, %v2060_v63  ;;  %v8274_v63 = vld [vmem:[%s11301_s22 + $0x1cb] ss:$2 sm:$0xff] }
 0x1cb   : > { %9346 = vmatmul.mubr.msk.bf16.gmra.mrb[12].mxu1 %vm622_vm1, %v2366_v31  ;;  %9353 = vmatprep.mubr.msk.bf16.mxu0 %vm622_vm1, %v11621_v32  ;;  %v2852_v4 = vpack.c.bf16 %v8274_v63, %v8273_v62  ;;  %v2809_v31 = vpack.c.bf16 %v8252_v26, %v8251_v25  ;;  %v8341_v62 = vld [vmem:[%s11301_s22 + $0x1bd] ss:$2 sm:$0xff]  ;;  %v8342_v63 = vld [vmem:[%s11301_s22 + $0x1cd] ss:$2 sm:$0xff]  ;;  %v8374_v25 = vld [vmem:[%s11301_s22 + $0x1ae] ss:$2 sm:$0xff] }
 0x1cc   : > { %9393 = vmatprep.mubr.msk.bf16.mxu1 %vm622_vm1, %v11623_v33  ;;  %v3422_v1 = vpack.c.bf16 %v8342_v63, %v8341_v62  ;;  %v8375_v26 = vld [vmem:[%s11301_s22 + $0x1be] ss:$2 sm:$0xff] }
 0x1cd   : > { %v8433_v62 = vld [vmem:[%s11301_s22 + $0x120] ss:$2 sm:$0xff]  ;;  %v8434_v63 = vld [vmem:[%s11301_s22 + $0x130] ss:$2 sm:$0xff] }
 0x1d2   : > { %9354 = vmatmul.mubr.msk.bf16.vlgmr.msra.gmra.mrb[16].mxu0 %vm622_vm1, %v11639_v41 }
 0x1d3   : > { %9394 = vmatmul.mubr.msk.bf16.vlgmr.msra.gmra.mrb[16].mxu1 %vm622_vm1, %v11641_v42  ;;  %9370 = vmatpush3.bf16.msra.mxu0 %v10594_v14 }
 0x1d4   : > { %9410 = vmatpush3.bf16.msra.mxu1 %v10594_v14  ;;  %9357 = vmatprep.mubr.msk.bf16.mxu0 %vm622_vm1, %v11643_v43  ;;  %v11706_v14 = vpack.c.bf16 %v8292_v9, %v8291_v8  ;;  %v8367_v8 = vld [vmem:[%s11301_s22 + $0x13e] ss:$2 sm:$0xff]  ;;  %v8368_v9 = vld [vmem:[%s11301_s22 + $0x14e] ss:$2 sm:$0xff] }
 0x1d5   : > { %9397 = vmatprep.mubr.msk.bf16.mxu1 %vm622_vm1, %v11645_v34  ;;  %10460 = vmatprep.subr.msk.bf16.mxu0 %vm647_vm0, %v10595_v36  ;;  %v3723_v12 = vpack.c.bf16 %v8368_v9, %v8367_v8  ;;  %v11895_v8 = vld [vmem:[#allocation9 + $0x20] sm:$0xff]  }
 0x1d6   : > { %10462 = vmatprep.subr.msk.bf16.mxu1 %vm647_vm0, %v10595_v36  ;;  %v2813_v36 = vpack.c.bf16 %v8260_v40, %v8259_v39  ;;  %v8402_v39 = vld [vmem:[%s11301_s22 + $0x14f] ss:$2 sm:$0xff] }
 0x1d7   : > { %9372 = vmatpush3.bf16.msra.mxu0 %v3064_v52 }
 0x1d8   : > { %9412 = vmatpush3.bf16.msra.mxu1 %v3064_v52  ;;  %9429 = vmatprep.subr.bf16.mxu0 %v10596_v53  ;;  %v10991_v52 = vmov 0.0  }
 0x1d9   : > { %9449 = vmatprep.subr.bf16.mxu1 %v10596_v53  ;;  %481 = vst.msk [vmem:[#allocation2] sm:$0x3] %vm480_vm2, %v10991_v52  ;;  %482 = vst.msk [vmem:[#allocation2 + $0xfc] sm:$0x3] %vm480_vm2, %v10991_v52 }
 0x1da   : > { %9358 = vmatmul.mubr.msk.bf16.gmra.mrb[20].mxu0 %vm622_vm1, %v11666_v54  ;;  %483 = vst [vmem:[#allocation3] sm:$0x1] %v10991_v52  ;;  %v8408_v52 = vld [vmem:[%s11301_s22 + $0x1af] ss:$2 sm:$0xff] }
 0x1db   : > { %9398 = vmatmul.mubr.msk.bf16.gmra.mrb[20].mxu1 %vm622_vm1, %v11668_v55  ;;  %9361 = vmatprep.mubr.msk.bf16.mxu0 %vm622_vm1, %v11670_v56 }
 0x1dc   : > { %9401 = vmatprep.mubr.msk.bf16.mxu1 %vm622_vm1, %v11672_v57 }
 0x1e2   : > { %9362 = vmatmul.mubr.msk.bf16.gmra.mrb[24].mxu0 %vm622_vm1, %v2851_v2 }
 0x1e3   : > { %9402 = vmatmul.mubr.msk.bf16.gmra.mrb[24].mxu1 %vm622_vm1, %v11690_v3  ;;  %9365 = vmatprep.mubr.msk.bf16.mxu0 %vm622_vm1, %v2852_v4 }
 0x1e4   : > { %9405 = vmatprep.mubr.msk.bf16.mxu1 %vm622_vm1, %v11692_v5 }
 0x1ea   : > { %9366 = vmatmul.mubr.msk.bf16.gmra.mrb[28].mxu0 %vm622_vm1, %v2853_v13 }
 0x1eb   : > { %9406 = vmatmul.mubr.msk.bf16.gmra.mrb[28].mxu1 %vm622_vm1, %v11706_v14  ;;  %9373 = vmatprep.mubr.msk.bf16.mxu0 %vm622_vm1, %v2806_v15  ;;  %v8370_v15 = vld [vmem:[%s11301_s22 + $0x16e] ss:$2 sm:$0xff] }
 0x1ec   : > { %9413 = vmatprep.mubr.msk.bf16.mxu1 %vm622_vm1, %v11621_v32  ;;  %v2810_v32 = vpack.c.bf16 %v8254_v28, %v8253_v27  ;;  %v8376_v27 = vld [vmem:[%s11301_s22 + $0x1ce] ss:$2 sm:$0xff] }
 0x1f2   : > { %9374 = vmatmul.mubr.msk.bf16.vlgmr.msra.gmra.mrb[16].mxu0 %vm622_vm1, %v2807_v22 }
 0x1f3   : > { %9414 = vmatmul.mubr.msk.bf16.vlgmr.msra.gmra.mrb[16].mxu1 %vm622_vm1, %v11639_v41  ;;  %9430 = vmatpush3.bf16.msra.mxu0 %v10596_v53  ;;  %v8329_v41 = vld [vmem:[%s11301_s22 + $0xfd] ss:$2 sm:$0xff] }
 0x1f4   : > { %9450 = vmatpush3.bf16.msra.mxu1 %v10596_v53  ;;  %9377 = vmatprep.mubr.msk.bf16.mxu0 %vm622_vm1, %v2808_v23  ;;  %v8336_v53 = vld [vmem:[%s11301_s22 + $0x16d] ss:$2 sm:$0xff]  ;;  %v3725_v23 = vpack.c.bf16 %v8372_v18, %v8371_v17 }
 0x1f5   : > { %9417 = vmatprep.mubr.msk.bf16.mxu1 %vm622_vm1, %v11643_v43  ;;  %10463 = vmatprep.subr.msk.bf16.mxu0 %vm647_vm0, %v10597_v24  ;;  %v8330_v43 = vld [vmem:[%s11301_s22 + $0x10d] ss:$2 sm:$0xff] }
 0x1f6   : > { %10464 = vmatprep.subr.msk.bf16.mxu1 %vm647_vm0, %v10597_v24  ;;  %v3416_v44 = vpack.c.bf16 %v8330_v43, %v8329_v41  ;;  %v8373_v24 = vld [vmem:[%s11301_s22 + $0x19e] ss:$2 sm:$0xff] }
 0x1f7   : > { %9432 = vmatpush3.bf16.msra.mxu0 %v3434_v29  ;;  %v3726_v28 = vpack.c.bf16 %v8374_v25, %v8373_v24  ;;  %v10603_v43 = vld [vmem:[#allocation4 + $0x44] ss:$0 sps:$4 sm:$0x77]   ;;  %v8466_v24 = vld [vmem:[%s11301_s22 + $0x111] ss:$2 sm:$0xff] }
 0x1f8   : > { %9452 = vmatpush3.bf16.msra.mxu1 %v3434_v29  ;;  %9469 = vmatprep.subr.bf16.mxu0 %v10598_v30  ;;  %v3727_v29 = vpack.c.bf16 %v8376_v27, %v8375_v26  ;;  %v4349_v49 = vsel %vm647_vm0, %v10603_v43, 0  ;;  %v11931_v25 = vld [vmem:[#allocation8] ss:$0 sm:$0xff] }
 0x1f9   : > { %9489 = vmatprep.subr.bf16.mxu1 %v10598_v30 }
 0x1fa   : > { %9378 = vmatmul.mubr.msk.bf16.gmra.mrb[20].mxu0 %vm622_vm1, %v2809_v31  ;;  %v8378_v31 = vld [vmem:[%s11301_s22 + $0x1ee] ss:$2 sm:$0x1f] }
 0x1fb   : > { %9418 = vmatmul.mubr.msk.bf16.gmra.mrb[20].mxu1 %vm622_vm1, %v11666_v54  ;;  %9381 = vmatprep.mubr.msk.bf16.mxu0 %vm622_vm1, %v2810_v32  ;;  %v8337_v54 = vld [vmem:[%s11301_s22 + $0x17d] ss:$2 sm:$0xff] }
 0x1fc   : > { %9421 = vmatprep.mubr.msk.bf16.mxu1 %vm622_vm1, %v11670_v56  ;;  %v8338_v56 = vld [vmem:[%s11301_s22 + $0x18d] ss:$2 sm:$0xff] }
 0x1fd   : > { %v3420_v60 = vpack.c.bf16 %v8338_v56, %v8337_v54  ;;  %v8397_v32 = vld [vmem:[%s11301_s22 + $0xff] ss:$2 sm:$0xff] }
 0x1fe   : > { %v4026_v37 = vpack.c.bf16 %v8398_v10, %v8397_v32 }
 0x202   : > { %9382 = vmatmul.mubr.msk.bf16.gmra.mrb[24].mxu0 %vm622_vm1, %v2811_v38  ;;  %v8400_v38 = vld [vmem:[%s11301_s22 + $0x12f] ss:$2 sm:$0xff] }
 0x203   : > { %9422 = vmatmul.mubr.msk.bf16.gmra.mrb[24].mxu1 %vm622_vm1, %v2851_v2  ;;  %9385 = vmatprep.mubr.msk.bf16.mxu0 %vm622_vm1, %v2812_v21  ;;  %v8363_v2 = vld [vmem:[%s11301_s22 + $0xfe] ss:$2 sm:$0xff]  ;;  %v8401_v21 = vld [vmem:[%s11301_s22 + $0x13f] ss:$2 sm:$0xff]  ;;  %v4027_v40 = vpack.c.bf16 %v8400_v38, %v8399_v16 }
 0x204   : > { %9425 = vmatprep.mubr.msk.bf16.mxu1 %vm622_vm1, %v2852_v4  ;;  %v8364_v4 = vld [vmem:[%s11301_s22 + $0x10e] ss:$2 sm:$0xff]  ;;  %v4028_v41 = vpack.c.bf16 %v8402_v39, %v8401_v21 }
 0x205   : > { %v3721_v7 = vpack.c.bf16 %v8364_v4, %v8363_v2  ;;  %v10605_v2 = vld [vmem:[#allocation4 + $0x50] ss:$0 sps:$4 sm:$0x77]   ;;  %v8437_v4 = vld [vmem:[%s11301_s22 + $0x160] ss:$2 sm:$0xff] }
 0x20a   : > { %9386 = vmatmul.mubr.msk.bf16.gmra.mrb[28].mxu0 %vm622_vm1, %v2813_v36  ;;  %v8403_v36 = vld [vmem:[%s11301_s22 + $0x15f] ss:$2 sm:$0xff] }
 0x20b   : > { %9426 = vmatmul.mubr.msk.bf16.gmra.mrb[28].mxu1 %vm622_vm1, %v2853_v13  ;;  %9433 = vmatprep.mubr.msk.bf16.mxu0 %vm622_vm1, %v11623_v33  ;;  %v8335_v33 = vld [vmem:[%s11301_s22 + $0x15d] ss:$2 sm:$0xff]  ;;  %v10601_v13 = vld [vmem:[#allocation4 + $0x38] ss:$0 sps:$4 sm:$0x77]  }
 0x20c   : > { %9453 = vmatprep.mubr.msk.bf16.mxu1 %vm622_vm1, %v3416_v44  ;;  %v3419_v59 = vpack.c.bf16 %v8336_v53, %v8335_v33  ;;  %v4044_v19 = vsel %vm647_vm0, %v10601_v13, 0  ;;  %v8409_v33 = vld [vmem:[%s11301_s22 + $0x1bf] ss:$2 sm:$0xff]  ;;  %v8410_v53 = vld [vmem:[%s11301_s22 + $0x1cf] ss:$2 sm:$0xff] }
 0x20d   : > { %v4032_v56 = vpack.c.bf16 %v8410_v53, %v8409_v33 }
 0x212   : > { %9434 = vmatmul.mubr.msk.bf16.vlgmr.msra.gmra.mrb[16].mxu0 %vm622_vm1, %v11641_v42  ;;  %v10600_v42 = vld [vmem:[#allocation4 + $0x30] sm:$0xff]  }
 0x213   : > { %9454 = vmatmul.mubr.msk.bf16.vlgmr.msra.gmra.mrb[16].mxu1 %vm622_vm1, %v3417_v48  ;;  %9470 = vmatpush3.bf16.msra.mxu0 %v10598_v30 }
 0x214   : > { %9490 = vmatpush3.bf16.msra.mxu1 %v10598_v30  ;;  %9437 = vmatprep.mubr.msk.bf16.mxu0 %vm622_vm1, %v11645_v34  ;;  %v8339_v34 = vld [vmem:[%s11301_s22 + $0x19d] ss:$2 sm:$0xff]  ;;  %v8377_v30 = vld [vmem:[%s11301_s22 + $0x1de] ss:$2 sm:$0xff] }
 0x215   : > { %9457 = vmatprep.mubr.msk.bf16.mxu1 %vm622_vm1, %v11758_v50  ;;  %10465 = vmatprep.subr.msk.bf16.mxu0 %vm647_vm0, %v10599_v51  ;;  %v3421_v0 = vpack.c.bf16 %v8340_v61, %v8339_v34  ;;  %v3728_v35 = vpack.c.bf16 %v8378_v31, %v8377_v30 }
 0x216   : > { %10466 = vmatprep.subr.msk.bf16.mxu1 %vm647_vm0, %v10599_v51  ;;  %v8407_v51 = vld [vmem:[%s11301_s22 + $0x19f] ss:$2 sm:$0xff] }
 0x217   : > { %9472 = vmatpush3.bf16.msra.mxu0 %v3739_v58  ;;  %v4031_v54 = vpack.c.bf16 %v8408_v52, %v8407_v51 }
 0x218   : > { %9492 = vmatpush3.bf16.msra.mxu1 %v3739_v58  ;;  %9509 = vmatprep.subr.bf16.mxu0 %v10600_v42  ;;  %v8411_v58 = vld [vmem:[%s11301_s22 + $0x1df] ss:$2 sm:$0xff] }
 0x219   : > { %9529 = vmatprep.subr.bf16.mxu1 %v10600_v42 }
 0x21a   : > { %9438 = vmatmul.mubr.msk.bf16.gmra.mrb[20].mxu0 %vm622_vm1, %v11668_v55  ;;  %v8343_v55 = vld [vmem:[%s11301_s22 + $0x1dd] ss:$2 sm:$0xff] }
 0x21b   : > { %9458 = vmatmul.mubr.msk.bf16.gmra.mrb[20].mxu1 %vm622_vm1, %v3419_v59  ;;  %9441 = vmatprep.mubr.msk.bf16.mxu0 %vm622_vm1, %v11672_v57  ;;  %v8344_v57 = vld [vmem:[%s11301_s22 + $0x1ed] ss:$2 sm:$0x1f] }
 0x21c   : > { %9461 = vmatprep.mubr.msk.bf16.mxu1 %vm622_vm1, %v3420_v60  ;;  %v3423_v6 = vpack.c.bf16 %v8344_v57, %v8343_v55  ;;  %v11880_v55 = vpack.c.bf16 %v8434_v63, %v8433_v62  ;;  %v8470_v62 = vld [vmem:[%s11301_s22 + $0x151] ss:$2 sm:$0xff] }
 0x222   : > { %9442 = vmatmul.mubr.msk.bf16.gmra.mrb[24].mxu0 %vm622_vm1, %v11690_v3  ;;  %v8365_v3 = vld [vmem:[%s11301_s22 + $0x11e] ss:$2 sm:$0xff] }
 0x223   : > { %9462 = vmatmul.mubr.msk.bf16.gmra.mrb[24].mxu1 %vm622_vm1, %v3421_v0  ;;  %9445 = vmatprep.mubr.msk.bf16.mxu0 %vm622_vm1, %v11692_v5  ;;  %v8366_v5 = vld [vmem:[%s11301_s22 + $0x12e] ss:$2 sm:$0xff] }
 0x224   : > { %9465 = vmatprep.mubr.msk.bf16.mxu1 %vm622_vm1, %v3422_v1  ;;  %v3722_v11 = vpack.c.bf16 %v8366_v5, %v8365_v3  ;;  %v8440_v3 = vld [vmem:[%s11301_s22 + $0x190] ss:$2 sm:$0xff]  ;;  %v4654_v5 = vsel %vm647_vm0, %v10605_v2, 0 }
 0x22a   : > { %9446 = vmatmul.mubr.msk.bf16.gmra.mrb[28].mxu0 %vm622_vm1, %v11706_v14  ;;  %v8369_v14 = vld [vmem:[%s11301_s22 + $0x15e] ss:$2 sm:$0xff] }
 0x22b   : > { %9466 = vmatmul.mubr.msk.bf16.gmra.mrb[28].mxu1 %vm622_vm1, %v3423_v6  ;;  %9473 = vmatprep.mubr.msk.bf16.mxu0 %vm622_vm1, %v3416_v44  ;;  %v3724_v22 = vpack.c.bf16 %v8370_v15, %v8369_v14  ;;  %v8404_v44 = vld [vmem:[%s11301_s22 + $0x16f] ss:$2 sm:$0xff]  ;;  %v8443_v14 = vld [vmem:[%s11301_s22 + $0x1c0] ss:$2 sm:$0xff]  ;;  %v8444_v15 = vld [vmem:[%s11301_s22 + $0x1d0] ss:$2 sm:$0xff] }
 0x22c   : > { %9493 = vmatprep.mubr.msk.bf16.mxu1 %vm622_vm1, %v3721_v7  ;;  %v11917_v18 = vpack.c.bf16 %v8444_v15, %v8443_v14 }
 0x232   : > { %9474 = vmatmul.mubr.msk.bf16.vlgmr.msra.gmra.mrb[16].mxu0 %vm622_vm1, %v3417_v48  ;;  %v4029_v48 = vpack.c.bf16 %v8404_v44, %v8403_v36 }
 0x233   : > { %9494 = vmatmul.mubr.msk.bf16.vlgmr.msra.gmra.mrb[16].mxu1 %vm622_vm1, %v3722_v11  ;;  %9510 = vmatpush3.bf16.msra.mxu0 %v10600_v42 }
 0x234   : > { %9530 = vmatpush3.bf16.msra.mxu1 %v10600_v42  ;;  %9477 = vmatprep.mubr.msk.bf16.mxu0 %vm622_vm1, %v11758_v50  ;;  %v4030_v50 = vpack.c.bf16 %v8406_v47, %v8405_v45  ;;  %v8412_v42 = vld [vmem:[%s11301_s22 + $0x1ef] ss:$2 sm:$0x1f] }
 0x235   : > { %9497 = vmatprep.mubr.msk.bf16.mxu1 %vm622_vm1, %v3723_v12  ;;  %10467 = vmatprep.subr.msk.bf16.mxu0 %vm647_vm0, %v10601_v13  ;;  %v11866_v34 = vpack.c.bf16 %v8412_v42, %v8411_v58  ;;  %v8468_v58 = vld [vmem:[%s11301_s22 + $0x131] ss:$2 sm:$0xff] }
 0x236   : > { %10468 = vmatprep.subr.msk.bf16.mxu1 %vm647_vm0, %v10601_v13  ;;  %v8442_v13 = vld [vmem:[%s11301_s22 + $0x1b0] ss:$2 sm:$0xff] }
 0x237   : > { %9512 = vmatpush3.bf16.msra.mxu0 %v4044_v19 }
 0x238   : > { %9532 = vmatpush3.bf16.msra.mxu1 %v4044_v19  ;;  %9549 = vmatprep.subr.bf16.mxu0 %v10602_v20  ;;  %v11922_v19 = vld [vmem:[#allocation6] ss:$0 sm:$0xff] }
 0x239   : > { %9569 = vmatprep.subr.bf16.mxu1 %v10602_v20 }
 0x23a   : > { %9478 = vmatmul.mubr.msk.bf16.gmra.mrb[20].mxu0 %vm622_vm1, %v3419_v59  ;;  %v8431_v59 = vld [vmem:[%s11301_s22 + $0x100] ss:$2 sm:$0xff] }
 0x23b   : > { %9498 = vmatmul.mubr.msk.bf16.gmra.mrb[20].mxu1 %vm622_vm1, %v3724_v22  ;;  %9481 = vmatprep.mubr.msk.bf16.mxu0 %vm622_vm1, %v3420_v60  ;;  %v8432_v60 = vld [vmem:[%s11301_s22 + $0x110] ss:$2 sm:$0xff] }
 0x23c   : > { %9501 = vmatprep.mubr.msk.bf16.mxu1 %vm622_vm1, %v3725_v23  ;;  %v11868_v61 = vpack.c.bf16 %v8432_v60, %v8431_v59 }
 0x242   : > { %9482 = vmatmul.mubr.msk.bf16.gmra.mrb[24].mxu0 %vm622_vm1, %v3421_v0  ;;  %v8435_v0 = vld [vmem:[%s11301_s22 + $0x140] ss:$2 sm:$0xff] }
 0x243   : > { %9502 = vmatmul.mubr.msk.bf16.gmra.mrb[24].mxu1 %vm622_vm1, %v3726_v28  ;;  %9485 = vmatprep.mubr.msk.bf16.mxu0 %vm622_vm1, %v3422_v1  ;;  %v8436_v1 = vld [vmem:[%s11301_s22 + $0x150] ss:$2 sm:$0xff] }
 0x244   : > { %9505 = vmatprep.mubr.msk.bf16.mxu1 %vm622_vm1, %v3727_v29  ;;  %v11882_v57 = vpack.c.bf16 %v8436_v1, %v8435_v0 }
 0x24a   : > { %9486 = vmatmul.mubr.msk.bf16.gmra.mrb[28].mxu0 %vm622_vm1, %v3423_v6  ;;  %v8438_v6 = vld [vmem:[%s11301_s22 + $0x170] ss:$2 sm:$0xff] }
 0x24b   : > { %9506 = vmatmul.mubr.msk.bf16.gmra.mrb[28].mxu1 %vm622_vm1, %v3728_v35  ;;  %9513 = vmatprep.mubr.msk.bf16.mxu0 %vm622_vm1, %v3721_v7  ;;  %v8439_v7 = vld [vmem:[%s11301_s22 + $0x180] ss:$2 sm:$0xff]  ;;  %v11899_v9 = vpack.c.bf16 %v8438_v6, %v8437_v4 }
 0x24c   : > { %9533 = vmatprep.mubr.msk.bf16.mxu1 %vm622_vm1, %v4026_v37 }
 0x252   : > { %9514 = vmatmul.mubr.msk.bf16.vlgmr.msra.gmra.mrb[16].mxu0 %vm622_vm1, %v3722_v11  ;;  %v11901_v11 = vpack.c.bf16 %v8440_v3, %v8439_v7 }
 0x253   : > { %9534 = vmatmul.mubr.msk.bf16.vlgmr.msra.gmra.mrb[16].mxu1 %vm622_vm1, %v4027_v40  ;;  %9550 = vmatpush3.bf16.msra.mxu0 %v10602_v20 }
 0x254   : > { %9570 = vmatpush3.bf16.msra.mxu1 %v10602_v20  ;;  %9517 = vmatprep.mubr.msk.bf16.mxu0 %vm622_vm1, %v3723_v12  ;;  %v8441_v12 = vld [vmem:[%s11301_s22 + $0x1a0] ss:$2 sm:$0xff] }
 0x255   : > { %9537 = vmatprep.mubr.msk.bf16.mxu1 %vm622_vm1, %v4028_v41  ;;  %10469 = vmatprep.subr.msk.bf16.mxu0 %vm647_vm0, %v10603_v43  ;;  %v11915_v17 = vpack.c.bf16 %v8442_v13, %v8441_v12  ;;  %v8445_v20 = vld [vmem:[%s11301_s22 + $0x1e0] ss:$2 sm:$0xff] }
 0x256   : > { %10470 = vmatprep.subr.msk.bf16.mxu1 %vm647_vm0, %v10603_v43 }
 0x257   : > { %9552 = vmatpush3.bf16.msra.mxu0 %v4349_v49 }
 0x258   : > { %9572 = vmatpush3.bf16.msra.mxu1 %v4349_v49  ;;  %9589 = vmatprep.subr.bf16.mxu0 %v10604_v46 }
 0x259   : > { %9609 = vmatprep.subr.bf16.mxu1 %v10604_v46 }
 0x25a   : > { %9518 = vmatmul.mubr.msk.bf16.gmra.mrb[20].mxu0 %vm622_vm1, %v3724_v22  ;;  %v8446_v22 = vld [vmem:[%s11301_s22 + $0x1f0] ss:$2 sm:$0x1f] }
 0x25b   : > { %9538 = vmatmul.mubr.msk.bf16.gmra.mrb[20].mxu1 %vm622_vm1, %v4029_v48  ;;  %9521 = vmatprep.mubr.msk.bf16.mxu0 %vm622_vm1, %v3725_v23  ;;  %v8465_v23 = vld [vmem:[%s11301_s22 + $0x101] ss:$2 sm:$0xff]  ;;  %v11935_v32 = vpack.c.bf16 %v8446_v22, %v8445_v20 }
 0x25c   : > { %9541 = vmatprep.mubr.msk.bf16.mxu1 %vm622_vm1, %v4030_v50  ;;  %v4636_v38 = vpack.c.bf16 %v8466_v24, %v8465_v23 }
 0x262   : > { %9522 = vmatmul.mubr.msk.bf16.gmra.mrb[24].mxu0 %vm622_vm1, %v3726_v28 }
 0x263   : > { %9542 = vmatmul.mubr.msk.bf16.gmra.mrb[24].mxu1 %vm622_vm1, %v4031_v54  ;;  %9525 = vmatprep.mubr.msk.bf16.mxu0 %vm622_vm1, %v3727_v29 }
 0x264   : > { %9545 = vmatprep.mubr.msk.bf16.mxu1 %vm622_vm1, %v4032_v56 }
 0x26a   : > { %9526 = vmatmul.mubr.msk.bf16.gmra.mrb[28].mxu0 %vm622_vm1, %v3728_v35 }
 0x26b   : > { %9546 = vmatmul.mubr.msk.bf16.gmra.mrb[28].mxu1 %vm622_vm1, %v11866_v34  ;;  %9553 = vmatprep.mubr.msk.bf16.mxu0 %vm622_vm1, %v4026_v37 }
 0x26c   : > { %9573 = vmatprep.mubr.msk.bf16.mxu1 %vm622_vm1, %v11868_v61 }
 0x272   : > { %9554 = vmatmul.mubr.msk.bf16.vlgmr.msra.gmra.mrb[16].mxu0 %vm622_vm1, %v4027_v40 }
 0x273   : > { %9574 = vmatmul.mubr.msk.bf16.vlgmr.msra.gmra.mrb[16].mxu1 %vm622_vm1, %v11880_v55  ;;  %9590 = vmatpush3.bf16.msra.mxu0 %v10604_v46 }
 0x274   : > { %9610 = vmatpush3.bf16.msra.mxu1 %v10604_v46  ;;  %9557 = vmatprep.mubr.msk.bf16.mxu0 %vm622_vm1, %v4028_v41 }
 0x275   : > { %9577 = vmatprep.mubr.msk.bf16.mxu1 %vm622_vm1, %v11882_v57  ;;  %10471 = vmatprep.subr.msk.bf16.mxu0 %vm647_vm0, %v10605_v2 }
 0x276   : > { %10472 = vmatprep.subr.msk.bf16.mxu1 %vm647_vm0, %v10605_v2 }
 0x277   : > { %9592 = vmatpush3.bf16.msra.mxu0 %v4654_v5 }
 0x278   : > { %9612 = vmatpush3.bf16.msra.mxu1 %v4654_v5  ;;  %9629 = vmatprep.subr.bf16.mxu0 %v11895_v8 }
 0x279   : > { %9677 = vmatprep.subr.bf16.mxu1 %v11895_v8 }
 0x27a   : > { %9558 = vmatmul.mubr.msk.bf16.gmra.mrb[20].mxu0 %vm622_vm1, %v4029_v48 }
 0x27b   : > { %9578 = vmatmul.mubr.msk.bf16.gmra.mrb[20].mxu1 %vm622_vm1, %v11899_v9  ;;  %9561 = vmatprep.mubr.msk.bf16.mxu0 %vm622_vm1, %v4030_v50 }
 0x27c   : > { %9581 = vmatprep.mubr.msk.bf16.mxu1 %vm622_vm1, %v11901_v11 }
 0x282   : > { %9562 = vmatmul.mubr.msk.bf16.gmra.mrb[24].mxu0 %vm622_vm1, %v4031_v54 }
 0x283   : > { %9582 = vmatmul.mubr.msk.bf16.gmra.mrb[24].mxu1 %vm622_vm1, %v11915_v17  ;;  %9565 = vmatprep.mubr.msk.bf16.mxu0 %vm622_vm1, %v4032_v56  ;;  %v8467_v56 = vld [vmem:[%s11301_s22 + $0x121] ss:$2 sm:$0xff] }
 0x284   : > { %9585 = vmatprep.mubr.msk.bf16.mxu1 %vm622_vm1, %v11917_v18  ;;  %v4637_v12 = vpack.c.bf16 %v8468_v58, %v8467_v56 }
 0x285   : > { %v9315_v26 = vpop.f32.mrb[0].mxu0 }
 0x286   : > { %v9335_v27 = vpop.f32.mrb[0].mxu1  ;;  %v2637_v28 = vmul.f32 %v9315_v26, %v11922_v19  ;;  %v2413_v30 = vpop.f32.mrb[1].mxu0 }
 0x287   : > { %v2691_v29 = vmul.f32 %v9335_v27, %v11922_v19  ;;  %v2550_v31 = vpop.f32.mrb[1].mxu1  ;;  %v2635_v10 = vmul.f32 %v11922_v19, %v2413_v30  ;;  %v9316_v37 = vpop.f32.mrb[2].mxu0 }
 0x288   : > { %v2689_v35 = vmul.f32 %v11922_v19, %v2550_v31  ;;  %v9336_v16 = vpop.f32.mrb[2].mxu1  ;;  %v2659_v21 = vadd.f32 %v11931_v25, %v2637_v28  ;;  %v2638_v40 = vmul.f32 %v9316_v37, %v11922_v19  ;;  %v2416_v43 = vpop.f32.mrb[3].mxu0 }
 0x289   : > { %v2707_v39 = vadd.f32 %v11931_v25, %v2691_v29  ;;  %v2692_v41 = vmul.f32 %v9336_v16, %v11922_v19  ;;  %v2553_v36 = vpop.f32.mrb[3].mxu1  ;;  %v2657_v44 = vadd.f32 %v11931_v25, %v2635_v10  ;;  %v2636_v47 = vmul.f32 %v11922_v19, %v2416_v43  ;;  %v10607_v16 = vld [vmem:[#allocation9 + $0x28] sm:$0xff]  }
 0x28a   : > { %v2705_v45 = vadd.f32 %v11931_v25, %v2689_v35  ;;  %v2690_v49 = vmul.f32 %v11922_v19, %v2553_v36  ;;  %v2675_v46 = vmax.f32 %v2659_v21, 0.0  ;;  %v2660_v50 = vadd.f32 %v11931_v25, %v2638_v40  ;;  %9566 = vmatmul.mubr.msk.bf16.gmra.mrb[28].mxu0 %vm622_vm1, %v11866_v34  ;;  %v8469_v34 = vld [vmem:[%s11301_s22 + $0x141] ss:$2 sm:$0xff] }
 0x28b   : > { %v2723_v48 = vmax.f32 %v2707_v39, 0.0  ;;  %v2708_v51 = vadd.f32 %v11931_v25, %v2692_v41  ;;  %9586 = vmatmul.mubr.msk.bf16.gmra.mrb[28].mxu1 %vm622_vm1, %v11935_v32  ;;  %v2673_v52 = vmax.f32 %v2657_v44, 0.0  ;;  %v2658_v53 = vadd.f32 %v11931_v25, %v2636_v47  ;;  %9593 = vmatprep.mubr.msk.bf16.mxu0 %vm622_vm1, %v11868_v61  ;;  %v8472_v47 = vld [vmem:[%s11301_s22 + $0x171] ss:$2 sm:$0xff] }
 0x28c   : > { %v2721_v33 = vmax.f32 %v2705_v45, 0.0  ;;  %v2706_v54 = vadd.f32 %v11931_v25, %v2690_v49  ;;  %9613 = vmatprep.mubr.msk.bf16.mxu1 %vm622_vm1, %v4636_v38  ;;  %v2676_v59 = vmax.f32 %v2660_v50, 0.0  ;;  %v4638_v23 = vpack.c.bf16 %v8470_v62, %v8469_v34  ;;  %v8471_v45 = vld [vmem:[%s11301_s22 + $0x161] ss:$2 sm:$0xff] }
 0x28d   : > { %v2739_v42 = vmax.f32 %v2675_v46, %v2723_v48  ;;  %v2724_v60 = vmax.f32 %v2708_v51, 0.0  ;;  %v2674_v0 = vmax.f32 %v2658_v53, 0.0  ;;  %v9319_v2 = vpop.f32.mrb[4].mxu0  ;;  %v8473_v50 = vld [vmem:[%s11301_s22 + $0x181] ss:$2 sm:$0xff] }
 0x28e   : > { %v2737_v63 = vmax.f32 %v2673_v52, %v2721_v33  ;;  %v2722_v1 = vmax.f32 %v2706_v54, 0.0  ;;  %v9339_v4 = vpop.f32.mrb[4].mxu1  ;;  %v2641_v7 = vmul.f32 %v9319_v2, %v11922_v19  ;;  %v2429_v3 = vpop.f32.mrb[5].mxu0 }
 0x28f   : > { %2756 = vst.msk [vmem:[#allocation2 + $0x12] sm:$0xff] %vm2753_vm3, %v2739_v42  ;;  %v2740_v6 = vmax.f32 %v2676_v59, %v2724_v60  ;;  %v2695_v61 = vmul.f32 %v9339_v4, %v11922_v19  ;;  %v2566_v5 = vpop.f32.mrb[5].mxu1  ;;  %v2639_v14 = vmul.f32 %v11922_v19, %v2429_v3  ;;  %v9320_v20 = vpop.f32.mrb[6].mxu0  ;;  %v4639_v60 = vpack.c.bf16 %v8472_v47, %v8471_v45 }
 0x290   : > { %2754 = vst.msk [vmem:[#allocation2 + $0x2] sm:$0xff] %vm2753_vm3, %v2737_v63  ;;  %v2738_v13 = vmax.f32 %v2674_v0, %v2722_v1  ;;  %v2693_v15 = vmul.f32 %v11922_v19, %v2566_v5  ;;  %v9340_v22 = vpop.f32.mrb[6].mxu1  ;;  %v2663_v24 = vadd.f32 %v11931_v25, %v2641_v7  ;;  %v2642_v27 = vmul.f32 %v9320_v20, %v11922_v19  ;;  %v2432_v29 = vpop.f32.mrb[7].mxu0  ;;  %v10608_v5 = vld [vmem:[#allocation9 + $0x30] sm:$0xff]  }
 0x291   : > { %2757 = vst.msk [vmem:[#allocation2 + $0x1a] sm:$0xff] %vm2753_vm3, %v2740_v6  ;;  %v2711_v26 = vadd.f32 %v11931_v25, %v2695_v61  ;;  %v2696_v28 = vmul.f32 %v9340_v22, %v11922_v19  ;;  %v2569_v30 = vpop.f32.mrb[7].mxu1  ;;  %v2661_v31 = vadd.f32 %v11931_v25, %v2639_v14  ;;  %v2640_v35 = vmul.f32 %v11922_v19, %v2432_v29  ;;  %v12011_v20 = vld [vmem:[%s11301_s22 + $0x1a1] ss:$2 sm:$0xff] }
 0x292   : > { %2755 = vst.msk [vmem:[#allocation2 + $0xa] sm:$0xff] %vm2753_vm3, %v2738_v13  ;;  %v2709_v10 = vadd.f32 %v11931_v25, %v2693_v15  ;;  %v2694_v37 = vmul.f32 %v11922_v19, %v2569_v30  ;;  %v2679_v38 = vmax.f32 %v2663_v24, 0.0  ;;  %v2664_v39 = vadd.f32 %v11931_v25, %v2642_v27  ;;  %9594 = vmatmul.mubr.msk.bf16.vlgmr.msra.gmra.mrb[16].mxu0 %vm622_vm1, %v11880_v55  ;;  %v8474_v55 = vld [vmem:[%s11301_s22 + $0x191] ss:$2 sm:$0xff] }
 0x293   : > { %v2727_v21 = vmax.f32 %v2711_v26, 0.0  ;;  %v2712_v40 = vadd.f32 %v11931_v25, %v2696_v28  ;;  %9614 = vmatmul.mubr.msk.bf16.vlgmr.msra.gmra.mrb[16].mxu1 %vm622_vm1, %v4637_v12  ;;  %v2677_v41 = vmax.f32 %v2661_v31, 0.0  ;;  %v2662_v36 = vadd.f32 %v11931_v25, %v2640_v35  ;;  %9597 = vmatprep.mubr.msk.bf16.mxu0 %vm622_vm1, %v11882_v57  ;;  %v8476_v27 = vld [vmem:[%s11301_s22 + $0x1b1] ss:$2 sm:$0xff] }
 0x294   : > { %v2725_v43 = vmax.f32 %v2709_v10, 0.0  ;;  %v2710_v44 = vadd.f32 %v11931_v25, %v2694_v37  ;;  %9617 = vmatprep.mubr.msk.bf16.mxu1 %vm622_vm1, %v4638_v23  ;;  %v2680_v46 = vmax.f32 %v2664_v39, 0.0  ;;  %9630 = vmatpush3.bf16.msra.mxu0 %v11895_v8  ;;  %v4640_v1 = vpack.c.bf16 %v8474_v55, %v8473_v50  ;;  %v12019_v28 = vld [vmem:[#allocation9 + $0x38] sm:$0xff]  }
 0x295   : > { %v2743_v49 = vmax.f32 %v2679_v38, %v2727_v21  ;;  %v2728_v48 = vmax.f32 %v2712_v40, 0.0  ;;  %9678 = vmatpush3.bf16.msra.mxu1 %v11895_v8  ;;  %v2678_v52 = vmax.f32 %v2662_v36, 0.0  ;;  %v9323_v53 = vpop.f32.mrb[8].mxu0  ;;  %9631 = vmatprep.subr.bf16.mxu0 %v10607_v16  ;;  %v8478_v38 = vld [vmem:[%s11301_s22 + $0x1d1] ss:$2 sm:$0xff]  ;;  %v4641_v36 = vpack.c.bf16 %v8476_v27, %v12011_v20 }
 0x296   : > { %v2741_v51 = vmax.f32 %v2677_v41, %v2725_v43  ;;  %v2726_v33 = vmax.f32 %v2710_v44, 0.0  ;;  %v9343_v54 = vpop.f32.mrb[8].mxu1  ;;  %9679 = vmatprep.subr.bf16.mxu1 %v10607_v16  ;;  %v2645_v56 = vmul.f32 %v9323_v53, %v11922_v19  ;;  %v2445_v42 = vpop.f32.mrb[9].mxu0 }
 0x297   : > { %2760 = vst.msk [vmem:[#allocation2 + $0x32] sm:$0xff] %vm2753_vm3, %v2743_v49  ;;  %v2744_v57 = vmax.f32 %v2680_v46, %v2728_v48  ;;  %v2699_v58 = vmul.f32 %v9343_v54, %v11922_v19  ;;  %v2582_v59 = vpop.f32.mrb[9].mxu1  ;;  %v2643_v34 = vmul.f32 %v11922_v19, %v2445_v42  ;;  %v9324_v63 = vpop.f32.mrb[10].mxu0 }
 0x298   : > { %2758 = vst.msk [vmem:[#allocation2 + $0x22] sm:$0xff] %vm2753_vm3, %v2741_v51  ;;  %v2742_v8 = vmax.f32 %v2678_v52, %v2726_v33  ;;  %v2697_v62 = vmul.f32 %v11922_v19, %v2582_v59  ;;  %v9344_v0 = vpop.f32.mrb[10].mxu1  ;;  %v2667_v2 = vadd.f32 %v11931_v25, %v2645_v56  ;;  %v2646_v6 = vmul.f32 %v9324_v63, %v11922_v19  ;;  %v2448_v61 = vpop.f32.mrb[11].mxu0 }
 0x299   : > { %2761 = vst.msk [vmem:[#allocation2 + $0x3a] sm:$0xff] %vm2753_vm3, %v2744_v57  ;;  %v2715_v4 = vadd.f32 %v11931_v25, %v2699_v58  ;;  %v2700_v7 = vmul.f32 %v9344_v0, %v11922_v19  ;;  %v2585_v3 = vpop.f32.mrb[11].mxu1  ;;  %9632 = vmatpush3.bf16.msra.mxu0 %v10607_v16  ;;  %v2665_v12 = vadd.f32 %v11931_v25, %v2643_v34 }
 0x29a   : > { %2759 = vst.msk [vmem:[#allocation2 + $0x2a] sm:$0xff] %vm2753_vm3, %v2742_v8  ;;  %v2713_v13 = vadd.f32 %v11931_v25, %v2697_v62  ;;  %v2644_v14 = vmul.f32 %v11922_v19, %v2448_v61  ;;  %v2698_v15 = vmul.f32 %v11922_v19, %v2585_v3  ;;  %9680 = vmatpush3.bf16.msra.mxu1 %v10607_v16  ;;  %v2683_v22 = vmax.f32 %v2667_v2, 0.0  ;;  %v8480_v61 = vld [vmem:[%s11301_s22 + $0x1f1] ss:$2 sm:$0x1f] }
 0x29b   : > { %v2731_v23 = vmax.f32 %v2715_v4, 0.0  ;;  %v2668_v24 = vadd.f32 %v11931_v25, %v2646_v6  ;;  %v2716_v26 = vadd.f32 %v11931_v25, %v2700_v7  ;;  %9598 = vmatmul.mubr.msk.bf16.gmra.mrb[20].mxu0 %vm622_vm1, %v11899_v9  ;;  %9618 = vmatmul.mubr.msk.bf16.gmra.mrb[20].mxu1 %vm622_vm1, %v4639_v60  ;;  %v2681_v29 = vmax.f32 %v2665_v12, 0.0  ;;  %v8477_v9 = vld [vmem:[%s11301_s22 + $0x1c1] ss:$2 sm:$0xff] }
 0x29c   : > { %v2729_v30 = vmax.f32 %v2713_v13, 0.0  ;;  %v2666_v31 = vadd.f32 %v11931_v25, %v2644_v14  ;;  %v2714_v10 = vadd.f32 %v11931_v25, %v2698_v15  ;;  %9601 = vmatprep.mubr.msk.bf16.mxu0 %vm622_vm1, %v11901_v11  ;;  %9621 = vmatprep.mubr.msk.bf16.mxu1 %vm622_vm1, %v4640_v1  ;;  %v4642_v52 = vpack.c.bf16 %v8478_v38, %v8477_v9  ;;  %v8479_v1 = vld [vmem:[%s11301_s22 + $0x1e1] ss:$2 sm:$0xff]  ;;  %v5135_v15 = vld [vmem:[#allocation2 + $0x12] ss:$2 sm:$0xff] }
 0x29d   : > { %v2747_v35 = vmax.f32 %v2683_v22, %v2731_v23  ;;  %v2684_v37 = vmax.f32 %v2668_v24, 0.0  ;;  %v2732_v16 = vmax.f32 %v2716_v26, 0.0  ;;  %9633 = vmatprep.subr.bf16.mxu0 %v10608_v5  ;;  %9681 = vmatprep.subr.bf16.mxu1 %v10608_v5  ;;  %v9327_v41 = vpop.f32.mrb[12].mxu0  ;;  %v4643_v22 = vpack.c.bf16 %v8480_v61, %v8479_v1  ;;  %v5084_v23 = vld [vmem:[#allocation2 + $0x1] ss:$2 sm:$0xff] }
 0x29e   : > { %v2745_v21 = vmax.f32 %v2681_v29, %v2729_v30  ;;  %v2682_v39 = vmax.f32 %v2666_v31, 0.0  ;;  %v2730_v40 = vmax.f32 %v2714_v10, 0.0  ;;  %v9347_v43 = vpop.f32.mrb[12].mxu1  ;;  %9634 = vmatpush3.bf16.msra.mxu0 %v10608_v5  ;;  %9682 = vmatpush3.bf16.msra.mxu1 %v10608_v5  ;;  %v2649_v44 = vmul.f32 %v9327_v41, %v11922_v19  ;;  %v2461_v47 = vpop.f32.mrb[13].mxu0  ;;  %v5086_v24 = vld [vmem:[#allocation2 + $0x11] ss:$2 sm:$0xff] }
 0x29f   : > { %2764 = vst.msk [vmem:[#allocation2 + $0x52] sm:$0xff] %vm2753_vm3, %v2747_v35  ;;  %v2748_v11 = vmax.f32 %v2684_v37, %v2732_v16  ;;  %v2703_v45 = vmul.f32 %v9347_v43, %v11922_v19  ;;  %v2598_v49 = vpop.f32.mrb[13].mxu1  ;;  %9635 = vmatprep.subr.bf16.mxu0 %v12019_v28  ;;  %9683 = vmatprep.subr.bf16.mxu1 %v12019_v28  ;;  %v9328_v55 = vpop.f32.mrb[14].mxu0  ;;  %v10611_v41 = vld [vmem:[#allocation9 + $0x8] sm:$0xff]   ;;  %v10612_v43 = vld [vmem:[#allocation9 + $0x10] sm:$0xff]  }
 0x2a0   : > { %2762 = vst.msk [vmem:[#allocation2 + $0x42] sm:$0xff] %vm2753_vm3, %v2745_v21  ;;  %v2746_v46 = vmax.f32 %v2682_v39, %v2730_v40  ;;  %v2647_v48 = vmul.f32 %v11922_v19, %v2461_v47  ;;  %v2701_v50 = vmul.f32 %v11922_v19, %v2598_v49  ;;  %v9348_v51 = vpop.f32.mrb[14].mxu1  ;;  %v2671_v33 = vadd.f32 %v11931_v25, %v2649_v44  ;;  %v2464_v56 = vpop.f32.mrb[15].mxu0  ;;  %v5139_v30 = vld [vmem:[#allocation2 + $0x32] ss:$2 sm:$0xff] }
 0x2a1   : > { %2765 = vst.msk [vmem:[#allocation2 + $0x5a] sm:$0xff] %vm2753_vm3, %v2748_v11  ;;  %v2719_v53 = vadd.f32 %v11931_v25, %v2703_v45  ;;  %v2650_v54 = vmul.f32 %v9328_v55, %v11922_v19  ;;  %v2704_v57 = vmul.f32 %v9348_v51, %v11922_v19  ;;  %v2601_v58 = vpop.f32.mrb[15].mxu1  ;;  %v2648_v60 = vmul.f32 %v11922_v19, %v2464_v56  ;;  %v5088_v29 = vld [vmem:[#allocation2 + $0x21] ss:$2 sm:$0xff]  ;;  %v5090_v31 = vld [vmem:[#allocation2 + $0x31] ss:$2 sm:$0xff] }
 0x2a2   : > { %2763 = vst.msk [vmem:[#allocation2 + $0x4a] sm:$0xff] %vm2753_vm3, %v2746_v46  ;;  %v2669_v42 = vadd.f32 %v11931_v25, %v2647_v48  ;;  %v2717_v59 = vadd.f32 %v11931_v25, %v2701_v50  ;;  %v2702_v8 = vmul.f32 %v11922_v19, %v2601_v58  ;;  %9636 = vmatpush3.bf16.msra.mxu0 %v12019_v28  ;;  %v2687_v34 = vmax.f32 %v2671_v33, 0.0  ;;  %v5137_v10 = vld [vmem:[#allocation2 + $0x22] ss:$2 sm:$0xff]  ;;  %v10610_v40 = vld [vmem:[#allocation9] sm:$0xff]  }
 0x2a3   : > { %v2735_v62 = vmax.f32 %v2719_v53, 0.0  ;;  %v2672_v63 = vadd.f32 %v11931_v25, %v2650_v54  ;;  %v2720_v0 = vadd.f32 %v11931_v25, %v2704_v57  ;;  %9602 = vmatmul.mubr.msk.bf16.gmra.mrb[24].mxu0 %vm622_vm1, %v11915_v17  ;;  %9622 = vmatmul.mubr.msk.bf16.gmra.mrb[24].mxu1 %vm622_vm1, %v4641_v36  ;;  %v2670_v6 = vadd.f32 %v11931_v25, %v2648_v60  ;;  %v10613_v36 = vld [vmem:[#allocation9 + $0x18] sm:$0xff]   ;;  %v12092_v11 = vld [vmem:[#allocation9 + $0x40] sm:$0xff]  }
 0x2a4   : > { %v2685_v2 = vmax.f32 %v2669_v42, 0.0  ;;  %v2733_v4 = vmax.f32 %v2717_v59, 0.0  ;;  %v2718_v7 = vadd.f32 %v11931_v25, %v2702_v8  ;;  %9605 = vmatprep.mubr.msk.bf16.mxu0 %vm622_vm1, %v11917_v18  ;;  %9625 = vmatprep.mubr.msk.bf16.mxu1 %vm622_vm1, %v4642_v52  ;;  %v5133_v18 = vld [vmem:[#allocation2 + $0x2] ss:$2 sm:$0xff]  ;;  %v12065_v27 = vpack.c.bf16 %v5086_v24, %v5084_v23 }
 0x2a5   : > { %v2751_v3 = vmax.f32 %v2687_v34, %v2735_v62  ;;  %v2688_v5 = vmax.f32 %v2672_v63, 0.0  ;;  %v2736_v12 = vmax.f32 %v2720_v0, 0.0  ;;  %9684 = vmatpush3.bf16.msra.mxu1 %v12019_v28  ;;  %v2686_v13 = vmax.f32 %v2670_v6, 0.0  ;;  %9653 = vmatprep.subr.bf16.mxu0 %v10610_v40 }
 0x2a6   : > { %v2749_v17 = vmax.f32 %v2685_v2, %v2733_v4  ;;  %v2734_v14 = vmax.f32 %v2718_v7, 0.0  ;;  %v12067_v28 = vpack.c.bf16 %v5135_v15, %v5133_v18  ;;  %v12076_v38 = vpack.c.bf16 %v5090_v31, %v5088_v29  ;;  %9701 = vmatprep.subr.bf16.mxu1 %v10610_v40 }
 0x2a7   : > { %2768 = vst.msk [vmem:[#allocation2 + $0x72] sm:$0xff] %vm2753_vm3, %v2751_v3  ;;  %v2752_v20 = vmax.f32 %v2688_v5, %v2736_v12  ;;  %v12078_v21 = vpack.c.bf16 %v5139_v30, %v5137_v10 }
 0x2a8   : > { %2766 = vst.msk [vmem:[#allocation2 + $0x62] sm:$0xff] %vm2753_vm3, %v2749_v17  ;;  %v2750_v26 = vmax.f32 %v2686_v13, %v2734_v14  ;;  %v5143_v35 = vld [vmem:[#allocation2 + $0x52] ss:$2 sm:$0xff] }
 0x2a9   : > { %2770 = vst.msk [vmem:[#allocation2 + $0x7a] sm:$0x1f] %vm2769_vm4, %v2752_v20  ;;  %v5092_v37 = vld [vmem:[#allocation2 + $0x41] ss:$2 sm:$0xff]  ;;  %v5094_v16 = vld [vmem:[#allocation2 + $0x51] ss:$2 sm:$0xff] }
 0x2aa   : > { %2767 = vst.msk [vmem:[#allocation2 + $0x6a] sm:$0xff] %vm2753_vm3, %v2750_v26  ;;  %v5141_v9 = vld [vmem:[#allocation2 + $0x42] ss:$2 sm:$0xff] }
 0x2ab   : > { %9606 = vmatmul.mubr.msk.bf16.gmra.mrb[28].mxu0 %vm622_vm1, %v11935_v32  ;;  %9626 = vmatmul.mubr.msk.bf16.gmra.mrb[28].mxu1 %vm622_vm1, %v4643_v22  ;;  %v12080_v32 = vpack.c.bf16 %v5094_v16, %v5092_v37  ;;  %v12082_v39 = vpack.c.bf16 %v5143_v35, %v5141_v9 }
 0x2ac   : > { %9637 = vmatprep.mubr.msk.bf16.mxu0 %vm2753_vm3, %v12065_v27  ;;  %9685 = vmatprep.mubr.msk.bf16.mxu1 %vm2753_vm3, %v12067_v28 }
 0x2b3   : > { %9638 = vmatmul.mubr.msk.bf16.vlgmr.msra.gmra.mrb[32].mxu0 %vm2753_vm3, %v12076_v38  ;;  %9686 = vmatmul.mubr.msk.bf16.vlgmr.msra.gmra.mrb[32].mxu1 %vm2753_vm3, %v12078_v21 }
 0x2b4   : > { %9641 = vmatprep.mubr.msk.bf16.mxu0 %vm2753_vm3, %v12080_v32  ;;  %9689 = vmatprep.mubr.msk.bf16.mxu1 %vm2753_vm3, %v12082_v39 }
 0x2b5   : > { %9654 = vmatpush3.bf16.msra.mxu0 %v10610_v40  ;;  %9702 = vmatpush3.bf16.msra.mxu1 %v10610_v40 }
 0x2b6   : > { %9655 = vmatprep.subr.bf16.mxu0 %v10611_v41  ;;  %9703 = vmatprep.subr.bf16.mxu1 %v10611_v41 }
 0x2b9   : > { %9656 = vmatpush3.bf16.msra.mxu0 %v10611_v41  ;;  %9704 = vmatpush3.bf16.msra.mxu1 %v10611_v41 }
 0x2ba   : > { %9657 = vmatprep.subr.bf16.mxu0 %v10612_v43  ;;  %9705 = vmatprep.subr.bf16.mxu1 %v10612_v43 }
 0x2bd   : > { %9658 = vmatpush3.bf16.msra.mxu0 %v10612_v43  ;;  %9706 = vmatpush3.bf16.msra.mxu1 %v10612_v43 }
 0x2be   : > { %9659 = vmatprep.subr.bf16.mxu0 %v10613_v36  ;;  %9707 = vmatprep.subr.bf16.mxu1 %v10613_v36 }
 0x2c1   : > { %9660 = vmatpush3.bf16.msra.mxu0 %v10613_v36  ;;  %9708 = vmatpush3.bf16.msra.mxu1 %v10613_v36 }
 0x2c2   : > { %9725 = vmatprep.subr.bf16.mxu0 %v12092_v11  ;;  %9749 = vmatprep.subr.bf16.mxu1 %v12092_v11 }
 0x365   : > { %v9595_v44 = vpop.f32.mrb[16].mxu0 }
 0x366   : > { %v9615_v45 = vpop.f32.mrb[16].mxu1  ;;  %v4908_v47 = vmul.f32 %v9595_v44, %v11922_v19  ;;  %v4690_v46 = vpop.f32.mrb[17].mxu0 }
 0x367   : > { %v4956_v49 = vmul.f32 %v9615_v45, %v11922_v19  ;;  %v4827_v48 = vpop.f32.mrb[17].mxu1  ;;  %v4906_v50 = vmul.f32 %v11922_v19, %v4690_v46  ;;  %v9596_v51 = vpop.f32.mrb[18].mxu0 }
 0x368   : > { %v4954_v55 = vmul.f32 %v11922_v19, %v4827_v48  ;;  %v9616_v52 = vpop.f32.mrb[18].mxu1  ;;  %v4924_v33 = vadd.f32 %v11931_v25, %v4908_v47  ;;  %v4909_v54 = vmul.f32 %v9596_v51, %v11922_v19  ;;  %v4693_v56 = vpop.f32.mrb[19].mxu0 }
 0x369   : > { %v4972_v53 = vadd.f32 %v11931_v25, %v4956_v49  ;;  %v4957_v57 = vmul.f32 %v9616_v52, %v11922_v19  ;;  %v4830_v58 = vpop.f32.mrb[19].mxu1  ;;  %v4922_v42 = vadd.f32 %v11931_v25, %v4906_v50  ;;  %v4907_v60 = vmul.f32 %v11922_v19, %v4693_v56 }
 0x36a   : > { %v4970_v59 = vadd.f32 %v11931_v25, %v4954_v55  ;;  %v4955_v8 = vmul.f32 %v11922_v19, %v4830_v58  ;;  %v4940_v34 = vmax.f32 %v4924_v33, 0.0  ;;  %v4925_v63 = vadd.f32 %v11931_v25, %v4909_v54 }
 0x36b   : > { %v4988_v62 = vmax.f32 %v4972_v53, 0.0  ;;  %v4973_v0 = vadd.f32 %v11931_v25, %v4957_v57  ;;  %v4938_v1 = vmax.f32 %v4922_v42, 0.0  ;;  %v4923_v4 = vadd.f32 %v11931_v25, %v4907_v60 }
 0x36c   : > { %v4986_v2 = vmax.f32 %v4970_v59, 0.0  ;;  %v4971_v6 = vadd.f32 %v11931_v25, %v4955_v8  ;;  %v4941_v61 = vmax.f32 %v4925_v63, 0.0  ;;  %v5096_v63 = vld [vmem:[#allocation2 + $0x61] ss:$2 sm:$0xff] }
 0x36d   : > { %v5004_v7 = vmax.f32 %v4940_v34, %v4988_v62  ;;  %v4989_v3 = vmax.f32 %v4973_v0, 0.0  ;;  %v4939_v12 = vmax.f32 %v4923_v4, 0.0 }
 0x36e   : > { %v5002_v5 = vmax.f32 %v4938_v1, %v4986_v2  ;;  %v4987_v17 = vmax.f32 %v4971_v6, 0.0  ;;  %v9599_v13 = vpop.f32.mrb[20].mxu0  ;;  %v9619_v14 = vpop.f32.mrb[20].mxu1 }
 0x36f   : > { %5020 = vst.msk [vmem:[#allocation2 + $0x8f] sm:$0xff] %vm2753_vm3, %v5004_v7  ;;  %v5005_v15 = vmax.f32 %v4941_v61, %v4989_v3  ;;  %v4912_v20 = vmul.f32 %v9599_v13, %v11922_v19  ;;  %v4960_v22 = vmul.f32 %v9619_v14, %v11922_v19  ;;  %v4706_v23 = vpop.f32.mrb[21].mxu0  ;;  %v4843_v24 = vpop.f32.mrb[21].mxu1 }
 0x370   : > { %5018 = vst.msk [vmem:[#allocation2 + $0x7f] sm:$0xff] %vm2753_vm3, %v5002_v5  ;;  %v5003_v18 = vmax.f32 %v4939_v12, %v4987_v17  ;;  %v4910_v26 = vmul.f32 %v11922_v19, %v4706_v23  ;;  %v4958_v29 = vmul.f32 %v11922_v19, %v4843_v24  ;;  %v9600_v30 = vpop.f32.mrb[22].mxu0  ;;  %v9620_v31 = vpop.f32.mrb[22].mxu1 }
 0x371   : > { %5021 = vst.msk [vmem:[#allocation2 + $0x97] sm:$0xff] %vm2753_vm3, %v5005_v15  ;;  %v4928_v10 = vadd.f32 %v11931_v25, %v4912_v20  ;;  %v4976_v35 = vadd.f32 %v11931_v25, %v4960_v22  ;;  %v4913_v37 = vmul.f32 %v9600_v30, %v11922_v19  ;;  %v4961_v16 = vmul.f32 %v9620_v31, %v11922_v19  ;;  %v4709_v9 = vpop.f32.mrb[23].mxu0  ;;  %v4846_v40 = vpop.f32.mrb[23].mxu1 }
 0x372   : > { %5019 = vst.msk [vmem:[#allocation2 + $0x87] sm:$0xff] %vm2753_vm3, %v5003_v18  ;;  %v4926_v41 = vadd.f32 %v11931_v25, %v4910_v26  ;;  %v4974_v43 = vadd.f32 %v11931_v25, %v4958_v29  ;;  %v4911_v36 = vmul.f32 %v11922_v19, %v4709_v9  ;;  %v4959_v44 = vmul.f32 %v11922_v19, %v4846_v40 }
 0x373   : > { %v4944_v45 = vmax.f32 %v4928_v10, 0.0  ;;  %v4992_v47 = vmax.f32 %v4976_v35, 0.0  ;;  %v4929_v49 = vadd.f32 %v11931_v25, %v4913_v37  ;;  %v4977_v46 = vadd.f32 %v11931_v25, %v4961_v16  ;;  %v5145_v16 = vld [vmem:[#allocation2 + $0x62] ss:$2 sm:$0xff] }
 0x374   : > { %v4942_v48 = vmax.f32 %v4926_v41, 0.0  ;;  %v4990_v50 = vmax.f32 %v4974_v43, 0.0  ;;  %v4927_v55 = vadd.f32 %v11931_v25, %v4911_v36  ;;  %v4975_v51 = vadd.f32 %v11931_v25, %v4959_v44 }
 0x375   : > { %v5008_v52 = vmax.f32 %v4944_v45, %v4992_v47  ;;  %v4945_v33 = vmax.f32 %v4929_v49, 0.0  ;;  %v4993_v53 = vmax.f32 %v4977_v46, 0.0 }
 0x376   : > { %v5006_v54 = vmax.f32 %v4942_v48, %v4990_v50  ;;  %v4943_v57 = vmax.f32 %v4927_v55, 0.0  ;;  %v4991_v56 = vmax.f32 %v4975_v51, 0.0  ;;  %v9603_v58 = vpop.f32.mrb[24].mxu0  ;;  %v9623_v42 = vpop.f32.mrb[24].mxu1 }
 0x377   : > { %5024 = vst.msk [vmem:[#allocation2 + $0xaf] sm:$0xff] %vm2753_vm3, %v5008_v52  ;;  %v5009_v59 = vmax.f32 %v4945_v33, %v4993_v53  ;;  %v4916_v60 = vmul.f32 %v9603_v58, %v11922_v19  ;;  %v4964_v8 = vmul.f32 %v9623_v42, %v11922_v19  ;;  %v4722_v34 = vpop.f32.mrb[25].mxu0  ;;  %v4859_v62 = vpop.f32.mrb[25].mxu1  ;;  %v5098_v0 = vld [vmem:[#allocation2 + $0x71] ss:$2 sm:$0xff] }
 0x378   : > { %5022 = vst.msk [vmem:[#allocation2 + $0x9f] sm:$0xff] %vm2753_vm3, %v5006_v54  ;;  %v5007_v1 = vmax.f32 %v4943_v57, %v4991_v56  ;;  %v4914_v2 = vmul.f32 %v11922_v19, %v4722_v34  ;;  %v4962_v4 = vmul.f32 %v11922_v19, %v4859_v62  ;;  %v9604_v6 = vpop.f32.mrb[26].mxu0  ;;  %v9624_v7 = vpop.f32.mrb[26].mxu1  ;;  %v12138_v61 = vpack.c.bf16 %v5098_v0, %v5096_v63  ;;  %v5147_v24 = vld [vmem:[#allocation2 + $0x72] ss:$2 sm:$0xff] }
 0x379   : > { %5025 = vst.msk [vmem:[#allocation2 + $0xb7] sm:$0xff] %vm2753_vm3, %v5009_v59  ;;  %v4932_v3 = vadd.f32 %v11931_v25, %v4916_v60  ;;  %v4980_v5 = vadd.f32 %v11931_v25, %v4964_v8  ;;  %v4917_v12 = vmul.f32 %v9604_v6, %v11922_v19  ;;  %v4965_v17 = vmul.f32 %v9624_v7, %v11922_v19  ;;  %v4725_v13 = vpop.f32.mrb[27].mxu0  ;;  %v4862_v14 = vpop.f32.mrb[27].mxu1  ;;  %v5100_v52 = vld [vmem:[#allocation2 + $0x81] ss:$2 sm:$0xff] }
 0x37a   : > { %5023 = vst.msk [vmem:[#allocation2 + $0xa7] sm:$0xff] %vm2753_vm3, %v5007_v1  ;;  %v4930_v15 = vadd.f32 %v11931_v25, %v4914_v2  ;;  %v4978_v20 = vadd.f32 %v11931_v25, %v4962_v4  ;;  %v4915_v22 = vmul.f32 %v11922_v19, %v4725_v13  ;;  %v4963_v23 = vmul.f32 %v11922_v19, %v4862_v14 }
 0x37b   : > { %9642 = vmatmul.mubr.msk.bf16.gmra.mrb[36].mxu0 %vm2753_vm3, %v12138_v61  ;;  %v4948_v18 = vmax.f32 %v4932_v3, 0.0  ;;  %v4996_v26 = vmax.f32 %v4980_v5, 0.0  ;;  %v4933_v29 = vadd.f32 %v11931_v25, %v4917_v12  ;;  %v4981_v30 = vadd.f32 %v11931_v25, %v4965_v17 }
 0x37c   : > { %v4946_v31 = vmax.f32 %v4930_v15, 0.0  ;;  %v4994_v10 = vmax.f32 %v4978_v20, 0.0  ;;  %v4931_v35 = vadd.f32 %v11931_v25, %v4915_v22  ;;  %v4979_v37 = vadd.f32 %v11931_v25, %v4963_v23  ;;  %v5149_v20 = vld [vmem:[#allocation2 + $0x82] ss:$2 sm:$0xff] }
 0x37d   : > { %v5012_v9 = vmax.f32 %v4948_v18, %v4996_v26  ;;  %v4949_v40 = vmax.f32 %v4933_v29, 0.0  ;;  %v4997_v41 = vmax.f32 %v4981_v30, 0.0  ;;  %v12156_v43 = vpack.c.bf16 %v5147_v24, %v5145_v16 }
 0x37e   : > { %v5010_v36 = vmax.f32 %v4946_v31, %v4994_v10  ;;  %v4947_v44 = vmax.f32 %v4931_v35, 0.0  ;;  %v4995_v45 = vmax.f32 %v4979_v37, 0.0  ;;  %v9607_v47 = vpop.f32.mrb[28].mxu0  ;;  %v9627_v49 = vpop.f32.mrb[28].mxu1 }
 0x37f   : > { %5028 = vst.msk [vmem:[#allocation2 + $0xcf] sm:$0xff] %vm2753_vm3, %v5012_v9  ;;  %v5013_v46 = vmax.f32 %v4949_v40, %v4997_v41  ;;  %9690 = vmatmul.mubr.msk.bf16.gmra.mrb[36].mxu1 %vm2753_vm3, %v12156_v43  ;;  %v4920_v48 = vmul.f32 %v9607_v47, %v11922_v19  ;;  %v4968_v50 = vmul.f32 %v9627_v49, %v11922_v19  ;;  %v4738_v55 = vpop.f32.mrb[29].mxu0  ;;  %v4875_v51 = vpop.f32.mrb[29].mxu1  ;;  %v5102_v33 = vld [vmem:[#allocation2 + $0x91] ss:$2 sm:$0xff] }
 0x380   : > { %5026 = vst.msk [vmem:[#allocation2 + $0xbf] sm:$0xff] %vm2753_vm3, %v5010_v36  ;;  %v5011_v53 = vmax.f32 %v4947_v44, %v4995_v45  ;;  %v4918_v54 = vmul.f32 %v11922_v19, %v4738_v55  ;;  %v4966_v57 = vmul.f32 %v11922_v19, %v4875_v51  ;;  %v9608_v56 = vpop.f32.mrb[30].mxu0  ;;  %v9628_v58 = vpop.f32.mrb[30].mxu1  ;;  %v12166_v42 = vpack.c.bf16 %v5102_v33, %v5100_v52  ;;  %v5151_v6 = vld [vmem:[#allocation2 + $0x92] ss:$2 sm:$0xff] }
 0x381   : > { %5029 = vst.msk [vmem:[#allocation2 + $0xd7] sm:$0xff] %vm2753_vm3, %v5013_v46  ;;  %v4936_v59 = vadd.f32 %v11931_v25, %v4920_v48  ;;  %v4984_v60 = vadd.f32 %v11931_v25, %v4968_v50  ;;  %v4921_v8 = vmul.f32 %v9608_v56, %v11922_v19  ;;  %v4969_v34 = vmul.f32 %v9628_v58, %v11922_v19  ;;  %v4741_v62 = vpop.f32.mrb[31].mxu0  ;;  %v4878_v63 = vpop.f32.mrb[31].mxu1  ;;  %v5104_v30 = vld [vmem:[#allocation2 + $0xa1] ss:$2 sm:$0xff] }
 0x382   : > { %5027 = vst.msk [vmem:[#allocation2 + $0xc7] sm:$0xff] %vm2753_vm3, %v5011_v53  ;;  %v4934_v0 = vadd.f32 %v11931_v25, %v4918_v54  ;;  %v4982_v1 = vadd.f32 %v11931_v25, %v4966_v57  ;;  %v4919_v2 = vmul.f32 %v11922_v19, %v4741_v62  ;;  %v4967_v4 = vmul.f32 %v11922_v19, %v4878_v63  ;;  %v5153_v35 = vld [vmem:[#allocation2 + $0xa2] ss:$2 sm:$0xff] }
 0x383   : > { %9645 = vmatprep.mubr.msk.bf16.mxu0 %vm2753_vm3, %v12166_v42  ;;  %v4952_v7 = vmax.f32 %v4936_v59, 0.0  ;;  %v5000_v3 = vmax.f32 %v4984_v60, 0.0  ;;  %v4937_v5 = vadd.f32 %v11931_v25, %v4921_v8  ;;  %v4985_v12 = vadd.f32 %v11931_v25, %v4969_v34  ;;  %v5044_v41 = vld [vmem:[#allocation2] ss:$2 sm:$0xff]  ;;  %v5046_v36 = vld [vmem:[#allocation2 + $0x10] ss:$2 sm:$0xff] }
 0x384   : > { %v4950_v17 = vmax.f32 %v4934_v0, 0.0  ;;  %v4998_v13 = vmax.f32 %v4982_v1, 0.0  ;;  %v4935_v14 = vadd.f32 %v11931_v25, %v4919_v2  ;;  %v4983_v15 = vadd.f32 %v11931_v25, %v4967_v4  ;;  %v5048_v54 = vld [vmem:[#allocation2 + $0x20] ss:$2 sm:$0xff]  ;;  %v5050_v57 = vld [vmem:[#allocation2 + $0x30] ss:$2 sm:$0xff] }
 0x385   : > { %v5016_v22 = vmax.f32 %v4952_v7, %v5000_v3  ;;  %v4953_v23 = vmax.f32 %v4937_v5, 0.0  ;;  %v5001_v19 = vmax.f32 %v4985_v12, 0.0  ;;  %v12184_v24 = vpack.c.bf16 %v5151_v6, %v5149_v20  ;;  %v5052_v56 = vld [vmem:[#allocation2 + $0x40] ss:$2 sm:$0xff]  ;;  %v5054_v58 = vld [vmem:[#allocation2 + $0x50] ss:$2 sm:$0xff] }
 0x386   : > { %v5014_v18 = vmax.f32 %v4950_v17, %v4998_v13  ;;  %v4951_v26 = vmax.f32 %v4935_v14, 0.0  ;;  %v4999_v29 = vmax.f32 %v4983_v15, 0.0  ;;  %v5075_v53 = vpack.c.bf16 %v5046_v36, %v5044_v41  ;;  %v10615_v8 = vld [vmem:[#allocation9 + $0x48] sm:$0xff]   ;;  %v5058_v34 = vld [vmem:[#allocation2 + $0x70] ss:$2 sm:$0xff]  ;;  %v10616_v62 = vld [vmem:[#allocation9 + $0x50] sm:$0xff]  }
 0x387   : > { %5032 = vst.msk [vmem:[#allocation2 + $0xef] sm:$0xff] %vm2753_vm3, %v5016_v22  ;;  %v5017_v31 = vmax.f32 %v4953_v23, %v5001_v19  ;;  %9693 = vmatprep.mubr.msk.bf16.mxu1 %vm2753_vm3, %v12184_v24  ;;  %v5106_v10 = vld [vmem:[#allocation2 + $0xb1] ss:$2 sm:$0xff]  ;;  %v5155_v37 = vld [vmem:[#allocation2 + $0xb2] ss:$2 sm:$0xff]  ;;  %v5076_v59 = vpack.c.bf16 %v5050_v57, %v5048_v54  ;;  %v5077_v60 = vpack.c.bf16 %v5054_v58, %v5052_v56  ;;  %v10624_v54 = vld [vmem:[#allocation9 + $0x90] sm:$0xff]  }
 0x388   : > { %5030 = vst.msk [vmem:[#allocation2 + $0xdf] sm:$0xff] %vm2753_vm3, %v5014_v18  ;;  %v5015_v25 = vmax.f32 %v4951_v26, %v4999_v29  ;;  %v12190_v16 = vpack.c.bf16 %v5106_v10, %v5104_v30  ;;  %v12192_v9 = vpack.c.bf16 %v5155_v37, %v5153_v35  ;;  %v5060_v63 = vld [vmem:[#allocation2 + $0x80] ss:$2 sm:$0xff]  ;;  %v5062_v0 = vld [vmem:[#allocation2 + $0x90] ss:$2 sm:$0xff] }
 0x389   : > { %5033 = vst.msk [vmem:[#allocation2 + $0xf7] sm:$0x1f] %vm2769_vm4, %v5017_v31  ;;  %v5108_v40 = vld [vmem:[#allocation2 + $0xc1] ss:$2 sm:$0xff]  ;;  %v5157_v45 = vld [vmem:[#allocation2 + $0xc2] ss:$2 sm:$0xff] }
 0x38a   : > { %5031 = vst.msk [vmem:[#allocation2 + $0xe7] sm:$0xff] %vm2753_vm3, %v5015_v25  ;;  %9646 = vmatmul.mubr.msk.bf16.gmra.mrb[40].mxu0 %vm2753_vm3, %v12190_v16  ;;  %9694 = vmatmul.mubr.msk.bf16.gmra.mrb[40].mxu1 %vm2753_vm3, %v12192_v9  ;;  %v10617_v2 = vld [vmem:[#allocation9 + $0x58] sm:$0xff]   ;;  %v10618_v4 = vld [vmem:[#allocation9 + $0x60] sm:$0xff]   ;;  %v5068_v6 = vld [vmem:[#allocation2 + $0xc0] ss:$2 sm:$0xff] }
 0x38b   : > { %v5070_v7 = vld [vmem:[#allocation2 + $0xd0] ss:$2 sm:$0xff]  ;;  %v5690_v12 = vld [vmem:[#allocation2 + $0x3] ss:$2 sm:$0xff]  ;;  %v5692_v17 = vld [vmem:[#allocation2 + $0x13] ss:$2 sm:$0xff] }
 0x38c   : > { %v5081_v5 = vpack.c.bf16 %v5070_v7, %v5068_v6  ;;  %v12239_v14 = vpack.c.bf16 %v5692_v17, %v5690_v12  ;;  %v5694_v15 = vld [vmem:[#allocation2 + $0x23] ss:$2 sm:$0xff]  ;;  %v5696_v20 = vld [vmem:[#allocation2 + $0x33] ss:$2 sm:$0xff]  ;;  %v6031_v57 = vld [vmem:[#allocation2 + $0x94] ss:$2 sm:$0xff] }
 0x38d   : > { %v5698_v22 = vld [vmem:[#allocation2 + $0x43] ss:$2 sm:$0xff]  ;;  %v5700_v23 = vld [vmem:[#allocation2 + $0x53] ss:$2 sm:$0xff]  ;;  %v12248_v19 = vpack.c.bf16 %v5696_v20, %v5694_v15  ;;  %v6025_v56 = vld [vmem:[#allocation2 + $0x64] ss:$2 sm:$0xff] }
 0x38e   : > { %v12250_v18 = vpack.c.bf16 %v5700_v23, %v5698_v22  ;;  %v10619_v26 = vld [vmem:[#allocation9 + $0x68] sm:$0xff]   ;;  %v10620_v29 = vld [vmem:[#allocation9 + $0x70] sm:$0xff]   ;;  %v10622_v25 = vld [vmem:[#allocation9 + $0x80] sm:$0xff]  }
 0x38f   : > { %v5110_v44 = vld [vmem:[#allocation2 + $0xd1] ss:$2 sm:$0xff]  ;;  %v5159_v47 = vld [vmem:[#allocation2 + $0xd2] ss:$2 sm:$0xff] }
 0x390   : > { %v12200_v49 = vpack.c.bf16 %v5110_v44, %v5108_v40  ;;  %v12202_v46 = vpack.c.bf16 %v5159_v47, %v5157_v45  ;;  %v5114_v48 = vld [vmem:[#allocation2 + $0xf1] ss:$2 sm:$0x1f]  ;;  %v5163_v50 = vld [vmem:[#allocation2 + $0xf2] ss:$2 sm:$0x1f] }
 0x391   : > { %v5112_v55 = vld [vmem:[#allocation2 + $0xe1] ss:$2 sm:$0xff]  ;;  %v5161_v51 = vld [vmem:[#allocation2 + $0xe2] ss:$2 sm:$0xff] }
 0x392   : > { %9649 = vmatprep.mubr.msk.bf16.mxu0 %vm2753_vm3, %v12200_v49  ;;  %9697 = vmatprep.mubr.msk.bf16.mxu1 %vm2753_vm3, %v12202_v46  ;;  %v12208_v52 = vpack.c.bf16 %v5114_v48, %v5112_v55  ;;  %v12210_v33 = vpack.c.bf16 %v5163_v50, %v5161_v51  ;;  %v5708_v30 = vld [vmem:[#allocation2 + $0x93] ss:$2 sm:$0xff]  ;;  %v5702_v31 = vld [vmem:[#allocation2 + $0x63] ss:$2 sm:$0xff]  ;;  %v6015_v45 = vld [vmem:[#allocation2 + $0x14] ss:$2 sm:$0xff] }
 0x393   : > { %v5712_v37 = vld [vmem:[#allocation2 + $0xb3] ss:$2 sm:$0xff]  ;;  %v5710_v40 = vld [vmem:[#allocation2 + $0xa3] ss:$2 sm:$0xff]  ;;  %v6017_v50 = vld [vmem:[#allocation2 + $0x24] ss:$2 sm:$0xff] }
 0x394   : > { %9650 = vmatmul.mubr.msk.bf16.gmra.mrb[44].mxu0 %vm2753_vm3, %v12208_v52  ;;  %9698 = vmatmul.mubr.msk.bf16.gmra.mrb[44].mxu1 %vm2753_vm3, %v12210_v33  ;;  %v12272_v41 = vpack.c.bf16 %v5712_v37, %v5710_v40  ;;  %v5720_v44 = vld [vmem:[#allocation2 + $0xf3] ss:$2 sm:$0x1f]  ;;  %v6021_v51 = vld [vmem:[#allocation2 + $0x44] ss:$2 sm:$0xff] }
 0x395   : > { %9661 = vmatprep.mubr.msk.bf16.mxu0 %vm2753_vm3, %v5075_v53  ;;  %9709 = vmatprep.mubr.msk.bf16.mxu1 %vm2753_vm3, %v12065_v27  ;;  %v5056_v27 = vld [vmem:[#allocation2 + $0x60] ss:$2 sm:$0xff]  ;;  %v6336_v6 = vld [vmem:[#allocation2 + $0x5] ss:$2 sm:$0xff]  ;;  %v6350_v20 = vld [vmem:[#allocation2 + $0x75] ss:$2 sm:$0xff] }
 0x396   : > { %v5078_v1 = vpack.c.bf16 %v5058_v34, %v5056_v27  ;;  %v10623_v53 = vld [vmem:[#allocation9 + $0x88] sm:$0xff]   ;;  %v10629_v15 = vld [vmem:[#allocation14 + $0x90] ss:$8 sps:$4 sm:$0xff]  }
 0x397   : > { %v6035_v27 = vld [vmem:[#allocation2 + $0xb4] ss:$2 sm:$0xff]  ;;  %v6344_v12 = vld [vmem:[#allocation2 + $0x45] ss:$2 sm:$0xff]  ;;  %v6354_v23 = vld [vmem:[#allocation2 + $0x95] ss:$2 sm:$0xff] }
 0x398   : > { %v10628_v34 = vld [vmem:[#allocation14 + $0x84] ss:$8 sps:$4 sm:$0xff]   ;;  %v10626_v17 = vld [vmem:[#allocation14 + $0x80] ss:$8 sps:$4 sm:$0xff]   ;;  %v10635_v40 = vld [vmem:[#allocation14 + $0xb0] ss:$8 sps:$4 sm:$0xff]  }
 0x399   : > { %v10634_v22 = vld [vmem:[#allocation14 + $0xa4] ss:$8 sps:$4 sm:$0xff]  }
 0x39a   : > { %v6364_v37 = vld [vmem:[#allocation2 + $0xe5] ss:$2 sm:$0xff] }
 0x39c   : > { %9662 = vmatmul.mubr.msk.bf16.vlgmr.msra.gmra.mrb[32].mxu0 %vm2753_vm3, %v5076_v59  ;;  %9710 = vmatmul.mubr.msk.bf16.vlgmr.msra.gmra.mrb[32].mxu1 %vm2753_vm3, %v12076_v38  ;;  %v5079_v38 = vpack.c.bf16 %v5062_v0, %v5060_v63  ;;  %v6029_v59 = vld [vmem:[#allocation2 + $0x84] ss:$2 sm:$0xff] }
 0x39d   : > { %9665 = vmatprep.mubr.msk.bf16.mxu0 %vm2753_vm3, %v5077_v60  ;;  %9713 = vmatprep.mubr.msk.bf16.mxu1 %vm2753_vm3, %v12080_v32  ;;  %v5064_v32 = vld [vmem:[#allocation2 + $0xa0] ss:$2 sm:$0xff]  ;;  %v12310_v60 = vpack.c.bf16 %v6031_v57, %v6029_v59 }
 0x39e   : > { %9726 = vmatpush3.bf16.msra.mxu0 %v12092_v11  ;;  %9750 = vmatpush3.bf16.msra.mxu1 %v12092_v11  ;;  %v5066_v11 = vld [vmem:[#allocation2 + $0xb0] ss:$2 sm:$0xff] }
 0x39f   : > { %9727 = vmatprep.subr.bf16.mxu0 %v10615_v8  ;;  %9751 = vmatprep.subr.bf16.mxu1 %v10615_v8  ;;  %v5080_v3 = vpack.c.bf16 %v5066_v11, %v5064_v32  ;;  %v6033_v63 = vld [vmem:[#allocation2 + $0xa4] ss:$2 sm:$0xff]  ;;  %v6043_v32 = vld [vmem:[#allocation2 + $0xf4] ss:$2 sm:$0x1f] }
 0x3a0   : > { %v6049_v0 = vpack.c.bf16 %v6035_v27, %v6033_v63  ;;  %v6338_v11 = vld [vmem:[#allocation2 + $0x15] ss:$2 sm:$0xff] }
 0x3a1   : > { %v6367_v7 = vpack.c.bf16 %v6338_v11, %v6336_v6 }
 0x3a2   : > { %9728 = vmatpush3.bf16.msra.mxu0 %v10615_v8  ;;  %9752 = vmatpush3.bf16.msra.mxu1 %v10615_v8  ;;  %v10625_v8 = vld [vmem:[#allocation9 + $0x98] sm:$0xff]  }
 0x3a3   : > { %9729 = vmatprep.subr.bf16.mxu0 %v10616_v62  ;;  %9753 = vmatprep.subr.bf16.mxu1 %v10616_v62 }
 0x3a4   : > { %9666 = vmatmul.mubr.msk.bf16.gmra.mrb[36].mxu0 %vm2753_vm3, %v5078_v1  ;;  %9714 = vmatmul.mubr.msk.bf16.gmra.mrb[36].mxu1 %vm2753_vm3, %v12138_v61  ;;  %v5072_v61 = vld [vmem:[#allocation2 + $0xe0] ss:$2 sm:$0xff] }
 0x3a5   : > { %9669 = vmatprep.mubr.msk.bf16.mxu0 %vm2753_vm3, %v5079_v38  ;;  %9717 = vmatprep.mubr.msk.bf16.mxu1 %vm2753_vm3, %v12166_v42  ;;  %v5074_v42 = vld [vmem:[#allocation2 + $0xf0] ss:$2 sm:$0x1f] }
 0x3a6   : > { %9730 = vmatpush3.bf16.msra.mxu0 %v10616_v62  ;;  %9754 = vmatpush3.bf16.msra.mxu1 %v10616_v62  ;;  %v5082_v13 = vpack.c.bf16 %v5074_v42, %v5072_v61  ;;  %v6039_v62 = vld [vmem:[#allocation2 + $0xd4] ss:$2 sm:$0xff]  ;;  %v6037_v1 = vld [vmem:[#allocation2 + $0xc4] ss:$2 sm:$0xff]  ;;  %v6340_v61 = vld [vmem:[#allocation2 + $0x25] ss:$2 sm:$0xff] }
 0x3a7   : > { %9731 = vmatprep.subr.bf16.mxu0 %v10617_v2  ;;  %9755 = vmatprep.subr.bf16.mxu1 %v10617_v2  ;;  %v6050_v38 = vpack.c.bf16 %v6039_v62, %v6037_v1 }
 0x3aa   : > { %9732 = vmatpush3.bf16.msra.mxu0 %v10617_v2  ;;  %9756 = vmatpush3.bf16.msra.mxu1 %v10617_v2  ;;  %v6041_v2 = vld [vmem:[#allocation2 + $0xe4] ss:$2 sm:$0xff] }
 0x3ab   : > { %9773 = vmatprep.subr.bf16.mxu0 %v10618_v4  ;;  %9797 = vmatprep.subr.bf16.mxu1 %v10618_v4 }
 0x3ac   : > { %9670 = vmatmul.mubr.msk.bf16.gmra.mrb[40].mxu0 %vm2753_vm3, %v5080_v3  ;;  %9718 = vmatmul.mubr.msk.bf16.gmra.mrb[40].mxu1 %vm2753_vm3, %v12190_v16  ;;  %v5716_v16 = vld [vmem:[#allocation2 + $0xd3] ss:$2 sm:$0xff] }
 0x3ad   : > { %9673 = vmatprep.mubr.msk.bf16.mxu0 %vm2753_vm3, %v5081_v5  ;;  %9721 = vmatprep.mubr.msk.bf16.mxu1 %vm2753_vm3, %v12200_v49  ;;  %v6013_v49 = vld [vmem:[#allocation2 + $0x4] ss:$2 sm:$0xff]  ;;  %v6342_v3 = vld [vmem:[#allocation2 + $0x35] ss:$2 sm:$0xff] }
 0x3ae   : > { %v12286_v48 = vpack.c.bf16 %v6015_v45, %v6013_v49  ;;  %v6346_v5 = vld [vmem:[#allocation2 + $0x55] ss:$2 sm:$0xff]  ;;  %v6368_v42 = vpack.c.bf16 %v6342_v3, %v6340_v61 }
 0x3af   : > { %v10646_v45 = vld [vmem:[#allocation14 + $0xe4] ss:$8 sps:$4 sm:$0xff]   ;;  %v10647_v49 = vld [vmem:[#allocation14 + $0xf0] ss:$8 sps:$4 sm:$0xff]  }
 0x3b4   : > { %9674 = vmatmul.mubr.msk.bf16.gmra.mrb[44].mxu0 %vm2753_vm3, %v5082_v13  ;;  %9722 = vmatmul.mubr.msk.bf16.gmra.mrb[44].mxu1 %vm2753_vm3, %v12208_v52  ;;  %v6369_v13 = vpack.c.bf16 %v6346_v5, %v6344_v12 }
 0x3b5   : > { %9733 = vmatprep.mubr.msk.bf16.mxu0 %vm2753_vm3, %v12067_v28  ;;  %9757 = vmatprep.mubr.msk.bf16.mxu1 %vm2753_vm3, %v12239_v14  ;;  %v5704_v28 = vld [vmem:[#allocation2 + $0x73] ss:$2 sm:$0xff] }
 0x3b6   : > { %v12260_v10 = vpack.c.bf16 %v5704_v28, %v5702_v31  ;;  %v10632_v28 = vld [vmem:[#allocation14 + $0xa0] ss:$8 sps:$4 sm:$0xff]  }
 0x3b7   : > { %v6362_v31 = vld [vmem:[#allocation2 + $0xd5] ss:$2 sm:$0xff] }
 0x3bc   : > { %9734 = vmatmul.mubr.msk.bf16.vlgmr.msra.gmra.mrb[32].mxu0 %vm2753_vm3, %v12078_v21  ;;  %9758 = vmatmul.mubr.msk.bf16.vlgmr.msra.gmra.mrb[32].mxu1 %vm2753_vm3, %v12248_v19  ;;  %v5706_v21 = vld [vmem:[#allocation2 + $0x83] ss:$2 sm:$0xff] }
 0x3bd   : > { %9737 = vmatprep.mubr.msk.bf16.mxu0 %vm2753_vm3, %v12082_v39  ;;  %9761 = vmatprep.mubr.msk.bf16.mxu1 %vm2753_vm3, %v12250_v18  ;;  %v12262_v35 = vpack.c.bf16 %v5708_v30, %v5706_v21  ;;  %v10621_v39 = vld [vmem:[#allocation9 + $0x78] sm:$0xff]  }
 0x3be   : > { %9774 = vmatpush3.bf16.msra.mxu0 %v10618_v4  ;;  %9798 = vmatpush3.bf16.msra.mxu1 %v10618_v4  ;;  %v6051_v4 = vpack.c.bf16 %v6043_v32, %v6041_v2  ;;  %v6358_v30 = vld [vmem:[#allocation2 + $0xb5] ss:$2 sm:$0xff] }
 0x3bf   : > { %9775 = vmatprep.subr.bf16.mxu0 %v10619_v26  ;;  %9799 = vmatprep.subr.bf16.mxu1 %v10619_v26 }
 0x3c2   : > { %9776 = vmatpush3.bf16.msra.mxu0 %v10619_v26  ;;  %9800 = vmatpush3.bf16.msra.mxu1 %v10619_v26  ;;  %v6352_v26 = vld [vmem:[#allocation2 + $0x85] ss:$2 sm:$0xff] }
 0x3c3   : > { %9777 = vmatprep.subr.bf16.mxu0 %v10620_v29  ;;  %9801 = vmatprep.subr.bf16.mxu1 %v10620_v29 }
 0x3c4   : > { %9738 = vmatmul.mubr.msk.bf16.gmra.mrb[36].mxu0 %vm2753_vm3, %v12156_v43  ;;  %9762 = vmatmul.mubr.msk.bf16.gmra.mrb[36].mxu1 %vm2753_vm3, %v12260_v10  ;;  %v5714_v43 = vld [vmem:[#allocation2 + $0xc3] ss:$2 sm:$0xff] }
 0x3c5   : > { %9741 = vmatprep.mubr.msk.bf16.mxu0 %vm2753_vm3, %v12184_v24  ;;  %9765 = vmatprep.mubr.msk.bf16.mxu1 %vm2753_vm3, %v12262_v35  ;;  %v12274_v36 = vpack.c.bf16 %v5716_v16, %v5714_v43  ;;  %v5718_v24 = vld [vmem:[#allocation2 + $0xe3] ss:$2 sm:$0xff] }
 0x3c6   : > { %9778 = vmatpush3.bf16.msra.mxu0 %v10620_v29  ;;  %9802 = vmatpush3.bf16.msra.mxu1 %v10620_v29  ;;  %v12284_v47 = vpack.c.bf16 %v5720_v44, %v5718_v24  ;;  %v6371_v29 = vpack.c.bf16 %v6354_v23, %v6352_v26  ;;  %v10640_v43 = vld [vmem:[#allocation14 + $0xc4] ss:$8 sps:$4 sm:$0xff]   ;;  %v10641_v24 = vld [vmem:[#allocation14 + $0xd0] ss:$8 sps:$4 sm:$0xff]   ;;  %v10643_v44 = vld [vmem:[#allocation14 + $0xd4] ss:$8 sps:$4 sm:$0xff]  }
 0x3c7   : > { %9779 = vmatprep.subr.bf16.mxu0 %v10621_v39  ;;  %9803 = vmatprep.subr.bf16.mxu1 %v10621_v39 }
 0x3ca   : > { %9780 = vmatpush3.bf16.msra.mxu0 %v10621_v39  ;;  %9804 = vmatpush3.bf16.msra.mxu1 %v10621_v39 }
 0x3cb   : > { %9821 = vmatprep.subr.bf16.mxu0 %v10622_v25  ;;  %9845 = vmatprep.subr.bf16.mxu1 %v10622_v25 }
 0x3cc   : > { %9742 = vmatmul.mubr.msk.bf16.gmra.mrb[40].mxu0 %vm2753_vm3, %v12192_v9  ;;  %9766 = vmatmul.mubr.msk.bf16.gmra.mrb[40].mxu1 %vm2753_vm3, %v12272_v41  ;;  %v6019_v9 = vld [vmem:[#allocation2 + $0x34] ss:$2 sm:$0xff] }
 0x3cd   : > { %9745 = vmatprep.mubr.msk.bf16.mxu0 %vm2753_vm3, %v12202_v46  ;;  %9769 = vmatprep.mubr.msk.bf16.mxu1 %vm2753_vm3, %v12274_v36  ;;  %v6023_v46 = vld [vmem:[#allocation2 + $0x54] ss:$2 sm:$0xff]  ;;  %v12296_v55 = vpack.c.bf16 %v6019_v9, %v6017_v50 }
 0x3ce   : > { %v12298_v52 = vpack.c.bf16 %v6023_v46, %v6021_v51  ;;  %v10652_v9 = vld [vmem:[#allocation14 + $0x4] ss:$8 sps:$4 sm:$0xff]   ;;  %v10992_v46 = vmov 0   ;;  %v12352_v50 = vld [vmem:[#allocation11] ss:$0 sm:$0xff] }
 0x3d4   : > { %9746 = vmatmul.mubr.msk.bf16.gmra.mrb[44].mxu0 %vm2753_vm3, %v12210_v33  ;;  %9770 = vmatmul.mubr.msk.bf16.gmra.mrb[44].mxu1 %vm2753_vm3, %v12284_v47  ;;  %v6027_v33 = vld [vmem:[#allocation2 + $0x74] ss:$2 sm:$0xff] }
 0x3d5   : > { %9781 = vmatprep.mubr.msk.bf16.mxu0 %vm2753_vm3, %v12239_v14  ;;  %9805 = vmatprep.mubr.msk.bf16.mxu1 %vm2753_vm3, %v12286_v48  ;;  %v12308_v58 = vpack.c.bf16 %v6027_v33, %v6025_v56  ;;  %v10631_v14 = vld [vmem:[#allocation14 + $0x94] ss:$8 sps:$4 sm:$0xff]  }
 0x3dc   : > { %9782 = vmatmul.mubr.msk.bf16.vlgmr.msra.gmra.mrb[32].mxu0 %vm2753_vm3, %v12248_v19  ;;  %9806 = vmatmul.mubr.msk.bf16.vlgmr.msra.gmra.mrb[32].mxu1 %vm2753_vm3, %v12296_v55  ;;  %v6348_v19 = vld [vmem:[#allocation2 + $0x65] ss:$2 sm:$0xff] }
 0x3dd   : > { %9785 = vmatprep.mubr.msk.bf16.mxu0 %vm2753_vm3, %v12250_v18  ;;  %9809 = vmatprep.mubr.msk.bf16.mxu1 %vm2753_vm3, %v12298_v52  ;;  %v6370_v18 = vpack.c.bf16 %v6350_v20, %v6348_v19 }
 0x3de   : > { %9822 = vmatpush3.bf16.msra.mxu0 %v10622_v25  ;;  %9846 = vmatpush3.bf16.msra.mxu1 %v10622_v25  ;;  %v6366_v25 = vld [vmem:[#allocation2 + $0xf5] ss:$2 sm:$0x1f] }
 0x3df   : > { %9823 = vmatprep.subr.bf16.mxu0 %v10623_v53  ;;  %9847 = vmatprep.subr.bf16.mxu1 %v10623_v53  ;;  %v6374_v16 = vpack.c.bf16 %v6366_v25, %v6364_v37 }
 0x3e2   : > { %9824 = vmatpush3.bf16.msra.mxu0 %v10623_v53  ;;  %9848 = vmatpush3.bf16.msra.mxu1 %v10623_v53 }
 0x3e3   : > { %9825 = vmatprep.subr.bf16.mxu0 %v10624_v54  ;;  %9849 = vmatprep.subr.bf16.mxu1 %v10624_v54 }
 0x3e4   : > { %9786 = vmatmul.mubr.msk.bf16.gmra.mrb[36].mxu0 %vm2753_vm3, %v12260_v10  ;;  %9810 = vmatmul.mubr.msk.bf16.gmra.mrb[36].mxu1 %vm2753_vm3, %v12308_v58  ;;  %v6356_v10 = vld [vmem:[#allocation2 + $0xa5] ss:$2 sm:$0xff] }
 0x3e5   : > { %9789 = vmatprep.mubr.msk.bf16.mxu0 %vm2753_vm3, %v12262_v35  ;;  %9813 = vmatprep.mubr.msk.bf16.mxu1 %vm2753_vm3, %v12310_v60  ;;  %v6372_v21 = vpack.c.bf16 %v6358_v30, %v6356_v10  ;;  %v6360_v35 = vld [vmem:[#allocation2 + $0xc5] ss:$2 sm:$0xff] }
 0x3e6   : > { %9826 = vmatpush3.bf16.msra.mxu0 %v10624_v54  ;;  %9850 = vmatpush3.bf16.msra.mxu1 %v10624_v54  ;;  %v6373_v39 = vpack.c.bf16 %v6362_v31, %v6360_v35 }
 0x3e7   : > { %9827 = vmatprep.subr.bf16.mxu0 %v10625_v8  ;;  %9851 = vmatprep.subr.bf16.mxu1 %v10625_v8 }
 0x3ea   : > { %9828 = vmatpush3.bf16.msra.mxu0 %v10625_v8  ;;  %9852 = vmatpush3.bf16.msra.mxu1 %v10625_v8 }
 0x3eb   : > { %6963 = vmatprep.subr.bf16.mxu0 %v10628_v34  ;;  %7189 = vmatprep.subr.bf16.mxu1 %v10628_v34 }
 0x3ec   : > { %9790 = vmatmul.mubr.msk.bf16.gmra.mrb[40].mxu0 %vm2753_vm3, %v12272_v41  ;;  %9814 = vmatmul.mubr.msk.bf16.gmra.mrb[40].mxu1 %vm2753_vm3, %v6049_v0  ;;  %v10637_v41 = vld [vmem:[#allocation14 + $0xb4] ss:$8 sps:$4 sm:$0xff]  }
 0x3ed   : > { %9793 = vmatprep.mubr.msk.bf16.mxu0 %vm2753_vm3, %v12274_v36  ;;  %9817 = vmatprep.mubr.msk.bf16.mxu1 %vm2753_vm3, %v6050_v38  ;;  %v10638_v36 = vld [vmem:[#allocation14 + $0xc0] ss:$8 sps:$4 sm:$0xff]  }
 0x3f4   : > { %9794 = vmatmul.mubr.msk.bf16.gmra.mrb[44].mxu0 %vm2753_vm3, %v12284_v47  ;;  %9818 = vmatmul.mubr.msk.bf16.gmra.mrb[44].mxu1 %vm2753_vm3, %v6051_v4  ;;  %v10644_v47 = vld [vmem:[#allocation14 + $0xe0] ss:$8 sps:$4 sm:$0xff]  }
 0x3f5   : > { %9829 = vmatprep.mubr.msk.bf16.mxu0 %vm2753_vm3, %v12286_v48  ;;  %9853 = vmatprep.mubr.msk.bf16.mxu1 %vm2753_vm3, %v6367_v7  ;;  %v10649_v48 = vld [vmem:[#allocation14 + $0xf4] ss:$8 sps:$4 sm:$0xff]  }
 0x3fc   : > { %9830 = vmatmul.mubr.msk.bf16.vlgmr.msra.gmra.mrb[32].mxu0 %vm2753_vm3, %v12296_v55  ;;  %9854 = vmatmul.mubr.msk.bf16.vlgmr.msra.gmra.mrb[32].mxu1 %vm2753_vm3, %v6368_v42  ;;  %v12354_v55 = vld [vmem:[#allocation12] ss:$0 sm:$0xff] }
 0x3fd   : > { %9833 = vmatprep.mubr.msk.bf16.mxu0 %vm2753_vm3, %v12298_v52  ;;  %9857 = vmatprep.mubr.msk.bf16.mxu1 %vm2753_vm3, %v6369_v13 }
 0x3fe   : > { %6964 = vmatpush1.bf16.msra.mxu0 %v10626_v17  ;;  %7190 = vmatpush1.bf16.msra.mxu1 %v10626_v17 }
 0x3ff   : > { %6965 = vmatprep.subr.bf16.mxu0 %v10631_v14  ;;  %7191 = vmatprep.subr.bf16.mxu1 %v10631_v14 }
 0x402   : > { %6966 = vmatpush1.bf16.msra.mxu0 %v10629_v15  ;;  %7192 = vmatpush1.bf16.msra.mxu1 %v10629_v15 }
 0x403   : > { %6967 = vmatprep.subr.bf16.mxu0 %v10634_v22  ;;  %7193 = vmatprep.subr.bf16.mxu1 %v10634_v22 }
 0x404   : > { %9834 = vmatmul.mubr.msk.bf16.gmra.mrb[36].mxu0 %vm2753_vm3, %v12308_v58  ;;  %9858 = vmatmul.mubr.msk.bf16.gmra.mrb[36].mxu1 %vm2753_vm3, %v6370_v18 }
 0x405   : > { %9837 = vmatprep.mubr.msk.bf16.mxu0 %vm2753_vm3, %v12310_v60  ;;  %9861 = vmatprep.mubr.msk.bf16.mxu1 %vm2753_vm3, %v6371_v29 }
 0x406   : > { %6968 = vmatpush1.bf16.msra.mxu0 %v10632_v28  ;;  %7194 = vmatpush1.bf16.msra.mxu1 %v10632_v28 }
 0x407   : > { %6969 = vmatprep.subr.bf16.mxu0 %v10637_v41  ;;  %7195 = vmatprep.subr.bf16.mxu1 %v10637_v41 }
 0x40a   : > { %6970 = vmatpush1.bf16.msra.mxu0 %v10635_v40  ;;  %7196 = vmatpush1.bf16.msra.mxu1 %v10635_v40 }
 0x40b   : > { %6971 = vmatprep.subr.bf16.mxu0 %v10640_v43  ;;  %7197 = vmatprep.subr.bf16.mxu1 %v10640_v43 }
 0x40c   : > { %9838 = vmatmul.mubr.msk.bf16.gmra.mrb[40].mxu0 %vm2753_vm3, %v6049_v0  ;;  %9862 = vmatmul.mubr.msk.bf16.gmra.mrb[40].mxu1 %vm2753_vm3, %v6372_v21 }
 0x40d   : > { %9841 = vmatprep.mubr.msk.bf16.mxu0 %vm2753_vm3, %v6050_v38  ;;  %9865 = vmatprep.mubr.msk.bf16.mxu1 %vm2753_vm3, %v6373_v39 }
 0x40e   : > { %6972 = vmatpush1.bf16.msra.mxu0 %v10638_v36  ;;  %7198 = vmatpush1.bf16.msra.mxu1 %v10638_v36 }
 0x40f   : > { %6973 = vmatprep.subr.bf16.mxu0 %v10643_v44  ;;  %7199 = vmatprep.subr.bf16.mxu1 %v10643_v44 }
 0x412   : > { %6974 = vmatpush1.bf16.msra.mxu0 %v10641_v24  ;;  %7200 = vmatpush1.bf16.msra.mxu1 %v10641_v24 }
 0x413   : > { %6975 = vmatprep.subr.bf16.mxu0 %v10646_v45  ;;  %7201 = vmatprep.subr.bf16.mxu1 %v10646_v45 }
 0x414   : > { %9842 = vmatmul.mubr.msk.bf16.gmra.mrb[44].mxu0 %vm2753_vm3, %v6051_v4  ;;  %9866 = vmatmul.mubr.msk.bf16.gmra.mrb[44].mxu1 %vm2753_vm3, %v6374_v16 }
 0x415   : > { %6995 = vmatprep.mubr.bf16.mxu0 %v10992_v46  ;;  %7221 = vmatprep.mubr.bf16.mxu1 %v10992_v46 }
 0x416   : > { %6976 = vmatpush1.bf16.msra.mxu0 %v10644_v47  ;;  %7202 = vmatpush1.bf16.msra.mxu1 %v10644_v47 }
 0x417   : > { %6977 = vmatprep.subr.bf16.mxu0 %v10649_v48  ;;  %7203 = vmatprep.subr.bf16.mxu1 %v10649_v48 }
 0x41a   : > { %6978 = vmatpush1.bf16.msra.mxu0 %v10647_v49  ;;  %7204 = vmatpush1.bf16.msra.mxu1 %v10647_v49 }
 0x41b   : > { %7116 = vmatprep.subr.bf16.mxu0 %v10652_v9  ;;  %7262 = vmatprep.subr.bf16.mxu1 %v10652_v9 }
 0x4cf   : > { %v9831_v51 = vpop.f32.mrb[32].mxu0  ;;  %v9855_v52 = vpop.f32.mrb[32].mxu1 }
 0x4d0   : > { %v6657_v53 = vmul.f32 %v9831_v51, %v12352_v50  ;;  %v6711_v33 = vmul.f32 %v9855_v52, %v12352_v50  ;;  %v6433_v54 = vpop.f32.mrb[33].mxu0  ;;  %v6570_v57 = vpop.f32.mrb[33].mxu1 }
 0x4d1   : > { %v6655_v56 = vmul.f32 %v12352_v50, %v6433_v54  ;;  %v6709_v58 = vmul.f32 %v12352_v50, %v6570_v57  ;;  %v9832_v59 = vpop.f32.mrb[34].mxu0  ;;  %v9856_v60 = vpop.f32.mrb[34].mxu1 }
 0x4d2   : > { %v6679_v8 = vadd.f32 %v12354_v55, %v6657_v53  ;;  %v6727_v27 = vadd.f32 %v12354_v55, %v6711_v33  ;;  %v6658_v34 = vmul.f32 %v9832_v59, %v12352_v50  ;;  %v6712_v62 = vmul.f32 %v9856_v60, %v12352_v50  ;;  %v6436_v63 = vpop.f32.mrb[35].mxu0  ;;  %v6573_v0 = vpop.f32.mrb[35].mxu1 }
 0x4d3   : > { %v6677_v1 = vadd.f32 %v12354_v55, %v6655_v56  ;;  %v6725_v38 = vadd.f32 %v12354_v55, %v6709_v58  ;;  %v6656_v2 = vmul.f32 %v12352_v50, %v6436_v63  ;;  %v6710_v32 = vmul.f32 %v12352_v50, %v6573_v0 }
 0x4d4   : > { %v6695_v11 = vmax.f32 %v6679_v8, 0.0  ;;  %v6743_v4 = vmax.f32 %v6727_v27, 0.0  ;;  %v6680_v6 = vadd.f32 %v12354_v55, %v6658_v34  ;;  %v6728_v7 = vadd.f32 %v12354_v55, %v6712_v62 }
 0x4d5   : > { %v6693_v3 = vmax.f32 %v6677_v1, 0.0  ;;  %v6741_v5 = vmax.f32 %v6725_v38, 0.0  ;;  %v6678_v61 = vadd.f32 %v12354_v55, %v6656_v2  ;;  %v6726_v42 = vadd.f32 %v12354_v55, %v6710_v32 }
 0x4d6   : > { %v6759_v12 = vmax.f32 %v6695_v11, %v6743_v4  ;;  %v6696_v17 = vmax.f32 %v6680_v6, 0.0  ;;  %v6744_v13 = vmax.f32 %v6728_v7, 0.0 }
 0x4d7   : > { %v6757_v14 = vmax.f32 %v6693_v3, %v6741_v5  ;;  %v6694_v15 = vmax.f32 %v6678_v61, 0.0  ;;  %v6742_v20 = vmax.f32 %v6726_v42, 0.0  ;;  %v9835_v22 = vpop.f32.mrb[36].mxu0  ;;  %v9859_v23 = vpop.f32.mrb[36].mxu1 }
 0x4d8   : > { %6775 = vst [vmem:[#allocation3 + $0x11] sm:$0xff] %v6759_v12  ;;  %v6760_v19 = vmax.f32 %v6696_v17, %v6744_v13  ;;  %v6661_v18 = vmul.f32 %v9835_v22, %v12352_v50  ;;  %v6715_v26 = vmul.f32 %v9859_v23, %v12352_v50  ;;  %v6449_v28 = vpop.f32.mrb[37].mxu0  ;;  %v6586_v29 = vpop.f32.mrb[37].mxu1 }
 0x4d9   : > { %6773 = vst [vmem:[#allocation3 + $0x1] sm:$0xff] %v6757_v14  ;;  %v6758_v30 = vmax.f32 %v6694_v15, %v6742_v20  ;;  %v6659_v31 = vmul.f32 %v12352_v50, %v6449_v28  ;;  %v6713_v10 = vmul.f32 %v12352_v50, %v6586_v29  ;;  %v9836_v21 = vpop.f32.mrb[38].mxu0  ;;  %v9860_v35 = vpop.f32.mrb[38].mxu1 }
 0x4da   : > { %6776 = vst [vmem:[#allocation3 + $0x19] sm:$0xff] %v6760_v19  ;;  %v6683_v39 = vadd.f32 %v12354_v55, %v6661_v18  ;;  %v6731_v37 = vadd.f32 %v12354_v55, %v6715_v26  ;;  %v6662_v25 = vmul.f32 %v9836_v21, %v12352_v50  ;;  %v6716_v16 = vmul.f32 %v9860_v35, %v12352_v50  ;;  %v6452_v40 = vpop.f32.mrb[39].mxu0  ;;  %v6589_v41 = vpop.f32.mrb[39].mxu1 }
 0x4db   : > { %6774 = vst [vmem:[#allocation3 + $0x9] sm:$0xff] %v6758_v30  ;;  %v6681_v43 = vadd.f32 %v12354_v55, %v6659_v31  ;;  %v6729_v36 = vadd.f32 %v12354_v55, %v6713_v10  ;;  %v6660_v24 = vmul.f32 %v12352_v50, %v6452_v40  ;;  %v6714_v44 = vmul.f32 %v12352_v50, %v6589_v41  ;;  %v10650_v10 = vld [vmem:[#allocation14] ss:$8 sps:$4 sm:$0xff]  }
 0x4dc   : > { %v6699_v45 = vmax.f32 %v6683_v39, 0.0  ;;  %v6747_v47 = vmax.f32 %v6731_v37, 0.0  ;;  %v6684_v49 = vadd.f32 %v12354_v55, %v6662_v25  ;;  %v6732_v48 = vadd.f32 %v12354_v55, %v6716_v16 }
 0x4dd   : > { %v6697_v9 = vmax.f32 %v6681_v43, 0.0  ;;  %v6745_v51 = vmax.f32 %v6729_v36, 0.0  ;;  %v6682_v52 = vadd.f32 %v12354_v55, %v6660_v24  ;;  %v6730_v53 = vadd.f32 %v12354_v55, %v6714_v44  ;;  %v10655_v24 = vld [vmem:[#allocation14 + $0x14] ss:$8 sps:$4 sm:$0xff]  }
 0x4de   : > { %v6763_v33 = vmax.f32 %v6699_v45, %v6747_v47  ;;  %v6700_v54 = vmax.f32 %v6684_v49, 0.0  ;;  %v6748_v57 = vmax.f32 %v6732_v48, 0.0 }
 0x4df   : > { %v6761_v56 = vmax.f32 %v6697_v9, %v6745_v51  ;;  %v6698_v58 = vmax.f32 %v6682_v52, 0.0  ;;  %v6746_v59 = vmax.f32 %v6730_v53, 0.0  ;;  %v9839_v60 = vpop.f32.mrb[40].mxu0  ;;  %v9863_v8 = vpop.f32.mrb[40].mxu1 }
 0x4e0   : > { %6779 = vst [vmem:[#allocation3 + $0x31] sm:$0xff] %v6763_v33  ;;  %v6764_v27 = vmax.f32 %v6700_v54, %v6748_v57  ;;  %v6665_v34 = vmul.f32 %v9839_v60, %v12352_v50  ;;  %v6719_v62 = vmul.f32 %v9863_v8, %v12352_v50  ;;  %v6465_v63 = vpop.f32.mrb[41].mxu0  ;;  %v6602_v0 = vpop.f32.mrb[41].mxu1  ;;  %v10653_v54 = vld [vmem:[#allocation14 + $0x10] ss:$8 sps:$4 sm:$0xff]  }
 0x4e1   : > { %6777 = vst [vmem:[#allocation3 + $0x21] sm:$0xff] %v6761_v56  ;;  %v6762_v1 = vmax.f32 %v6698_v58, %v6746_v59  ;;  %v6663_v38 = vmul.f32 %v12352_v50, %v6465_v63  ;;  %v6717_v2 = vmul.f32 %v12352_v50, %v6602_v0  ;;  %v9840_v32 = vpop.f32.mrb[42].mxu0  ;;  %v9864_v11 = vpop.f32.mrb[42].mxu1  ;;  %v6829_v15 = vld [vmem:[#allocation3 + $0x11] ss:$2 sm:$0xff] }
 0x4e2   : > { %6780 = vst [vmem:[#allocation3 + $0x39] sm:$0xff] %v6764_v27  ;;  %v6687_v4 = vadd.f32 %v12354_v55, %v6665_v34  ;;  %v6735_v6 = vadd.f32 %v12354_v55, %v6719_v62  ;;  %v6666_v7 = vmul.f32 %v9840_v32, %v12352_v50  ;;  %v6720_v3 = vmul.f32 %v9864_v11, %v12352_v50  ;;  %v6468_v5 = vpop.f32.mrb[43].mxu0  ;;  %v6605_v61 = vpop.f32.mrb[43].mxu1  ;;  %v6827_v14 = vld [vmem:[#allocation3 + $0x1] ss:$2 sm:$0xff] }
 0x4e3   : > { %6778 = vst [vmem:[#allocation3 + $0x29] sm:$0xff] %v6762_v1  ;;  %v6685_v42 = vadd.f32 %v12354_v55, %v6663_v38  ;;  %v6733_v12 = vadd.f32 %v12354_v55, %v6717_v2  ;;  %v6664_v17 = vmul.f32 %v12352_v50, %v6468_v5  ;;  %v6718_v13 = vmul.f32 %v12352_v50, %v6605_v61  ;;  %v6864_v18 = vld [vmem:[#allocation3 + $0x2] ss:$2 sm:$0xff]  ;;  %v6866_v26 = vld [vmem:[#allocation3 + $0x12] ss:$2 sm:$0xff] }
 0x4e4   : > { %v6703_v20 = vmax.f32 %v6687_v4, 0.0  ;;  %v6751_v22 = vmax.f32 %v6735_v6, 0.0  ;;  %v6688_v23 = vadd.f32 %v12354_v55, %v6666_v7  ;;  %v6736_v19 = vadd.f32 %v12354_v55, %v6720_v3  ;;  %v10658_v27 = vld [vmem:[#allocation14 + $0x24] ss:$8 sps:$4 sm:$0xff]  }
 0x4e5   : > { %v6701_v28 = vmax.f32 %v6685_v42, 0.0  ;;  %v6749_v29 = vmax.f32 %v6733_v12, 0.0  ;;  %v6686_v30 = vadd.f32 %v12354_v55, %v6664_v17  ;;  %v6734_v31 = vadd.f32 %v12354_v55, %v6718_v13  ;;  %v10656_v42 = vld [vmem:[#allocation14 + $0x20] ss:$8 sps:$4 sm:$0xff]  }
 0x4e6   : > { %v6767_v21 = vmax.f32 %v6703_v20, %v6751_v22  ;;  %v6704_v35 = vmax.f32 %v6688_v23, 0.0  ;;  %v6752_v39 = vmax.f32 %v6736_v19, 0.0  ;;  %v12404_v37 = vpack.c.bf16 %v6829_v15, %v6827_v14  ;;  %v10661_v15 = vld [vmem:[#allocation14 + $0x34] ss:$8 sps:$4 sm:$0xff]  }
 0x4e7   : > { %v6765_v25 = vmax.f32 %v6701_v28, %v6749_v29  ;;  %v6702_v16 = vmax.f32 %v6686_v30, 0.0  ;;  %v6750_v40 = vmax.f32 %v6734_v31, 0.0  ;;  %v12406_v41 = vpack.c.bf16 %v6866_v26, %v6864_v18  ;;  %v9843_v43 = vpop.f32.mrb[44].mxu0  ;;  %v9867_v36 = vpop.f32.mrb[44].mxu1  ;;  %v10664_v29 = vld [vmem:[#allocation14 + $0x44] ss:$8 sps:$4 sm:$0xff]  }
 0x4e8   : > { %6783 = vst [vmem:[#allocation3 + $0x51] sm:$0xff] %v6767_v21  ;;  %v6768_v44 = vmax.f32 %v6704_v35, %v6752_v39  ;;  %6996 = vmatmul.mubr.bf16.vlgmr.msra.gmra.mrb[48].mxu0 %v12404_v37  ;;  %v6669_v45 = vmul.f32 %v9843_v43, %v12352_v50  ;;  %v6723_v47 = vmul.f32 %v9867_v36, %v12352_v50  ;;  %v6481_v49 = vpop.f32.mrb[45].mxu0  ;;  %v6618_v48 = vpop.f32.mrb[45].mxu1  ;;  %v10662_v35 = vld [vmem:[#allocation14 + $0x40] ss:$8 sps:$4 sm:$0xff]  }
 0x4e9   : > { %6781 = vst [vmem:[#allocation3 + $0x41] sm:$0xff] %v6765_v25  ;;  %v6766_v9 = vmax.f32 %v6702_v16, %v6750_v40  ;;  %7222 = vmatmul.mubr.bf16.vlgmr.msra.gmra.mrb[48].mxu1 %v12406_v41  ;;  %7117 = vmatpush1.bf16.msra.mxu0 %v10650_v10  ;;  %v6667_v51 = vmul.f32 %v12352_v50, %v6481_v49  ;;  %v9844_v53 = vpop.f32.mrb[46].mxu0  ;;  %v9868_v33 = vpop.f32.mrb[46].mxu1  ;;  %v6833_v1 = vld [vmem:[#allocation3 + $0x31] ss:$2 sm:$0xff] }
 0x4ea   : > { %v6721_v52 = vmul.f32 %v12352_v50, %v6618_v48  ;;  %6784 = vst [vmem:[#allocation3 + $0x59] sm:$0xff] %v6768_v44  ;;  %7263 = vmatpush1.bf16.msra.mxu1 %v10650_v10  ;;  %v6691_v57 = vadd.f32 %v12354_v55, %v6669_v45  ;;  %v6739_v56 = vadd.f32 %v12354_v55, %v6723_v47  ;;  %v6484_v60 = vpop.f32.mrb[47].mxu0  ;;  %v6621_v8 = vpop.f32.mrb[47].mxu1  ;;  %v6831_v0 = vld [vmem:[#allocation3 + $0x21] ss:$2 sm:$0xff] }
 0x4eb   : > { %v6670_v58 = vmul.f32 %v9844_v53, %v12352_v50  ;;  %v6724_v59 = vmul.f32 %v9868_v33, %v12352_v50  ;;  %6782 = vst [vmem:[#allocation3 + $0x49] sm:$0xff] %v6766_v9  ;;  %v6689_v34 = vadd.f32 %v12354_v55, %v6667_v51  ;;  %7118 = vmatprep.subr.bf16.mxu0 %v10655_v24  ;;  %v6868_v4 = vld [vmem:[#allocation3 + $0x22] ss:$2 sm:$0xff]  ;;  %v6870_v6 = vld [vmem:[#allocation3 + $0x32] ss:$2 sm:$0xff] }
 0x4ec   : > { %v6737_v62 = vadd.f32 %v12354_v55, %v6721_v52  ;;  %7264 = vmatprep.subr.bf16.mxu1 %v10655_v24  ;;  %v6668_v63 = vmul.f32 %v12352_v50, %v6484_v60  ;;  %v6707_v38 = vmax.f32 %v6691_v57, 0.0  ;;  %v6755_v2 = vmax.f32 %v6739_v56, 0.0  ;;  %7005 = vmatprep.mubr.bf16.mxu0 %v10992_v46  ;;  %v10667_v25 = vld [vmem:[#allocation14 + $0x54] ss:$8 sps:$4 sm:$0xff]   ;;  %v10665_v16 = vld [vmem:[#allocation14 + $0x50] ss:$8 sps:$4 sm:$0xff]  }
 0x4ed   : > { %v6692_v32 = vadd.f32 %v12354_v55, %v6670_v58  ;;  %v6740_v11 = vadd.f32 %v12354_v55, %v6724_v59  ;;  %7231 = vmatprep.mubr.bf16.mxu1 %v10992_v46  ;;  %v6705_v7 = vmax.f32 %v6689_v34, 0.0  ;;  %v6722_v61 = vmul.f32 %v12352_v50, %v6621_v8  ;;  %7119 = vmatpush1.bf16.msra.mxu0 %v10653_v54  ;;  %v10659_v50 = vld [vmem:[#allocation14 + $0x30] ss:$8 sps:$4 sm:$0xff]   ;;  %v10670_v40 = vld [vmem:[#allocation14 + $0x64] ss:$8 sps:$4 sm:$0xff]  }
 0x4ee   : > { %v6753_v3 = vmax.f32 %v6737_v62, 0.0  ;;  %v6690_v5 = vadd.f32 %v12354_v55, %v6668_v63  ;;  %v6771_v12 = vmax.f32 %v6707_v38, %v6755_v2  ;;  %7265 = vmatpush1.bf16.msra.mxu1 %v10653_v54  ;;  %v12427_v14 = vpack.c.bf16 %v6833_v1, %v6831_v0  ;;  %7120 = vmatprep.subr.bf16.mxu0 %v10658_v27  ;;  %v10668_v47 = vld [vmem:[#allocation14 + $0x60] ss:$8 sps:$4 sm:$0xff]   ;;  %v10673_v48 = vld [vmem:[#allocation14 + $0x74] ss:$8 sps:$4 sm:$0xff]  }
 0x4ef   : > { %v6708_v17 = vmax.f32 %v6692_v32, 0.0  ;;  %v6756_v13 = vmax.f32 %v6740_v11, 0.0  ;;  %v6738_v23 = vadd.f32 %v12354_v55, %v6722_v61  ;;  %v12430_v19 = vpack.c.bf16 %v6870_v6, %v6868_v4  ;;  %7266 = vmatprep.subr.bf16.mxu1 %v10658_v27  ;;  %v10671_v9 = vld [vmem:[#allocation14 + $0x70] ss:$8 sps:$4 sm:$0xff]   ;;  %v10676_v51 = vld [vmem:[#allocation14 + $0x104] ss:$8 sps:$4 sm:$0xff]  }
 0x4f0   : > { %v6769_v20 = vmax.f32 %v6705_v7, %v6753_v3  ;;  %v6706_v22 = vmax.f32 %v6690_v5, 0.0  ;;  %6787 = vst [vmem:[#allocation3 + $0x71] sm:$0xff] %v6771_v12  ;;  %7006 = vmatmul.mubr.bf16.gmra.mrb[52].mxu0 %v12427_v14  ;;  %v6807_v52 = vld [vmem:[#allocation3] ss:$2 sm:$0xff]  ;;  %v6809_v53 = vld [vmem:[#allocation3 + $0x10] ss:$2 sm:$0xff] }
 0x4f1   : > { %v6772_v18 = vmax.f32 %v6708_v17, %v6756_v13  ;;  %v6754_v26 = vmax.f32 %v6738_v23, 0.0  ;;  %7232 = vmatmul.mubr.bf16.gmra.mrb[52].mxu1 %v12430_v19  ;;  %7121 = vmatpush1.bf16.msra.mxu0 %v10656_v42  ;;  %v6837_v28 = vld [vmem:[#allocation3 + $0x51] ss:$2 sm:$0xff]  ;;  %v6874_v31 = vld [vmem:[#allocation3 + $0x52] ss:$2 sm:$0xff]  ;;  %v6822_v54 = vpack.c.bf16 %v6809_v53, %v6807_v52 }
 0x4f2   : > { %6785 = vst [vmem:[#allocation3 + $0x61] sm:$0xff] %v6769_v20  ;;  %7267 = vmatpush1.bf16.msra.mxu1 %v10656_v42  ;;  %7122 = vmatprep.subr.bf16.mxu0 %v10661_v15  ;;  %v6835_v30 = vld [vmem:[#allocation3 + $0x41] ss:$2 sm:$0xff]  ;;  %v6872_v55 = vld [vmem:[#allocation3 + $0x42] ss:$2 sm:$0xff] }
 0x4f3   : > { %6788 = vst [vmem:[#allocation3 + $0x79] sm:$0x1f] %v6772_v18  ;;  %v6770_v10 = vmax.f32 %v6706_v22, %v6754_v26  ;;  %7268 = vmatprep.subr.bf16.mxu1 %v10661_v15  ;;  %7015 = vmatprep.mubr.bf16.mxu0 %v10992_v46  ;;  %v12436_v21 = vpack.c.bf16 %v6837_v28, %v6835_v30  ;;  %v10674_v33 = vld [vmem:[#allocation14 + $0x100] ss:$8 sps:$4 sm:$0xff]   ;;  %v10679_v57 = vld [vmem:[#allocation14 + $0x114] ss:$8 sps:$4 sm:$0xff]  }
 0x4f4   : > { %7241 = vmatprep.mubr.bf16.mxu1 %v10992_v46  ;;  %v12438_v39 = vpack.c.bf16 %v6874_v31, %v6872_v55  ;;  %v10677_v56 = vld [vmem:[#allocation14 + $0x110] ss:$8 sps:$4 sm:$0xff]   ;;  %v10682_v58 = vld [vmem:[#allocation14 + $0x124] ss:$8 sps:$4 sm:$0xff]   ;;  %v10680_v8 = vld [vmem:[#allocation14 + $0x120] ss:$8 sps:$4 sm:$0xff]  }
 0x4f5   : > { %6786 = vst [vmem:[#allocation3 + $0x69] sm:$0xff] %v6770_v10  ;;  %7123 = vmatpush1.bf16.msra.mxu0 %v10659_v50  ;;  %v6811_v59 = vld [vmem:[#allocation3 + $0x20] ss:$2 sm:$0xff]  ;;  %v6813_v60 = vld [vmem:[#allocation3 + $0x30] ss:$2 sm:$0xff] }
 0x4f6   : > { %7269 = vmatpush1.bf16.msra.mxu1 %v10659_v50  ;;  %7124 = vmatprep.subr.bf16.mxu0 %v10664_v29  ;;  %v6823_v27 = vpack.c.bf16 %v6813_v60, %v6811_v59  ;;  %v10685_v34 = vld [vmem:[#allocation14 + $0x134] ss:$8 sps:$4 sm:$0xff]   ;;  %v10688_v62 = vld [vmem:[#allocation14 + $0x144] ss:$8 sps:$4 sm:$0xff]   ;;  %v10686_v1 = vld [vmem:[#allocation14 + $0x140] ss:$8 sps:$4 sm:$0xff]  }
 0x4f7   : > { %7270 = vmatprep.subr.bf16.mxu1 %v10664_v29  ;;  %v6815_v63 = vld [vmem:[#allocation3 + $0x40] ss:$2 sm:$0xff]  ;;  %v6817_v0 = vld [vmem:[#allocation3 + $0x50] ss:$2 sm:$0xff]  ;;  %v7355_v42 = vld [vmem:[#allocation3 + $0x13] ss:$2 sm:$0xff] }
 0x4f8   : > { %7016 = vmatmul.mubr.bf16.gmra.mrb[56].mxu0 %v12436_v21  ;;  %v6824_v38 = vpack.c.bf16 %v6817_v0, %v6815_v63  ;;  %v10691_v2 = vld [vmem:[#allocation14 + $0x154] ss:$8 sps:$4 sm:$0xff]   ;;  %v10689_v32 = vld [vmem:[#allocation14 + $0x150] ss:$8 sps:$4 sm:$0xff]   ;;  %v10694_v11 = vld [vmem:[#allocation14 + $0x164] ss:$8 sps:$4 sm:$0xff]  }
 0x4f9   : > { %7242 = vmatmul.mubr.bf16.gmra.mrb[56].mxu1 %v12438_v39  ;;  %7125 = vmatpush1.bf16.msra.mxu0 %v10662_v35  ;;  %v10692_v7 = vld [vmem:[#allocation14 + $0x160] ss:$8 sps:$4 sm:$0xff]   ;;  %v10697_v5 = vld [vmem:[#allocation14 + $0x174] ss:$8 sps:$4 sm:$0xff]   ;;  %v10695_v61 = vld [vmem:[#allocation14 + $0x170] ss:$8 sps:$4 sm:$0xff]  }
 0x4fa   : > { %7271 = vmatpush1.bf16.msra.mxu1 %v10662_v35  ;;  %7126 = vmatprep.subr.bf16.mxu0 %v10667_v25  ;;  %v6841_v43 = vld [vmem:[#allocation3 + $0x71] ss:$2 sm:$0x3f]  ;;  %v6878_v36 = vld [vmem:[#allocation3 + $0x72] ss:$2 sm:$0x3f] }
 0x4fb   : > { %7272 = vmatprep.subr.bf16.mxu1 %v10667_v25  ;;  %7025 = vmatprep.mubr.bf16.mxu0 %v10992_v46  ;;  %v7353_v12 = vld [vmem:[#allocation3 + $0x3] ss:$2 sm:$0xff]  ;;  %v7359_v13 = vld [vmem:[#allocation3 + $0x33] ss:$2 sm:$0xff] }
 0x4fc   : > { %7251 = vmatprep.mubr.bf16.mxu1 %v10992_v46  ;;  %v6839_v24 = vld [vmem:[#allocation3 + $0x61] ss:$2 sm:$0xff]  ;;  %v6876_v44 = vld [vmem:[#allocation3 + $0x62] ss:$2 sm:$0xff]  ;;  %v7368_v17 = vpack.c.bf16 %v7355_v42, %v7353_v12  ;;  %v6789_v29 = vld [vmem:[#allocation15] sm:$0x3] }
 0x4fd   : > { %7127 = vmatpush1.bf16.msra.mxu0 %v10665_v16  ;;  %v12444_v45 = vpack.c.bf16 %v6841_v43, %v6839_v24  ;;  %v12446_v49 = vpack.c.bf16 %v6878_v36, %v6876_v44  ;;  %v6819_v4 = vld [vmem:[#allocation3 + $0x60] ss:$2 sm:$0xff]  ;;  %v6821_v6 = vld [vmem:[#allocation3 + $0x70] ss:$2 sm:$0x3f] }
 0x4fe   : > { %7273 = vmatpush1.bf16.msra.mxu1 %v10665_v16  ;;  %7128 = vmatprep.subr.bf16.mxu0 %v10670_v40  ;;  %v6825_v3 = vpack.c.bf16 %v6821_v6, %v6819_v4  ;;  %v7363_v20 = vld [vmem:[#allocation3 + $0x53] ss:$2 sm:$0xff]  ;;  %v7361_v22 = vld [vmem:[#allocation3 + $0x43] ss:$2 sm:$0xff] }
 0x4ff   : > { %7274 = vmatprep.subr.bf16.mxu1 %v10670_v40  ;;  %v7370_v23 = vpack.c.bf16 %v7363_v20, %v7361_v22  ;;  %v7367_v18 = vld [vmem:[#allocation3 + $0x73] ss:$2 sm:$0x3f]  ;;  %v6790_v55 = vld [vmem:[#allocation17] sm:$0x3] }
 0x500   : > { %7026 = vmatmul.mubr.bf16.gmra.mrb[60].mxu0 %v12444_v45 }
 0x501   : > { %7252 = vmatmul.mubr.bf16.gmra.mrb[60].mxu1 %v12446_v49  ;;  %7129 = vmatpush1.bf16.msra.mxu0 %v10668_v47 }
 0x502   : > { %7275 = vmatpush1.bf16.msra.mxu1 %v10668_v47  ;;  %7130 = vmatprep.subr.bf16.mxu0 %v10673_v48 }
 0x503   : > { %7276 = vmatprep.subr.bf16.mxu1 %v10673_v48  ;;  %7148 = vmatprep.mubr.bf16.mxu0 %v10992_v46 }
 0x504   : > { %7294 = vmatprep.mubr.bf16.mxu1 %v10992_v46 }
 0x505   : > { %7131 = vmatpush1.bf16.msra.mxu0 %v10671_v9 }
 0x506   : > { %7277 = vmatpush1.bf16.msra.mxu1 %v10671_v9  ;;  %7452 = vmatprep.subr.bf16.mxu0 %v10676_v51 }
 0x507   : > { %7541 = vmatprep.subr.bf16.mxu1 %v10676_v51 }
 0x508   : > { %7149 = vmatmul.mubr.bf16.vlgmr.msra.gmra.mrb[48].mxu0 %v6822_v54 }
 0x509   : > { %7295 = vmatmul.mubr.bf16.vlgmr.msra.gmra.mrb[48].mxu1 %v12404_v37  ;;  %7453 = vmatpush1.bf16.msra.mxu0 %v10674_v33  ;;  %v10683_v37 = vld [vmem:[#allocation14 + $0x130] ss:$8 sps:$4 sm:$0xff]  }
 0x50a   : > { %7542 = vmatpush1.bf16.msra.mxu1 %v10674_v33  ;;  %7454 = vmatprep.subr.bf16.mxu0 %v10679_v57 }
 0x50b   : > { %7543 = vmatprep.subr.bf16.mxu1 %v10679_v57  ;;  %7158 = vmatprep.mubr.bf16.mxu0 %v10992_v46 }
 0x50c   : > { %7304 = vmatprep.mubr.bf16.mxu1 %v10992_v46 }
 0x50d   : > { %7455 = vmatpush1.bf16.msra.mxu0 %v10677_v56 }
 0x50e   : > { %7544 = vmatpush1.bf16.msra.mxu1 %v10677_v56  ;;  %7456 = vmatprep.subr.bf16.mxu0 %v10682_v58 }
 0x50f   : > { %7545 = vmatprep.subr.bf16.mxu1 %v10682_v58 }
 0x510   : > { %7159 = vmatmul.mubr.bf16.gmra.mrb[52].mxu0 %v6823_v27 }
 0x511   : > { %7305 = vmatmul.mubr.bf16.gmra.mrb[52].mxu1 %v12427_v14  ;;  %7457 = vmatpush1.bf16.msra.mxu0 %v10680_v8  ;;  %v7357_v14 = vld [vmem:[#allocation3 + $0x23] ss:$2 sm:$0xff] }
 0x512   : > { %7546 = vmatpush1.bf16.msra.mxu1 %v10680_v8  ;;  %7458 = vmatprep.subr.bf16.mxu0 %v10685_v34  ;;  %v7369_v15 = vpack.c.bf16 %v7359_v13, %v7357_v14 }
 0x513   : > { %7547 = vmatprep.subr.bf16.mxu1 %v10685_v34  ;;  %7168 = vmatprep.mubr.bf16.mxu0 %v10992_v46 }
 0x514   : > { %7314 = vmatprep.mubr.bf16.mxu1 %v10992_v46 }
 0x515   : > { %7459 = vmatpush1.bf16.msra.mxu0 %v10683_v37 }
 0x516   : > { %7548 = vmatpush1.bf16.msra.mxu1 %v10683_v37  ;;  %7460 = vmatprep.subr.bf16.mxu0 %v10688_v62 }
 0x517   : > { %7549 = vmatprep.subr.bf16.mxu1 %v10688_v62 }
 0x518   : > { %7169 = vmatmul.mubr.bf16.gmra.mrb[56].mxu0 %v6824_v38 }
 0x519   : > { %7315 = vmatmul.mubr.bf16.gmra.mrb[56].mxu1 %v12436_v21  ;;  %7461 = vmatpush1.bf16.msra.mxu0 %v10686_v1 }
 0x51a   : > { %7550 = vmatpush1.bf16.msra.mxu1 %v10686_v1  ;;  %7462 = vmatprep.subr.bf16.mxu0 %v10691_v2 }
 0x51b   : > { %7551 = vmatprep.subr.bf16.mxu1 %v10691_v2  ;;  %7178 = vmatprep.mubr.bf16.mxu0 %v10992_v46 }
 0x51c   : > { %7324 = vmatprep.mubr.bf16.mxu1 %v10992_v46 }
 0x51d   : > { %7463 = vmatpush1.bf16.msra.mxu0 %v10689_v32 }
 0x51e   : > { %7552 = vmatpush1.bf16.msra.mxu1 %v10689_v32  ;;  %7464 = vmatprep.subr.bf16.mxu0 %v10694_v11 }
 0x51f   : > { %7553 = vmatprep.subr.bf16.mxu1 %v10694_v11 }
 0x520   : > { %7179 = vmatmul.mubr.bf16.gmra.mrb[60].mxu0 %v6825_v3 }
 0x521   : > { %7325 = vmatmul.mubr.bf16.gmra.mrb[60].mxu1 %v12444_v45  ;;  %7465 = vmatpush1.bf16.msra.mxu0 %v10692_v7 }
 0x522   : > { %7554 = vmatpush1.bf16.msra.mxu1 %v10692_v7  ;;  %7466 = vmatprep.subr.bf16.mxu0 %v10697_v5 }
 0x523   : > { %7555 = vmatprep.subr.bf16.mxu1 %v10697_v5  ;;  %7484 = vmatprep.mubr.bf16.mxu0 %v10992_v46 }
 0x524   : > { %7573 = vmatprep.mubr.bf16.mxu1 %v10992_v46 }
 0x525   : > { %7467 = vmatpush1.bf16.msra.mxu0 %v10695_v61 }
 0x526   : > { %7556 = vmatpush1.bf16.msra.mxu1 %v10695_v61 }
 0x528   : > { %7485 = vmatmul.mubr.bf16.vlgmr.msra.gmra.mrb[48].mxu0 %v12406_v41  ;;  %v7365_v41 = vld [vmem:[#allocation3 + $0x63] ss:$2 sm:$0xff] }
 0x529   : > { %7574 = vmatmul.mubr.bf16.vlgmr.msra.gmra.mrb[48].mxu1 %v7368_v17  ;;  %7494 = vmatprep.mubr.bf16.mxu0 %v10992_v46  ;;  %v7371_v50 = vpack.c.bf16 %v7367_v18, %v7365_v41 }
 0x52a   : > { %7583 = vmatprep.mubr.bf16.mxu1 %v10992_v46 }
 0x530   : > { %7495 = vmatmul.mubr.bf16.gmra.mrb[52].mxu0 %v12430_v19  ;;  %v7631_v19 = vlaneseq }
 0x531   : > { %7584 = vmatmul.mubr.bf16.gmra.mrb[52].mxu1 %v7369_v15  ;;  %7504 = vmatprep.mubr.bf16.mxu0 %v10992_v46 }
 0x532   : > { %7593 = vmatprep.mubr.bf16.mxu1 %v10992_v46  ;;  %v7632_v26 = vshrl.u32 %v7631_v19, 7 }
 0x534   : > { %v7633_v28 = vsub.s32 0, %v7632_v26  ;;  %v7637_v30 = vsub.s32 1, %v7632_v26 }
 0x536   : > { %v12474_v31 = vrot.slane %v6789_v29, %v7633_v28  ;;  %v12476_v10 = vrot.slane %v6789_v29, %v7637_v30  ;;  %v12478_v21 = vrot.slane %v6790_v55, %v7633_v28 }
 0x538   : > { %7505 = vmatmul.mubr.bf16.gmra.mrb[56].mxu0 %v12438_v39 }
 0x539   : > { %7594 = vmatmul.mubr.bf16.gmra.mrb[56].mxu1 %v7370_v23  ;;  %7514 = vmatprep.mubr.bf16.mxu0 %v10992_v46 }
 0x53a   : > { %7603 = vmatprep.mubr.bf16.mxu1 %v10992_v46  ;;  %v12480_v46 = vrot.slane %v6790_v55, %v7637_v30 }
 0x540   : > { %7515 = vmatmul.mubr.bf16.gmra.mrb[60].mxu0 %v12446_v49 }
 0x541   : > { %7604 = vmatmul.mubr.bf16.gmra.mrb[60].mxu1 %v7371_v50 }
 0x5fb   : > { %v7486_v35 = vpop.f32.mrb[48].mxu0 }
 0x5fc   : > { %v7641_v39 = vmul.f32 %v12474_v31, %v7486_v35  ;;  %v7575_v25 = vpop.f32.mrb[48].mxu1  ;;  %v7488_v16 = vpop.f32.mrb[49].mxu0 }
 0x5fd   : > { %v7700_v40 = vmul.f32 %v12474_v31, %v7575_v25  ;;  %v7642_v43 = vmul.f32 %v12476_v10, %v7488_v16  ;;  %v7577_v36 = vpop.f32.mrb[49].mxu1  ;;  %v7490_v24 = vpop.f32.mrb[50].mxu0 }
 0x5fe   : > { %v7668_v44 = vadd.f32 %v12478_v21, %v7641_v39  ;;  %v7701_v45 = vmul.f32 %v12476_v10, %v7577_v36  ;;  %v7643_v47 = vmul.f32 %v12474_v31, %v7490_v24  ;;  %v7579_v49 = vpop.f32.mrb[50].mxu1  ;;  %v7492_v48 = vpop.f32.mrb[51].mxu0 }
 0x5ff   : > { %v7716_v9 = vadd.f32 %v7700_v40, %v12478_v21  ;;  %v7669_v51 = vadd.f32 %v12480_v46, %v7642_v43  ;;  %v7702_v52 = vmul.f32 %v12474_v31, %v7579_v49  ;;  %v7644_v53 = vmul.f32 %v12476_v10, %v7492_v48  ;;  %v7581_v33 = vpop.f32.mrb[51].mxu1 }
 0x600   : > { %v7684_v54 = vmax.f32 %v7668_v44, 0.0  ;;  %v7717_v57 = vadd.f32 %v7701_v45, %v12480_v46  ;;  %v7670_v56 = vadd.f32 %v12478_v21, %v7643_v47  ;;  %v7703_v58 = vmul.f32 %v12476_v10, %v7581_v33 }
 0x601   : > { %v7732_v59 = vmax.f32 %v7716_v9, 0.0  ;;  %v7685_v60 = vmax.f32 %v7669_v51, 0.0  ;;  %v7718_v8 = vadd.f32 %v7702_v52, %v12478_v21  ;;  %v7671_v27 = vadd.f32 %v12480_v46, %v7644_v53 }
 0x602   : > { %v7733_v34 = vmax.f32 %v7717_v57, 0.0  ;;  %v7686_v37 = vmax.f32 %v7670_v56, 0.0  ;;  %v7719_v62 = vadd.f32 %v7703_v58, %v12480_v46 }
 0x603   : > { %v7748_v63 = vmax.f32 %v7684_v54, %v7732_v59  ;;  %v7734_v0 = vmax.f32 %v7718_v8, 0.0  ;;  %v7687_v1 = vmax.f32 %v7671_v27, 0.0  ;;  %v7496_v38 = vpop.f32.mrb[52].mxu0 }
 0x604   : > { %v7749_v2 = vmax.f32 %v7685_v60, %v7733_v34  ;;  %v7735_v32 = vmax.f32 %v7719_v62, 0.0  ;;  %v7645_v11 = vmul.f32 %v12474_v31, %v7496_v38  ;;  %v7585_v4 = vpop.f32.mrb[52].mxu1  ;;  %v7498_v6 = vpop.f32.mrb[53].mxu0 }
 0x605   : > { %v7750_v7 = vmax.f32 %v7686_v37, %v7734_v0  ;;  %v7704_v3 = vmul.f32 %v12474_v31, %v7585_v4  ;;  %v7646_v5 = vmul.f32 %v12476_v10, %v7498_v6  ;;  %v7587_v61 = vpop.f32.mrb[53].mxu1  ;;  %v7500_v42 = vpop.f32.mrb[54].mxu0 }
 0x606   : > { %v8661_v12 = vpack.c.bf16 %v7749_v2, %v7748_v63  ;;  %v7751_v17 = vmax.f32 %v7687_v1, %v7735_v32  ;;  %v7672_v13 = vadd.f32 %v12478_v21, %v7645_v11  ;;  %v7705_v14 = vmul.f32 %v12476_v10, %v7587_v61  ;;  %v7589_v15 = vpop.f32.mrb[54].mxu1  ;;  %v7502_v20 = vpop.f32.mrb[55].mxu0 }
 0x607   : > { %v7720_v22 = vadd.f32 %v7704_v3, %v12478_v21  ;;  %v7673_v23 = vadd.f32 %v12480_v46, %v7646_v5  ;;  %v7647_v41 = vmul.f32 %v12474_v31, %v7500_v42  ;;  %v7706_v18 = vmul.f32 %v12474_v31, %v7589_v15  ;;  %v7591_v50 = vpop.f32.mrb[55].mxu1 }
 0x608   : > { %7812 = vst [vmem:[%s12503_s23] sm:$0xff] %v8661_v12  ;;  %v8662_v19 = vpack.c.bf16 %v7751_v17, %v7750_v7  ;;  %v7688_v26 = vmax.f32 %v7672_v13, 0.0  ;;  %v7721_v28 = vadd.f32 %v7705_v14, %v12480_v46  ;;  %v7648_v29 = vmul.f32 %v12476_v10, %v7502_v20 }
 0x609   : > { %v7736_v30 = vmax.f32 %v7720_v22, 0.0  ;;  %v7689_v55 = vmax.f32 %v7673_v23, 0.0  ;;  %v7674_v35 = vadd.f32 %v12478_v21, %v7647_v41  ;;  %v7722_v39 = vadd.f32 %v7706_v18, %v12478_v21 }
 0x60a   : > { %7813 = vst [vmem:[%s12503_s23 + $0x8] sm:$0xff] %v8662_v19  ;;  %v7737_v25 = vmax.f32 %v7721_v28, 0.0  ;;  %v7675_v16 = vadd.f32 %v12480_v46, %v7648_v29  ;;  %v7707_v40 = vmul.f32 %v12476_v10, %v7591_v50 }
 0x60b   : > { %v7752_v43 = vmax.f32 %v7688_v26, %v7736_v30  ;;  %v7690_v36 = vmax.f32 %v7674_v35, 0.0  ;;  %v7738_v24 = vmax.f32 %v7722_v39, 0.0  ;;  %v7506_v44 = vpop.f32.mrb[56].mxu0 }
 0x60c   : > { %v7753_v45 = vmax.f32 %v7689_v55, %v7737_v25  ;;  %v7691_v47 = vmax.f32 %v7675_v16, 0.0  ;;  %v7723_v49 = vadd.f32 %v7707_v40, %v12480_v46  ;;  %v7649_v48 = vmul.f32 %v12474_v31, %v7506_v44  ;;  %v7595_v9 = vpop.f32.mrb[56].mxu1  ;;  %v7508_v51 = vpop.f32.mrb[57].mxu0 }
 0x60d   : > { %v7754_v52 = vmax.f32 %v7690_v36, %v7738_v24  ;;  %v7708_v53 = vmul.f32 %v12474_v31, %v7595_v9  ;;  %v7650_v33 = vmul.f32 %v12476_v10, %v7508_v51  ;;  %v7597_v54 = vpop.f32.mrb[57].mxu1  ;;  %v7510_v57 = vpop.f32.mrb[58].mxu0 }
 0x60e   : > { %v8663_v56 = vpack.c.bf16 %v7753_v45, %v7752_v43  ;;  %v7739_v58 = vmax.f32 %v7723_v49, 0.0  ;;  %v7676_v59 = vadd.f32 %v12478_v21, %v7649_v48  ;;  %v7709_v60 = vmul.f32 %v12476_v10, %v7597_v54  ;;  %v7599_v8 = vpop.f32.mrb[58].mxu1  ;;  %v7512_v27 = vpop.f32.mrb[59].mxu0 }
 0x60f   : > { %v7724_v34 = vadd.f32 %v7708_v53, %v12478_v21  ;;  %v7677_v37 = vadd.f32 %v12480_v46, %v7650_v33  ;;  %v7651_v62 = vmul.f32 %v12474_v31, %v7510_v57  ;;  %v7710_v63 = vmul.f32 %v12474_v31, %v7599_v8  ;;  %v7601_v0 = vpop.f32.mrb[59].mxu1 }
 0x610   : > { %7814 = vst [vmem:[%s12503_s23 + $0x10] sm:$0xff] %v8663_v56  ;;  %v7755_v1 = vmax.f32 %v7691_v47, %v7739_v58  ;;  %v7692_v38 = vmax.f32 %v7676_v59, 0.0  ;;  %v7725_v2 = vadd.f32 %v7709_v60, %v12480_v46  ;;  %v7652_v32 = vmul.f32 %v12476_v10, %v7512_v27 }
 0x611   : > { %v7740_v11 = vmax.f32 %v7724_v34, 0.0  ;;  %v7693_v4 = vmax.f32 %v7677_v37, 0.0  ;;  %v7678_v6 = vadd.f32 %v12478_v21, %v7651_v62  ;;  %v7726_v7 = vadd.f32 %v7710_v63, %v12478_v21 }
 0x612   : > { %v8664_v3 = vpack.c.bf16 %v7755_v1, %v7754_v52  ;;  %v7741_v5 = vmax.f32 %v7725_v2, 0.0  ;;  %v7679_v61 = vadd.f32 %v12480_v46, %v7652_v32  ;;  %v7711_v42 = vmul.f32 %v12476_v10, %v7601_v0 }
 0x613   : > { %v7756_v12 = vmax.f32 %v7692_v38, %v7740_v11  ;;  %v7694_v17 = vmax.f32 %v7678_v6, 0.0  ;;  %v7742_v13 = vmax.f32 %v7726_v7, 0.0  ;;  %v7516_v14 = vpop.f32.mrb[60].mxu0 }
 0x614   : > { %7815 = vst [vmem:[%s12503_s23 + $0x18] sm:$0xff] %v8664_v3  ;;  %v7757_v15 = vmax.f32 %v7693_v4, %v7741_v5  ;;  %v7695_v20 = vmax.f32 %v7679_v61, 0.0  ;;  %v7727_v22 = vadd.f32 %v7711_v42, %v12480_v46  ;;  %v7653_v23 = vmul.f32 %v12474_v31, %v7516_v14  ;;  %v7605_v41 = vpop.f32.mrb[60].mxu1  ;;  %v7518_v18 = vpop.f32.mrb[61].mxu0 }
 0x615   : > { %v7758_v50 = vmax.f32 %v7694_v17, %v7742_v13  ;;  %v7712_v19 = vmul.f32 %v12474_v31, %v7605_v41  ;;  %v7654_v26 = vmul.f32 %v12476_v10, %v7518_v18  ;;  %v7607_v28 = vpop.f32.mrb[61].mxu1  ;;  %v7520_v29 = vpop.f32.mrb[62].mxu0 }
 0x616   : > { %v8665_v30 = vpack.c.bf16 %v7757_v15, %v7756_v12  ;;  %v7743_v55 = vmax.f32 %v7727_v22, 0.0  ;;  %v7680_v35 = vadd.f32 %v12478_v21, %v7653_v23  ;;  %v7713_v39 = vmul.f32 %v12476_v10, %v7607_v28  ;;  %v7609_v25 = vpop.f32.mrb[62].mxu1  ;;  %v7522_v16 = vpop.f32.mrb[63].mxu0 }
 0x617   : > { %v7728_v40 = vadd.f32 %v7712_v19, %v12478_v21  ;;  %v7681_v43 = vadd.f32 %v12480_v46, %v7654_v26  ;;  %v7655_v36 = vmul.f32 %v12474_v31, %v7520_v29  ;;  %v7714_v24 = vmul.f32 %v12474_v31, %v7609_v25  ;;  %v7611_v44 = vpop.f32.mrb[63].mxu1 }
 0x618   : > { %7816 = vst [vmem:[%s12503_s23 + $0x20] sm:$0xff] %v8665_v30  ;;  %v7759_v45 = vmax.f32 %v7695_v20, %v7743_v55  ;;  %v7696_v47 = vmax.f32 %v7680_v35, 0.0  ;;  %v7729_v49 = vadd.f32 %v7713_v39, %v12480_v46  ;;  %v7656_v48 = vmul.f32 %v12476_v10, %v7522_v16 }
 0x619   : > { %v7744_v9 = vmax.f32 %v7728_v40, 0.0  ;;  %v7697_v51 = vmax.f32 %v7681_v43, 0.0  ;;  %v7682_v52 = vadd.f32 %v12478_v21, %v7655_v36  ;;  %v7730_v53 = vadd.f32 %v7714_v24, %v12478_v21 }
 0x61a   : > { %v8666_v33 = vpack.c.bf16 %v7759_v45, %v7758_v50  ;;  %v7745_v54 = vmax.f32 %v7729_v49, 0.0  ;;  %v7683_v31 = vadd.f32 %v12480_v46, %v7656_v48  ;;  %v7715_v57 = vmul.f32 %v12476_v10, %v7611_v44 }
 0x61b   : > { %v7760_v56 = vmax.f32 %v7696_v47, %v7744_v9  ;;  %v7698_v58 = vmax.f32 %v7682_v52, 0.0  ;;  %v7746_v59 = vmax.f32 %v7730_v53, 0.0 }
 0x61c   : > { %7817 = vst [vmem:[%s12503_s23 + $0x28] sm:$0xff] %v8666_v33  ;;  %v7761_v60 = vmax.f32 %v7697_v51, %v7745_v54  ;;  %v7699_v8 = vmax.f32 %v7683_v31, 0.0  ;;  %v7731_v27 = vadd.f32 %v7715_v57, %v12480_v46 }
 0x61d   : > { %v7762_v34 = vmax.f32 %v7698_v58, %v7746_v59 }
 0x61e   : > { %v8667_v37 = vpack.c.bf16 %v7761_v60, %v7760_v56  ;;  %v7747_v62 = vmax.f32 %v7731_v27, 0.0 }
 0x620   : > { %7818 = vst [vmem:[%s12503_s23 + $0x30] sm:$0xff] %v8667_v37  ;;  %v7763_v21 = vmax.f32 %v7699_v8, %v7747_v62 }
 0x622   : > { %v8668_v63 = vpack.c.bf16 %v7763_v21, %v7762_v34 }
 0x624   : > { %7819 = vst [vmem:[%s12503_s23 + $0x38] sm:$0x77] %v8668_v63 }
 0x625 PF: > { %s25_s13 = sadd.s32 1, %s10976_s13  }
 0x626   : > { %p22_p11 = scmp.ge.s32.totalorder %s25_s13, 4  }
 0x628   :  { %24 = sbr.rel (!%p22_p11) target bundleno = 5 (0x5), region = 520 }
 0x62f   :  { %7841 = vsyncpa [#allocation5], 1 }
 0x630   :  { %7843 = vsyncpa [#allocation5 + $0x1], 1 }
 0x631   :  { %7844 = vsyncpa [#allocation7], 1 }
 0x632   :  { %7845 = vsyncpa [#allocation10], 1 }
 0x633   :  { %7846 = vsyncpa [#allocation13], 1 }
 0x634   :  { %7847 = vsyncpa [#allocation16], 1 }

// kernel: forward_pallas.3
= control target key start
LH: loop header
LB: loop body
LE: loop exit
PB: predicated region body
PF: predicated region fallthrough
CT: control target
= control target key end

     0   :  { %10 = vsyncpa [#allocation3], 0  ;;  %s15484_s0 = inlined_call_operand.vmem [shape: bf16[2,15872], index: 0, kind: input, shape index: {}]   ;;  %s15485_s1 = inlined_call_operand.hbm [shape: bf16[15872,128], index: 1, kind: input, shape index: {}]   ;;  %s15486_s2 = inlined_call_operand.hbm [shape: f32[1,128], index: 2, kind: input, shape index: {}]   ;;  %s15487_s3 = inlined_call_operand.vmem [shape: f32[128,4], index: 3, kind: input, shape index: {}]   ;;  %s15488_s4 = inlined_call_operand.hbm [shape: f32[1,4], index: 4, kind: input, shape index: {}]   ;;  %s15489_s5 = inlined_call_operand.hbm [shape: f32[2,4], index: 5, kind: output, shape index: {}]  }
   0x1   :  { %11 = vsyncpa [#allocation6], 0 }
   0x2   :  { %12 = vsyncpa [#allocation4], 0  ;;  %s15055_s18 = smov [#allocation5]   ;;  %s15056_s20 = smov [#allocation2]  }
   0x3   :  { %s33_s19 = sshll.u32 %s15055_s18, 4  ;;  %s20_s21 = sshll.u32 %s15056_s20, 4  ;;  %s34_s19 = int_to_ptr.vmem [resolvable:$true] %s33_s19  ;;  %s15095_s21 = int_to_ptr.vmem [resolvable:$true] %s20_s21 }
   0x4   :  { %s14961_s24 = scalar_lea.hbm %s15486_s2, 16 }
   0x5   :  { %p14962_p0 = scmp.ne.s32.totalorder %s15486_s2, %s14961_s24  ;;  %p14965_p1 = scmp.lt.u32.totalorder %s14961_s24, %s15486_s2 }
   0x7   :  { %p14967_p2 = pnand %p14965_p1, %p14962_p0 }
   0x9   :  { %14970 = shalt.err (!%p14967_p2)
}
   0xa   :  { %s14971_s29 = scalar_lea.vmem %s34_s19, 16  ;;  %s14975_s30 = scalar_lea.vmem %s34_s19, 32 }
   0xb   :  { %p14972_p3 = scmp.ne.s32.totalorder %s34_s19, %s14971_s29  ;;  %p14976_p4 = scmp.lt.s32.totalorder %s34_s19, %s34_s19 }
   0xc   :  { %p14977_p5 = scmp.lt.s32.totalorder %s14975_s30, %s14971_s29 }
   0xe   :  { %p14978_p6 = por %p14977_p5, %p14976_p4 }
  0x10   :  { %p14979_p7 = pnand %p14978_p6, %p14972_p3 }
  0x12   :  { %14982 = shalt.err (!%p14979_p7)
}
  0x13   :  { %36 = dma.hbm_to_vmem [thread:$0]  %s15486_s2, 16, %s34_s19, [#allocation6]  }
  0x14   :  { %s14983_s10 = scalar_lea.hbm %s15485_s1, 126976 }
  0x15   :  { %p14984_p8 = scmp.ne.s32.totalorder %s15485_s1, %s14983_s10  ;;  %p14987_p9 = scmp.lt.u32.totalorder %s14983_s10, %s15485_s1 }
  0x17   :  { %p14989_p10 = pnand %p14987_p9, %p14984_p8 }
  0x19   :  { %14992 = shalt.err (!%p14989_p10)
}
  0x1a   :  { %s14993_s15 = scalar_lea.vmem %s15095_s21, 126976  ;;  %p14998_p12 = scmp.lt.s32.totalorder %s15095_s21, %s15095_s21 }
  0x1b   :  { %p14994_p11 = scmp.ne.s32.totalorder %s15095_s21, %s14993_s15  ;;  %p14999_p13 = scmp.lt.s32.totalorder %s14993_s15, %s14993_s15 }
  0x1d   :  { %p15000_p0 = por %p14999_p13, %p14998_p12 }
  0x1f   :  { %p15001_p1 = pnand %p15000_p0, %p14994_p11 }
  0x21   :  { %15004 = shalt.err (!%p15001_p1)
}
  0x22   :  { %s15057_s2 = smov 64   ;;  %s15058_s16 = smov 4  }
  0x23   :  { %26 = dma.hbm_to_vmem [thread:$0]  %s15485_s1, 126976, %s15095_s21, [#allocation3], %s15057_s2, %s15057_s2, %s15058_s16  }
  0x24   :  { %s15059_s19 = smov [#allocation7]   ;;  %s15005_s24 = scalar_lea.hbm %s15488_s4, 16 }
  0x25   :  { %s45_s20 = sshll.u32 %s15059_s19, 4  ;;  %p15006_p2 = scmp.ne.s32.totalorder %s15488_s4, %s15005_s24  ;;  %s46_s20 = int_to_ptr.vmem [resolvable:$true] %s45_s20 }
  0x26   :  { %p15009_p3 = scmp.lt.u32.totalorder %s15005_s24, %s15488_s4 }
  0x28   :  { %p15011_p4 = pnand %p15009_p3, %p15006_p2 }
  0x2a   :  { %15014 = shalt.err (!%p15011_p4)
}
  0x2b   :  { %s15015_s29 = scalar_lea.vmem %s46_s20, 16  ;;  %s15019_s1 = scalar_lea.vmem %s46_s20, 32 }
  0x2c   :  { %p15016_p5 = scmp.ne.s32.totalorder %s46_s20, %s15015_s29  ;;  %p15020_p6 = scmp.lt.s32.totalorder %s46_s20, %s46_s20 }
  0x2d   :  { %p15021_p7 = scmp.lt.s32.totalorder %s15019_s1, %s15015_s29 }
  0x2f   :  { %p15022_p8 = por %p15021_p7, %p15020_p6 }
  0x31   :  { %p15023_p9 = pnand %p15022_p8, %p15016_p5 }
  0x33   :  { %15026 = shalt.err (!%p15023_p9)
}
  0x34   :  { %48 = dma.hbm_to_vmem [thread:$0]  %s15488_s4, 16, %s46_s20, [#allocation6]  }
  0x35   :  { %15049 = dma.done.wait [#allocation3], 126976  }
  0x36   :  { %15050 = vsyncadd [#allocation3], 4294840320 }
  0x37   :  { %15051 = dma.done.wait [#allocation6], 32  }
  0x38   :  { %15052 = vsyncadd [#allocation6], 4294967264  ;;  %v13954_v0 = vld [vmem:[#allocation2 + $0x40] sm:$0xff]   ;;  %v13958_v4 = vld [vmem:[#allocation2 + $0x48] sm:$0xff]   ;;  %v15060_v22 = vmov 1966171168   ;;  %v2086_v24 = vlaneseq }
  0x39   :  { %v13955_v1 = vld [vmem:[#allocation2 + $0xc0] sm:$0xff]   ;;  %12504 = vmatprep.subr.bf16.mxu0 %v13954_v0  ;;  %v13959_v5 = vld [vmem:[#allocation2 + $0xc8] sm:$0xff]   ;;  %v13962_v8 = vld [vmem:[#allocation2 + $0x50] sm:$0xff]   ;;  %v2084_v23 = vunpack.c.l.s4 %v15060_v22  ;;  %vm15062_vm0 = vmmov 0   ;;  %vm11491_vm1 = vcmask 25600  }
  0x3a   :  { %v13956_v2 = vld [vmem:[#allocation2] sm:$0xff]   ;;  %12526 = vmatprep.subr.bf16.mxu1 %v13955_v1  ;;  %v13960_v6 = vld [vmem:[#allocation2 + $0x8] sm:$0xff]   ;;  %v13963_v9 = vld [vmem:[#allocation2 + $0xd0] sm:$0xff]   ;;  %v2087_v30 = vshrl.u32 %v2086_v24, 7 }
  0x3b   :  { %v13957_v3 = vld [vmem:[#allocation2 + $0x80] sm:$0xff]   ;;  %12505 = vmatpush3.bf16.msra.mxu0 %v13956_v2  ;;  %v13961_v7 = vld [vmem:[#allocation2 + $0x88] sm:$0xff]   ;;  %v13964_v10 = vld [vmem:[#allocation2 + $0x10] sm:$0xff]   ;;  %v2085_v29 = vunpack.c.0.s8 %v2084_v23 }
  0x3c   :  { %12527 = vmatpush3.bf16.msra.mxu1 %v13957_v3  ;;  %12506 = vmatprep.subr.bf16.mxu0 %v13958_v4  ;;  %v13965_v11 = vld [vmem:[#allocation2 + $0x90] sm:$0xff]   ;;  %v13966_v12 = vld [vmem:[#allocation2 + $0x58] sm:$0xff]   ;;  %v13970_v16 = vld [vmem:[#allocation2 + $0x60] sm:$0xff]  }
  0x3d   :  { %12528 = vmatprep.subr.bf16.mxu1 %v13959_v5  ;;  %v13967_v13 = vld [vmem:[#allocation2 + $0xd8] sm:$0xff]   ;;  %v13971_v17 = vld [vmem:[#allocation2 + $0xe0] sm:$0xff]   ;;  %v13974_v20 = vld [vmem:[#allocation2 + $0x68] sm:$0xff]   ;;  %v15138_v35 = vsub.s32 %v2085_v29, %v2087_v30 }
  0x3e   :  { %v13968_v14 = vld [vmem:[#allocation2 + $0x18] sm:$0xff]   ;;  %v13972_v18 = vld [vmem:[#allocation2 + $0x20] sm:$0xff]   ;;  %v13975_v21 = vld [vmem:[#allocation2 + $0xe8] sm:$0xff]  }
  0x3f   :  { %12507 = vmatpush3.bf16.msra.mxu0 %v13960_v6  ;;  %v13969_v15 = vld [vmem:[#allocation2 + $0x98] sm:$0xff]   ;;  %v13973_v19 = vld [vmem:[#allocation2 + $0xa0] sm:$0xff]   ;;  %v13976_v25 = vld [vmem:[#allocation2 + $0x28] sm:$0xff]  }
  0x40   :  { %12529 = vmatpush3.bf16.msra.mxu1 %v13961_v7  ;;  %12508 = vmatprep.subr.bf16.mxu0 %v13962_v8  ;;  %v13977_v26 = vld [vmem:[#allocation2 + $0xa8] sm:$0xff]   ;;  %v13978_v27 = vld [vmem:[#allocation2 + $0x70] sm:$0xff]   ;;  %v13982_v33 = vld [vmem:[#allocation2 + $0x78] sm:$0xff]  }
  0x41   :  { %12530 = vmatprep.subr.bf16.mxu1 %v13963_v9  ;;  %v13979_v28 = vld [vmem:[#allocation2 + $0xf0] sm:$0xff]   ;;  %v13983_v34 = vld [vmem:[#allocation2 + $0xf8] sm:$0xff]   ;;  %v59_v38 = vld [vmem:[%s15484_s0] sm:$0xff] }
  0x42   :  { %v13980_v31 = vld [vmem:[#allocation2 + $0x30] sm:$0xff]   ;;  %v13984_v36 = vld [vmem:[#allocation2 + $0x38] sm:$0xff]   ;;  %v2082_v39 = vcombine.high %v59_v38, %v59_v38  ;;  %v2089_v40 = vrot.slane %v59_v38, %v15138_v35  ;;  %v13987_v41 = vld [vmem:[#allocation2 + $0x140] sm:$0xff]  }
  0x43   :  { %12509 = vmatpush3.bf16.msra.mxu0 %v13964_v10  ;;  %v13981_v32 = vld [vmem:[#allocation2 + $0xb0] sm:$0xff]   ;;  %v13985_v37 = vld [vmem:[#allocation2 + $0xb8] sm:$0xff]   ;;  %v13988_v42 = vld [vmem:[#allocation2 + $0x1c0] sm:$0xff]  }
  0x44   :  { %12531 = vmatpush3.bf16.msra.mxu1 %v13965_v11  ;;  %12510 = vmatprep.subr.bf16.mxu0 %v13966_v12  ;;  %v2097_v43 = vcombine.high %v2089_v40, %v2089_v40  ;;  %v2105_v44 = vrot.slane %v2089_v40, %v15138_v35  ;;  %v15146_v45 = vrot.slane %v2082_v39, %v15138_v35  ;;  %v13989_v46 = vld [vmem:[#allocation2 + $0x100] sm:$0xff]   ;;  %v13991_v51 = vld [vmem:[#allocation2 + $0x148] sm:$0xff]   ;;  %v13995_v58 = vld [vmem:[#allocation2 + $0x150] sm:$0xff]  }
  0x45   :  { %12532 = vmatprep.subr.bf16.mxu1 %v13967_v13  ;;  %v13990_v48 = vld [vmem:[#allocation2 + $0x180] sm:$0xff]   ;;  %v13992_v53 = vld [vmem:[#allocation2 + $0x1c8] sm:$0xff]   ;;  %v13996_v59 = vld [vmem:[#allocation2 + $0x1d0] sm:$0xff]  }
  0x46   :  { %v2119_v47 = vrot.slane %v2097_v43, %v15138_v35  ;;  %v2098_v49 = vcombine.high %v15146_v45, %v15146_v45  ;;  %v2127_v50 = vcombine.high %v2105_v44, %v2105_v44  ;;  %v13993_v55 = vld [vmem:[#allocation2 + $0x108] sm:$0xff]   ;;  %v13997_v60 = vld [vmem:[#allocation2 + $0x110] sm:$0xff]   ;;  %v13999_v62 = vld [vmem:[#allocation2 + $0x158] sm:$0xff]  }
  0x47   :  { %12511 = vmatpush3.bf16.msra.mxu0 %v13968_v14  ;;  %v13994_v56 = vld [vmem:[#allocation2 + $0x188] sm:$0xff]   ;;  %v13998_v61 = vld [vmem:[#allocation2 + $0x190] sm:$0xff]   ;;  %v14000_v63 = vld [vmem:[#allocation2 + $0x1d8] sm:$0xff]  }
  0x48   :  { %12533 = vmatpush3.bf16.msra.mxu1 %v13969_v15  ;;  %12512 = vmatprep.subr.bf16.mxu0 %v13970_v16  ;;  %v2129_v52 = vcombine.high %v2119_v47, %v2119_v47  ;;  %v2126_v54 = vrot.slane %v2098_v49, %v15138_v35  ;;  %v14001_v0 = vld [vmem:[#allocation2 + $0x118] sm:$0xff]   ;;  %v14003_v2 = vld [vmem:[#allocation2 + $0x160] sm:$0xff]   ;;  %v14007_v6 = vld [vmem:[#allocation2 + $0x168] sm:$0xff]  }
  0x49   :  { %12534 = vmatprep.subr.bf16.mxu1 %v13971_v17  ;;  %8949 = vmatprep.mubr.bf16.mxu0 %v2119_v47  ;;  %v14002_v1 = vld [vmem:[#allocation2 + $0x198] sm:$0xff]   ;;  %v14004_v3 = vld [vmem:[#allocation2 + $0x1e0] sm:$0xff]   ;;  %v14008_v7 = vld [vmem:[#allocation2 + $0x1e8] sm:$0xff]  }
  0x4a   :  { %8989 = vmatprep.mubr.bf16.mxu1 %v2129_v52  ;;  %v2130_v57 = vcombine.high %v2126_v54, %v2126_v54  ;;  %v14005_v4 = vld [vmem:[#allocation2 + $0x120] sm:$0xff]   ;;  %v14009_v8 = vld [vmem:[#allocation2 + $0x128] sm:$0xff]   ;;  %v14011_v10 = vld [vmem:[#allocation2 + $0x170] sm:$0xff]  }
  0x4b   :  { %12513 = vmatpush3.bf16.msra.mxu0 %v13972_v18  ;;  %v14006_v5 = vld [vmem:[#allocation2 + $0x1a0] sm:$0xff]   ;;  %v14010_v9 = vld [vmem:[#allocation2 + $0x1a8] sm:$0xff]   ;;  %v14012_v11 = vld [vmem:[#allocation2 + $0x1f0] sm:$0xff]   ;;  %v2112_v18 = vrot.slane %v15146_v45, %v15138_v35 }
  0x4c   :  { %12535 = vmatpush3.bf16.msra.mxu1 %v13973_v19  ;;  %12514 = vmatprep.subr.bf16.mxu0 %v13974_v20  ;;  %v14013_v12 = vld [vmem:[#allocation2 + $0x130] sm:$0xff]   ;;  %v14015_v14 = vld [vmem:[#allocation2 + $0x178] sm:$0xff]   ;;  %v14019_v19 = vld [vmem:[#allocation2 + $0x240] sm:$0xff]  }
  0x4d   :  { %12536 = vmatprep.subr.bf16.mxu1 %v13975_v21  ;;  %v14014_v13 = vld [vmem:[#allocation2 + $0x1b0] sm:$0xff]   ;;  %v14016_v15 = vld [vmem:[#allocation2 + $0x1f8] sm:$0xff]   ;;  %v14020_v20 = vld [vmem:[#allocation2 + $0x2c0] sm:$0xff]   ;;  %v2128_v23 = vcombine.high %v2112_v18, %v2112_v18 }
  0x4e   :  { %v14017_v16 = vld [vmem:[#allocation2 + $0x138] sm:$0xff]   ;;  %v14021_v21 = vld [vmem:[#allocation2 + $0x200] sm:$0xff]   ;;  %v14023_v24 = vld [vmem:[#allocation2 + $0x248] sm:$0xff]  }
  0x4f   :  { %12515 = vmatpush3.bf16.msra.mxu0 %v13976_v25  ;;  %v14018_v17 = vld [vmem:[#allocation2 + $0x1b8] sm:$0xff]   ;;  %v14022_v22 = vld [vmem:[#allocation2 + $0x280] sm:$0xff]   ;;  %v14024_v25 = vld [vmem:[#allocation2 + $0x2c8] sm:$0xff]  }
  0x50   :  { %12537 = vmatpush3.bf16.msra.mxu1 %v13977_v26  ;;  %12516 = vmatprep.subr.bf16.mxu0 %v13978_v27  ;;  %v14025_v26 = vld [vmem:[#allocation2 + $0x208] sm:$0xff]   ;;  %v14028_v29 = vld [vmem:[#allocation2 + $0x2d0] sm:$0xff]   ;;  %v14036_v38 = vld [vmem:[#allocation2 + $0x2e0] sm:$0xff]  }
  0x51   :  { %12538 = vmatprep.subr.bf16.mxu1 %v13979_v28  ;;  %v14026_v27 = vld [vmem:[#allocation2 + $0x288] sm:$0xff]   ;;  %v14027_v28 = vld [vmem:[#allocation2 + $0x250] sm:$0xff]   ;;  %v14037_v39 = vld [vmem:[#allocation2 + $0x220] sm:$0xff]  }
  0x52   :  { %v14029_v30 = vld [vmem:[#allocation2 + $0x210] sm:$0xff]   ;;  %v14038_v40 = vld [vmem:[#allocation2 + $0x2a0] sm:$0xff]   ;;  %v14041_v43 = vld [vmem:[#allocation2 + $0x228] sm:$0xff]  }
  0x53   :  { %12517 = vmatpush3.bf16.msra.mxu0 %v13980_v31  ;;  %v14030_v31 = vld [vmem:[#allocation2 + $0x290] sm:$0xff]   ;;  %v14047_v49 = vld [vmem:[#allocation2 + $0x278] sm:$0xff]   ;;  %v60_v52 = vld [vmem:[%s15484_s0 + $0x8] sm:$0xff] }
  0x54   :  { %12539 = vmatpush3.bf16.msra.mxu1 %v13981_v32  ;;  %12518 = vmatprep.subr.bf16.mxu0 %v13982_v33  ;;  %v14031_v32 = vld [vmem:[#allocation2 + $0x258] sm:$0xff]   ;;  %v14043_v45 = vld [vmem:[#allocation2 + $0x270] sm:$0xff]  }
  0x55   :  { %12540 = vmatprep.subr.bf16.mxu1 %v13983_v34  ;;  %v14032_v33 = vld [vmem:[#allocation2 + $0x2d8] sm:$0xff]   ;;  %v14045_v47 = vld [vmem:[#allocation2 + $0x230] sm:$0xff]  }
  0x56   :  { %v14033_v34 = vld [vmem:[#allocation2 + $0x218] sm:$0xff]  }
  0x57   :  { %12519 = vmatpush3.bf16.msra.mxu0 %v13984_v36  ;;  %v14034_v36 = vld [vmem:[#allocation2 + $0x298] sm:$0xff]  }
  0x58   :  { %12541 = vmatpush3.bf16.msra.mxu1 %v13985_v37  ;;  %12548 = vmatprep.subr.bf16.mxu0 %v13987_v41  ;;  %v14035_v37 = vld [vmem:[#allocation2 + $0x260] sm:$0xff]   ;;  %v14039_v41 = vld [vmem:[#allocation2 + $0x268] sm:$0xff]  }
  0x59   :  { %12570 = vmatprep.subr.bf16.mxu1 %v13988_v42  ;;  %v14040_v42 = vld [vmem:[#allocation2 + $0x2e8] sm:$0xff]  }
  0x5a   :  { %8950 = vmatmul.mubr.bf16.vlgmr.msra.gmra.mrb[0].mxu0 %v2105_v44  ;;  %v14042_v44 = vld [vmem:[#allocation2 + $0x2a8] sm:$0xff]  }
  0x5b   :  { %12549 = vmatpush3.bf16.msra.mxu0 %v13989_v46  ;;  %8990 = vmatmul.mubr.bf16.vlgmr.msra.gmra.mrb[0].mxu1 %v2127_v50  ;;  %v14044_v46 = vld [vmem:[#allocation2 + $0x2f0] sm:$0xff]   ;;  %v14048_v50 = vld [vmem:[#allocation2 + $0x2f8] sm:$0xff]  }
  0x5c   :  { %12550 = vmatprep.subr.bf16.mxu0 %v13991_v51  ;;  %12571 = vmatpush3.bf16.msra.mxu1 %v13990_v48  ;;  %v14046_v48 = vld [vmem:[#allocation2 + $0x2b0] sm:$0xff]   ;;  %v14049_v51 = vld [vmem:[#allocation2 + $0x238] sm:$0xff]  }
  0x5d   :  { %9029 = vmatprep.mubr.bf16.mxu0 %v2126_v54  ;;  %12572 = vmatprep.subr.bf16.mxu1 %v13992_v53  ;;  %v14050_v53 = vld [vmem:[#allocation2 + $0x2b8] sm:$0xff]   ;;  %v2138_v54 = vrot.slane %v60_v52, %v15138_v35 }
  0x5e   :  { %9069 = vmatprep.mubr.bf16.mxu1 %v2130_v57 }
  0x5f   :  { %12551 = vmatpush3.bf16.msra.mxu0 %v13993_v55  ;;  %v2131_v55 = vcombine.high %v60_v52, %v60_v52  ;;  %v2146_v57 = vcombine.high %v2138_v54, %v2138_v54  ;;  %v14100_v52 = vld [vmem:[#allocation2 + $0x460] sm:$0xff]  }
  0x60   :  { %12552 = vmatprep.subr.bf16.mxu0 %v13995_v58  ;;  %12573 = vmatpush3.bf16.msra.mxu1 %v13994_v56  ;;  %v14051_v56 = vld [vmem:[#allocation2 + $0x340] sm:$0xff]   ;;  %v2154_v58 = vrot.slane %v2138_v54, %v15138_v35 }
  0x61   :  { %12574 = vmatprep.subr.bf16.mxu1 %v13996_v59  ;;  %v14052_v59 = vld [vmem:[#allocation2 + $0x3c0] sm:$0xff]  }
  0x62   :  { %v14102_v54 = vld [vmem:[#allocation2 + $0x420] sm:$0xff]  }
  0x63   :  { %12553 = vmatpush3.bf16.msra.mxu0 %v13997_v60  ;;  %v15160_v60 = vrot.slane %v2131_v55, %v15138_v35  ;;  %v14103_v55 = vld [vmem:[#allocation2 + $0x4a0] sm:$0xff]  }
  0x64   :  { %12554 = vmatprep.subr.bf16.mxu0 %v13999_v62  ;;  %12575 = vmatpush3.bf16.msra.mxu1 %v13998_v61  ;;  %v14053_v61 = vld [vmem:[#allocation2 + $0x300] sm:$0xff]   ;;  %v2168_v62 = vrot.slane %v2146_v57, %v15138_v35  ;;  %v14105_v57 = vld [vmem:[#allocation2 + $0x4e8] sm:$0xff]  }
  0x65   :  { %12576 = vmatprep.subr.bf16.mxu1 %v14000_v63  ;;  %v14054_v63 = vld [vmem:[#allocation2 + $0x380] sm:$0xff]  }
  0x67   :  { %12555 = vmatpush3.bf16.msra.mxu0 %v14001_v0  ;;  %v2147_v0 = vcombine.high %v15160_v60, %v15160_v60 }
  0x68   :  { %12556 = vmatprep.subr.bf16.mxu0 %v14003_v2  ;;  %12577 = vmatpush3.bf16.msra.mxu1 %v14002_v1  ;;  %v2176_v1 = vcombine.high %v2154_v58, %v2154_v58  ;;  %v14055_v2 = vld [vmem:[#allocation2 + $0x348] sm:$0xff]  }
  0x69   :  { %12578 = vmatprep.subr.bf16.mxu1 %v14004_v3  ;;  %v2178_v3 = vcombine.high %v2168_v62, %v2168_v62 }
  0x6b   :  { %12557 = vmatpush3.bf16.msra.mxu0 %v14005_v4  ;;  %v14056_v4 = vld [vmem:[#allocation2 + $0x3c8] sm:$0xff]  }
  0x6c   :  { %12558 = vmatprep.subr.bf16.mxu0 %v14007_v6  ;;  %12579 = vmatpush3.bf16.msra.mxu1 %v14006_v5  ;;  %v2175_v5 = vrot.slane %v2147_v0, %v15138_v35  ;;  %v14057_v6 = vld [vmem:[#allocation2 + $0x308] sm:$0xff]   ;;  %v14112_v0 = vld [vmem:[#allocation2 + $0x478] sm:$0xff]  }
  0x6d   :  { %12580 = vmatprep.subr.bf16.mxu1 %v14008_v7  ;;  %v14058_v7 = vld [vmem:[#allocation2 + $0x388] sm:$0xff]  }
  0x6f   :  { %12559 = vmatpush3.bf16.msra.mxu0 %v14009_v8  ;;  %v2179_v8 = vcombine.high %v2175_v5, %v2175_v5 }
  0x70   :  { %12560 = vmatprep.subr.bf16.mxu0 %v14011_v10  ;;  %12581 = vmatpush3.bf16.msra.mxu1 %v14010_v9  ;;  %v14059_v9 = vld [vmem:[#allocation2 + $0x350] sm:$0xff]  }
  0x71   :  { %12582 = vmatprep.subr.bf16.mxu1 %v14012_v11  ;;  %v14060_v10 = vld [vmem:[#allocation2 + $0x3d0] sm:$0xff]  }
  0x72   :  { %v14061_v11 = vld [vmem:[#allocation2 + $0x310] sm:$0xff]  }
  0x73   :  { %12561 = vmatpush3.bf16.msra.mxu0 %v14013_v12  ;;  %v14062_v12 = vld [vmem:[#allocation2 + $0x390] sm:$0xff]  }
  0x74   :  { %12562 = vmatprep.subr.bf16.mxu0 %v14015_v14  ;;  %12583 = vmatpush3.bf16.msra.mxu1 %v14014_v13  ;;  %v14063_v13 = vld [vmem:[#allocation2 + $0x358] sm:$0xff]  }
  0x75   :  { %12584 = vmatprep.subr.bf16.mxu1 %v14016_v15  ;;  %v14064_v14 = vld [vmem:[#allocation2 + $0x3d8] sm:$0xff]  }
  0x76   :  { %v14065_v15 = vld [vmem:[#allocation2 + $0x318] sm:$0xff]  }
  0x77   :  { %12563 = vmatpush3.bf16.msra.mxu0 %v14017_v16  ;;  %v14066_v16 = vld [vmem:[#allocation2 + $0x398] sm:$0xff]  }
  0x78   :  { %12592 = vmatprep.subr.bf16.mxu0 %v14019_v19  ;;  %12585 = vmatpush3.bf16.msra.mxu1 %v14018_v17  ;;  %v14067_v17 = vld [vmem:[#allocation2 + $0x360] sm:$0xff]  }
  0x79   :  { %12614 = vmatprep.subr.bf16.mxu1 %v14020_v20  ;;  %v14069_v19 = vld [vmem:[#allocation2 + $0x320] sm:$0xff]  }
  0x7a   :  { %9030 = vmatmul.mubr.bf16.vlgmr.msra.gmra.mrb[4].mxu0 %v2112_v18  ;;  %v14068_v18 = vld [vmem:[#allocation2 + $0x3e0] sm:$0xff]  }
  0x7b   :  { %12593 = vmatpush3.bf16.msra.mxu0 %v14021_v21  ;;  %9070 = vmatmul.mubr.bf16.vlgmr.msra.gmra.mrb[4].mxu1 %v2128_v23  ;;  %v14070_v20 = vld [vmem:[#allocation2 + $0x3a0] sm:$0xff]   ;;  %v14071_v21 = vld [vmem:[#allocation2 + $0x368] sm:$0xff]  }
  0x7c   :  { %12594 = vmatprep.subr.bf16.mxu0 %v14023_v24  ;;  %12615 = vmatpush3.bf16.msra.mxu1 %v14022_v22  ;;  %v14072_v22 = vld [vmem:[#allocation2 + $0x3e8] sm:$0xff]  }
  0x7d   :  { %12616 = vmatprep.subr.bf16.mxu1 %v14024_v25  ;;  %9109 = vmatprep.mubr.bf16.mxu0 %v2168_v62  ;;  %v14073_v23 = vld [vmem:[#allocation2 + $0x328] sm:$0xff]   ;;  %v14075_v25 = vld [vmem:[#allocation2 + $0x370] sm:$0xff]  }
  0x7e   :  { %9149 = vmatprep.mubr.bf16.mxu1 %v2178_v3  ;;  %v14074_v24 = vld [vmem:[#allocation2 + $0x3a8] sm:$0xff]   ;;  %v14110_v62 = vld [vmem:[#allocation2 + $0x430] sm:$0xff]  }
  0x7f   :  { %12595 = vmatpush3.bf16.msra.mxu0 %v14025_v26  ;;  %v14076_v26 = vld [vmem:[#allocation2 + $0x3f0] sm:$0xff]  }
  0x80   :  { %12596 = vmatprep.subr.bf16.mxu0 %v14027_v28  ;;  %12617 = vmatpush3.bf16.msra.mxu1 %v14026_v27  ;;  %v14077_v27 = vld [vmem:[#allocation2 + $0x330] sm:$0xff]  }
  0x81   :  { %12618 = vmatprep.subr.bf16.mxu1 %v14028_v29  ;;  %v14078_v28 = vld [vmem:[#allocation2 + $0x3b0] sm:$0xff]   ;;  %v14079_v29 = vld [vmem:[#allocation2 + $0x378] sm:$0xff]  }
  0x82   :  { %v61_v3 = vld [vmem:[%s15484_s0 + $0x10] sm:$0xff] }
  0x83   :  { %12597 = vmatpush3.bf16.msra.mxu0 %v14029_v30  ;;  %v14080_v30 = vld [vmem:[#allocation2 + $0x3f8] sm:$0xff]  }
  0x84   :  { %12598 = vmatprep.subr.bf16.mxu0 %v14031_v32  ;;  %12619 = vmatpush3.bf16.msra.mxu1 %v14030_v31  ;;  %v14081_v31 = vld [vmem:[#allocation2 + $0x338] sm:$0xff]  }
  0x85   :  { %12620 = vmatprep.subr.bf16.mxu1 %v14032_v33  ;;  %v14082_v32 = vld [vmem:[#allocation2 + $0x3b8] sm:$0xff]   ;;  %v2161_v33 = vrot.slane %v15160_v60, %v15138_v35  ;;  %v14108_v60 = vld [vmem:[#allocation2 + $0x470] sm:$0xff]  }
  0x87   :  { %12599 = vmatpush3.bf16.msra.mxu0 %v14033_v34  ;;  %v14084_v34 = vld [vmem:[#allocation2 + $0x440] sm:$0xff]  }
  0x88   :  { %12600 = vmatprep.subr.bf16.mxu0 %v14035_v37  ;;  %12621 = vmatpush3.bf16.msra.mxu1 %v14034_v36  ;;  %v14085_v36 = vld [vmem:[#allocation2 + $0x4c0] sm:$0xff]  }
  0x89   :  { %12622 = vmatprep.subr.bf16.mxu1 %v14036_v38  ;;  %v14086_v37 = vld [vmem:[#allocation2 + $0x400] sm:$0xff]  }
  0x8a   :  { %v14087_v38 = vld [vmem:[#allocation2 + $0x480] sm:$0xff]  }
  0x8b   :  { %12601 = vmatpush3.bf16.msra.mxu0 %v14037_v39  ;;  %v2177_v39 = vcombine.high %v2161_v33, %v2161_v33 }
  0x8c   :  { %12602 = vmatprep.subr.bf16.mxu0 %v14039_v41  ;;  %12623 = vmatpush3.bf16.msra.mxu1 %v14038_v40  ;;  %v14088_v40 = vld [vmem:[#allocation2 + $0x448] sm:$0xff]  }
  0x8d   :  { %12624 = vmatprep.subr.bf16.mxu1 %v14040_v42  ;;  %v14089_v41 = vld [vmem:[#allocation2 + $0x4c8] sm:$0xff]  }
  0x8e   :  { %v14090_v42 = vld [vmem:[#allocation2 + $0x408] sm:$0xff]  }
  0x8f   :  { %12603 = vmatpush3.bf16.msra.mxu0 %v14041_v43  ;;  %v14091_v43 = vld [vmem:[#allocation2 + $0x488] sm:$0xff]  }
  0x90   :  { %12604 = vmatprep.subr.bf16.mxu0 %v14043_v45  ;;  %12625 = vmatpush3.bf16.msra.mxu1 %v14042_v44  ;;  %v14092_v44 = vld [vmem:[#allocation2 + $0x450] sm:$0xff]  }
  0x91   :  { %12626 = vmatprep.subr.bf16.mxu1 %v14044_v46  ;;  %v14093_v45 = vld [vmem:[#allocation2 + $0x4d0] sm:$0xff]  }
  0x92   :  { %v14094_v46 = vld [vmem:[#allocation2 + $0x410] sm:$0xff]  }
  0x93   :  { %12605 = vmatpush3.bf16.msra.mxu0 %v14045_v47  ;;  %v14095_v47 = vld [vmem:[#allocation2 + $0x490] sm:$0xff]  }
  0x94   :  { %12606 = vmatprep.subr.bf16.mxu0 %v14047_v49  ;;  %12627 = vmatpush3.bf16.msra.mxu1 %v14046_v48  ;;  %v14096_v48 = vld [vmem:[#allocation2 + $0x458] sm:$0xff]  }
  0x95   :  { %12628 = vmatprep.subr.bf16.mxu1 %v14048_v50  ;;  %v14097_v49 = vld [vmem:[#allocation2 + $0x4d8] sm:$0xff]  }
  0x96   :  { %v14098_v50 = vld [vmem:[#allocation2 + $0x418] sm:$0xff]  }
  0x97   :  { %12607 = vmatpush3.bf16.msra.mxu0 %v14049_v51  ;;  %v14099_v51 = vld [vmem:[#allocation2 + $0x498] sm:$0xff]  }
  0x98   :  { %12636 = vmatprep.subr.bf16.mxu0 %v14051_v56  ;;  %12629 = vmatpush3.bf16.msra.mxu1 %v14050_v53  ;;  %v14101_v53 = vld [vmem:[#allocation2 + $0x4e0] sm:$0xff]   ;;  %v14104_v56 = vld [vmem:[#allocation2 + $0x468] sm:$0xff]  }
  0x99   :  { %12658 = vmatprep.subr.bf16.mxu1 %v14052_v59  ;;  %v14107_v59 = vld [vmem:[#allocation2 + $0x4a8] sm:$0xff]  }
  0x9a   :  { %9110 = vmatmul.mubr.bf16.vlgmr.msra.gmra.mrb[8].mxu0 %v2154_v58  ;;  %v14106_v58 = vld [vmem:[#allocation2 + $0x428] sm:$0xff]  }
  0x9b   :  { %12637 = vmatpush3.bf16.msra.mxu0 %v14053_v61  ;;  %9150 = vmatmul.mubr.bf16.vlgmr.msra.gmra.mrb[8].mxu1 %v2176_v1  ;;  %v14109_v61 = vld [vmem:[#allocation2 + $0x4f0] sm:$0xff]   ;;  %v14113_v1 = vld [vmem:[#allocation2 + $0x4f8] sm:$0xff]  }
  0x9c   :  { %12638 = vmatprep.subr.bf16.mxu0 %v14055_v2  ;;  %12659 = vmatpush3.bf16.msra.mxu1 %v14054_v63  ;;  %v14111_v63 = vld [vmem:[#allocation2 + $0x4b0] sm:$0xff]   ;;  %v14114_v2 = vld [vmem:[#allocation2 + $0x438] sm:$0xff]  }
  0x9d   :  { %9189 = vmatprep.mubr.bf16.mxu0 %v2175_v5  ;;  %12660 = vmatprep.subr.bf16.mxu1 %v14056_v4  ;;  %v14115_v4 = vld [vmem:[#allocation2 + $0x4b8] sm:$0xff]   ;;  %v2187_v5 = vrot.slane %v61_v3, %v15138_v35 }
  0x9e   :  { %9229 = vmatprep.mubr.bf16.mxu1 %v2179_v8 }
  0x9f   :  { %12639 = vmatpush3.bf16.msra.mxu0 %v14057_v6  ;;  %v2180_v6 = vcombine.high %v61_v3, %v61_v3  ;;  %v2195_v8 = vcombine.high %v2187_v5, %v2187_v5  ;;  %v14165_v3 = vld [vmem:[#allocation2 + $0x660] sm:$0xff]  }
  0xa0   :  { %12640 = vmatprep.subr.bf16.mxu0 %v14059_v9  ;;  %12661 = vmatpush3.bf16.msra.mxu1 %v14058_v7  ;;  %v14116_v7 = vld [vmem:[#allocation2 + $0x540] sm:$0xff]   ;;  %v2203_v9 = vrot.slane %v2187_v5, %v15138_v35 }
  0xa1   :  { %12662 = vmatprep.subr.bf16.mxu1 %v14060_v10  ;;  %v14117_v10 = vld [vmem:[#allocation2 + $0x5c0] sm:$0xff]  }
  0xa2   :  { %v14167_v5 = vld [vmem:[#allocation2 + $0x620] sm:$0xff]  }
  0xa3   :  { %12641 = vmatpush3.bf16.msra.mxu0 %v14061_v11  ;;  %v15174_v11 = vrot.slane %v2180_v6, %v15138_v35  ;;  %v14168_v6 = vld [vmem:[#allocation2 + $0x6a0] sm:$0xff]  }
  0xa4   :  { %12642 = vmatprep.subr.bf16.mxu0 %v14063_v13  ;;  %12663 = vmatpush3.bf16.msra.mxu1 %v14062_v12  ;;  %v14118_v12 = vld [vmem:[#allocation2 + $0x500] sm:$0xff]   ;;  %v2217_v13 = vrot.slane %v2195_v8, %v15138_v35  ;;  %v14170_v8 = vld [vmem:[#allocation2 + $0x6e8] sm:$0xff]  }
  0xa5   :  { %12664 = vmatprep.subr.bf16.mxu1 %v14064_v14  ;;  %v14119_v14 = vld [vmem:[#allocation2 + $0x580] sm:$0xff]  }
  0xa7   :  { %12643 = vmatpush3.bf16.msra.mxu0 %v14065_v15  ;;  %v2196_v15 = vcombine.high %v15174_v11, %v15174_v11 }
  0xa8   :  { %12644 = vmatprep.subr.bf16.mxu0 %v14067_v17  ;;  %12665 = vmatpush3.bf16.msra.mxu1 %v14066_v16  ;;  %v2225_v16 = vcombine.high %v2203_v9, %v2203_v9  ;;  %v14120_v17 = vld [vmem:[#allocation2 + $0x548] sm:$0xff]  }
  0xa9   :  { %12666 = vmatprep.subr.bf16.mxu1 %v14068_v18  ;;  %v2227_v18 = vcombine.high %v2217_v13, %v2217_v13 }
  0xab   :  { %12645 = vmatpush3.bf16.msra.mxu0 %v14069_v19  ;;  %v14121_v19 = vld [vmem:[#allocation2 + $0x5c8] sm:$0xff]  }
  0xac   :  { %12646 = vmatprep.subr.bf16.mxu0 %v14071_v21  ;;  %12667 = vmatpush3.bf16.msra.mxu1 %v14070_v20  ;;  %v2224_v20 = vrot.slane %v2196_v15, %v15138_v35  ;;  %v14122_v21 = vld [vmem:[#allocation2 + $0x508] sm:$0xff]   ;;  %v14177_v15 = vld [vmem:[#allocation2 + $0x678] sm:$0xff]  }
  0xad   :  { %12668 = vmatprep.subr.bf16.mxu1 %v14072_v22  ;;  %v14123_v22 = vld [vmem:[#allocation2 + $0x588] sm:$0xff]  }
  0xaf   :  { %12647 = vmatpush3.bf16.msra.mxu0 %v14073_v23  ;;  %v2228_v23 = vcombine.high %v2224_v20, %v2224_v20 }
  0xb0   :  { %12648 = vmatprep.subr.bf16.mxu0 %v14075_v25  ;;  %12669 = vmatpush3.bf16.msra.mxu1 %v14074_v24  ;;  %v14124_v24 = vld [vmem:[#allocation2 + $0x550] sm:$0xff]  }
  0xb1   :  { %12670 = vmatprep.subr.bf16.mxu1 %v14076_v26  ;;  %v14125_v25 = vld [vmem:[#allocation2 + $0x5d0] sm:$0xff]  }
  0xb2   :  { %v14126_v26 = vld [vmem:[#allocation2 + $0x510] sm:$0xff]  }
  0xb3   :  { %12649 = vmatpush3.bf16.msra.mxu0 %v14077_v27  ;;  %v14127_v27 = vld [vmem:[#allocation2 + $0x590] sm:$0xff]  }
  0xb4   :  { %12650 = vmatprep.subr.bf16.mxu0 %v14079_v29  ;;  %12671 = vmatpush3.bf16.msra.mxu1 %v14078_v28  ;;  %v14128_v28 = vld [vmem:[#allocation2 + $0x558] sm:$0xff]  }
  0xb5   :  { %12672 = vmatprep.subr.bf16.mxu1 %v14080_v30  ;;  %v14129_v29 = vld [vmem:[#allocation2 + $0x5d8] sm:$0xff]  }
  0xb6   :  { %v14130_v30 = vld [vmem:[#allocation2 + $0x518] sm:$0xff]  }
  0xb7   :  { %12651 = vmatpush3.bf16.msra.mxu0 %v14081_v31  ;;  %v14131_v31 = vld [vmem:[#allocation2 + $0x598] sm:$0xff]  }
  0xb8   :  { %12680 = vmatprep.subr.bf16.mxu0 %v14084_v34  ;;  %12673 = vmatpush3.bf16.msra.mxu1 %v14082_v32  ;;  %v14132_v32 = vld [vmem:[#allocation2 + $0x560] sm:$0xff]  }
  0xb9   :  { %12702 = vmatprep.subr.bf16.mxu1 %v14085_v36  ;;  %v14134_v34 = vld [vmem:[#allocation2 + $0x520] sm:$0xff]  }
  0xba   :  { %9190 = vmatmul.mubr.bf16.vlgmr.msra.gmra.mrb[12].mxu0 %v2161_v33  ;;  %v14133_v33 = vld [vmem:[#allocation2 + $0x5e0] sm:$0xff]  }
  0xbb   :  { %12681 = vmatpush3.bf16.msra.mxu0 %v14086_v37  ;;  %9230 = vmatmul.mubr.bf16.vlgmr.msra.gmra.mrb[12].mxu1 %v2177_v39  ;;  %v14135_v36 = vld [vmem:[#allocation2 + $0x5a0] sm:$0xff]   ;;  %v14136_v37 = vld [vmem:[#allocation2 + $0x568] sm:$0xff]  }
  0xbc   :  { %12682 = vmatprep.subr.bf16.mxu0 %v14088_v40  ;;  %12703 = vmatpush3.bf16.msra.mxu1 %v14087_v38  ;;  %v14137_v38 = vld [vmem:[#allocation2 + $0x5e8] sm:$0xff]  }
  0xbd   :  { %12704 = vmatprep.subr.bf16.mxu1 %v14089_v41  ;;  %9269 = vmatprep.mubr.bf16.mxu0 %v2217_v13  ;;  %v14138_v39 = vld [vmem:[#allocation2 + $0x528] sm:$0xff]   ;;  %v14140_v41 = vld [vmem:[#allocation2 + $0x570] sm:$0xff]  }
  0xbe   :  { %9309 = vmatprep.mubr.bf16.mxu1 %v2227_v18  ;;  %v14139_v40 = vld [vmem:[#allocation2 + $0x5a8] sm:$0xff]   ;;  %v14175_v13 = vld [vmem:[#allocation2 + $0x630] sm:$0xff]   ;;  %v62_v18 = vld [vmem:[%s15484_s0 + $0x18] sm:$0xff] }
  0xbf   :  { %12683 = vmatpush3.bf16.msra.mxu0 %v14090_v42  ;;  %v14141_v42 = vld [vmem:[#allocation2 + $0x5f0] sm:$0xff]  }
  0xc0   :  { %12684 = vmatprep.subr.bf16.mxu0 %v14092_v44  ;;  %12705 = vmatpush3.bf16.msra.mxu1 %v14091_v43  ;;  %v14142_v43 = vld [vmem:[#allocation2 + $0x530] sm:$0xff]  }
  0xc1   :  { %12706 = vmatprep.subr.bf16.mxu1 %v14093_v45  ;;  %v14143_v44 = vld [vmem:[#allocation2 + $0x5b0] sm:$0xff]   ;;  %v14144_v45 = vld [vmem:[#allocation2 + $0x578] sm:$0xff]  }
  0xc3   :  { %12685 = vmatpush3.bf16.msra.mxu0 %v14094_v46  ;;  %v14145_v46 = vld [vmem:[#allocation2 + $0x5f8] sm:$0xff]  }
  0xc4   :  { %12686 = vmatprep.subr.bf16.mxu0 %v14096_v48  ;;  %12707 = vmatpush3.bf16.msra.mxu1 %v14095_v47  ;;  %v14146_v47 = vld [vmem:[#allocation2 + $0x538] sm:$0xff]  }
  0xc5   :  { %12708 = vmatprep.subr.bf16.mxu1 %v14097_v49  ;;  %v14147_v48 = vld [vmem:[#allocation2 + $0x5b8] sm:$0xff]   ;;  %v2210_v49 = vrot.slane %v15174_v11, %v15138_v35  ;;  %v14173_v11 = vld [vmem:[#allocation2 + $0x670] sm:$0xff]  }
  0xc7   :  { %12687 = vmatpush3.bf16.msra.mxu0 %v14098_v50  ;;  %v14149_v50 = vld [vmem:[#allocation2 + $0x640] sm:$0xff]  }
  0xc8   :  { %12688 = vmatprep.subr.bf16.mxu0 %v14100_v52  ;;  %12709 = vmatpush3.bf16.msra.mxu1 %v14099_v51  ;;  %v14150_v51 = vld [vmem:[#allocation2 + $0x6c0] sm:$0xff]  }
  0xc9   :  { %12710 = vmatprep.subr.bf16.mxu1 %v14101_v53  ;;  %v14151_v52 = vld [vmem:[#allocation2 + $0x600] sm:$0xff]  }
  0xca   :  { %v14152_v53 = vld [vmem:[#allocation2 + $0x680] sm:$0xff]  }
  0xcb   :  { %12689 = vmatpush3.bf16.msra.mxu0 %v14102_v54  ;;  %v2226_v54 = vcombine.high %v2210_v49, %v2210_v49 }
  0xcc   :  { %12690 = vmatprep.subr.bf16.mxu0 %v14104_v56  ;;  %12711 = vmatpush3.bf16.msra.mxu1 %v14103_v55  ;;  %v14153_v55 = vld [vmem:[#allocation2 + $0x648] sm:$0xff]  }
  0xcd   :  { %12712 = vmatprep.subr.bf16.mxu1 %v14105_v57  ;;  %v14154_v56 = vld [vmem:[#allocation2 + $0x6c8] sm:$0xff]  }
  0xce   :  { %v14155_v57 = vld [vmem:[#allocation2 + $0x608] sm:$0xff]  }
  0xcf   :  { %12691 = vmatpush3.bf16.msra.mxu0 %v14106_v58  ;;  %v14156_v58 = vld [vmem:[#allocation2 + $0x688] sm:$0xff]  }
  0xd0   :  { %12692 = vmatprep.subr.bf16.mxu0 %v14108_v60  ;;  %12713 = vmatpush3.bf16.msra.mxu1 %v14107_v59  ;;  %v14157_v59 = vld [vmem:[#allocation2 + $0x650] sm:$0xff]  }
  0xd1   :  { %12714 = vmatprep.subr.bf16.mxu1 %v14109_v61  ;;  %v14158_v60 = vld [vmem:[#allocation2 + $0x6d0] sm:$0xff]  }
  0xd2   :  { %v14159_v61 = vld [vmem:[#allocation2 + $0x610] sm:$0xff]  }
  0xd3   :  { %12693 = vmatpush3.bf16.msra.mxu0 %v14110_v62  ;;  %v14160_v62 = vld [vmem:[#allocation2 + $0x690] sm:$0xff]  }
  0xd4   :  { %12694 = vmatprep.subr.bf16.mxu0 %v14112_v0  ;;  %12715 = vmatpush3.bf16.msra.mxu1 %v14111_v63  ;;  %v14161_v63 = vld [vmem:[#allocation2 + $0x658] sm:$0xff]  }
  0xd5   :  { %12716 = vmatprep.subr.bf16.mxu1 %v14113_v1  ;;  %v14162_v0 = vld [vmem:[#allocation2 + $0x6d8] sm:$0xff]  }
  0xd6   :  { %v14163_v1 = vld [vmem:[#allocation2 + $0x618] sm:$0xff]  }
  0xd7   :  { %12695 = vmatpush3.bf16.msra.mxu0 %v14114_v2  ;;  %v14164_v2 = vld [vmem:[#allocation2 + $0x698] sm:$0xff]  }
  0xd8   :  { %12724 = vmatprep.subr.bf16.mxu0 %v14116_v7  ;;  %12717 = vmatpush3.bf16.msra.mxu1 %v14115_v4  ;;  %v14166_v4 = vld [vmem:[#allocation2 + $0x6e0] sm:$0xff]   ;;  %v14169_v7 = vld [vmem:[#allocation2 + $0x668] sm:$0xff]  }
  0xd9   :  { %12746 = vmatprep.subr.bf16.mxu1 %v14117_v10  ;;  %v14172_v10 = vld [vmem:[#allocation2 + $0x6a8] sm:$0xff]  }
  0xda   :  { %9270 = vmatmul.mubr.bf16.vlgmr.msra.gmra.mrb[16].mxu0 %v2203_v9  ;;  %v14171_v9 = vld [vmem:[#allocation2 + $0x628] sm:$0xff]  }
  0xdb   :  { %12725 = vmatpush3.bf16.msra.mxu0 %v14118_v12  ;;  %9310 = vmatmul.mubr.bf16.vlgmr.msra.gmra.mrb[16].mxu1 %v2225_v16  ;;  %v14174_v12 = vld [vmem:[#allocation2 + $0x6f0] sm:$0xff]   ;;  %v14178_v16 = vld [vmem:[#allocation2 + $0x6f8] sm:$0xff]  }
  0xdc   :  { %12726 = vmatprep.subr.bf16.mxu0 %v14120_v17  ;;  %12747 = vmatpush3.bf16.msra.mxu1 %v14119_v14  ;;  %v14176_v14 = vld [vmem:[#allocation2 + $0x6b0] sm:$0xff]   ;;  %v14179_v17 = vld [vmem:[#allocation2 + $0x638] sm:$0xff]  }
  0xdd   :  { %9349 = vmatprep.mubr.bf16.mxu0 %v2224_v20  ;;  %12748 = vmatprep.subr.bf16.mxu1 %v14121_v19  ;;  %v2236_v19 = vrot.slane %v62_v18, %v15138_v35  ;;  %v14181_v20 = vld [vmem:[#allocation2 + $0x740] sm:$0xff]  }
  0xde   :  { %9389 = vmatprep.mubr.bf16.mxu1 %v2228_v23 }
  0xdf   :  { %12727 = vmatpush3.bf16.msra.mxu0 %v14122_v21  ;;  %v2229_v21 = vcombine.high %v62_v18, %v62_v18  ;;  %v2244_v23 = vcombine.high %v2236_v19, %v2236_v19 }
  0xe0   :  { %12728 = vmatprep.subr.bf16.mxu0 %v14124_v24  ;;  %12749 = vmatpush3.bf16.msra.mxu1 %v14123_v22  ;;  %v14180_v22 = vld [vmem:[#allocation2 + $0x6b8] sm:$0xff]   ;;  %v2252_v24 = vrot.slane %v2236_v19, %v15138_v35  ;;  %v14218_v19 = vld [vmem:[#allocation2 + $0x848] sm:$0xff]  }
  0xe1   :  { %12750 = vmatprep.subr.bf16.mxu1 %v14125_v25  ;;  %v14182_v25 = vld [vmem:[#allocation2 + $0x7c0] sm:$0xff]  }
  0xe3   :  { %12729 = vmatpush3.bf16.msra.mxu0 %v14126_v26  ;;  %v15188_v26 = vrot.slane %v2229_v21, %v15138_v35  ;;  %v14220_v21 = vld [vmem:[#allocation2 + $0x808] sm:$0xff]  }
  0xe4   :  { %12730 = vmatprep.subr.bf16.mxu0 %v14128_v28  ;;  %12751 = vmatpush3.bf16.msra.mxu1 %v14127_v27  ;;  %v2266_v27 = vrot.slane %v2244_v23, %v15138_v35  ;;  %v14183_v28 = vld [vmem:[#allocation2 + $0x700] sm:$0xff]   ;;  %v14222_v23 = vld [vmem:[#allocation2 + $0x850] sm:$0xff]  }
  0xe5   :  { %12752 = vmatprep.subr.bf16.mxu1 %v14129_v29  ;;  %v2245_v29 = vcombine.high %v15188_v26, %v15188_v26 }
  0xe7   :  { %12731 = vmatpush3.bf16.msra.mxu0 %v14130_v30  ;;  %v2274_v30 = vcombine.high %v2252_v24, %v2252_v24 }
  0xe8   :  { %12732 = vmatprep.subr.bf16.mxu0 %v14132_v32  ;;  %12753 = vmatpush3.bf16.msra.mxu1 %v14131_v31  ;;  %v14185_v31 = vld [vmem:[#allocation2 + $0x748] sm:$0xff]   ;;  %v2276_v32 = vcombine.high %v2266_v27, %v2266_v27 }
  0xe9   :  { %12754 = vmatprep.subr.bf16.mxu1 %v14133_v33  ;;  %v14184_v33 = vld [vmem:[#allocation2 + $0x780] sm:$0xff]  }
  0xeb   :  { %12733 = vmatpush3.bf16.msra.mxu0 %v14134_v34  ;;  %v2273_v34 = vrot.slane %v2245_v29, %v15138_v35  ;;  %v14228_v29 = vld [vmem:[#allocation2 + $0x818] sm:$0xff]  }
  0xec   :  { %12734 = vmatprep.subr.bf16.mxu0 %v14136_v37  ;;  %12755 = vmatpush3.bf16.msra.mxu1 %v14135_v36  ;;  %v14186_v36 = vld [vmem:[#allocation2 + $0x7c8] sm:$0xff]  }
  0xed   :  { %12756 = vmatprep.subr.bf16.mxu1 %v14137_v38  ;;  %v14187_v37 = vld [vmem:[#allocation2 + $0x708] sm:$0xff]   ;;  %v2277_v38 = vcombine.high %v2273_v34, %v2273_v34 }
  0xef   :  { %12735 = vmatpush3.bf16.msra.mxu0 %v14138_v39  ;;  %v14189_v39 = vld [vmem:[#allocation2 + $0x750] sm:$0xff]  }
  0xf0   :  { %12736 = vmatprep.subr.bf16.mxu0 %v14140_v41  ;;  %12757 = vmatpush3.bf16.msra.mxu1 %v14139_v40  ;;  %v14188_v40 = vld [vmem:[#allocation2 + $0x788] sm:$0xff]   ;;  %v14190_v41 = vld [vmem:[#allocation2 + $0x7d0] sm:$0xff]  }
  0xf1   :  { %12758 = vmatprep.subr.bf16.mxu1 %v14141_v42  ;;  %v14191_v42 = vld [vmem:[#allocation2 + $0x710] sm:$0xff]  }
  0xf3   :  { %12737 = vmatpush3.bf16.msra.mxu0 %v14142_v43  ;;  %v14193_v43 = vld [vmem:[#allocation2 + $0x758] sm:$0xff]  }
  0xf4   :  { %12738 = vmatprep.subr.bf16.mxu0 %v14144_v45  ;;  %12759 = vmatpush3.bf16.msra.mxu1 %v14143_v44  ;;  %v14192_v44 = vld [vmem:[#allocation2 + $0x790] sm:$0xff]   ;;  %v14194_v45 = vld [vmem:[#allocation2 + $0x7d8] sm:$0xff]  }
  0xf5   :  { %12760 = vmatprep.subr.bf16.mxu1 %v14145_v46  ;;  %v14195_v46 = vld [vmem:[#allocation2 + $0x718] sm:$0xff]  }
  0xf7   :  { %12739 = vmatpush3.bf16.msra.mxu0 %v14146_v47  ;;  %v14197_v47 = vld [vmem:[#allocation2 + $0x760] sm:$0xff]  }
  0xf8   :  { %12768 = vmatprep.subr.bf16.mxu0 %v14149_v50  ;;  %12761 = vmatpush3.bf16.msra.mxu1 %v14147_v48  ;;  %v14196_v48 = vld [vmem:[#allocation2 + $0x798] sm:$0xff]   ;;  %v14199_v50 = vld [vmem:[#allocation2 + $0x720] sm:$0xff]  }
  0xf9   :  { %12790 = vmatprep.subr.bf16.mxu1 %v14150_v51  ;;  %v14201_v51 = vld [vmem:[#allocation2 + $0x768] sm:$0xff]  }
  0xfa   :  { %9350 = vmatmul.mubr.bf16.vlgmr.msra.gmra.mrb[20].mxu0 %v2210_v49  ;;  %v14198_v49 = vld [vmem:[#allocation2 + $0x7e0] sm:$0xff]  }
  0xfb   :  { %12769 = vmatpush3.bf16.msra.mxu0 %v14151_v52  ;;  %9390 = vmatmul.mubr.bf16.vlgmr.msra.gmra.mrb[20].mxu1 %v2226_v54  ;;  %v14200_v52 = vld [vmem:[#allocation2 + $0x7a0] sm:$0xff]  }
  0xfc   :  { %12770 = vmatprep.subr.bf16.mxu0 %v14153_v55  ;;  %12791 = vmatpush3.bf16.msra.mxu1 %v14152_v53  ;;  %v14202_v53 = vld [vmem:[#allocation2 + $0x7e8] sm:$0xff]   ;;  %v11509_v54 = vld [vmem:[#allocation5] ss:$0 sm:$0xff] }
  0xfd   :  { %12792 = vmatprep.subr.bf16.mxu1 %v14154_v56  ;;  %9429 = vmatprep.mubr.bf16.mxu0 %v2266_v27  ;;  %v14203_v55 = vld [vmem:[#allocation2 + $0x728] sm:$0xff]   ;;  %v14226_v27 = vld [vmem:[#allocation2 + $0x858] sm:$0xff]  }
  0xfe   :  { %9469 = vmatprep.mubr.bf16.mxu1 %v2276_v32  ;;  %v14231_v32 = vld [vmem:[#allocation2 + $0x8e0] sm:$0xff]  }
  0xff   :  { %12771 = vmatpush3.bf16.msra.mxu0 %v14155_v57  ;;  %v14205_v57 = vld [vmem:[#allocation2 + $0x770] sm:$0xff]  }
 0x100   :  { %12772 = vmatprep.subr.bf16.mxu0 %v14157_v59  ;;  %12793 = vmatpush3.bf16.msra.mxu1 %v14156_v58  ;;  %v14204_v59 = vld [vmem:[#allocation2 + $0x7a8] sm:$0xff]  }
 0x101   :  { %12794 = vmatprep.subr.bf16.mxu1 %v14158_v60 }
 0x103   :  { %12773 = vmatpush3.bf16.msra.mxu0 %v14159_v61 }
 0x104   :  { %12774 = vmatprep.subr.bf16.mxu0 %v14161_v63  ;;  %12795 = vmatpush3.bf16.msra.mxu1 %v14160_v62  ;;  %v14206_v63 = vld [vmem:[#allocation2 + $0x7f0] sm:$0xff]  }
 0x105   :  { %12796 = vmatprep.subr.bf16.mxu1 %v14162_v0  ;;  %v14207_v0 = vld [vmem:[#allocation2 + $0x730] sm:$0xff]  }
 0x107   :  { %12775 = vmatpush3.bf16.msra.mxu0 %v14163_v1 }
 0x108   :  { %12776 = vmatprep.subr.bf16.mxu0 %v14165_v3  ;;  %12797 = vmatpush3.bf16.msra.mxu1 %v14164_v2  ;;  %v14208_v3 = vld [vmem:[#allocation2 + $0x7b0] sm:$0xff]  }
 0x109   :  { %12798 = vmatprep.subr.bf16.mxu1 %v14166_v4 }
 0x10b   :  { %12777 = vmatpush3.bf16.msra.mxu0 %v14167_v5 }
 0x10c   :  { %12778 = vmatprep.subr.bf16.mxu0 %v14169_v7  ;;  %12799 = vmatpush3.bf16.msra.mxu1 %v14168_v6  ;;  %v14209_v7 = vld [vmem:[#allocation2 + $0x778] sm:$0xff]  }
 0x10d   :  { %12800 = vmatprep.subr.bf16.mxu1 %v14170_v8 }
 0x10f   :  { %12779 = vmatpush3.bf16.msra.mxu0 %v14171_v9  ;;  %v14210_v9 = vld [vmem:[#allocation2 + $0x7f8] sm:$0xff]  }
 0x110   :  { %12780 = vmatprep.subr.bf16.mxu0 %v14173_v11  ;;  %12801 = vmatpush3.bf16.msra.mxu1 %v14172_v10  ;;  %v14211_v11 = vld [vmem:[#allocation2 + $0x738] sm:$0xff]  }
 0x111   :  { %12802 = vmatprep.subr.bf16.mxu1 %v14174_v12  ;;  %v14212_v12 = vld [vmem:[#allocation2 + $0x7b8] sm:$0xff]  }
 0x113   :  { %12781 = vmatpush3.bf16.msra.mxu0 %v14175_v13  ;;  %v2259_v13 = vrot.slane %v15188_v26, %v15138_v35  ;;  %v14225_v26 = vld [vmem:[#allocation2 + $0x890] sm:$0xff]  }
 0x114   :  { %12782 = vmatprep.subr.bf16.mxu0 %v14177_v15  ;;  %12803 = vmatpush3.bf16.msra.mxu1 %v14176_v14  ;;  %v14214_v14 = vld [vmem:[#allocation2 + $0x840] sm:$0xff]  }
 0x115   :  { %12804 = vmatprep.subr.bf16.mxu1 %v14178_v16  ;;  %v14215_v15 = vld [vmem:[#allocation2 + $0x8c0] sm:$0xff]   ;;  %v2275_v18 = vcombine.high %v2259_v13, %v2259_v13 }
 0x116   :  { %v14216_v16 = vld [vmem:[#allocation2 + $0x800] sm:$0xff]  }
 0x117   :  { %12783 = vmatpush3.bf16.msra.mxu0 %v14179_v17  ;;  %v14217_v17 = vld [vmem:[#allocation2 + $0x880] sm:$0xff]  }
 0x118   :  { %12812 = vmatprep.subr.bf16.mxu0 %v14181_v20  ;;  %12805 = vmatpush3.bf16.msra.mxu1 %v14180_v22  ;;  %v14219_v20 = vld [vmem:[#allocation2 + $0x8c8] sm:$0xff]  }
 0x119   :  { %12834 = vmatprep.subr.bf16.mxu1 %v14182_v25  ;;  %v14221_v22 = vld [vmem:[#allocation2 + $0x888] sm:$0xff]   ;;  %v14224_v25 = vld [vmem:[#allocation2 + $0x810] sm:$0xff]  }
 0x11a   :  { %9430 = vmatmul.mubr.bf16.vlgmr.msra.gmra.mrb[24].mxu0 %v2252_v24  ;;  %v14223_v24 = vld [vmem:[#allocation2 + $0x8d0] sm:$0xff]  }
 0x11b   :  { %12813 = vmatpush3.bf16.msra.mxu0 %v14183_v28  ;;  %9470 = vmatmul.mubr.bf16.vlgmr.msra.gmra.mrb[24].mxu1 %v2274_v30  ;;  %v14227_v28 = vld [vmem:[#allocation2 + $0x8d8] sm:$0xff]  }
 0x11c   :  { %12814 = vmatprep.subr.bf16.mxu0 %v14185_v31  ;;  %12835 = vmatpush3.bf16.msra.mxu1 %v14184_v33  ;;  %v14229_v30 = vld [vmem:[#allocation2 + $0x898] sm:$0xff]   ;;  %v14230_v31 = vld [vmem:[#allocation2 + $0x860] sm:$0xff]  }
 0x11d   :  { %9509 = vmatprep.mubr.bf16.mxu0 %v2273_v34  ;;  %12836 = vmatprep.subr.bf16.mxu1 %v14186_v36  ;;  %v14232_v33 = vld [vmem:[#allocation2 + $0x820] sm:$0xff]   ;;  %v14234_v36 = vld [vmem:[#allocation2 + $0x868] sm:$0xff]  }
 0x11e   :  { %9549 = vmatprep.mubr.bf16.mxu1 %v2277_v38  ;;  %v14233_v34 = vld [vmem:[#allocation2 + $0x8a0] sm:$0xff]   ;;  %v14236_v38 = vld [vmem:[#allocation2 + $0x828] sm:$0xff]  }
 0x11f   :  { %12815 = vmatpush3.bf16.msra.mxu0 %v14187_v37  ;;  %v14235_v37 = vld [vmem:[#allocation2 + $0x8e8] sm:$0xff]  }
 0x120   :  { %12816 = vmatprep.subr.bf16.mxu0 %v14189_v39  ;;  %12837 = vmatpush3.bf16.msra.mxu1 %v14188_v40  ;;  %v14237_v39 = vld [vmem:[#allocation2 + $0x8a8] sm:$0xff]  }
 0x121   :  { %12838 = vmatprep.subr.bf16.mxu1 %v14190_v41  ;;  %v14238_v41 = vld [vmem:[#allocation2 + $0x870] sm:$0xff]  }
 0x123   :  { %12817 = vmatpush3.bf16.msra.mxu0 %v14191_v42 }
 0x124   :  { %12818 = vmatprep.subr.bf16.mxu0 %v14193_v43  ;;  %12839 = vmatpush3.bf16.msra.mxu1 %v14192_v44  ;;  %v14239_v43 = vld [vmem:[#allocation2 + $0x8f0] sm:$0xff]  }
 0x125   :  { %12840 = vmatprep.subr.bf16.mxu1 %v14194_v45 }
 0x127   :  { %12819 = vmatpush3.bf16.msra.mxu0 %v14195_v46 }
 0x128   :  { %12820 = vmatprep.subr.bf16.mxu0 %v14197_v47  ;;  %12841 = vmatpush3.bf16.msra.mxu1 %v14196_v48 }
 0x129   :  { %12842 = vmatprep.subr.bf16.mxu1 %v14198_v49  ;;  %v14240_v49 = vld [vmem:[#allocation2 + $0x830] sm:$0xff]  }
 0x12b   :  { %12821 = vmatpush3.bf16.msra.mxu0 %v14199_v50  ;;  %v14241_v50 = vld [vmem:[#allocation2 + $0x8b0] sm:$0xff]  }
 0x12c   :  { %12822 = vmatprep.subr.bf16.mxu0 %v14201_v51  ;;  %12843 = vmatpush3.bf16.msra.mxu1 %v14200_v52 }
 0x12d   :  { %v12520_v56 = vpop.f32.mrb[0].mxu0  ;;  %12844 = vmatprep.subr.bf16.mxu1 %v14202_v53 }
 0x12e   :  { %v12521_v58 = vpop.f32.mrb[1].mxu0  ;;  %v12542_v60 = vpop.f32.mrb[0].mxu1 }
 0x12f   :  { %v12522_v61 = vadd.f32 %v12521_v58, %v12520_v56  ;;  %v12523_v62 = vpop.f32.mrb[2].mxu0  ;;  %v12543_v1 = vpop.f32.mrb[1].mxu1  ;;  %12823 = vmatpush3.bf16.msra.mxu0 %v14203_v55  ;;  %v14243_v56 = vld [vmem:[#allocation2 + $0x8f8] sm:$0xff]  }
 0x130   :  { %v12524_v2 = vpop.f32.mrb[3].mxu0  ;;  %v12544_v5 = vadd.f32 %v12543_v1, %v12542_v60  ;;  %v12545_v6 = vpop.f32.mrb[2].mxu1  ;;  %12824 = vmatprep.subr.bf16.mxu0 %v14205_v57  ;;  %12845 = vmatpush3.bf16.msra.mxu1 %v14204_v59  ;;  %v14244_v58 = vld [vmem:[#allocation2 + $0x838] sm:$0xff]   ;;  %v63_v59 = vld [vmem:[%s15484_s0 + $0x20] sm:$0xff] }
 0x131   :  { %v8952_v4 = vadd.f32 %v12522_v61, %v11509_v54  ;;  %v12546_v8 = vpop.f32.mrb[3].mxu1  ;;  %12846 = vmatprep.subr.bf16.mxu1 %v14206_v63  ;;  %v14242_v54 = vld [vmem:[#allocation2 + $0x878] sm:$0xff]   ;;  %v2285_v60 = vrot.slane %v63_v59, %v15138_v35  ;;  %v14246_v61 = vld [vmem:[#allocation2 + $0x940] sm:$0xff]   ;;  %v2278_v62 = vcombine.high %v63_v59, %v63_v59  ;;  %v14283_v59 = vld [vmem:[#allocation2 + $0xa48] sm:$0xff]  }
 0x132   :  { %v14245_v63 = vld [vmem:[#allocation2 + $0x8b8] sm:$0xff]   ;;  %v14247_v2 = vld [vmem:[#allocation2 + $0x9c0] sm:$0xff]  }
 0x133   :  { %v15194_v10 = vadd.f32 %v12544_v5, %v8952_v4  ;;  %12825 = vmatpush3.bf16.msra.mxu0 %v14207_v0  ;;  %v2293_v0 = vcombine.high %v2285_v60, %v2285_v60  ;;  %v2301_v1 = vrot.slane %v2285_v60, %v15138_v35  ;;  %v14248_v4 = vld [vmem:[#allocation2 + $0x900] sm:$0xff]   ;;  %v14284_v60 = vld [vmem:[#allocation2 + $0xac8] sm:$0xff]  }
 0x134   :  { %12826 = vmatprep.subr.bf16.mxu0 %v14209_v7  ;;  %12847 = vmatpush3.bf16.msra.mxu1 %v14208_v3  ;;  %v15207_v3 = vrot.slane %v2278_v62, %v15138_v35  ;;  %v14249_v6 = vld [vmem:[#allocation2 + $0x980] sm:$0xff]   ;;  %v14286_v62 = vld [vmem:[#allocation2 + $0xa88] sm:$0xff]  }
 0x135   :  { %12848 = vmatprep.subr.bf16.mxu1 %v14210_v9  ;;  %v2315_v5 = vrot.slane %v2293_v0, %v15138_v35  ;;  %v2323_v8 = vcombine.high %v2301_v1, %v2301_v1  ;;  %v14250_v9 = vld [vmem:[#allocation2 + $0x948] sm:$0xff]   ;;  %v14288_v0 = vld [vmem:[#allocation2 + $0xad0] sm:$0xff]  }
 0x136   :  { %v2294_v7 = vcombine.high %v15207_v3, %v15207_v3 }
 0x137   :  { %12827 = vmatpush3.bf16.msra.mxu0 %v14211_v11  ;;  %v14251_v11 = vld [vmem:[#allocation2 + $0x9c8] sm:$0xff]  }
 0x138   :  { %12856 = vmatprep.subr.bf16.mxu0 %v14214_v14  ;;  %12849 = vmatpush3.bf16.msra.mxu1 %v14212_v12  ;;  %v2322_v12 = vrot.slane %v2294_v7, %v15138_v35  ;;  %v14253_v14 = vld [vmem:[#allocation2 + $0x988] sm:$0xff]   ;;  %v14295_v7 = vld [vmem:[#allocation2 + $0xa60] sm:$0xff]  }
 0x139   :  { %12878 = vmatprep.subr.bf16.mxu1 %v14215_v15 }
 0x13a   :  { %9510 = vmatmul.mubr.bf16.vlgmr.msra.gmra.mrb[28].mxu0 %v2259_v13  ;;  %v14252_v13 = vld [vmem:[#allocation2 + $0x908] sm:$0xff]   ;;  %v2326_v15 = vcombine.high %v2322_v12, %v2322_v12 }
 0x13b   :  { %12857 = vmatpush3.bf16.msra.mxu0 %v14216_v16  ;;  %9550 = vmatmul.mubr.bf16.vlgmr.msra.gmra.mrb[28].mxu1 %v2275_v18  ;;  %v14254_v16 = vld [vmem:[#allocation2 + $0x950] sm:$0xff]  }
 0x13c   :  { %12858 = vmatprep.subr.bf16.mxu0 %v14218_v19  ;;  %12879 = vmatpush3.bf16.msra.mxu1 %v14217_v17  ;;  %v14255_v17 = vld [vmem:[#allocation2 + $0x9d0] sm:$0xff]  }
 0x13d   :  { %12880 = vmatprep.subr.bf16.mxu1 %v14219_v20  ;;  %9589 = vmatprep.mubr.bf16.mxu0 %v2315_v5  ;;  %v14256_v18 = vld [vmem:[#allocation2 + $0x910] sm:$0xff]   ;;  %v14258_v20 = vld [vmem:[#allocation2 + $0x958] sm:$0xff]  }
 0x13e   :  { %v14257_v19 = vld [vmem:[#allocation2 + $0x990] sm:$0xff]  }
 0x13f   :  { %12859 = vmatpush3.bf16.msra.mxu0 %v14220_v21  ;;  %v14259_v21 = vld [vmem:[#allocation2 + $0x9d8] sm:$0xff]  }
 0x140   :  { %12860 = vmatprep.subr.bf16.mxu0 %v14222_v23  ;;  %12881 = vmatpush3.bf16.msra.mxu1 %v14221_v22  ;;  %v14260_v22 = vld [vmem:[#allocation2 + $0x918] sm:$0xff]  }
 0x141   :  { %12882 = vmatprep.subr.bf16.mxu1 %v14223_v24  ;;  %v14261_v23 = vld [vmem:[#allocation2 + $0x998] sm:$0xff]   ;;  %v14262_v24 = vld [vmem:[#allocation2 + $0x960] sm:$0xff]  }
 0x143   :  { %12861 = vmatpush3.bf16.msra.mxu0 %v14224_v25  ;;  %v14263_v25 = vld [vmem:[#allocation2 + $0x9e0] sm:$0xff]  }
 0x144   :  { %12862 = vmatprep.subr.bf16.mxu0 %v14226_v27  ;;  %12883 = vmatpush3.bf16.msra.mxu1 %v14225_v26  ;;  %v14264_v26 = vld [vmem:[#allocation2 + $0x920] sm:$0xff]  }
 0x145   :  { %12884 = vmatprep.subr.bf16.mxu1 %v14227_v28  ;;  %v14265_v27 = vld [vmem:[#allocation2 + $0x9a0] sm:$0xff]   ;;  %v14266_v28 = vld [vmem:[#allocation2 + $0x968] sm:$0xff]  }
 0x147   :  { %12863 = vmatpush3.bf16.msra.mxu0 %v14228_v29  ;;  %v14267_v29 = vld [vmem:[#allocation2 + $0x9e8] sm:$0xff]  }
 0x148   :  { %12864 = vmatprep.subr.bf16.mxu0 %v14230_v31  ;;  %12885 = vmatpush3.bf16.msra.mxu1 %v14229_v30  ;;  %v14268_v30 = vld [vmem:[#allocation2 + $0x928] sm:$0xff]  }
 0x149   :  { %12886 = vmatprep.subr.bf16.mxu1 %v14231_v32  ;;  %v14269_v32 = vld [vmem:[#allocation2 + $0x9a8] sm:$0xff]  }
 0x14b   :  { %12865 = vmatpush3.bf16.msra.mxu0 %v14232_v33 }
 0x14c   :  { %12866 = vmatprep.subr.bf16.mxu0 %v14234_v36  ;;  %12887 = vmatpush3.bf16.msra.mxu1 %v14233_v34  ;;  %v14270_v34 = vld [vmem:[#allocation2 + $0x970] sm:$0xff]  }
 0x14d   :  { %v12564_v40 = vpop.f32.mrb[4].mxu0  ;;  %12888 = vmatprep.subr.bf16.mxu1 %v14235_v37 }
 0x14e   :  { %v12565_v42 = vpop.f32.mrb[5].mxu0  ;;  %v12586_v44 = vpop.f32.mrb[4].mxu1 }
 0x14f   :  { %v12566_v45 = vadd.f32 %v12565_v42, %v12564_v40  ;;  %v12567_v46 = vpop.f32.mrb[6].mxu0  ;;  %v12587_v47 = vpop.f32.mrb[5].mxu1  ;;  %12867 = vmatpush3.bf16.msra.mxu0 %v14236_v38  ;;  %v14272_v40 = vld [vmem:[#allocation2 + $0x930] sm:$0xff]  }
 0x150   :  { %v12568_v48 = vpop.f32.mrb[7].mxu0  ;;  %v12588_v52 = vadd.f32 %v12587_v47, %v12586_v44  ;;  %v12589_v53 = vpop.f32.mrb[6].mxu1  ;;  %12868 = vmatprep.subr.bf16.mxu0 %v14238_v41  ;;  %12889 = vmatpush3.bf16.msra.mxu1 %v14237_v39  ;;  %v14271_v39 = vld [vmem:[#allocation2 + $0x9f0] sm:$0xff]  }
 0x151   :  { %v9032_v51 = vadd.f32 %v12566_v45, %v15194_v10  ;;  %v12590_v55 = vpop.f32.mrb[7].mxu1  ;;  %12890 = vmatprep.subr.bf16.mxu1 %v14239_v43  ;;  %v2325_v10 = vcombine.high %v2315_v5, %v2315_v5  ;;  %v14273_v46 = vld [vmem:[#allocation2 + $0x9b0] sm:$0xff]   ;;  %v14274_v48 = vld [vmem:[#allocation2 + $0x978] sm:$0xff]   ;;  %v2308_v53 = vrot.slane %v15207_v3, %v15138_v35 }
 0x152   :  { %v14280_v55 = vld [vmem:[#allocation2 + $0xac0] sm:$0xff]   ;;  %v14291_v3 = vld [vmem:[#allocation2 + $0xa58] sm:$0xff]  }
 0x153   :  { %v15199_v57 = vadd.f32 %v12588_v52, %v9032_v51  ;;  %12869 = vmatpush3.bf16.msra.mxu0 %v14240_v49  ;;  %9629 = vmatprep.mubr.bf16.mxu1 %v2325_v10  ;;  %v14276_v51 = vld [vmem:[#allocation2 + $0x938] sm:$0xff]   ;;  %v14298_v10 = vld [vmem:[#allocation2 + $0xaa0] sm:$0xff]  }
 0x154   :  { %12870 = vmatprep.subr.bf16.mxu0 %v14242_v54  ;;  %12891 = vmatpush3.bf16.msra.mxu1 %v14241_v50  ;;  %v14275_v50 = vld [vmem:[#allocation2 + $0x9f8] sm:$0xff]   ;;  %v14279_v54 = vld [vmem:[#allocation2 + $0xa40] sm:$0xff]  }
 0x155   :  { %12892 = vmatprep.subr.bf16.mxu1 %v14243_v56  ;;  %v14277_v52 = vld [vmem:[#allocation2 + $0x9b8] sm:$0xff]   ;;  %v14281_v56 = vld [vmem:[#allocation2 + $0xa00] sm:$0xff]  }
 0x156   :  { %v14293_v5 = vld [vmem:[#allocation2 + $0xa18] sm:$0xff]  }
 0x157   :  { %12871 = vmatpush3.bf16.msra.mxu0 %v14244_v58  ;;  %v2324_v58 = vcombine.high %v2308_v53, %v2308_v53 }
 0x158   :  { %12900 = vmatprep.subr.bf16.mxu0 %v14246_v61  ;;  %12893 = vmatpush3.bf16.msra.mxu1 %v14245_v63  ;;  %v14285_v61 = vld [vmem:[#allocation2 + $0xa08] sm:$0xff]   ;;  %v14287_v63 = vld [vmem:[#allocation2 + $0xa50] sm:$0xff]  }
 0x159   :  { %12922 = vmatprep.subr.bf16.mxu1 %v14247_v2  ;;  %v14290_v2 = vld [vmem:[#allocation2 + $0xa90] sm:$0xff]  }
 0x15a   :  { %9590 = vmatmul.mubr.bf16.vlgmr.msra.gmra.mrb[32].mxu0 %v2301_v1  ;;  %v14289_v1 = vld [vmem:[#allocation2 + $0xa10] sm:$0xff]  }
 0x15b   :  { %12901 = vmatpush3.bf16.msra.mxu0 %v14248_v4  ;;  %9630 = vmatmul.mubr.bf16.vlgmr.msra.gmra.mrb[32].mxu1 %v2323_v8  ;;  %v14292_v4 = vld [vmem:[#allocation2 + $0xad8] sm:$0xff]   ;;  %v14296_v8 = vld [vmem:[#allocation2 + $0xae0] sm:$0xff]  }
 0x15c   :  { %12902 = vmatprep.subr.bf16.mxu0 %v14250_v9  ;;  %12923 = vmatpush3.bf16.msra.mxu1 %v14249_v6  ;;  %v14294_v6 = vld [vmem:[#allocation2 + $0xa98] sm:$0xff]   ;;  %v14297_v9 = vld [vmem:[#allocation2 + $0xa20] sm:$0xff]  }
 0x15d   :  { %9669 = vmatprep.mubr.bf16.mxu0 %v2322_v12  ;;  %12924 = vmatprep.subr.bf16.mxu1 %v14251_v11  ;;  %v14299_v11 = vld [vmem:[#allocation2 + $0xa68] sm:$0xff]  }
 0x15e   :  { %9709 = vmatprep.mubr.bf16.mxu1 %v2326_v15  ;;  %v14300_v12 = vld [vmem:[#allocation2 + $0xae8] sm:$0xff]  }
 0x15f   :  { %12903 = vmatpush3.bf16.msra.mxu0 %v14252_v13  ;;  %v14301_v13 = vld [vmem:[#allocation2 + $0xa28] sm:$0xff]  }
 0x160   :  { %12904 = vmatprep.subr.bf16.mxu0 %v14254_v16  ;;  %12925 = vmatpush3.bf16.msra.mxu1 %v14253_v14  ;;  %v14302_v15 = vld [vmem:[#allocation2 + $0xaa8] sm:$0xff]  }
 0x161   :  { %12926 = vmatprep.subr.bf16.mxu1 %v14255_v17  ;;  %v14303_v17 = vld [vmem:[#allocation2 + $0xa70] sm:$0xff]  }
 0x163   :  { %12905 = vmatpush3.bf16.msra.mxu0 %v14256_v18 }
 0x164   :  { %12906 = vmatprep.subr.bf16.mxu0 %v14258_v20  ;;  %12927 = vmatpush3.bf16.msra.mxu1 %v14257_v19 }
 0x165   :  { %12928 = vmatprep.subr.bf16.mxu1 %v14259_v21 }
 0x167   :  { %12907 = vmatpush3.bf16.msra.mxu0 %v14260_v22 }
 0x168   :  { %12908 = vmatprep.subr.bf16.mxu0 %v14262_v24  ;;  %12929 = vmatpush3.bf16.msra.mxu1 %v14261_v23  ;;  %v14304_v23 = vld [vmem:[#allocation2 + $0xaf0] sm:$0xff]  }
 0x169   :  { %12930 = vmatprep.subr.bf16.mxu1 %v14263_v25  ;;  %v14305_v24 = vld [vmem:[#allocation2 + $0xa30] sm:$0xff]  }
 0x16b   :  { %12909 = vmatpush3.bf16.msra.mxu0 %v14264_v26 }
 0x16c   :  { %12910 = vmatprep.subr.bf16.mxu0 %v14266_v28  ;;  %12931 = vmatpush3.bf16.msra.mxu1 %v14265_v27  ;;  %v14306_v28 = vld [vmem:[#allocation2 + $0xab0] sm:$0xff]  }
 0x16d   :  { %v12608_v31 = vpop.f32.mrb[8].mxu0  ;;  %12932 = vmatprep.subr.bf16.mxu1 %v14267_v29 }
 0x16e   :  { %v12609_v33 = vpop.f32.mrb[9].mxu0  ;;  %v12630_v36 = vpop.f32.mrb[8].mxu1 }
 0x16f   :  { %v12610_v37 = vadd.f32 %v12609_v33, %v12608_v31  ;;  %v12611_v38 = vpop.f32.mrb[10].mxu0  ;;  %v12631_v41 = vpop.f32.mrb[9].mxu1  ;;  %12911 = vmatpush3.bf16.msra.mxu0 %v14268_v30  ;;  %v14307_v30 = vld [vmem:[#allocation2 + $0xa78] sm:$0xff]  }
 0x170   :  { %v12612_v42 = vpop.f32.mrb[11].mxu0  ;;  %v12632_v44 = vadd.f32 %v12631_v41, %v12630_v36  ;;  %v12633_v45 = vpop.f32.mrb[10].mxu1  ;;  %12912 = vmatprep.subr.bf16.mxu0 %v14270_v34  ;;  %12933 = vmatpush3.bf16.msra.mxu1 %v14269_v32  ;;  %v14308_v32 = vld [vmem:[#allocation2 + $0xaf8] sm:$0xff]   ;;  %v64_v34 = vld [vmem:[%s15484_s0 + $0x28] sm:$0xff] }
 0x171   :  { %v9112_v43 = vadd.f32 %v12610_v37, %v15199_v57  ;;  %v12634_v47 = vpop.f32.mrb[11].mxu1  ;;  %12934 = vmatprep.subr.bf16.mxu1 %v14271_v39  ;;  %v14282_v57 = vld [vmem:[#allocation2 + $0xa80] sm:$0xff]   ;;  %v14309_v33 = vld [vmem:[#allocation2 + $0xa38] sm:$0xff]   ;;  %v2334_v36 = vrot.slane %v64_v34, %v15138_v35  ;;  %v2327_v38 = vcombine.high %v64_v34, %v64_v34  ;;  %v14348_v34 = vld [vmem:[#allocation2 + $0xc48] sm:$0xff]  }
 0x172   :  { %v14311_v37 = vld [vmem:[#allocation2 + $0xb40] sm:$0xff]   ;;  %v14310_v39 = vld [vmem:[#allocation2 + $0xab8] sm:$0xff]  }
 0x173   :  { %v15214_v49 = vadd.f32 %v12632_v44, %v9112_v43  ;;  %12913 = vmatpush3.bf16.msra.mxu0 %v14272_v40  ;;  %v2342_v40 = vcombine.high %v2334_v36, %v2334_v36  ;;  %v2350_v41 = vrot.slane %v2334_v36, %v15138_v35  ;;  %v14312_v42 = vld [vmem:[#allocation2 + $0xbc0] sm:$0xff]   ;;  %v15227_v43 = vrot.slane %v2327_v38, %v15138_v35  ;;  %v14349_v36 = vld [vmem:[#allocation2 + $0xcc8] sm:$0xff]  }
 0x174   :  { %12914 = vmatprep.subr.bf16.mxu0 %v14274_v48  ;;  %12935 = vmatpush3.bf16.msra.mxu1 %v14273_v46  ;;  %v14313_v44 = vld [vmem:[#allocation2 + $0xb00] sm:$0xff]   ;;  %v14351_v38 = vld [vmem:[#allocation2 + $0xc88] sm:$0xff]  }
 0x175   :  { %12936 = vmatprep.subr.bf16.mxu1 %v14275_v50  ;;  %v2364_v45 = vrot.slane %v2342_v40, %v15138_v35  ;;  %v14314_v46 = vld [vmem:[#allocation2 + $0xb80] sm:$0xff]   ;;  %v2343_v47 = vcombine.high %v15227_v43, %v15227_v43  ;;  %v2372_v48 = vcombine.high %v2350_v41, %v2350_v41  ;;  %v14353_v40 = vld [vmem:[#allocation2 + $0xcd0] sm:$0xff]  }
 0x177   :  { %12915 = vmatpush3.bf16.msra.mxu0 %v14276_v51  ;;  %v2374_v50 = vcombine.high %v2364_v45, %v2364_v45  ;;  %v14316_v51 = vld [vmem:[#allocation2 + $0xbc8] sm:$0xff]  }
 0x178   :  { %12944 = vmatprep.subr.bf16.mxu0 %v14279_v54  ;;  %12937 = vmatpush3.bf16.msra.mxu1 %v14277_v52  ;;  %v2371_v52 = vrot.slane %v2343_v47, %v15138_v35  ;;  %v14318_v54 = vld [vmem:[#allocation2 + $0xb88] sm:$0xff]   ;;  %v14360_v47 = vld [vmem:[#allocation2 + $0xc60] sm:$0xff]  }
 0x179   :  { %12966 = vmatprep.subr.bf16.mxu1 %v14280_v55 }
 0x17a   :  { %9670 = vmatmul.mubr.bf16.vlgmr.msra.gmra.mrb[36].mxu0 %v2308_v53  ;;  %v14317_v53 = vld [vmem:[#allocation2 + $0xb08] sm:$0xff]   ;;  %v2375_v55 = vcombine.high %v2371_v52, %v2371_v52 }
 0x17b   :  { %12945 = vmatpush3.bf16.msra.mxu0 %v14281_v56  ;;  %9710 = vmatmul.mubr.bf16.vlgmr.msra.gmra.mrb[36].mxu1 %v2324_v58  ;;  %v14319_v56 = vld [vmem:[#allocation2 + $0xb50] sm:$0xff]  }
 0x17c   :  { %12946 = vmatprep.subr.bf16.mxu0 %v14283_v59  ;;  %12967 = vmatpush3.bf16.msra.mxu1 %v14282_v57  ;;  %v14320_v57 = vld [vmem:[#allocation2 + $0xbd0] sm:$0xff]  }
 0x17d   :  { %12968 = vmatprep.subr.bf16.mxu1 %v14284_v60  ;;  %9749 = vmatprep.mubr.bf16.mxu0 %v2364_v45  ;;  %v14321_v58 = vld [vmem:[#allocation2 + $0xb10] sm:$0xff]   ;;  %v14323_v60 = vld [vmem:[#allocation2 + $0xb58] sm:$0xff]  }
 0x17e   :  { %9789 = vmatprep.mubr.bf16.mxu1 %v2374_v50  ;;  %v14322_v59 = vld [vmem:[#allocation2 + $0xb90] sm:$0xff]   ;;  %v14358_v45 = vld [vmem:[#allocation2 + $0xc18] sm:$0xff]   ;;  %v14363_v50 = vld [vmem:[#allocation2 + $0xca0] sm:$0xff]  }
 0x17f   :  { %12947 = vmatpush3.bf16.msra.mxu0 %v14285_v61  ;;  %v14324_v61 = vld [vmem:[#allocation2 + $0xbd8] sm:$0xff]  }
 0x180   :  { %12948 = vmatprep.subr.bf16.mxu0 %v14287_v63  ;;  %12969 = vmatpush3.bf16.msra.mxu1 %v14286_v62  ;;  %v14325_v62 = vld [vmem:[#allocation2 + $0xb18] sm:$0xff]  }
 0x181   :  { %12970 = vmatprep.subr.bf16.mxu1 %v14288_v0  ;;  %v14326_v63 = vld [vmem:[#allocation2 + $0xb98] sm:$0xff]   ;;  %v14327_v0 = vld [vmem:[#allocation2 + $0xb60] sm:$0xff]  }
 0x183   :  { %12949 = vmatpush3.bf16.msra.mxu0 %v14289_v1  ;;  %v14328_v1 = vld [vmem:[#allocation2 + $0xbe0] sm:$0xff]  }
 0x184   :  { %12950 = vmatprep.subr.bf16.mxu0 %v14291_v3  ;;  %12971 = vmatpush3.bf16.msra.mxu1 %v14290_v2  ;;  %v14329_v2 = vld [vmem:[#allocation2 + $0xb20] sm:$0xff]  }
 0x185   :  { %12972 = vmatprep.subr.bf16.mxu1 %v14292_v4  ;;  %v14330_v3 = vld [vmem:[#allocation2 + $0xba0] sm:$0xff]   ;;  %v14331_v4 = vld [vmem:[#allocation2 + $0xb68] sm:$0xff]  }
 0x187   :  { %12951 = vmatpush3.bf16.msra.mxu0 %v14293_v5  ;;  %v14332_v5 = vld [vmem:[#allocation2 + $0xbe8] sm:$0xff]  }
 0x188   :  { %12952 = vmatprep.subr.bf16.mxu0 %v14295_v7  ;;  %12973 = vmatpush3.bf16.msra.mxu1 %v14294_v6  ;;  %v14333_v7 = vld [vmem:[#allocation2 + $0xb28] sm:$0xff]  }
 0x189   :  { %12974 = vmatprep.subr.bf16.mxu1 %v14296_v8 }
 0x18b   :  { %12953 = vmatpush3.bf16.msra.mxu0 %v14297_v9  ;;  %v14334_v9 = vld [vmem:[#allocation2 + $0xba8] sm:$0xff]  }
 0x18c   :  { %12954 = vmatprep.subr.bf16.mxu0 %v14299_v11  ;;  %12975 = vmatpush3.bf16.msra.mxu1 %v14298_v10 }
 0x18d   :  { %v12652_v14 = vpop.f32.mrb[12].mxu0  ;;  %12976 = vmatprep.subr.bf16.mxu1 %v14300_v12 }
 0x18e   :  { %v12653_v16 = vpop.f32.mrb[13].mxu0  ;;  %v12674_v18 = vpop.f32.mrb[12].mxu1 }
 0x18f   :  { %v12654_v19 = vadd.f32 %v12653_v16, %v12652_v14  ;;  %v12655_v20 = vpop.f32.mrb[14].mxu0  ;;  %v12675_v21 = vpop.f32.mrb[13].mxu1  ;;  %12955 = vmatpush3.bf16.msra.mxu0 %v14301_v13  ;;  %v14335_v13 = vld [vmem:[#allocation2 + $0xb70] sm:$0xff]  }
 0x190   :  { %v12656_v22 = vpop.f32.mrb[15].mxu0  ;;  %v12676_v26 = vadd.f32 %v12675_v21, %v12674_v18  ;;  %v12677_v27 = vpop.f32.mrb[14].mxu1  ;;  %12956 = vmatprep.subr.bf16.mxu0 %v14303_v17  ;;  %12977 = vmatpush3.bf16.msra.mxu1 %v14302_v15  ;;  %v14336_v14 = vld [vmem:[#allocation2 + $0xbf0] sm:$0xff]  }
 0x191   :  { %v9192_v25 = vadd.f32 %v12654_v19, %v15214_v49  ;;  %v12678_v29 = vpop.f32.mrb[15].mxu1  ;;  %12978 = vmatprep.subr.bf16.mxu1 %v14304_v23  ;;  %v14315_v49 = vld [vmem:[#allocation2 + $0xb48] sm:$0xff]   ;;  %v14337_v20 = vld [vmem:[#allocation2 + $0xb30] sm:$0xff]   ;;  %v14342_v27 = vld [vmem:[#allocation2 + $0xbb8] sm:$0xff]  }
 0x192   :  { %v14338_v22 = vld [vmem:[#allocation2 + $0xbb0] sm:$0xff]   ;;  %v14344_v29 = vld [vmem:[#allocation2 + $0xc40] sm:$0xff]  }
 0x193   :  { %v15219_v31 = vadd.f32 %v12676_v26, %v9192_v25  ;;  %12957 = vmatpush3.bf16.msra.mxu0 %v14305_v24  ;;  %v14339_v24 = vld [vmem:[#allocation2 + $0xb78] sm:$0xff]  }
 0x194   :  { %12958 = vmatprep.subr.bf16.mxu0 %v14307_v30  ;;  %12979 = vmatpush3.bf16.msra.mxu1 %v14306_v28  ;;  %v14340_v25 = vld [vmem:[#allocation2 + $0xbf8] sm:$0xff]   ;;  %v2357_v28 = vrot.slane %v15227_v43, %v15138_v35  ;;  %v14345_v30 = vld [vmem:[#allocation2 + $0xcc0] sm:$0xff]  }
 0x195   :  { %12980 = vmatprep.subr.bf16.mxu1 %v14308_v32  ;;  %v14341_v26 = vld [vmem:[#allocation2 + $0xb38] sm:$0xff]   ;;  %v14347_v32 = vld [vmem:[#allocation2 + $0xc80] sm:$0xff]  }
 0x196   :  { %v14356_v43 = vld [vmem:[#allocation2 + $0xc58] sm:$0xff]  }
 0x197   :  { %12959 = vmatpush3.bf16.msra.mxu0 %v14309_v33  ;;  %v2373_v33 = vcombine.high %v2357_v28, %v2357_v28 }
 0x198   :  { %12988 = vmatprep.subr.bf16.mxu0 %v14311_v37  ;;  %12981 = vmatpush3.bf16.msra.mxu1 %v14310_v39  ;;  %v14350_v37 = vld [vmem:[#allocation2 + $0xc08] sm:$0xff]   ;;  %v14352_v39 = vld [vmem:[#allocation2 + $0xc50] sm:$0xff]  }
 0x199   :  { %13010 = vmatprep.subr.bf16.mxu1 %v14312_v42  ;;  %v14355_v42 = vld [vmem:[#allocation2 + $0xc90] sm:$0xff]  }
 0x19a   :  { %9750 = vmatmul.mubr.bf16.vlgmr.msra.gmra.mrb[40].mxu0 %v2350_v41  ;;  %v14354_v41 = vld [vmem:[#allocation2 + $0xc10] sm:$0xff]  }
 0x19b   :  { %12989 = vmatpush3.bf16.msra.mxu0 %v14313_v44  ;;  %9790 = vmatmul.mubr.bf16.vlgmr.msra.gmra.mrb[40].mxu1 %v2372_v48  ;;  %v14357_v44 = vld [vmem:[#allocation2 + $0xcd8] sm:$0xff]   ;;  %v14361_v48 = vld [vmem:[#allocation2 + $0xce0] sm:$0xff]  }
 0x19c   :  { %12990 = vmatprep.subr.bf16.mxu0 %v14315_v49  ;;  %13011 = vmatpush3.bf16.msra.mxu1 %v14314_v46  ;;  %v14359_v46 = vld [vmem:[#allocation2 + $0xc98] sm:$0xff]   ;;  %v14362_v49 = vld [vmem:[#allocation2 + $0xc20] sm:$0xff]  }
 0x19d   :  { %9829 = vmatprep.mubr.bf16.mxu0 %v2371_v52  ;;  %13012 = vmatprep.subr.bf16.mxu1 %v14316_v51  ;;  %v14364_v51 = vld [vmem:[#allocation2 + $0xc68] sm:$0xff]  }
 0x19e   :  { %9869 = vmatprep.mubr.bf16.mxu1 %v2375_v55  ;;  %v14365_v52 = vld [vmem:[#allocation2 + $0xce8] sm:$0xff]  }
 0x19f   :  { %12991 = vmatpush3.bf16.msra.mxu0 %v14317_v53 }
 0x1a0   :  { %12992 = vmatprep.subr.bf16.mxu0 %v14319_v56  ;;  %13013 = vmatpush3.bf16.msra.mxu1 %v14318_v54  ;;  %v14366_v54 = vld [vmem:[#allocation2 + $0xc28] sm:$0xff]   ;;  %v14368_v56 = vld [vmem:[#allocation2 + $0xc70] sm:$0xff]  }
 0x1a1   :  { %13014 = vmatprep.subr.bf16.mxu1 %v14320_v57 }
 0x1a3   :  { %12993 = vmatpush3.bf16.msra.mxu0 %v14321_v58 }
 0x1a4   :  { %12994 = vmatprep.subr.bf16.mxu0 %v14323_v60  ;;  %13015 = vmatpush3.bf16.msra.mxu1 %v14322_v59 }
 0x1a5   :  { %13016 = vmatprep.subr.bf16.mxu1 %v14324_v61  ;;  %v14367_v61 = vld [vmem:[#allocation2 + $0xca8] sm:$0xff]  }
 0x1a7   :  { %12995 = vmatpush3.bf16.msra.mxu0 %v14325_v62 }
 0x1a8   :  { %12996 = vmatprep.subr.bf16.mxu0 %v14327_v0  ;;  %13017 = vmatpush3.bf16.msra.mxu1 %v14326_v63  ;;  %v14369_v63 = vld [vmem:[#allocation2 + $0xcf0] sm:$0xff]  }
 0x1a9   :  { %13018 = vmatprep.subr.bf16.mxu1 %v14328_v1 }
 0x1ab   :  { %12997 = vmatpush3.bf16.msra.mxu0 %v14329_v2 }
 0x1ac   :  { %12998 = vmatprep.subr.bf16.mxu0 %v14331_v4  ;;  %13019 = vmatpush3.bf16.msra.mxu1 %v14330_v3  ;;  %v14370_v3 = vld [vmem:[#allocation2 + $0xc30] sm:$0xff]  }
 0x1ad   :  { %v12696_v6 = vpop.f32.mrb[16].mxu0  ;;  %13020 = vmatprep.subr.bf16.mxu1 %v14332_v5  ;;  %v14372_v5 = vld [vmem:[#allocation2 + $0xc78] sm:$0xff]  }
 0x1ae   :  { %v12697_v8 = vpop.f32.mrb[17].mxu0  ;;  %v12718_v10 = vpop.f32.mrb[16].mxu1 }
 0x1af   :  { %v12698_v11 = vadd.f32 %v12697_v8, %v12696_v6  ;;  %v12699_v12 = vpop.f32.mrb[18].mxu0  ;;  %v12719_v15 = vpop.f32.mrb[17].mxu1  ;;  %12999 = vmatpush3.bf16.msra.mxu0 %v14333_v7  ;;  %v14371_v7 = vld [vmem:[#allocation2 + $0xcb0] sm:$0xff]   ;;  %v14373_v8 = vld [vmem:[#allocation2 + $0xcf8] sm:$0xff]  }
 0x1b0   :  { %v12700_v16 = vpop.f32.mrb[19].mxu0  ;;  %v12720_v18 = vadd.f32 %v12719_v15, %v12718_v10  ;;  %v12721_v19 = vpop.f32.mrb[18].mxu1  ;;  %13000 = vmatprep.subr.bf16.mxu0 %v14335_v13  ;;  %13021 = vmatpush3.bf16.msra.mxu1 %v14334_v9  ;;  %v14374_v9 = vld [vmem:[#allocation2 + $0xc38] sm:$0xff]   ;;  %v65_v10 = vld [vmem:[%s15484_s0 + $0x30] sm:$0xff]  ;;  %v14376_v12 = vld [vmem:[#allocation2 + $0xd40] sm:$0xff]  }
 0x1b1   :  { %v9272_v17 = vadd.f32 %v12698_v11, %v15219_v31  ;;  %v12722_v21 = vpop.f32.mrb[19].mxu1  ;;  %13022 = vmatprep.subr.bf16.mxu1 %v14336_v14  ;;  %v14346_v31 = vld [vmem:[#allocation2 + $0xc00] sm:$0xff]   ;;  %v2383_v11 = vrot.slane %v65_v10, %v15138_v35  ;;  %v2376_v13 = vcombine.high %v65_v10, %v65_v10  ;;  %v14375_v14 = vld [vmem:[#allocation2 + $0xcb8] sm:$0xff]   ;;  %v14413_v10 = vld [vmem:[#allocation2 + $0xe48] sm:$0xff]  }
 0x1b2   :  { %v14378_v19 = vld [vmem:[#allocation2 + $0xd00] sm:$0xff]  }
 0x1b3   :  { %v15234_v23 = vadd.f32 %v12720_v18, %v9272_v17  ;;  %13001 = vmatpush3.bf16.msra.mxu0 %v14337_v20  ;;  %v2391_v15 = vcombine.high %v2383_v11, %v2383_v11  ;;  %v2399_v16 = vrot.slane %v2383_v11, %v15138_v35  ;;  %v14377_v17 = vld [vmem:[#allocation2 + $0xdc0] sm:$0xff]   ;;  %v15247_v18 = vrot.slane %v2376_v13, %v15138_v35  ;;  %v14414_v11 = vld [vmem:[#allocation2 + $0xec8] sm:$0xff]  }
 0x1b4   :  { %13002 = vmatprep.subr.bf16.mxu0 %v14339_v24  ;;  %13023 = vmatpush3.bf16.msra.mxu1 %v14338_v22  ;;  %v14379_v21 = vld [vmem:[#allocation2 + $0xd80] sm:$0xff]   ;;  %v14380_v24 = vld [vmem:[#allocation2 + $0xd48] sm:$0xff]  }
 0x1b5   :  { %13024 = vmatprep.subr.bf16.mxu1 %v14340_v25  ;;  %v2413_v20 = vrot.slane %v2391_v15, %v15138_v35  ;;  %v2392_v22 = vcombine.high %v15247_v18, %v15247_v18  ;;  %v14416_v13 = vld [vmem:[#allocation2 + $0xe88] sm:$0xff]   ;;  %v14418_v15 = vld [vmem:[#allocation2 + $0xed0] sm:$0xff]  }
 0x1b7   :  { %13003 = vmatpush3.bf16.msra.mxu0 %v14341_v26  ;;  %v2423_v25 = vcombine.high %v2413_v20, %v2413_v20  ;;  %v14381_v26 = vld [vmem:[#allocation2 + $0xdc8] sm:$0xff]  }
 0x1b8   :  { %13032 = vmatprep.subr.bf16.mxu0 %v14344_v29  ;;  %13025 = vmatpush3.bf16.msra.mxu1 %v14342_v27  ;;  %v2420_v27 = vrot.slane %v2392_v22, %v15138_v35  ;;  %v14383_v29 = vld [vmem:[#allocation2 + $0xd88] sm:$0xff]   ;;  %v14425_v22 = vld [vmem:[#allocation2 + $0xe60] sm:$0xff]  }
 0x1b9   :  { %13054 = vmatprep.subr.bf16.mxu1 %v14345_v30 }
 0x1ba   :  { %9830 = vmatmul.mubr.bf16.vlgmr.msra.gmra.mrb[44].mxu0 %v2357_v28  ;;  %v14382_v28 = vld [vmem:[#allocation2 + $0xd08] sm:$0xff]   ;;  %v2424_v30 = vcombine.high %v2420_v27, %v2420_v27 }
 0x1bb   :  { %13033 = vmatpush3.bf16.msra.mxu0 %v14346_v31  ;;  %9870 = vmatmul.mubr.bf16.vlgmr.msra.gmra.mrb[44].mxu1 %v2373_v33  ;;  %v14384_v31 = vld [vmem:[#allocation2 + $0xd50] sm:$0xff]  }
 0x1bc   :  { %13034 = vmatprep.subr.bf16.mxu0 %v14348_v34  ;;  %13055 = vmatpush3.bf16.msra.mxu1 %v14347_v32  ;;  %v14385_v32 = vld [vmem:[#allocation2 + $0xdd0] sm:$0xff]  }
 0x1bd   :  { %13056 = vmatprep.subr.bf16.mxu1 %v14349_v36  ;;  %9909 = vmatprep.mubr.bf16.mxu0 %v2413_v20  ;;  %v14386_v33 = vld [vmem:[#allocation2 + $0xd10] sm:$0xff]   ;;  %v14388_v36 = vld [vmem:[#allocation2 + $0xd58] sm:$0xff]  }
 0x1be   :  { %9949 = vmatprep.mubr.bf16.mxu1 %v2423_v25  ;;  %v14387_v34 = vld [vmem:[#allocation2 + $0xd90] sm:$0xff]   ;;  %v14423_v20 = vld [vmem:[#allocation2 + $0xe18] sm:$0xff]   ;;  %v14428_v25 = vld [vmem:[#allocation2 + $0xea0] sm:$0xff]  }
 0x1bf   :  { %13035 = vmatpush3.bf16.msra.mxu0 %v14350_v37  ;;  %v14389_v37 = vld [vmem:[#allocation2 + $0xdd8] sm:$0xff]  }
 0x1c0   :  { %13036 = vmatprep.subr.bf16.mxu0 %v14352_v39  ;;  %13057 = vmatpush3.bf16.msra.mxu1 %v14351_v38  ;;  %v14390_v38 = vld [vmem:[#allocation2 + $0xd18] sm:$0xff]  }
 0x1c1   :  { %13058 = vmatprep.subr.bf16.mxu1 %v14353_v40  ;;  %v14391_v39 = vld [vmem:[#allocation2 + $0xd98] sm:$0xff]   ;;  %v14392_v40 = vld [vmem:[#allocation2 + $0xd60] sm:$0xff]  }
 0x1c3   :  { %13037 = vmatpush3.bf16.msra.mxu0 %v14354_v41  ;;  %v14393_v41 = vld [vmem:[#allocation2 + $0xde0] sm:$0xff]  }
 0x1c4   :  { %13038 = vmatprep.subr.bf16.mxu0 %v14356_v43  ;;  %13059 = vmatpush3.bf16.msra.mxu1 %v14355_v42  ;;  %v14394_v42 = vld [vmem:[#allocation2 + $0xd20] sm:$0xff]  }
 0x1c5   :  { %13060 = vmatprep.subr.bf16.mxu1 %v14357_v44  ;;  %v14395_v43 = vld [vmem:[#allocation2 + $0xda0] sm:$0xff]   ;;  %v14396_v44 = vld [vmem:[#allocation2 + $0xd68] sm:$0xff]  }
 0x1c7   :  { %13039 = vmatpush3.bf16.msra.mxu0 %v14358_v45  ;;  %v14397_v45 = vld [vmem:[#allocation2 + $0xde8] sm:$0xff]  }
 0x1c8   :  { %13040 = vmatprep.subr.bf16.mxu0 %v14360_v47  ;;  %13061 = vmatpush3.bf16.msra.mxu1 %v14359_v46  ;;  %v14398_v47 = vld [vmem:[#allocation2 + $0xd28] sm:$0xff]  }
 0x1c9   :  { %13062 = vmatprep.subr.bf16.mxu1 %v14361_v48 }
 0x1cb   :  { %13041 = vmatpush3.bf16.msra.mxu0 %v14362_v49  ;;  %v14399_v49 = vld [vmem:[#allocation2 + $0xda8] sm:$0xff]  }
 0x1cc   :  { %13042 = vmatprep.subr.bf16.mxu0 %v14364_v51  ;;  %13063 = vmatpush3.bf16.msra.mxu1 %v14363_v50 }
 0x1cd   :  { %v12740_v53 = vpop.f32.mrb[20].mxu0  ;;  %13064 = vmatprep.subr.bf16.mxu1 %v14365_v52 }
 0x1ce   :  { %v12741_v55 = vpop.f32.mrb[21].mxu0  ;;  %v12762_v57 = vpop.f32.mrb[20].mxu1 }
 0x1cf   :  { %v12742_v58 = vadd.f32 %v12741_v55, %v12740_v53  ;;  %v12743_v59 = vpop.f32.mrb[22].mxu0  ;;  %v12763_v60 = vpop.f32.mrb[21].mxu1  ;;  %13043 = vmatpush3.bf16.msra.mxu0 %v14366_v54  ;;  %v14400_v53 = vld [vmem:[#allocation2 + $0xd70] sm:$0xff]  }
 0x1d0   :  { %v12744_v62 = vpop.f32.mrb[23].mxu0  ;;  %v12764_v1 = vadd.f32 %v12763_v60, %v12762_v57  ;;  %v12765_v2 = vpop.f32.mrb[22].mxu1  ;;  %13044 = vmatprep.subr.bf16.mxu0 %v14368_v56  ;;  %13065 = vmatpush3.bf16.msra.mxu1 %v14367_v61  ;;  %v14401_v54 = vld [vmem:[#allocation2 + $0xdf0] sm:$0xff]  }
 0x1d1   :  { %v9352_v0 = vadd.f32 %v12742_v58, %v15234_v23  ;;  %v12766_v4 = vpop.f32.mrb[23].mxu1  ;;  %13066 = vmatprep.subr.bf16.mxu1 %v14369_v63  ;;  %v2421_v23 = vcombine.high %v2399_v16, %v2399_v16  ;;  %v14402_v60 = vld [vmem:[#allocation2 + $0xd30] sm:$0xff]   ;;  %v14406_v2 = vld [vmem:[#allocation2 + $0xd38] sm:$0xff]  }
 0x1d2   :  { %v14403_v62 = vld [vmem:[#allocation2 + $0xdb0] sm:$0xff]   ;;  %v2406_v4 = vrot.slane %v15247_v18, %v15138_v35  ;;  %v14421_v18 = vld [vmem:[#allocation2 + $0xe58] sm:$0xff]  }
 0x1d3   :  { %v15239_v6 = vadd.f32 %v12764_v1, %v9352_v0  ;;  %13045 = vmatpush3.bf16.msra.mxu0 %v14370_v3  ;;  %v14404_v0 = vld [vmem:[#allocation2 + $0xd78] sm:$0xff]  }
 0x1d4   :  { %13046 = vmatprep.subr.bf16.mxu0 %v14372_v5  ;;  %13067 = vmatpush3.bf16.msra.mxu1 %v14371_v7  ;;  %v14405_v1 = vld [vmem:[#allocation2 + $0xdf8] sm:$0xff]   ;;  %v14409_v5 = vld [vmem:[#allocation2 + $0xe40] sm:$0xff]  }
 0x1d5   :  { %13068 = vmatprep.subr.bf16.mxu1 %v14373_v8  ;;  %v14407_v3 = vld [vmem:[#allocation2 + $0xdb8] sm:$0xff]   ;;  %v14411_v7 = vld [vmem:[#allocation2 + $0xe00] sm:$0xff]  }
 0x1d6   :  { %v14412_v8 = vld [vmem:[#allocation2 + $0xe80] sm:$0xff]  }
 0x1d7   :  { %13047 = vmatpush3.bf16.msra.mxu0 %v14374_v9  ;;  %v2422_v9 = vcombine.high %v2406_v4, %v2406_v4 }
 0x1d8   :  { %13076 = vmatprep.subr.bf16.mxu0 %v14376_v12  ;;  %13069 = vmatpush3.bf16.msra.mxu1 %v14375_v14  ;;  %v14415_v12 = vld [vmem:[#allocation2 + $0xe08] sm:$0xff]   ;;  %v14417_v14 = vld [vmem:[#allocation2 + $0xe50] sm:$0xff]  }
 0x1d9   :  { %13098 = vmatprep.subr.bf16.mxu1 %v14377_v17  ;;  %v14420_v17 = vld [vmem:[#allocation2 + $0xe90] sm:$0xff]  }
 0x1da   :  { %9910 = vmatmul.mubr.bf16.vlgmr.msra.gmra.mrb[48].mxu0 %v2399_v16  ;;  %v14419_v16 = vld [vmem:[#allocation2 + $0xe10] sm:$0xff]  }
 0x1db   :  { %13077 = vmatpush3.bf16.msra.mxu0 %v14378_v19  ;;  %9950 = vmatmul.mubr.bf16.vlgmr.msra.gmra.mrb[48].mxu1 %v2421_v23  ;;  %v14422_v19 = vld [vmem:[#allocation2 + $0xed8] sm:$0xff]   ;;  %v14426_v23 = vld [vmem:[#allocation2 + $0xee0] sm:$0xff]  }
 0x1dc   :  { %13078 = vmatprep.subr.bf16.mxu0 %v14380_v24  ;;  %13099 = vmatpush3.bf16.msra.mxu1 %v14379_v21  ;;  %v14424_v21 = vld [vmem:[#allocation2 + $0xe98] sm:$0xff]   ;;  %v14427_v24 = vld [vmem:[#allocation2 + $0xe20] sm:$0xff]  }
 0x1dd   :  { %9989 = vmatprep.mubr.bf16.mxu0 %v2420_v27  ;;  %13100 = vmatprep.subr.bf16.mxu1 %v14381_v26  ;;  %v14429_v26 = vld [vmem:[#allocation2 + $0xe68] sm:$0xff]  }
 0x1de   :  { %10029 = vmatprep.mubr.bf16.mxu1 %v2424_v30  ;;  %v14430_v27 = vld [vmem:[#allocation2 + $0xee8] sm:$0xff]  }
 0x1df   :  { %13079 = vmatpush3.bf16.msra.mxu0 %v14382_v28 }
 0x1e0   :  { %13080 = vmatprep.subr.bf16.mxu0 %v14384_v31  ;;  %13101 = vmatpush3.bf16.msra.mxu1 %v14383_v29  ;;  %v14431_v29 = vld [vmem:[#allocation2 + $0xe28] sm:$0xff]   ;;  %v14433_v31 = vld [vmem:[#allocation2 + $0xe70] sm:$0xff]  }
 0x1e1   :  { %13102 = vmatprep.subr.bf16.mxu1 %v14385_v32 }
 0x1e3   :  { %13081 = vmatpush3.bf16.msra.mxu0 %v14386_v33 }
 0x1e4   :  { %13082 = vmatprep.subr.bf16.mxu0 %v14388_v36  ;;  %13103 = vmatpush3.bf16.msra.mxu1 %v14387_v34 }
 0x1e5   :  { %13104 = vmatprep.subr.bf16.mxu1 %v14389_v37  ;;  %v14432_v37 = vld [vmem:[#allocation2 + $0xea8] sm:$0xff]  }
 0x1e7   :  { %13083 = vmatpush3.bf16.msra.mxu0 %v14390_v38 }
 0x1e8   :  { %13084 = vmatprep.subr.bf16.mxu0 %v14392_v40  ;;  %13105 = vmatpush3.bf16.msra.mxu1 %v14391_v39  ;;  %v14434_v39 = vld [vmem:[#allocation2 + $0xef0] sm:$0xff]  }
 0x1e9   :  { %13106 = vmatprep.subr.bf16.mxu1 %v14393_v41 }
 0x1eb   :  { %13085 = vmatpush3.bf16.msra.mxu0 %v14394_v42 }
 0x1ec   :  { %13086 = vmatprep.subr.bf16.mxu0 %v14396_v44  ;;  %13107 = vmatpush3.bf16.msra.mxu1 %v14395_v43  ;;  %v14435_v43 = vld [vmem:[#allocation2 + $0xe30] sm:$0xff]  }
 0x1ed   :  { %v12784_v46 = vpop.f32.mrb[24].mxu0  ;;  %13108 = vmatprep.subr.bf16.mxu1 %v14397_v45  ;;  %v14437_v45 = vld [vmem:[#allocation2 + $0xe78] sm:$0xff]  }
 0x1ee   :  { %v12785_v48 = vpop.f32.mrb[25].mxu0  ;;  %v12806_v50 = vpop.f32.mrb[24].mxu1 }
 0x1ef   :  { %v12786_v51 = vadd.f32 %v12785_v48, %v12784_v46  ;;  %v12787_v52 = vpop.f32.mrb[26].mxu0  ;;  %v12807_v55 = vpop.f32.mrb[25].mxu1  ;;  %13087 = vmatpush3.bf16.msra.mxu0 %v14398_v47  ;;  %v14436_v47 = vld [vmem:[#allocation2 + $0xeb0] sm:$0xff]   ;;  %v14438_v48 = vld [vmem:[#allocation2 + $0xef8] sm:$0xff]  }
 0x1f0   :  { %v12788_v56 = vpop.f32.mrb[27].mxu0  ;;  %v12808_v58 = vadd.f32 %v12807_v55, %v12806_v50  ;;  %v12809_v59 = vpop.f32.mrb[26].mxu1  ;;  %13088 = vmatprep.subr.bf16.mxu0 %v14400_v53  ;;  %13109 = vmatpush3.bf16.msra.mxu1 %v14399_v49  ;;  %v14439_v49 = vld [vmem:[#allocation2 + $0xe38] sm:$0xff]   ;;  %v14441_v52 = vld [vmem:[#allocation2 + $0xf40] sm:$0xff]  }
 0x1f1   :  { %v9432_v57 = vadd.f32 %v12786_v51, %v15239_v6  ;;  %v12810_v61 = vpop.f32.mrb[27].mxu1  ;;  %13110 = vmatprep.subr.bf16.mxu1 %v14401_v54  ;;  %v14410_v6 = vld [vmem:[#allocation2 + $0xec0] sm:$0xff]   ;;  %v66_v50 = vld [vmem:[%s15484_s0 + $0x38] sm:$0xff] }
 0x1f2   :  { %v2432_v51 = vrot.slane %v66_v50, %v15138_v35  ;;  %v2425_v53 = vcombine.high %v66_v50, %v66_v50  ;;  %v14440_v54 = vld [vmem:[#allocation2 + $0xeb8] sm:$0xff]   ;;  %v14443_v59 = vld [vmem:[#allocation2 + $0xf00] sm:$0xff]   ;;  %v14478_v50 = vld [vmem:[#allocation2 + $0x1048] sm:$0xff]  }
 0x1f3   :  { %v15254_v63 = vadd.f32 %v12808_v58, %v9432_v57  ;;  %13089 = vmatpush3.bf16.msra.mxu0 %v14402_v60  ;;  %v14442_v57 = vld [vmem:[#allocation2 + $0xfc0] sm:$0xff]  }
 0x1f4   :  { %13090 = vmatprep.subr.bf16.mxu0 %v14404_v0  ;;  %13111 = vmatpush3.bf16.msra.mxu1 %v14403_v62  ;;  %v2440_v55 = vcombine.high %v2432_v51, %v2432_v51  ;;  %v2448_v56 = vrot.slane %v2432_v51, %v15138_v35  ;;  %v15267_v58 = vrot.slane %v2425_v53, %v15138_v35  ;;  %v14444_v61 = vld [vmem:[#allocation2 + $0xf80] sm:$0xff]   ;;  %v14445_v0 = vld [vmem:[#allocation2 + $0xf48] sm:$0xff]  }
 0x1f5   :  { %13112 = vmatprep.subr.bf16.mxu1 %v14405_v1  ;;  %v14479_v51 = vld [vmem:[#allocation2 + $0x10c8] sm:$0xff]  }
 0x1f6   :  { %v2462_v60 = vrot.slane %v2440_v55, %v15138_v35  ;;  %v2441_v62 = vcombine.high %v15267_v58, %v15267_v58  ;;  %v14481_v53 = vld [vmem:[#allocation2 + $0x1088] sm:$0xff]   ;;  %v14483_v55 = vld [vmem:[#allocation2 + $0x10d0] sm:$0xff]  }
 0x1f7   :  { %13091 = vmatpush3.bf16.msra.mxu0 %v14406_v2  ;;  %v14446_v2 = vld [vmem:[#allocation2 + $0xfc8] sm:$0xff]  }
 0x1f8   :  { %13120 = vmatprep.subr.bf16.mxu0 %v14409_v5  ;;  %13113 = vmatpush3.bf16.msra.mxu1 %v14407_v3  ;;  %v2472_v1 = vcombine.high %v2462_v60, %v2462_v60  ;;  %v2469_v3 = vrot.slane %v2441_v62, %v15138_v35  ;;  %v14448_v5 = vld [vmem:[#allocation2 + $0xf88] sm:$0xff]   ;;  %v14490_v62 = vld [vmem:[#allocation2 + $0x1060] sm:$0xff]  }
 0x1f9   :  { %13142 = vmatprep.subr.bf16.mxu1 %v14410_v6 }
 0x1fa   :  { %9990 = vmatmul.mubr.bf16.vlgmr.msra.gmra.mrb[52].mxu0 %v2406_v4  ;;  %v14447_v4 = vld [vmem:[#allocation2 + $0xf08] sm:$0xff]   ;;  %v2473_v6 = vcombine.high %v2469_v3, %v2469_v3 }
 0x1fb   :  { %13121 = vmatpush3.bf16.msra.mxu0 %v14411_v7  ;;  %10030 = vmatmul.mubr.bf16.vlgmr.msra.gmra.mrb[52].mxu1 %v2422_v9  ;;  %v14449_v7 = vld [vmem:[#allocation2 + $0xf50] sm:$0xff]  }
 0x1fc   :  { %13122 = vmatprep.subr.bf16.mxu0 %v14413_v10  ;;  %13143 = vmatpush3.bf16.msra.mxu1 %v14412_v8  ;;  %v14450_v8 = vld [vmem:[#allocation2 + $0xfd0] sm:$0xff]  }
 0x1fd   :  { %13144 = vmatprep.subr.bf16.mxu1 %v14414_v11  ;;  %10069 = vmatprep.mubr.bf16.mxu0 %v2462_v60  ;;  %v14451_v9 = vld [vmem:[#allocation2 + $0xf10] sm:$0xff]   ;;  %v14453_v11 = vld [vmem:[#allocation2 + $0xf58] sm:$0xff]  }
 0x1fe   :  { %10109 = vmatprep.mubr.bf16.mxu1 %v2472_v1  ;;  %v14452_v10 = vld [vmem:[#allocation2 + $0xf90] sm:$0xff]   ;;  %v14488_v60 = vld [vmem:[#allocation2 + $0x1018] sm:$0xff]   ;;  %v14493_v1 = vld [vmem:[#allocation2 + $0x10a0] sm:$0xff]  }
 0x1ff   :  { %13123 = vmatpush3.bf16.msra.mxu0 %v14415_v12  ;;  %v14454_v12 = vld [vmem:[#allocation2 + $0xfd8] sm:$0xff]  }
 0x200   :  { %13124 = vmatprep.subr.bf16.mxu0 %v14417_v14  ;;  %13145 = vmatpush3.bf16.msra.mxu1 %v14416_v13  ;;  %v14455_v13 = vld [vmem:[#allocation2 + $0xf18] sm:$0xff]  }
 0x201   :  { %13146 = vmatprep.subr.bf16.mxu1 %v14418_v15  ;;  %v14456_v14 = vld [vmem:[#allocation2 + $0xf98] sm:$0xff]   ;;  %v14457_v15 = vld [vmem:[#allocation2 + $0xf60] sm:$0xff]  }
 0x203   :  { %13125 = vmatpush3.bf16.msra.mxu0 %v14419_v16  ;;  %v14458_v16 = vld [vmem:[#allocation2 + $0xfe0] sm:$0xff]  }
 0x204   :  { %13126 = vmatprep.subr.bf16.mxu0 %v14421_v18  ;;  %13147 = vmatpush3.bf16.msra.mxu1 %v14420_v17  ;;  %v14459_v17 = vld [vmem:[#allocation2 + $0xf20] sm:$0xff]  }
 0x205   :  { %13148 = vmatprep.subr.bf16.mxu1 %v14422_v19  ;;  %v14460_v18 = vld [vmem:[#allocation2 + $0xfa0] sm:$0xff]   ;;  %v14461_v19 = vld [vmem:[#allocation2 + $0xf68] sm:$0xff]  }
 0x207   :  { %13127 = vmatpush3.bf16.msra.mxu0 %v14423_v20  ;;  %v14462_v20 = vld [vmem:[#allocation2 + $0xfe8] sm:$0xff]  }
 0x208   :  { %13128 = vmatprep.subr.bf16.mxu0 %v14425_v22  ;;  %13149 = vmatpush3.bf16.msra.mxu1 %v14424_v21  ;;  %v14463_v22 = vld [vmem:[#allocation2 + $0xf28] sm:$0xff]  }
 0x209   :  { %13150 = vmatprep.subr.bf16.mxu1 %v14426_v23 }
 0x20b   :  { %13129 = vmatpush3.bf16.msra.mxu0 %v14427_v24  ;;  %v14464_v24 = vld [vmem:[#allocation2 + $0xfa8] sm:$0xff]  }
 0x20c   :  { %13130 = vmatprep.subr.bf16.mxu0 %v14429_v26  ;;  %13151 = vmatpush3.bf16.msra.mxu1 %v14428_v25 }
 0x20d   :  { %v12828_v28 = vpop.f32.mrb[28].mxu0  ;;  %13152 = vmatprep.subr.bf16.mxu1 %v14430_v27 }
 0x20e   :  { %v12829_v30 = vpop.f32.mrb[29].mxu0  ;;  %v12850_v32 = vpop.f32.mrb[28].mxu1 }
 0x20f   :  { %v12830_v33 = vadd.f32 %v12829_v30, %v12828_v28  ;;  %v12831_v34 = vpop.f32.mrb[30].mxu0  ;;  %v12851_v36 = vpop.f32.mrb[29].mxu1  ;;  %13131 = vmatpush3.bf16.msra.mxu0 %v14431_v29  ;;  %v14465_v28 = vld [vmem:[#allocation2 + $0xf70] sm:$0xff]  }
 0x210   :  { %v12832_v38 = vpop.f32.mrb[31].mxu0  ;;  %v12852_v41 = vadd.f32 %v12851_v36, %v12850_v32  ;;  %v12853_v42 = vpop.f32.mrb[30].mxu1  ;;  %13132 = vmatprep.subr.bf16.mxu0 %v14433_v31  ;;  %13153 = vmatpush3.bf16.msra.mxu1 %v14432_v37  ;;  %v14466_v29 = vld [vmem:[#allocation2 + $0xff0] sm:$0xff]  }
 0x211   :  { %v9512_v40 = vadd.f32 %v12830_v33, %v15254_v63  ;;  %v12854_v44 = vpop.f32.mrb[31].mxu1  ;;  %13154 = vmatprep.subr.bf16.mxu1 %v14434_v39  ;;  %v2470_v63 = vcombine.high %v2448_v56, %v2448_v56  ;;  %v14467_v36 = vld [vmem:[#allocation2 + $0xf30] sm:$0xff]   ;;  %v14471_v42 = vld [vmem:[#allocation2 + $0xf38] sm:$0xff]  }
 0x212   :  { %v14468_v38 = vld [vmem:[#allocation2 + $0xfb0] sm:$0xff]   ;;  %v2455_v44 = vrot.slane %v15267_v58, %v15138_v35  ;;  %v14486_v58 = vld [vmem:[#allocation2 + $0x1058] sm:$0xff]  }
 0x213   :  { %v15259_v46 = vadd.f32 %v12852_v41, %v9512_v40  ;;  %13133 = vmatpush3.bf16.msra.mxu0 %v14435_v43  ;;  %v14469_v40 = vld [vmem:[#allocation2 + $0xf78] sm:$0xff]  }
 0x214   :  { %13134 = vmatprep.subr.bf16.mxu0 %v14437_v45  ;;  %13155 = vmatpush3.bf16.msra.mxu1 %v14436_v47  ;;  %v14470_v41 = vld [vmem:[#allocation2 + $0xff8] sm:$0xff]   ;;  %v14474_v45 = vld [vmem:[#allocation2 + $0x1040] sm:$0xff]  }
 0x215   :  { %13156 = vmatprep.subr.bf16.mxu1 %v14438_v48  ;;  %v14472_v43 = vld [vmem:[#allocation2 + $0xfb8] sm:$0xff]   ;;  %v14476_v47 = vld [vmem:[#allocation2 + $0x1000] sm:$0xff]  }
 0x216   :  { %v14477_v48 = vld [vmem:[#allocation2 + $0x1080] sm:$0xff]  }
 0x217   :  { %13135 = vmatpush3.bf16.msra.mxu0 %v14439_v49  ;;  %v2471_v49 = vcombine.high %v2455_v44, %v2455_v44 }
 0x218   :  { %13164 = vmatprep.subr.bf16.mxu0 %v14441_v52  ;;  %13157 = vmatpush3.bf16.msra.mxu1 %v14440_v54  ;;  %v14480_v52 = vld [vmem:[#allocation2 + $0x1008] sm:$0xff]   ;;  %v14482_v54 = vld [vmem:[#allocation2 + $0x1050] sm:$0xff]  }
 0x219   :  { %13186 = vmatprep.subr.bf16.mxu1 %v14442_v57  ;;  %v14485_v57 = vld [vmem:[#allocation2 + $0x1090] sm:$0xff]  }
 0x21a   :  { %10070 = vmatmul.mubr.bf16.vlgmr.msra.gmra.mrb[56].mxu0 %v2448_v56  ;;  %v14484_v56 = vld [vmem:[#allocation2 + $0x1010] sm:$0xff]  }
 0x21b   :  { %13165 = vmatpush3.bf16.msra.mxu0 %v14443_v59  ;;  %10110 = vmatmul.mubr.bf16.vlgmr.msra.gmra.mrb[56].mxu1 %v2470_v63  ;;  %v14487_v59 = vld [vmem:[#allocation2 + $0x10d8] sm:$0xff]   ;;  %v14491_v63 = vld [vmem:[#allocation2 + $0x10e0] sm:$0xff]  }
 0x21c   :  { %13166 = vmatprep.subr.bf16.mxu0 %v14445_v0  ;;  %13187 = vmatpush3.bf16.msra.mxu1 %v14444_v61  ;;  %v14489_v61 = vld [vmem:[#allocation2 + $0x1098] sm:$0xff]   ;;  %v14492_v0 = vld [vmem:[#allocation2 + $0x1020] sm:$0xff]  }
 0x21d   :  { %10149 = vmatprep.mubr.bf16.mxu0 %v2469_v3  ;;  %13188 = vmatprep.subr.bf16.mxu1 %v14446_v2  ;;  %v14494_v2 = vld [vmem:[#allocation2 + $0x1068] sm:$0xff]  }
 0x21e   :  { %10189 = vmatprep.mubr.bf16.mxu1 %v2473_v6  ;;  %v14495_v3 = vld [vmem:[#allocation2 + $0x10e8] sm:$0xff]  }
 0x21f   :  { %13167 = vmatpush3.bf16.msra.mxu0 %v14447_v4 }
 0x220   :  { %13168 = vmatprep.subr.bf16.mxu0 %v14449_v7  ;;  %13189 = vmatpush3.bf16.msra.mxu1 %v14448_v5  ;;  %v14496_v5 = vld [vmem:[#allocation2 + $0x1028] sm:$0xff]   ;;  %v14498_v7 = vld [vmem:[#allocation2 + $0x1070] sm:$0xff]  }
 0x221   :  { %13190 = vmatprep.subr.bf16.mxu1 %v14450_v8 }
 0x223   :  { %13169 = vmatpush3.bf16.msra.mxu0 %v14451_v9 }
 0x224   :  { %13170 = vmatprep.subr.bf16.mxu0 %v14453_v11  ;;  %13191 = vmatpush3.bf16.msra.mxu1 %v14452_v10 }
 0x225   :  { %13192 = vmatprep.subr.bf16.mxu1 %v14454_v12  ;;  %v14497_v12 = vld [vmem:[#allocation2 + $0x10a8] sm:$0xff]  }
 0x227   :  { %13171 = vmatpush3.bf16.msra.mxu0 %v14455_v13 }
 0x228   :  { %13172 = vmatprep.subr.bf16.mxu0 %v14457_v15  ;;  %13193 = vmatpush3.bf16.msra.mxu1 %v14456_v14  ;;  %v14499_v14 = vld [vmem:[#allocation2 + $0x10f0] sm:$0xff]  }
 0x229   :  { %13194 = vmatprep.subr.bf16.mxu1 %v14458_v16 }
 0x22b   :  { %13173 = vmatpush3.bf16.msra.mxu0 %v14459_v17 }
 0x22c   :  { %13174 = vmatprep.subr.bf16.mxu0 %v14461_v19  ;;  %13195 = vmatpush3.bf16.msra.mxu1 %v14460_v18  ;;  %v14500_v18 = vld [vmem:[#allocation2 + $0x1030] sm:$0xff]  }
 0x22d   :  { %v12872_v21 = vpop.f32.mrb[32].mxu0  ;;  %13196 = vmatprep.subr.bf16.mxu1 %v14462_v20  ;;  %v14502_v20 = vld [vmem:[#allocation2 + $0x1078] sm:$0xff]  }
 0x22e   :  { %v12873_v23 = vpop.f32.mrb[33].mxu0  ;;  %v12894_v25 = vpop.f32.mrb[32].mxu1 }
 0x22f   :  { %v12874_v26 = vadd.f32 %v12873_v23, %v12872_v21  ;;  %v12875_v27 = vpop.f32.mrb[34].mxu0  ;;  %v12895_v30 = vpop.f32.mrb[33].mxu1  ;;  %13175 = vmatpush3.bf16.msra.mxu0 %v14463_v22  ;;  %v14501_v22 = vld [vmem:[#allocation2 + $0x10b0] sm:$0xff]   ;;  %v14503_v23 = vld [vmem:[#allocation2 + $0x10f8] sm:$0xff]  }
 0x230   :  { %v12876_v31 = vpop.f32.mrb[35].mxu0  ;;  %v12896_v33 = vadd.f32 %v12895_v30, %v12894_v25  ;;  %v12897_v34 = vpop.f32.mrb[34].mxu1  ;;  %13176 = vmatprep.subr.bf16.mxu0 %v14465_v28  ;;  %13197 = vmatpush3.bf16.msra.mxu1 %v14464_v24  ;;  %v14504_v24 = vld [vmem:[#allocation2 + $0x1038] sm:$0xff]   ;;  %v67_v25 = vld [vmem:[%s15484_s0 + $0x40] sm:$0xff] }
 0x231   :  { %v9592_v32 = vadd.f32 %v12874_v26, %v15259_v46  ;;  %v12898_v37 = vpop.f32.mrb[35].mxu1  ;;  %13198 = vmatprep.subr.bf16.mxu1 %v14466_v29  ;;  %v14475_v46 = vld [vmem:[#allocation2 + $0x10c0] sm:$0xff]   ;;  %v2481_v26 = vrot.slane %v67_v25, %v15138_v35  ;;  %v2474_v28 = vcombine.high %v67_v25, %v67_v25  ;;  %v14505_v29 = vld [vmem:[#allocation2 + $0x10b8] sm:$0xff]   ;;  %v14543_v25 = vld [vmem:[#allocation2 + $0x1248] sm:$0xff]  }
 0x232   :  { %v14506_v27 = vld [vmem:[#allocation2 + $0x1140] sm:$0xff]  }
 0x233   :  { %v15274_v39 = vadd.f32 %v12896_v33, %v9592_v32  ;;  %13177 = vmatpush3.bf16.msra.mxu0 %v14467_v36  ;;  %v2489_v30 = vcombine.high %v2481_v26, %v2481_v26  ;;  %v2497_v31 = vrot.slane %v2481_v26, %v15138_v35  ;;  %v14507_v32 = vld [vmem:[#allocation2 + $0x11c0] sm:$0xff]   ;;  %v15287_v33 = vrot.slane %v2474_v28, %v15138_v35  ;;  %v14544_v26 = vld [vmem:[#allocation2 + $0x12c8] sm:$0xff]  }
 0x234   :  { %13178 = vmatprep.subr.bf16.mxu0 %v14469_v40  ;;  %13199 = vmatpush3.bf16.msra.mxu1 %v14468_v38  ;;  %v14508_v34 = vld [vmem:[#allocation2 + $0x1100] sm:$0xff]   ;;  %v14510_v40 = vld [vmem:[#allocation2 + $0x1148] sm:$0xff]  }
 0x235   :  { %13200 = vmatprep.subr.bf16.mxu1 %v14470_v41  ;;  %v2511_v36 = vrot.slane %v2489_v30, %v15138_v35  ;;  %v14509_v37 = vld [vmem:[#allocation2 + $0x1180] sm:$0xff]   ;;  %v2490_v38 = vcombine.high %v15287_v33, %v15287_v33  ;;  %v14546_v28 = vld [vmem:[#allocation2 + $0x1288] sm:$0xff]   ;;  %v14548_v30 = vld [vmem:[#allocation2 + $0x12d0] sm:$0xff]  }
 0x237   :  { %13179 = vmatpush3.bf16.msra.mxu0 %v14471_v42  ;;  %v2521_v41 = vcombine.high %v2511_v36, %v2511_v36  ;;  %v14511_v42 = vld [vmem:[#allocation2 + $0x11c8] sm:$0xff]  }
 0x238   :  { %13208 = vmatprep.subr.bf16.mxu0 %v14474_v45  ;;  %13201 = vmatpush3.bf16.msra.mxu1 %v14472_v43  ;;  %v2518_v43 = vrot.slane %v2490_v38, %v15138_v35  ;;  %v14513_v45 = vld [vmem:[#allocation2 + $0x1188] sm:$0xff]   ;;  %v14555_v38 = vld [vmem:[#allocation2 + $0x1260] sm:$0xff]  }
 0x239   :  { %13230 = vmatprep.subr.bf16.mxu1 %v14475_v46 }
 0x23a   :  { %10150 = vmatmul.mubr.bf16.vlgmr.msra.gmra.mrb[60].mxu0 %v2455_v44  ;;  %v14512_v44 = vld [vmem:[#allocation2 + $0x1108] sm:$0xff]   ;;  %v2522_v46 = vcombine.high %v2518_v43, %v2518_v43 }
 0x23b   :  { %13209 = vmatpush3.bf16.msra.mxu0 %v14476_v47  ;;  %10190 = vmatmul.mubr.bf16.vlgmr.msra.gmra.mrb[60].mxu1 %v2471_v49  ;;  %v14514_v47 = vld [vmem:[#allocation2 + $0x1150] sm:$0xff]  }
 0x23c   :  { %13210 = vmatprep.subr.bf16.mxu0 %v14478_v50  ;;  %13231 = vmatpush3.bf16.msra.mxu1 %v14477_v48  ;;  %v14515_v48 = vld [vmem:[#allocation2 + $0x11d0] sm:$0xff]  }
 0x23d   :  { %13232 = vmatprep.subr.bf16.mxu1 %v14479_v51  ;;  %10229 = vmatprep.mubr.bf16.mxu0 %v2511_v36  ;;  %v14516_v49 = vld [vmem:[#allocation2 + $0x1110] sm:$0xff]   ;;  %v14518_v51 = vld [vmem:[#allocation2 + $0x1158] sm:$0xff]  }
 0x23e   :  { %10269 = vmatprep.mubr.bf16.mxu1 %v2521_v41  ;;  %v14517_v50 = vld [vmem:[#allocation2 + $0x1190] sm:$0xff]   ;;  %v14553_v36 = vld [vmem:[#allocation2 + $0x1218] sm:$0xff]   ;;  %v14558_v41 = vld [vmem:[#allocation2 + $0x12a0] sm:$0xff]  }
 0x23f   :  { %13211 = vmatpush3.bf16.msra.mxu0 %v14480_v52  ;;  %v14519_v52 = vld [vmem:[#allocation2 + $0x11d8] sm:$0xff]  }
 0x240   :  { %13212 = vmatprep.subr.bf16.mxu0 %v14482_v54  ;;  %13233 = vmatpush3.bf16.msra.mxu1 %v14481_v53  ;;  %v14520_v53 = vld [vmem:[#allocation2 + $0x1118] sm:$0xff]  }
 0x241   :  { %13234 = vmatprep.subr.bf16.mxu1 %v14483_v55  ;;  %v14521_v54 = vld [vmem:[#allocation2 + $0x1198] sm:$0xff]   ;;  %v14522_v55 = vld [vmem:[#allocation2 + $0x1160] sm:$0xff]  }
 0x243   :  { %13213 = vmatpush3.bf16.msra.mxu0 %v14484_v56  ;;  %v14523_v56 = vld [vmem:[#allocation2 + $0x11e0] sm:$0xff]  }
 0x244   :  { %13214 = vmatprep.subr.bf16.mxu0 %v14486_v58  ;;  %13235 = vmatpush3.bf16.msra.mxu1 %v14485_v57  ;;  %v14524_v57 = vld [vmem:[#allocation2 + $0x1120] sm:$0xff]  }
 0x245   :  { %13236 = vmatprep.subr.bf16.mxu1 %v14487_v59  ;;  %v14525_v58 = vld [vmem:[#allocation2 + $0x11a0] sm:$0xff]   ;;  %v14526_v59 = vld [vmem:[#allocation2 + $0x1168] sm:$0xff]  }
 0x247   :  { %13215 = vmatpush3.bf16.msra.mxu0 %v14488_v60  ;;  %v14527_v60 = vld [vmem:[#allocation2 + $0x11e8] sm:$0xff]  }
 0x248   :  { %13216 = vmatprep.subr.bf16.mxu0 %v14490_v62  ;;  %13237 = vmatpush3.bf16.msra.mxu1 %v14489_v61  ;;  %v14528_v62 = vld [vmem:[#allocation2 + $0x1128] sm:$0xff]  }
 0x249   :  { %13238 = vmatprep.subr.bf16.mxu1 %v14491_v63 }
 0x24b   :  { %13217 = vmatpush3.bf16.msra.mxu0 %v14492_v0  ;;  %v14529_v0 = vld [vmem:[#allocation2 + $0x11a8] sm:$0xff]  }
 0x24c   :  { %13218 = vmatprep.subr.bf16.mxu0 %v14494_v2  ;;  %13239 = vmatpush3.bf16.msra.mxu1 %v14493_v1 }
 0x24d   :  { %v12916_v4 = vpop.f32.mrb[36].mxu0  ;;  %13240 = vmatprep.subr.bf16.mxu1 %v14495_v3 }
 0x24e   :  { %v12917_v6 = vpop.f32.mrb[37].mxu0  ;;  %v12938_v8 = vpop.f32.mrb[36].mxu1 }
 0x24f   :  { %v12918_v9 = vadd.f32 %v12917_v6, %v12916_v4  ;;  %v12919_v10 = vpop.f32.mrb[38].mxu0  ;;  %v12939_v11 = vpop.f32.mrb[37].mxu1  ;;  %13219 = vmatpush3.bf16.msra.mxu0 %v14496_v5  ;;  %v14530_v4 = vld [vmem:[#allocation2 + $0x1170] sm:$0xff]  }
 0x250   :  { %v12920_v13 = vpop.f32.mrb[39].mxu0  ;;  %v12940_v16 = vadd.f32 %v12939_v11, %v12938_v8  ;;  %v12941_v17 = vpop.f32.mrb[38].mxu1  ;;  %13220 = vmatprep.subr.bf16.mxu0 %v14498_v7  ;;  %13241 = vmatpush3.bf16.msra.mxu1 %v14497_v12  ;;  %v14531_v5 = vld [vmem:[#allocation2 + $0x11f0] sm:$0xff]  }
 0x251   :  { %v9672_v15 = vadd.f32 %v12918_v9, %v15274_v39  ;;  %v12942_v19 = vpop.f32.mrb[39].mxu1  ;;  %13242 = vmatprep.subr.bf16.mxu1 %v14499_v14  ;;  %v2519_v39 = vcombine.high %v2497_v31, %v2497_v31  ;;  %v14532_v11 = vld [vmem:[#allocation2 + $0x1130] sm:$0xff]   ;;  %v14536_v17 = vld [vmem:[#allocation2 + $0x1138] sm:$0xff]  }
 0x252   :  { %v14533_v13 = vld [vmem:[#allocation2 + $0x11b0] sm:$0xff]   ;;  %v2504_v19 = vrot.slane %v15287_v33, %v15138_v35  ;;  %v14551_v33 = vld [vmem:[#allocation2 + $0x1258] sm:$0xff]  }
 0x253   :  { %v15279_v21 = vadd.f32 %v12940_v16, %v9672_v15  ;;  %13221 = vmatpush3.bf16.msra.mxu0 %v14500_v18  ;;  %v14534_v15 = vld [vmem:[#allocation2 + $0x1178] sm:$0xff]  }
 0x254   :  { %13222 = vmatprep.subr.bf16.mxu0 %v14502_v20  ;;  %13243 = vmatpush3.bf16.msra.mxu1 %v14501_v22  ;;  %v14535_v16 = vld [vmem:[#allocation2 + $0x11f8] sm:$0xff]   ;;  %v14539_v20 = vld [vmem:[#allocation2 + $0x1240] sm:$0xff]  }
 0x255   :  { %13244 = vmatprep.subr.bf16.mxu1 %v14503_v23  ;;  %v14537_v18 = vld [vmem:[#allocation2 + $0x11b8] sm:$0xff]   ;;  %v14541_v22 = vld [vmem:[#allocation2 + $0x1200] sm:$0xff]  }
 0x256   :  { %v14542_v23 = vld [vmem:[#allocation2 + $0x1280] sm:$0xff]  }
 0x257   :  { %13223 = vmatpush3.bf16.msra.mxu0 %v14504_v24  ;;  %v2520_v24 = vcombine.high %v2504_v19, %v2504_v19 }
 0x258   :  { %13252 = vmatprep.subr.bf16.mxu0 %v14506_v27  ;;  %13245 = vmatpush3.bf16.msra.mxu1 %v14505_v29  ;;  %v14545_v27 = vld [vmem:[#allocation2 + $0x1208] sm:$0xff]   ;;  %v14547_v29 = vld [vmem:[#allocation2 + $0x1250] sm:$0xff]  }
 0x259   :  { %13274 = vmatprep.subr.bf16.mxu1 %v14507_v32  ;;  %v14550_v32 = vld [vmem:[#allocation2 + $0x1290] sm:$0xff]  }
 0x25a   :  { %10230 = vmatmul.mubr.bf16.vlgmr.msra.gmra.mrb[64].mxu0 %v2497_v31  ;;  %v14549_v31 = vld [vmem:[#allocation2 + $0x1210] sm:$0xff]  }
 0x25b   :  { %13253 = vmatpush3.bf16.msra.mxu0 %v14508_v34  ;;  %10270 = vmatmul.mubr.bf16.vlgmr.msra.gmra.mrb[64].mxu1 %v2519_v39  ;;  %v14552_v34 = vld [vmem:[#allocation2 + $0x12d8] sm:$0xff]   ;;  %v14556_v39 = vld [vmem:[#allocation2 + $0x12e0] sm:$0xff]  }
 0x25c   :  { %13254 = vmatprep.subr.bf16.mxu0 %v14510_v40  ;;  %13275 = vmatpush3.bf16.msra.mxu1 %v14509_v37  ;;  %v14554_v37 = vld [vmem:[#allocation2 + $0x1298] sm:$0xff]   ;;  %v14557_v40 = vld [vmem:[#allocation2 + $0x1220] sm:$0xff]  }
 0x25d   :  { %10309 = vmatprep.mubr.bf16.mxu0 %v2518_v43  ;;  %13276 = vmatprep.subr.bf16.mxu1 %v14511_v42  ;;  %v14559_v42 = vld [vmem:[#allocation2 + $0x1268] sm:$0xff]  }
 0x25e   :  { %10349 = vmatprep.mubr.bf16.mxu1 %v2522_v46  ;;  %v14560_v43 = vld [vmem:[#allocation2 + $0x12e8] sm:$0xff]  }
 0x25f   :  { %13255 = vmatpush3.bf16.msra.mxu0 %v14512_v44 }
 0x260   :  { %13256 = vmatprep.subr.bf16.mxu0 %v14514_v47  ;;  %13277 = vmatpush3.bf16.msra.mxu1 %v14513_v45  ;;  %v14561_v45 = vld [vmem:[#allocation2 + $0x1228] sm:$0xff]   ;;  %v14563_v47 = vld [vmem:[#allocation2 + $0x1270] sm:$0xff]  }
 0x261   :  { %13278 = vmatprep.subr.bf16.mxu1 %v14515_v48 }
 0x263   :  { %13257 = vmatpush3.bf16.msra.mxu0 %v14516_v49 }
 0x264   :  { %13258 = vmatprep.subr.bf16.mxu0 %v14518_v51  ;;  %13279 = vmatpush3.bf16.msra.mxu1 %v14517_v50 }
 0x265   :  { %13280 = vmatprep.subr.bf16.mxu1 %v14519_v52  ;;  %v14562_v52 = vld [vmem:[#allocation2 + $0x12a8] sm:$0xff]  }
 0x267   :  { %13259 = vmatpush3.bf16.msra.mxu0 %v14520_v53 }
 0x268   :  { %13260 = vmatprep.subr.bf16.mxu0 %v14522_v55  ;;  %13281 = vmatpush3.bf16.msra.mxu1 %v14521_v54  ;;  %v14564_v54 = vld [vmem:[#allocation2 + $0x12f0] sm:$0xff]  }
 0x269   :  { %13282 = vmatprep.subr.bf16.mxu1 %v14523_v56 }
 0x26b   :  { %13261 = vmatpush3.bf16.msra.mxu0 %v14524_v57 }
 0x26c   :  { %13262 = vmatprep.subr.bf16.mxu0 %v14526_v59  ;;  %13283 = vmatpush3.bf16.msra.mxu1 %v14525_v58  ;;  %v14565_v58 = vld [vmem:[#allocation2 + $0x1230] sm:$0xff]  }
 0x26d   :  { %v12960_v61 = vpop.f32.mrb[40].mxu0  ;;  %13284 = vmatprep.subr.bf16.mxu1 %v14527_v60  ;;  %v14567_v60 = vld [vmem:[#allocation2 + $0x1278] sm:$0xff]  }
 0x26e   :  { %v12961_v63 = vpop.f32.mrb[41].mxu0  ;;  %v12982_v1 = vpop.f32.mrb[40].mxu1 }
 0x26f   :  { %v12962_v2 = vadd.f32 %v12961_v63, %v12960_v61  ;;  %v12963_v3 = vpop.f32.mrb[42].mxu0  ;;  %v12983_v6 = vpop.f32.mrb[41].mxu1  ;;  %13263 = vmatpush3.bf16.msra.mxu0 %v14528_v62  ;;  %v14566_v62 = vld [vmem:[#allocation2 + $0x12b0] sm:$0xff]   ;;  %v14568_v63 = vld [vmem:[#allocation2 + $0x12f8] sm:$0xff]  }
 0x270   :  { %v12964_v7 = vpop.f32.mrb[43].mxu0  ;;  %v12984_v9 = vadd.f32 %v12983_v6, %v12982_v1  ;;  %v12985_v10 = vpop.f32.mrb[42].mxu1  ;;  %13264 = vmatprep.subr.bf16.mxu0 %v14530_v4  ;;  %13285 = vmatpush3.bf16.msra.mxu1 %v14529_v0  ;;  %v14569_v0 = vld [vmem:[#allocation2 + $0x1238] sm:$0xff]   ;;  %v68_v1 = vld [vmem:[%s15484_s0 + $0x48] sm:$0xff]  ;;  %v14571_v3 = vld [vmem:[#allocation2 + $0x1340] sm:$0xff]  }
 0x271   :  { %v9752_v8 = vadd.f32 %v12962_v2, %v15279_v21  ;;  %v12986_v12 = vpop.f32.mrb[43].mxu1  ;;  %13286 = vmatprep.subr.bf16.mxu1 %v14531_v5  ;;  %v14540_v21 = vld [vmem:[#allocation2 + $0x12c0] sm:$0xff]   ;;  %v2530_v2 = vrot.slane %v68_v1, %v15138_v35  ;;  %v2523_v4 = vcombine.high %v68_v1, %v68_v1  ;;  %v14570_v5 = vld [vmem:[#allocation2 + $0x12b8] sm:$0xff]   ;;  %v14608_v1 = vld [vmem:[#allocation2 + $0x1448] sm:$0xff]  }
 0x272   :  { %v14573_v10 = vld [vmem:[#allocation2 + $0x1300] sm:$0xff]  }
 0x273   :  { %v15294_v14 = vadd.f32 %v12984_v9, %v9752_v8  ;;  %13265 = vmatpush3.bf16.msra.mxu0 %v14532_v11  ;;  %v2538_v6 = vcombine.high %v2530_v2, %v2530_v2  ;;  %v2546_v7 = vrot.slane %v2530_v2, %v15138_v35  ;;  %v14572_v8 = vld [vmem:[#allocation2 + $0x13c0] sm:$0xff]   ;;  %v15307_v9 = vrot.slane %v2523_v4, %v15138_v35  ;;  %v14609_v2 = vld [vmem:[#allocation2 + $0x14c8] sm:$0xff]  }
 0x274   :  { %13266 = vmatprep.subr.bf16.mxu0 %v14534_v15  ;;  %13287 = vmatpush3.bf16.msra.mxu1 %v14533_v13  ;;  %v14574_v12 = vld [vmem:[#allocation2 + $0x1380] sm:$0xff]   ;;  %v14575_v15 = vld [vmem:[#allocation2 + $0x1348] sm:$0xff]  }
 0x275   :  { %13288 = vmatprep.subr.bf16.mxu1 %v14535_v16  ;;  %v2560_v11 = vrot.slane %v2538_v6, %v15138_v35  ;;  %v2539_v13 = vcombine.high %v15307_v9, %v15307_v9  ;;  %v14611_v4 = vld [vmem:[#allocation2 + $0x1488] sm:$0xff]   ;;  %v14613_v6 = vld [vmem:[#allocation2 + $0x14d0] sm:$0xff]  }
 0x277   :  { %13267 = vmatpush3.bf16.msra.mxu0 %v14536_v17  ;;  %v2570_v16 = vcombine.high %v2560_v11, %v2560_v11  ;;  %v14576_v17 = vld [vmem:[#allocation2 + $0x13c8] sm:$0xff]  }
 0x278   :  { %13296 = vmatprep.subr.bf16.mxu0 %v14539_v20  ;;  %13289 = vmatpush3.bf16.msra.mxu1 %v14537_v18  ;;  %v2567_v18 = vrot.slane %v2539_v13, %v15138_v35  ;;  %v14578_v20 = vld [vmem:[#allocation2 + $0x1388] sm:$0xff]   ;;  %v14620_v13 = vld [vmem:[#allocation2 + $0x1460] sm:$0xff]  }
 0x279   :  { %13318 = vmatprep.subr.bf16.mxu1 %v14540_v21 }
 0x27a   :  { %10310 = vmatmul.mubr.bf16.vlgmr.msra.gmra.mrb[68].mxu0 %v2504_v19  ;;  %v14577_v19 = vld [vmem:[#allocation2 + $0x1308] sm:$0xff]   ;;  %v2571_v21 = vcombine.high %v2567_v18, %v2567_v18 }
 0x27b   :  { %13297 = vmatpush3.bf16.msra.mxu0 %v14541_v22  ;;  %10350 = vmatmul.mubr.bf16.vlgmr.msra.gmra.mrb[68].mxu1 %v2520_v24  ;;  %v14579_v22 = vld [vmem:[#allocation2 + $0x1350] sm:$0xff]  }
 0x27c   :  { %13298 = vmatprep.subr.bf16.mxu0 %v14543_v25  ;;  %13319 = vmatpush3.bf16.msra.mxu1 %v14542_v23  ;;  %v14580_v23 = vld [vmem:[#allocation2 + $0x13d0] sm:$0xff]  }
 0x27d   :  { %13320 = vmatprep.subr.bf16.mxu1 %v14544_v26  ;;  %10389 = vmatprep.mubr.bf16.mxu0 %v2560_v11  ;;  %v14581_v24 = vld [vmem:[#allocation2 + $0x1310] sm:$0xff]   ;;  %v14583_v26 = vld [vmem:[#allocation2 + $0x1358] sm:$0xff]  }
 0x27e   :  { %10429 = vmatprep.mubr.bf16.mxu1 %v2570_v16  ;;  %v14582_v25 = vld [vmem:[#allocation2 + $0x1390] sm:$0xff]   ;;  %v14618_v11 = vld [vmem:[#allocation2 + $0x1418] sm:$0xff]   ;;  %v14623_v16 = vld [vmem:[#allocation2 + $0x14a0] sm:$0xff]  }
 0x27f   :  { %13299 = vmatpush3.bf16.msra.mxu0 %v14545_v27  ;;  %v14584_v27 = vld [vmem:[#allocation2 + $0x13d8] sm:$0xff]  }
 0x280   :  { %13300 = vmatprep.subr.bf16.mxu0 %v14547_v29  ;;  %13321 = vmatpush3.bf16.msra.mxu1 %v14546_v28  ;;  %v14585_v28 = vld [vmem:[#allocation2 + $0x1318] sm:$0xff]  }
 0x281   :  { %13322 = vmatprep.subr.bf16.mxu1 %v14548_v30  ;;  %v14586_v29 = vld [vmem:[#allocation2 + $0x1398] sm:$0xff]   ;;  %v14587_v30 = vld [vmem:[#allocation2 + $0x1360] sm:$0xff]  }
 0x283   :  { %13301 = vmatpush3.bf16.msra.mxu0 %v14549_v31  ;;  %v14588_v31 = vld [vmem:[#allocation2 + $0x13e0] sm:$0xff]  }
 0x284   :  { %13302 = vmatprep.subr.bf16.mxu0 %v14551_v33  ;;  %13323 = vmatpush3.bf16.msra.mxu1 %v14550_v32  ;;  %v14589_v32 = vld [vmem:[#allocation2 + $0x1320] sm:$0xff]  }
 0x285   :  { %13324 = vmatprep.subr.bf16.mxu1 %v14552_v34  ;;  %v14590_v33 = vld [vmem:[#allocation2 + $0x13a0] sm:$0xff]   ;;  %v14591_v34 = vld [vmem:[#allocation2 + $0x1368] sm:$0xff]  }
 0x287   :  { %13303 = vmatpush3.bf16.msra.mxu0 %v14553_v36  ;;  %v14592_v36 = vld [vmem:[#allocation2 + $0x13e8] sm:$0xff]  }
 0x288   :  { %13304 = vmatprep.subr.bf16.mxu0 %v14555_v38  ;;  %13325 = vmatpush3.bf16.msra.mxu1 %v14554_v37  ;;  %v14593_v38 = vld [vmem:[#allocation2 + $0x1328] sm:$0xff]  }
 0x289   :  { %13326 = vmatprep.subr.bf16.mxu1 %v14556_v39 }
 0x28b   :  { %13305 = vmatpush3.bf16.msra.mxu0 %v14557_v40  ;;  %v14594_v40 = vld [vmem:[#allocation2 + $0x13a8] sm:$0xff]  }
 0x28c   :  { %13306 = vmatprep.subr.bf16.mxu0 %v14559_v42  ;;  %13327 = vmatpush3.bf16.msra.mxu1 %v14558_v41 }
 0x28d   :  { %v13004_v44 = vpop.f32.mrb[44].mxu0  ;;  %13328 = vmatprep.subr.bf16.mxu1 %v14560_v43 }
 0x28e   :  { %v13005_v46 = vpop.f32.mrb[45].mxu0  ;;  %v13026_v48 = vpop.f32.mrb[44].mxu1 }
 0x28f   :  { %v13006_v49 = vadd.f32 %v13005_v46, %v13004_v44  ;;  %v13007_v50 = vpop.f32.mrb[46].mxu0  ;;  %v13027_v51 = vpop.f32.mrb[45].mxu1  ;;  %13307 = vmatpush3.bf16.msra.mxu0 %v14561_v45  ;;  %v14595_v44 = vld [vmem:[#allocation2 + $0x1370] sm:$0xff]  }
 0x290   :  { %v13008_v53 = vpop.f32.mrb[47].mxu0  ;;  %v13028_v56 = vadd.f32 %v13027_v51, %v13026_v48  ;;  %v13029_v57 = vpop.f32.mrb[46].mxu1  ;;  %13308 = vmatprep.subr.bf16.mxu0 %v14563_v47  ;;  %13329 = vmatpush3.bf16.msra.mxu1 %v14562_v52  ;;  %v14596_v45 = vld [vmem:[#allocation2 + $0x13f0] sm:$0xff]  }
 0x291   :  { %v9832_v55 = vadd.f32 %v13006_v49, %v15294_v14  ;;  %v13030_v59 = vpop.f32.mrb[47].mxu1  ;;  %13330 = vmatprep.subr.bf16.mxu1 %v14564_v54  ;;  %v2568_v14 = vcombine.high %v2546_v7, %v2546_v7  ;;  %v14597_v51 = vld [vmem:[#allocation2 + $0x1330] sm:$0xff]   ;;  %v14601_v57 = vld [vmem:[#allocation2 + $0x1338] sm:$0xff]  }
 0x292   :  { %v14598_v53 = vld [vmem:[#allocation2 + $0x13b0] sm:$0xff]   ;;  %v2553_v59 = vrot.slane %v15307_v9, %v15138_v35  ;;  %v14616_v9 = vld [vmem:[#allocation2 + $0x1458] sm:$0xff]  }
 0x293   :  { %v15299_v61 = vadd.f32 %v13028_v56, %v9832_v55  ;;  %13309 = vmatpush3.bf16.msra.mxu0 %v14565_v58  ;;  %v14599_v55 = vld [vmem:[#allocation2 + $0x1378] sm:$0xff]  }
 0x294   :  { %13310 = vmatprep.subr.bf16.mxu0 %v14567_v60  ;;  %13331 = vmatpush3.bf16.msra.mxu1 %v14566_v62  ;;  %v14600_v56 = vld [vmem:[#allocation2 + $0x13f8] sm:$0xff]   ;;  %v14604_v60 = vld [vmem:[#allocation2 + $0x1440] sm:$0xff]  }
 0x295   :  { %13332 = vmatprep.subr.bf16.mxu1 %v14568_v63  ;;  %v14602_v58 = vld [vmem:[#allocation2 + $0x13b8] sm:$0xff]   ;;  %v14606_v62 = vld [vmem:[#allocation2 + $0x1400] sm:$0xff]  }
 0x296   :  { %v14607_v63 = vld [vmem:[#allocation2 + $0x1480] sm:$0xff]  }
 0x297   :  { %13311 = vmatpush3.bf16.msra.mxu0 %v14569_v0  ;;  %v2569_v0 = vcombine.high %v2553_v59, %v2553_v59 }
 0x298   :  { %13340 = vmatprep.subr.bf16.mxu0 %v14571_v3  ;;  %13333 = vmatpush3.bf16.msra.mxu1 %v14570_v5  ;;  %v14610_v3 = vld [vmem:[#allocation2 + $0x1408] sm:$0xff]   ;;  %v14612_v5 = vld [vmem:[#allocation2 + $0x1450] sm:$0xff]  }
 0x299   :  { %13362 = vmatprep.subr.bf16.mxu1 %v14572_v8  ;;  %v14615_v8 = vld [vmem:[#allocation2 + $0x1490] sm:$0xff]  }
 0x29a   :  { %10390 = vmatmul.mubr.bf16.vlgmr.msra.gmra.mrb[72].mxu0 %v2546_v7  ;;  %v14614_v7 = vld [vmem:[#allocation2 + $0x1410] sm:$0xff]  }
 0x29b   :  { %13341 = vmatpush3.bf16.msra.mxu0 %v14573_v10  ;;  %10430 = vmatmul.mubr.bf16.vlgmr.msra.gmra.mrb[72].mxu1 %v2568_v14  ;;  %v14617_v10 = vld [vmem:[#allocation2 + $0x14d8] sm:$0xff]   ;;  %v14621_v14 = vld [vmem:[#allocation2 + $0x14e0] sm:$0xff]  }
 0x29c   :  { %13342 = vmatprep.subr.bf16.mxu0 %v14575_v15  ;;  %13363 = vmatpush3.bf16.msra.mxu1 %v14574_v12  ;;  %v14619_v12 = vld [vmem:[#allocation2 + $0x1498] sm:$0xff]   ;;  %v14622_v15 = vld [vmem:[#allocation2 + $0x1420] sm:$0xff]  }
 0x29d   :  { %10469 = vmatprep.mubr.bf16.mxu0 %v2567_v18  ;;  %13364 = vmatprep.subr.bf16.mxu1 %v14576_v17  ;;  %v14624_v17 = vld [vmem:[#allocation2 + $0x1468] sm:$0xff]  }
 0x29e   :  { %10509 = vmatprep.mubr.bf16.mxu1 %v2571_v21  ;;  %v14625_v18 = vld [vmem:[#allocation2 + $0x14e8] sm:$0xff]  }
 0x29f   :  { %13343 = vmatpush3.bf16.msra.mxu0 %v14577_v19 }
 0x2a0   :  { %13344 = vmatprep.subr.bf16.mxu0 %v14579_v22  ;;  %13365 = vmatpush3.bf16.msra.mxu1 %v14578_v20  ;;  %v14626_v20 = vld [vmem:[#allocation2 + $0x1428] sm:$0xff]   ;;  %v14628_v22 = vld [vmem:[#allocation2 + $0x1470] sm:$0xff]  }
 0x2a1   :  { %13366 = vmatprep.subr.bf16.mxu1 %v14580_v23 }
 0x2a3   :  { %13345 = vmatpush3.bf16.msra.mxu0 %v14581_v24 }
 0x2a4   :  { %13346 = vmatprep.subr.bf16.mxu0 %v14583_v26  ;;  %13367 = vmatpush3.bf16.msra.mxu1 %v14582_v25 }
 0x2a5   :  { %13368 = vmatprep.subr.bf16.mxu1 %v14584_v27  ;;  %v14627_v27 = vld [vmem:[#allocation2 + $0x14a8] sm:$0xff]  }
 0x2a7   :  { %13347 = vmatpush3.bf16.msra.mxu0 %v14585_v28 }
 0x2a8   :  { %13348 = vmatprep.subr.bf16.mxu0 %v14587_v30  ;;  %13369 = vmatpush3.bf16.msra.mxu1 %v14586_v29  ;;  %v14629_v29 = vld [vmem:[#allocation2 + $0x14f0] sm:$0xff]  }
 0x2a9   :  { %13370 = vmatprep.subr.bf16.mxu1 %v14588_v31 }
 0x2ab   :  { %13349 = vmatpush3.bf16.msra.mxu0 %v14589_v32 }
 0x2ac   :  { %13350 = vmatprep.subr.bf16.mxu0 %v14591_v34  ;;  %13371 = vmatpush3.bf16.msra.mxu1 %v14590_v33  ;;  %v14630_v33 = vld [vmem:[#allocation2 + $0x1430] sm:$0xff]  }
 0x2ad   :  { %v13048_v37 = vpop.f32.mrb[48].mxu0  ;;  %13372 = vmatprep.subr.bf16.mxu1 %v14592_v36  ;;  %v14632_v36 = vld [vmem:[#allocation2 + $0x1478] sm:$0xff]  }
 0x2ae   :  { %v13049_v39 = vpop.f32.mrb[49].mxu0  ;;  %v13070_v41 = vpop.f32.mrb[48].mxu1 }
 0x2af   :  { %v13050_v42 = vadd.f32 %v13049_v39, %v13048_v37  ;;  %v13051_v43 = vpop.f32.mrb[50].mxu0  ;;  %v13071_v46 = vpop.f32.mrb[49].mxu1  ;;  %13351 = vmatpush3.bf16.msra.mxu0 %v14593_v38  ;;  %v14631_v38 = vld [vmem:[#allocation2 + $0x14b0] sm:$0xff]   ;;  %v14633_v39 = vld [vmem:[#allocation2 + $0x14f8] sm:$0xff]  }
 0x2b0   :  { %v13052_v47 = vpop.f32.mrb[51].mxu0  ;;  %v13072_v49 = vadd.f32 %v13071_v46, %v13070_v41  ;;  %v13073_v50 = vpop.f32.mrb[50].mxu1  ;;  %13352 = vmatprep.subr.bf16.mxu0 %v14595_v44  ;;  %13373 = vmatpush3.bf16.msra.mxu1 %v14594_v40  ;;  %v14634_v40 = vld [vmem:[#allocation2 + $0x1438] sm:$0xff]   ;;  %v69_v41 = vld [vmem:[%s15484_s0 + $0x50] sm:$0xff]  ;;  %v14636_v43 = vld [vmem:[#allocation2 + $0x1540] sm:$0xff]  }
 0x2b1   :  { %v9912_v48 = vadd.f32 %v13050_v42, %v15299_v61  ;;  %v13074_v52 = vpop.f32.mrb[51].mxu1  ;;  %13374 = vmatprep.subr.bf16.mxu1 %v14596_v45  ;;  %v14605_v61 = vld [vmem:[#allocation2 + $0x14c0] sm:$0xff]   ;;  %v2579_v42 = vrot.slane %v69_v41, %v15138_v35  ;;  %v2572_v44 = vcombine.high %v69_v41, %v69_v41  ;;  %v14635_v45 = vld [vmem:[#allocation2 + $0x14b8] sm:$0xff]   ;;  %v14673_v41 = vld [vmem:[#allocation2 + $0x1648] sm:$0xff]  }
 0x2b2   :  { %v14638_v50 = vld [vmem:[#allocation2 + $0x1500] sm:$0xff]  }
 0x2b3   :  { %v15314_v54 = vadd.f32 %v13072_v49, %v9912_v48  ;;  %13353 = vmatpush3.bf16.msra.mxu0 %v14597_v51  ;;  %v2587_v46 = vcombine.high %v2579_v42, %v2579_v42  ;;  %v2595_v47 = vrot.slane %v2579_v42, %v15138_v35  ;;  %v14637_v48 = vld [vmem:[#allocation2 + $0x15c0] sm:$0xff]   ;;  %v15327_v49 = vrot.slane %v2572_v44, %v15138_v35  ;;  %v14674_v42 = vld [vmem:[#allocation2 + $0x16c8] sm:$0xff]  }
 0x2b4   :  { %13354 = vmatprep.subr.bf16.mxu0 %v14599_v55  ;;  %13375 = vmatpush3.bf16.msra.mxu1 %v14598_v53  ;;  %v14639_v52 = vld [vmem:[#allocation2 + $0x1580] sm:$0xff]   ;;  %v14640_v55 = vld [vmem:[#allocation2 + $0x1548] sm:$0xff]  }
 0x2b5   :  { %13376 = vmatprep.subr.bf16.mxu1 %v14600_v56  ;;  %v2609_v51 = vrot.slane %v2587_v46, %v15138_v35  ;;  %v2588_v53 = vcombine.high %v15327_v49, %v15327_v49  ;;  %v14676_v44 = vld [vmem:[#allocation2 + $0x1688] sm:$0xff]   ;;  %v14678_v46 = vld [vmem:[#allocation2 + $0x16d0] sm:$0xff]  }
 0x2b7   :  { %13355 = vmatpush3.bf16.msra.mxu0 %v14601_v57  ;;  %v2619_v56 = vcombine.high %v2609_v51, %v2609_v51  ;;  %v14641_v57 = vld [vmem:[#allocation2 + $0x15c8] sm:$0xff]  }
 0x2b8   :  { %13384 = vmatprep.subr.bf16.mxu0 %v14604_v60  ;;  %13377 = vmatpush3.bf16.msra.mxu1 %v14602_v58  ;;  %v2616_v58 = vrot.slane %v2588_v53, %v15138_v35  ;;  %v14643_v60 = vld [vmem:[#allocation2 + $0x1588] sm:$0xff]   ;;  %v14685_v53 = vld [vmem:[#allocation2 + $0x1660] sm:$0xff]  }
 0x2b9   :  { %13406 = vmatprep.subr.bf16.mxu1 %v14605_v61 }
 0x2ba   :  { %10470 = vmatmul.mubr.bf16.vlgmr.msra.gmra.mrb[76].mxu0 %v2553_v59  ;;  %v14642_v59 = vld [vmem:[#allocation2 + $0x1508] sm:$0xff]   ;;  %v2620_v61 = vcombine.high %v2616_v58, %v2616_v58 }
 0x2bb   :  { %13385 = vmatpush3.bf16.msra.mxu0 %v14606_v62  ;;  %10510 = vmatmul.mubr.bf16.vlgmr.msra.gmra.mrb[76].mxu1 %v2569_v0  ;;  %v14644_v62 = vld [vmem:[#allocation2 + $0x1550] sm:$0xff]  }
 0x2bc   :  { %13386 = vmatprep.subr.bf16.mxu0 %v14608_v1  ;;  %13407 = vmatpush3.bf16.msra.mxu1 %v14607_v63  ;;  %v14645_v63 = vld [vmem:[#allocation2 + $0x15d0] sm:$0xff]  }
 0x2bd   :  { %13408 = vmatprep.subr.bf16.mxu1 %v14609_v2  ;;  %10549 = vmatprep.mubr.bf16.mxu0 %v2609_v51  ;;  %v14646_v0 = vld [vmem:[#allocation2 + $0x1510] sm:$0xff]   ;;  %v14648_v2 = vld [vmem:[#allocation2 + $0x1558] sm:$0xff]  }
 0x2be   :  { %10589 = vmatprep.mubr.bf16.mxu1 %v2619_v56  ;;  %v14647_v1 = vld [vmem:[#allocation2 + $0x1590] sm:$0xff]   ;;  %v14683_v51 = vld [vmem:[#allocation2 + $0x1618] sm:$0xff]   ;;  %v14688_v56 = vld [vmem:[#allocation2 + $0x16a0] sm:$0xff]  }
 0x2bf   :  { %13387 = vmatpush3.bf16.msra.mxu0 %v14610_v3  ;;  %v14649_v3 = vld [vmem:[#allocation2 + $0x15d8] sm:$0xff]  }
 0x2c0   :  { %13388 = vmatprep.subr.bf16.mxu0 %v14612_v5  ;;  %13409 = vmatpush3.bf16.msra.mxu1 %v14611_v4  ;;  %v14650_v4 = vld [vmem:[#allocation2 + $0x1518] sm:$0xff]  }
 0x2c1   :  { %13410 = vmatprep.subr.bf16.mxu1 %v14613_v6  ;;  %v14651_v5 = vld [vmem:[#allocation2 + $0x1598] sm:$0xff]   ;;  %v14652_v6 = vld [vmem:[#allocation2 + $0x1560] sm:$0xff]  }
 0x2c3   :  { %13389 = vmatpush3.bf16.msra.mxu0 %v14614_v7  ;;  %v14653_v7 = vld [vmem:[#allocation2 + $0x15e0] sm:$0xff]  }
 0x2c4   :  { %13390 = vmatprep.subr.bf16.mxu0 %v14616_v9  ;;  %13411 = vmatpush3.bf16.msra.mxu1 %v14615_v8  ;;  %v14654_v8 = vld [vmem:[#allocation2 + $0x1520] sm:$0xff]  }
 0x2c5   :  { %13412 = vmatprep.subr.bf16.mxu1 %v14617_v10  ;;  %v14655_v9 = vld [vmem:[#allocation2 + $0x15a0] sm:$0xff]   ;;  %v14656_v10 = vld [vmem:[#allocation2 + $0x1568] sm:$0xff]  }
 0x2c7   :  { %13391 = vmatpush3.bf16.msra.mxu0 %v14618_v11  ;;  %v14657_v11 = vld [vmem:[#allocation2 + $0x15e8] sm:$0xff]  }
 0x2c8   :  { %13392 = vmatprep.subr.bf16.mxu0 %v14620_v13  ;;  %13413 = vmatpush3.bf16.msra.mxu1 %v14619_v12  ;;  %v14658_v13 = vld [vmem:[#allocation2 + $0x1528] sm:$0xff]  }
 0x2c9   :  { %13414 = vmatprep.subr.bf16.mxu1 %v14621_v14 }
 0x2cb   :  { %13393 = vmatpush3.bf16.msra.mxu0 %v14622_v15  ;;  %v14659_v15 = vld [vmem:[#allocation2 + $0x15a8] sm:$0xff]  }
 0x2cc   :  { %13394 = vmatprep.subr.bf16.mxu0 %v14624_v17  ;;  %13415 = vmatpush3.bf16.msra.mxu1 %v14623_v16 }
 0x2cd   :  { %v13092_v19 = vpop.f32.mrb[52].mxu0  ;;  %13416 = vmatprep.subr.bf16.mxu1 %v14625_v18 }
 0x2ce   :  { %v13093_v21 = vpop.f32.mrb[53].mxu0  ;;  %v13114_v23 = vpop.f32.mrb[52].mxu1 }
 0x2cf   :  { %v13094_v24 = vadd.f32 %v13093_v21, %v13092_v19  ;;  %v13095_v25 = vpop.f32.mrb[54].mxu0  ;;  %v13115_v26 = vpop.f32.mrb[53].mxu1  ;;  %13395 = vmatpush3.bf16.msra.mxu0 %v14626_v20  ;;  %v14660_v19 = vld [vmem:[#allocation2 + $0x1570] sm:$0xff]  }
 0x2d0   :  { %v13096_v28 = vpop.f32.mrb[55].mxu0  ;;  %v13116_v31 = vadd.f32 %v13115_v26, %v13114_v23  ;;  %v13117_v32 = vpop.f32.mrb[54].mxu1  ;;  %13396 = vmatprep.subr.bf16.mxu0 %v14628_v22  ;;  %13417 = vmatpush3.bf16.msra.mxu1 %v14627_v27  ;;  %v14661_v20 = vld [vmem:[#allocation2 + $0x15f0] sm:$0xff]  }
 0x2d1   :  { %v9992_v30 = vadd.f32 %v13094_v24, %v15314_v54  ;;  %v13118_v34 = vpop.f32.mrb[55].mxu1  ;;  %13418 = vmatprep.subr.bf16.mxu1 %v14629_v29  ;;  %v2617_v54 = vcombine.high %v2595_v47, %v2595_v47  ;;  %v14662_v26 = vld [vmem:[#allocation2 + $0x1530] sm:$0xff]   ;;  %v14666_v32 = vld [vmem:[#allocation2 + $0x1538] sm:$0xff]  }
 0x2d2   :  { %v14663_v28 = vld [vmem:[#allocation2 + $0x15b0] sm:$0xff]   ;;  %v2602_v34 = vrot.slane %v15327_v49, %v15138_v35  ;;  %v14681_v49 = vld [vmem:[#allocation2 + $0x1658] sm:$0xff]  }
 0x2d3   :  { %v15319_v37 = vadd.f32 %v13116_v31, %v9992_v30  ;;  %13397 = vmatpush3.bf16.msra.mxu0 %v14630_v33  ;;  %v14664_v30 = vld [vmem:[#allocation2 + $0x1578] sm:$0xff]  }
 0x2d4   :  { %13398 = vmatprep.subr.bf16.mxu0 %v14632_v36  ;;  %13419 = vmatpush3.bf16.msra.mxu1 %v14631_v38  ;;  %v14665_v31 = vld [vmem:[#allocation2 + $0x15f8] sm:$0xff]   ;;  %v14669_v36 = vld [vmem:[#allocation2 + $0x1640] sm:$0xff]  }
 0x2d5   :  { %13420 = vmatprep.subr.bf16.mxu1 %v14633_v39  ;;  %v14667_v33 = vld [vmem:[#allocation2 + $0x15b8] sm:$0xff]   ;;  %v14671_v38 = vld [vmem:[#allocation2 + $0x1600] sm:$0xff]  }
 0x2d6   :  { %v14672_v39 = vld [vmem:[#allocation2 + $0x1680] sm:$0xff]  }
 0x2d7   :  { %13399 = vmatpush3.bf16.msra.mxu0 %v14634_v40  ;;  %v2618_v40 = vcombine.high %v2602_v34, %v2602_v34 }
 0x2d8   :  { %13428 = vmatprep.subr.bf16.mxu0 %v14636_v43  ;;  %13421 = vmatpush3.bf16.msra.mxu1 %v14635_v45  ;;  %v14675_v43 = vld [vmem:[#allocation2 + $0x1608] sm:$0xff]   ;;  %v14677_v45 = vld [vmem:[#allocation2 + $0x1650] sm:$0xff]  }
 0x2d9   :  { %13450 = vmatprep.subr.bf16.mxu1 %v14637_v48  ;;  %v14680_v48 = vld [vmem:[#allocation2 + $0x1690] sm:$0xff]  }
 0x2da   :  { %10550 = vmatmul.mubr.bf16.vlgmr.msra.gmra.mrb[80].mxu0 %v2595_v47  ;;  %v14679_v47 = vld [vmem:[#allocation2 + $0x1610] sm:$0xff]  }
 0x2db   :  { %13429 = vmatpush3.bf16.msra.mxu0 %v14638_v50  ;;  %10590 = vmatmul.mubr.bf16.vlgmr.msra.gmra.mrb[80].mxu1 %v2617_v54  ;;  %v14682_v50 = vld [vmem:[#allocation2 + $0x16d8] sm:$0xff]   ;;  %v14686_v54 = vld [vmem:[#allocation2 + $0x16e0] sm:$0xff]  }
 0x2dc   :  { %13430 = vmatprep.subr.bf16.mxu0 %v14640_v55  ;;  %13451 = vmatpush3.bf16.msra.mxu1 %v14639_v52  ;;  %v14684_v52 = vld [vmem:[#allocation2 + $0x1698] sm:$0xff]   ;;  %v14687_v55 = vld [vmem:[#allocation2 + $0x1620] sm:$0xff]  }
 0x2dd   :  { %10629 = vmatprep.mubr.bf16.mxu0 %v2616_v58  ;;  %13452 = vmatprep.subr.bf16.mxu1 %v14641_v57  ;;  %v14689_v57 = vld [vmem:[#allocation2 + $0x1668] sm:$0xff]  }
 0x2de   :  { %10669 = vmatprep.mubr.bf16.mxu1 %v2620_v61  ;;  %v14690_v58 = vld [vmem:[#allocation2 + $0x16e8] sm:$0xff]  }
 0x2df   :  { %13431 = vmatpush3.bf16.msra.mxu0 %v14642_v59 }
 0x2e0   :  { %13432 = vmatprep.subr.bf16.mxu0 %v14644_v62  ;;  %13453 = vmatpush3.bf16.msra.mxu1 %v14643_v60  ;;  %v14691_v60 = vld [vmem:[#allocation2 + $0x1628] sm:$0xff]   ;;  %v14693_v62 = vld [vmem:[#allocation2 + $0x1670] sm:$0xff]  }
 0x2e1   :  { %13454 = vmatprep.subr.bf16.mxu1 %v14645_v63 }
 0x2e3   :  { %13433 = vmatpush3.bf16.msra.mxu0 %v14646_v0 }
 0x2e4   :  { %13434 = vmatprep.subr.bf16.mxu0 %v14648_v2  ;;  %13455 = vmatpush3.bf16.msra.mxu1 %v14647_v1 }
 0x2e5   :  { %13456 = vmatprep.subr.bf16.mxu1 %v14649_v3  ;;  %v14692_v3 = vld [vmem:[#allocation2 + $0x16a8] sm:$0xff]  }
 0x2e7   :  { %13435 = vmatpush3.bf16.msra.mxu0 %v14650_v4 }
 0x2e8   :  { %13436 = vmatprep.subr.bf16.mxu0 %v14652_v6  ;;  %13457 = vmatpush3.bf16.msra.mxu1 %v14651_v5  ;;  %v14694_v5 = vld [vmem:[#allocation2 + $0x16f0] sm:$0xff]  }
 0x2e9   :  { %13458 = vmatprep.subr.bf16.mxu1 %v14653_v7 }
 0x2eb   :  { %13437 = vmatpush3.bf16.msra.mxu0 %v14654_v8 }
 0x2ec   :  { %13438 = vmatprep.subr.bf16.mxu0 %v14656_v10  ;;  %13459 = vmatpush3.bf16.msra.mxu1 %v14655_v9  ;;  %v14695_v9 = vld [vmem:[#allocation2 + $0x1630] sm:$0xff]  }
 0x2ed   :  { %v13136_v12 = vpop.f32.mrb[56].mxu0  ;;  %13460 = vmatprep.subr.bf16.mxu1 %v14657_v11  ;;  %v14697_v11 = vld [vmem:[#allocation2 + $0x1678] sm:$0xff]  }
 0x2ee   :  { %v13137_v14 = vpop.f32.mrb[57].mxu0  ;;  %v13158_v16 = vpop.f32.mrb[56].mxu1 }
 0x2ef   :  { %v13138_v17 = vadd.f32 %v13137_v14, %v13136_v12  ;;  %v13139_v18 = vpop.f32.mrb[58].mxu0  ;;  %v13159_v21 = vpop.f32.mrb[57].mxu1  ;;  %13439 = vmatpush3.bf16.msra.mxu0 %v14658_v13  ;;  %v14696_v13 = vld [vmem:[#allocation2 + $0x16b0] sm:$0xff]   ;;  %v14698_v14 = vld [vmem:[#allocation2 + $0x16f8] sm:$0xff]  }
 0x2f0   :  { %v13140_v22 = vpop.f32.mrb[59].mxu0  ;;  %v13160_v24 = vadd.f32 %v13159_v21, %v13158_v16  ;;  %v13161_v25 = vpop.f32.mrb[58].mxu1  ;;  %13440 = vmatprep.subr.bf16.mxu0 %v14660_v19  ;;  %13461 = vmatpush3.bf16.msra.mxu1 %v14659_v15  ;;  %v14699_v15 = vld [vmem:[#allocation2 + $0x1638] sm:$0xff]   ;;  %v14701_v18 = vld [vmem:[#allocation2 + $0x1740] sm:$0xff]  }
 0x2f1   :  { %v10072_v23 = vadd.f32 %v13138_v17, %v15319_v37  ;;  %v13162_v27 = vpop.f32.mrb[59].mxu1  ;;  %13462 = vmatprep.subr.bf16.mxu1 %v14661_v20  ;;  %v14670_v37 = vld [vmem:[#allocation2 + $0x16c0] sm:$0xff]   ;;  %v70_v16 = vld [vmem:[%s15484_s0 + $0x58] sm:$0xff] }
 0x2f2   :  { %v2628_v17 = vrot.slane %v70_v16, %v15138_v35  ;;  %v2621_v19 = vcombine.high %v70_v16, %v70_v16  ;;  %v14700_v20 = vld [vmem:[#allocation2 + $0x16b8] sm:$0xff]   ;;  %v14703_v25 = vld [vmem:[#allocation2 + $0x1700] sm:$0xff]   ;;  %v14738_v16 = vld [vmem:[#allocation2 + $0x1848] sm:$0xff]  }
 0x2f3   :  { %v15334_v29 = vadd.f32 %v13160_v24, %v10072_v23  ;;  %13441 = vmatpush3.bf16.msra.mxu0 %v14662_v26  ;;  %v14702_v23 = vld [vmem:[#allocation2 + $0x17c0] sm:$0xff]  }
 0x2f4   :  { %13442 = vmatprep.subr.bf16.mxu0 %v14664_v30  ;;  %13463 = vmatpush3.bf16.msra.mxu1 %v14663_v28  ;;  %v2636_v21 = vcombine.high %v2628_v17, %v2628_v17  ;;  %v2644_v22 = vrot.slane %v2628_v17, %v15138_v35  ;;  %v15347_v24 = vrot.slane %v2621_v19, %v15138_v35  ;;  %v14704_v27 = vld [vmem:[#allocation2 + $0x1780] sm:$0xff]   ;;  %v14705_v30 = vld [vmem:[#allocation2 + $0x1748] sm:$0xff]  }
 0x2f5   :  { %13464 = vmatprep.subr.bf16.mxu1 %v14665_v31  ;;  %v14739_v17 = vld [vmem:[#allocation2 + $0x18c8] sm:$0xff]  }
 0x2f6   :  { %v2658_v26 = vrot.slane %v2636_v21, %v15138_v35  ;;  %v2637_v28 = vcombine.high %v15347_v24, %v15347_v24  ;;  %v14741_v19 = vld [vmem:[#allocation2 + $0x1888] sm:$0xff]   ;;  %v14743_v21 = vld [vmem:[#allocation2 + $0x18d0] sm:$0xff]  }
 0x2f7   :  { %13443 = vmatpush3.bf16.msra.mxu0 %v14666_v32  ;;  %v14706_v32 = vld [vmem:[#allocation2 + $0x17c8] sm:$0xff]  }
 0x2f8   :  { %13472 = vmatprep.subr.bf16.mxu0 %v14669_v36  ;;  %13465 = vmatpush3.bf16.msra.mxu1 %v14667_v33  ;;  %v2668_v31 = vcombine.high %v2658_v26, %v2658_v26  ;;  %v2665_v33 = vrot.slane %v2637_v28, %v15138_v35  ;;  %v14708_v36 = vld [vmem:[#allocation2 + $0x1788] sm:$0xff]   ;;  %v14750_v28 = vld [vmem:[#allocation2 + $0x1860] sm:$0xff]  }
 0x2f9   :  { %13494 = vmatprep.subr.bf16.mxu1 %v14670_v37 }
 0x2fa   :  { %10630 = vmatmul.mubr.bf16.vlgmr.msra.gmra.mrb[84].mxu0 %v2602_v34  ;;  %v14707_v34 = vld [vmem:[#allocation2 + $0x1708] sm:$0xff]   ;;  %v2669_v37 = vcombine.high %v2665_v33, %v2665_v33 }
 0x2fb   :  { %13473 = vmatpush3.bf16.msra.mxu0 %v14671_v38  ;;  %10670 = vmatmul.mubr.bf16.vlgmr.msra.gmra.mrb[84].mxu1 %v2618_v40  ;;  %v14709_v38 = vld [vmem:[#allocation2 + $0x1750] sm:$0xff]  }
 0x2fc   :  { %13474 = vmatprep.subr.bf16.mxu0 %v14673_v41  ;;  %13495 = vmatpush3.bf16.msra.mxu1 %v14672_v39  ;;  %v14710_v39 = vld [vmem:[#allocation2 + $0x17d0] sm:$0xff]  }
 0x2fd   :  { %13496 = vmatprep.subr.bf16.mxu1 %v14674_v42  ;;  %10709 = vmatprep.mubr.bf16.mxu0 %v2658_v26  ;;  %v14711_v40 = vld [vmem:[#allocation2 + $0x1710] sm:$0xff]   ;;  %v14713_v42 = vld [vmem:[#allocation2 + $0x1758] sm:$0xff]  }
 0x2fe   :  { %10749 = vmatprep.mubr.bf16.mxu1 %v2668_v31  ;;  %v14712_v41 = vld [vmem:[#allocation2 + $0x1790] sm:$0xff]   ;;  %v14748_v26 = vld [vmem:[#allocation2 + $0x1818] sm:$0xff]   ;;  %v14753_v31 = vld [vmem:[#allocation2 + $0x18a0] sm:$0xff]  }
 0x2ff   :  { %13475 = vmatpush3.bf16.msra.mxu0 %v14675_v43  ;;  %v14714_v43 = vld [vmem:[#allocation2 + $0x17d8] sm:$0xff]  }
 0x300   :  { %13476 = vmatprep.subr.bf16.mxu0 %v14677_v45  ;;  %13497 = vmatpush3.bf16.msra.mxu1 %v14676_v44  ;;  %v14715_v44 = vld [vmem:[#allocation2 + $0x1718] sm:$0xff]  }
 0x301   :  { %13498 = vmatprep.subr.bf16.mxu1 %v14678_v46  ;;  %v14716_v45 = vld [vmem:[#allocation2 + $0x1798] sm:$0xff]   ;;  %v14717_v46 = vld [vmem:[#allocation2 + $0x1760] sm:$0xff]  }
 0x303   :  { %13477 = vmatpush3.bf16.msra.mxu0 %v14679_v47  ;;  %v14718_v47 = vld [vmem:[#allocation2 + $0x17e0] sm:$0xff]  }
 0x304   :  { %13478 = vmatprep.subr.bf16.mxu0 %v14681_v49  ;;  %13499 = vmatpush3.bf16.msra.mxu1 %v14680_v48  ;;  %v14719_v48 = vld [vmem:[#allocation2 + $0x1720] sm:$0xff]  }
 0x305   :  { %13500 = vmatprep.subr.bf16.mxu1 %v14682_v50  ;;  %v14720_v49 = vld [vmem:[#allocation2 + $0x17a0] sm:$0xff]   ;;  %v14721_v50 = vld [vmem:[#allocation2 + $0x1768] sm:$0xff]  }
 0x307   :  { %13479 = vmatpush3.bf16.msra.mxu0 %v14683_v51  ;;  %v14722_v51 = vld [vmem:[#allocation2 + $0x17e8] sm:$0xff]  }
 0x308   :  { %13480 = vmatprep.subr.bf16.mxu0 %v14685_v53  ;;  %13501 = vmatpush3.bf16.msra.mxu1 %v14684_v52  ;;  %v14723_v53 = vld [vmem:[#allocation2 + $0x1728] sm:$0xff]  }
 0x309   :  { %13502 = vmatprep.subr.bf16.mxu1 %v14686_v54 }
 0x30b   :  { %13481 = vmatpush3.bf16.msra.mxu0 %v14687_v55  ;;  %v14724_v55 = vld [vmem:[#allocation2 + $0x17a8] sm:$0xff]  }
 0x30c   :  { %13482 = vmatprep.subr.bf16.mxu0 %v14689_v57  ;;  %13503 = vmatpush3.bf16.msra.mxu1 %v14688_v56 }
 0x30d   :  { %v13180_v59 = vpop.f32.mrb[60].mxu0  ;;  %13504 = vmatprep.subr.bf16.mxu1 %v14690_v58 }
 0x30e   :  { %v13181_v61 = vpop.f32.mrb[61].mxu0  ;;  %v13202_v63 = vpop.f32.mrb[60].mxu1 }
 0x30f   :  { %v13182_v0 = vadd.f32 %v13181_v61, %v13180_v59  ;;  %v13183_v1 = vpop.f32.mrb[62].mxu0  ;;  %v13203_v2 = vpop.f32.mrb[61].mxu1  ;;  %13483 = vmatpush3.bf16.msra.mxu0 %v14691_v60  ;;  %v14725_v59 = vld [vmem:[#allocation2 + $0x1770] sm:$0xff]  }
 0x310   :  { %v13184_v4 = vpop.f32.mrb[63].mxu0  ;;  %v13204_v7 = vadd.f32 %v13203_v2, %v13202_v63  ;;  %v13205_v8 = vpop.f32.mrb[62].mxu1  ;;  %13484 = vmatprep.subr.bf16.mxu0 %v14693_v62  ;;  %13505 = vmatpush3.bf16.msra.mxu1 %v14692_v3  ;;  %v14726_v60 = vld [vmem:[#allocation2 + $0x17f0] sm:$0xff]  }
 0x311   :  { %v10152_v6 = vadd.f32 %v13182_v0, %v15334_v29  ;;  %v13206_v10 = vpop.f32.mrb[63].mxu1  ;;  %13506 = vmatprep.subr.bf16.mxu1 %v14694_v5  ;;  %v2666_v29 = vcombine.high %v2644_v22, %v2644_v22  ;;  %v14727_v2 = vld [vmem:[#allocation2 + $0x1730] sm:$0xff]   ;;  %v14731_v8 = vld [vmem:[#allocation2 + $0x1738] sm:$0xff]  }
 0x312   :  { %v14728_v4 = vld [vmem:[#allocation2 + $0x17b0] sm:$0xff]   ;;  %v2651_v10 = vrot.slane %v15347_v24, %v15138_v35  ;;  %v14746_v24 = vld [vmem:[#allocation2 + $0x1858] sm:$0xff]  }
 0x313   :  { %v15339_v12 = vadd.f32 %v13204_v7, %v10152_v6  ;;  %13485 = vmatpush3.bf16.msra.mxu0 %v14695_v9  ;;  %v14729_v6 = vld [vmem:[#allocation2 + $0x1778] sm:$0xff]  }
 0x314   :  { %13486 = vmatprep.subr.bf16.mxu0 %v14697_v11  ;;  %13507 = vmatpush3.bf16.msra.mxu1 %v14696_v13  ;;  %v14730_v7 = vld [vmem:[#allocation2 + $0x17f8] sm:$0xff]   ;;  %v14734_v11 = vld [vmem:[#allocation2 + $0x1840] sm:$0xff]  }
 0x315   :  { %13508 = vmatprep.subr.bf16.mxu1 %v14698_v14  ;;  %v14732_v9 = vld [vmem:[#allocation2 + $0x17b8] sm:$0xff]   ;;  %v14736_v13 = vld [vmem:[#allocation2 + $0x1800] sm:$0xff]  }
 0x316   :  { %v14737_v14 = vld [vmem:[#allocation2 + $0x1880] sm:$0xff]  }
 0x317   :  { %13487 = vmatpush3.bf16.msra.mxu0 %v14699_v15  ;;  %v2667_v15 = vcombine.high %v2651_v10, %v2651_v10 }
 0x318   :  { %13516 = vmatprep.subr.bf16.mxu0 %v14701_v18  ;;  %13509 = vmatpush3.bf16.msra.mxu1 %v14700_v20  ;;  %v14740_v18 = vld [vmem:[#allocation2 + $0x1808] sm:$0xff]   ;;  %v14742_v20 = vld [vmem:[#allocation2 + $0x1850] sm:$0xff]  }
 0x319   :  { %13538 = vmatprep.subr.bf16.mxu1 %v14702_v23  ;;  %v14745_v23 = vld [vmem:[#allocation2 + $0x1890] sm:$0xff]  }
 0x31a   :  { %10710 = vmatmul.mubr.bf16.vlgmr.msra.gmra.mrb[88].mxu0 %v2644_v22  ;;  %v14744_v22 = vld [vmem:[#allocation2 + $0x1810] sm:$0xff]  }
 0x31b   :  { %13517 = vmatpush3.bf16.msra.mxu0 %v14703_v25  ;;  %10750 = vmatmul.mubr.bf16.vlgmr.msra.gmra.mrb[88].mxu1 %v2666_v29  ;;  %v14747_v25 = vld [vmem:[#allocation2 + $0x18d8] sm:$0xff]   ;;  %v14751_v29 = vld [vmem:[#allocation2 + $0x18e0] sm:$0xff]  }
 0x31c   :  { %13518 = vmatprep.subr.bf16.mxu0 %v14705_v30  ;;  %13539 = vmatpush3.bf16.msra.mxu1 %v14704_v27  ;;  %v14749_v27 = vld [vmem:[#allocation2 + $0x1898] sm:$0xff]   ;;  %v14752_v30 = vld [vmem:[#allocation2 + $0x1820] sm:$0xff]  }
 0x31d   :  { %10789 = vmatprep.mubr.bf16.mxu0 %v2665_v33  ;;  %13540 = vmatprep.subr.bf16.mxu1 %v14706_v32  ;;  %v14754_v32 = vld [vmem:[#allocation2 + $0x1868] sm:$0xff]  }
 0x31e   :  { %10829 = vmatprep.mubr.bf16.mxu1 %v2669_v37  ;;  %v14755_v33 = vld [vmem:[#allocation2 + $0x18e8] sm:$0xff]  }
 0x31f   :  { %13519 = vmatpush3.bf16.msra.mxu0 %v14707_v34 }
 0x320   :  { %13520 = vmatprep.subr.bf16.mxu0 %v14709_v38  ;;  %13541 = vmatpush3.bf16.msra.mxu1 %v14708_v36  ;;  %v14756_v36 = vld [vmem:[#allocation2 + $0x1828] sm:$0xff]   ;;  %v14758_v38 = vld [vmem:[#allocation2 + $0x1870] sm:$0xff]  }
 0x321   :  { %13542 = vmatprep.subr.bf16.mxu1 %v14710_v39 }
 0x323   :  { %13521 = vmatpush3.bf16.msra.mxu0 %v14711_v40 }
 0x324   :  { %13522 = vmatprep.subr.bf16.mxu0 %v14713_v42  ;;  %13543 = vmatpush3.bf16.msra.mxu1 %v14712_v41 }
 0x325   :  { %13544 = vmatprep.subr.bf16.mxu1 %v14714_v43  ;;  %v14757_v43 = vld [vmem:[#allocation2 + $0x18a8] sm:$0xff]  }
 0x327   :  { %13523 = vmatpush3.bf16.msra.mxu0 %v14715_v44 }
 0x328   :  { %13524 = vmatprep.subr.bf16.mxu0 %v14717_v46  ;;  %13545 = vmatpush3.bf16.msra.mxu1 %v14716_v45  ;;  %v14759_v45 = vld [vmem:[#allocation2 + $0x18f0] sm:$0xff]  }
 0x329   :  { %13546 = vmatprep.subr.bf16.mxu1 %v14718_v47 }
 0x32b   :  { %13525 = vmatpush3.bf16.msra.mxu0 %v14719_v48 }
 0x32c   :  { %13526 = vmatprep.subr.bf16.mxu0 %v14721_v50  ;;  %13547 = vmatpush3.bf16.msra.mxu1 %v14720_v49  ;;  %v14760_v49 = vld [vmem:[#allocation2 + $0x1830] sm:$0xff]  }
 0x32d   :  { %v13224_v52 = vpop.f32.mrb[64].mxu0  ;;  %13548 = vmatprep.subr.bf16.mxu1 %v14722_v51  ;;  %v14762_v51 = vld [vmem:[#allocation2 + $0x1878] sm:$0xff]  }
 0x32e   :  { %v13225_v54 = vpop.f32.mrb[65].mxu0  ;;  %v13246_v56 = vpop.f32.mrb[64].mxu1 }
 0x32f   :  { %v13226_v57 = vadd.f32 %v13225_v54, %v13224_v52  ;;  %v13227_v58 = vpop.f32.mrb[66].mxu0  ;;  %v13247_v61 = vpop.f32.mrb[65].mxu1  ;;  %13527 = vmatpush3.bf16.msra.mxu0 %v14723_v53  ;;  %v14761_v53 = vld [vmem:[#allocation2 + $0x18b0] sm:$0xff]   ;;  %v14763_v54 = vld [vmem:[#allocation2 + $0x18f8] sm:$0xff]  }
 0x330   :  { %v13228_v62 = vpop.f32.mrb[67].mxu0  ;;  %v13248_v0 = vadd.f32 %v13247_v61, %v13246_v56  ;;  %v13249_v1 = vpop.f32.mrb[66].mxu1  ;;  %13528 = vmatprep.subr.bf16.mxu0 %v14725_v59  ;;  %13549 = vmatpush3.bf16.msra.mxu1 %v14724_v55  ;;  %v14764_v55 = vld [vmem:[#allocation2 + $0x1838] sm:$0xff]   ;;  %v71_v56 = vld [vmem:[%s15484_s0 + $0x60] sm:$0xff] }
 0x331   :  { %v10232_v63 = vadd.f32 %v13226_v57, %v15339_v12  ;;  %v13250_v3 = vpop.f32.mrb[67].mxu1  ;;  %13550 = vmatprep.subr.bf16.mxu1 %v14726_v60  ;;  %v14735_v12 = vld [vmem:[#allocation2 + $0x18c0] sm:$0xff]   ;;  %v2677_v57 = vrot.slane %v71_v56, %v15138_v35  ;;  %v2670_v59 = vcombine.high %v71_v56, %v71_v56  ;;  %v14765_v60 = vld [vmem:[#allocation2 + $0x18b8] sm:$0xff]   ;;  %v14803_v56 = vld [vmem:[#allocation2 + $0x1a48] sm:$0xff]  }
 0x332   :  { %v14766_v58 = vld [vmem:[#allocation2 + $0x1940] sm:$0xff]  }
 0x333   :  { %v15354_v5 = vadd.f32 %v13248_v0, %v10232_v63  ;;  %13529 = vmatpush3.bf16.msra.mxu0 %v14727_v2  ;;  %v2685_v61 = vcombine.high %v2677_v57, %v2677_v57  ;;  %v2693_v62 = vrot.slane %v2677_v57, %v15138_v35  ;;  %v14767_v63 = vld [vmem:[#allocation2 + $0x19c0] sm:$0xff]   ;;  %v15367_v0 = vrot.slane %v2670_v59, %v15138_v35  ;;  %v14804_v57 = vld [vmem:[#allocation2 + $0x1ac8] sm:$0xff]  }
 0x334   :  { %13530 = vmatprep.subr.bf16.mxu0 %v14729_v6  ;;  %13551 = vmatpush3.bf16.msra.mxu1 %v14728_v4  ;;  %v14768_v1 = vld [vmem:[#allocation2 + $0x1900] sm:$0xff]   ;;  %v14770_v6 = vld [vmem:[#allocation2 + $0x1948] sm:$0xff]  }
 0x335   :  { %13552 = vmatprep.subr.bf16.mxu1 %v14730_v7  ;;  %v2707_v2 = vrot.slane %v2685_v61, %v15138_v35  ;;  %v14769_v3 = vld [vmem:[#allocation2 + $0x1980] sm:$0xff]   ;;  %v2686_v4 = vcombine.high %v15367_v0, %v15367_v0  ;;  %v14806_v59 = vld [vmem:[#allocation2 + $0x1a88] sm:$0xff]   ;;  %v14808_v61 = vld [vmem:[#allocation2 + $0x1ad0] sm:$0xff]  }
 0x337   :  { %13531 = vmatpush3.bf16.msra.mxu0 %v14731_v8  ;;  %v2717_v7 = vcombine.high %v2707_v2, %v2707_v2  ;;  %v14771_v8 = vld [vmem:[#allocation2 + $0x19c8] sm:$0xff]  }
 0x338   :  { %13560 = vmatprep.subr.bf16.mxu0 %v14734_v11  ;;  %13553 = vmatpush3.bf16.msra.mxu1 %v14732_v9  ;;  %v2714_v9 = vrot.slane %v2686_v4, %v15138_v35  ;;  %v14773_v11 = vld [vmem:[#allocation2 + $0x1988] sm:$0xff]   ;;  %v14815_v4 = vld [vmem:[#allocation2 + $0x1a60] sm:$0xff]  }
 0x339   :  { %13582 = vmatprep.subr.bf16.mxu1 %v14735_v12 }
 0x33a   :  { %10790 = vmatmul.mubr.bf16.vlgmr.msra.gmra.mrb[92].mxu0 %v2651_v10  ;;  %v14772_v10 = vld [vmem:[#allocation2 + $0x1908] sm:$0xff]   ;;  %v2718_v12 = vcombine.high %v2714_v9, %v2714_v9 }
 0x33b   :  { %13561 = vmatpush3.bf16.msra.mxu0 %v14736_v13  ;;  %10830 = vmatmul.mubr.bf16.vlgmr.msra.gmra.mrb[92].mxu1 %v2667_v15  ;;  %v14774_v13 = vld [vmem:[#allocation2 + $0x1950] sm:$0xff]  }
 0x33c   :  { %13562 = vmatprep.subr.bf16.mxu0 %v14738_v16  ;;  %13583 = vmatpush3.bf16.msra.mxu1 %v14737_v14  ;;  %v14775_v14 = vld [vmem:[#allocation2 + $0x19d0] sm:$0xff]  }
 0x33d   :  { %13584 = vmatprep.subr.bf16.mxu1 %v14739_v17  ;;  %10869 = vmatprep.mubr.bf16.mxu0 %v2707_v2  ;;  %v14776_v15 = vld [vmem:[#allocation2 + $0x1910] sm:$0xff]   ;;  %v14778_v17 = vld [vmem:[#allocation2 + $0x1958] sm:$0xff]  }
 0x33e   :  { %10909 = vmatprep.mubr.bf16.mxu1 %v2717_v7  ;;  %v14777_v16 = vld [vmem:[#allocation2 + $0x1990] sm:$0xff]   ;;  %v14813_v2 = vld [vmem:[#allocation2 + $0x1a18] sm:$0xff]   ;;  %v14818_v7 = vld [vmem:[#allocation2 + $0x1aa0] sm:$0xff]  }
 0x33f   :  { %13563 = vmatpush3.bf16.msra.mxu0 %v14740_v18  ;;  %v14779_v18 = vld [vmem:[#allocation2 + $0x19d8] sm:$0xff]  }
 0x340   :  { %13564 = vmatprep.subr.bf16.mxu0 %v14742_v20  ;;  %13585 = vmatpush3.bf16.msra.mxu1 %v14741_v19  ;;  %v14780_v19 = vld [vmem:[#allocation2 + $0x1918] sm:$0xff]  }
 0x341   :  { %13586 = vmatprep.subr.bf16.mxu1 %v14743_v21  ;;  %v14781_v20 = vld [vmem:[#allocation2 + $0x1998] sm:$0xff]   ;;  %v14782_v21 = vld [vmem:[#allocation2 + $0x1960] sm:$0xff]  }
 0x343   :  { %13565 = vmatpush3.bf16.msra.mxu0 %v14744_v22  ;;  %v14783_v22 = vld [vmem:[#allocation2 + $0x19e0] sm:$0xff]  }
 0x344   :  { %13566 = vmatprep.subr.bf16.mxu0 %v14746_v24  ;;  %13587 = vmatpush3.bf16.msra.mxu1 %v14745_v23  ;;  %v14784_v23 = vld [vmem:[#allocation2 + $0x1920] sm:$0xff]  }
 0x345   :  { %13588 = vmatprep.subr.bf16.mxu1 %v14747_v25  ;;  %v14785_v24 = vld [vmem:[#allocation2 + $0x19a0] sm:$0xff]   ;;  %v14786_v25 = vld [vmem:[#allocation2 + $0x1968] sm:$0xff]  }
 0x347   :  { %13567 = vmatpush3.bf16.msra.mxu0 %v14748_v26  ;;  %v14787_v26 = vld [vmem:[#allocation2 + $0x19e8] sm:$0xff]  }
 0x348   :  { %13568 = vmatprep.subr.bf16.mxu0 %v14750_v28  ;;  %13589 = vmatpush3.bf16.msra.mxu1 %v14749_v27  ;;  %v14788_v28 = vld [vmem:[#allocation2 + $0x1928] sm:$0xff]  }
 0x349   :  { %13590 = vmatprep.subr.bf16.mxu1 %v14751_v29 }
 0x34b   :  { %13569 = vmatpush3.bf16.msra.mxu0 %v14752_v30  ;;  %v14789_v30 = vld [vmem:[#allocation2 + $0x19a8] sm:$0xff]  }
 0x34c   :  { %13570 = vmatprep.subr.bf16.mxu0 %v14754_v32  ;;  %13591 = vmatpush3.bf16.msra.mxu1 %v14753_v31 }
 0x34d   :  { %v13268_v34 = vpop.f32.mrb[68].mxu0  ;;  %13592 = vmatprep.subr.bf16.mxu1 %v14755_v33 }
 0x34e   :  { %v13269_v37 = vpop.f32.mrb[69].mxu0  ;;  %v13290_v39 = vpop.f32.mrb[68].mxu1 }
 0x34f   :  { %v13270_v40 = vadd.f32 %v13269_v37, %v13268_v34  ;;  %v13271_v41 = vpop.f32.mrb[70].mxu0  ;;  %v13291_v42 = vpop.f32.mrb[69].mxu1  ;;  %13571 = vmatpush3.bf16.msra.mxu0 %v14756_v36  ;;  %v14790_v34 = vld [vmem:[#allocation2 + $0x1970] sm:$0xff]  }
 0x350   :  { %v13272_v44 = vpop.f32.mrb[71].mxu0  ;;  %v13292_v47 = vadd.f32 %v13291_v42, %v13290_v39  ;;  %v13293_v48 = vpop.f32.mrb[70].mxu1  ;;  %13572 = vmatprep.subr.bf16.mxu0 %v14758_v38  ;;  %13593 = vmatpush3.bf16.msra.mxu1 %v14757_v43  ;;  %v14791_v36 = vld [vmem:[#allocation2 + $0x19f0] sm:$0xff]  }
 0x351   :  { %v10312_v46 = vadd.f32 %v13270_v40, %v15354_v5  ;;  %v13294_v50 = vpop.f32.mrb[71].mxu1  ;;  %13594 = vmatprep.subr.bf16.mxu1 %v14759_v45  ;;  %v2715_v5 = vcombine.high %v2693_v62, %v2693_v62  ;;  %v14792_v42 = vld [vmem:[#allocation2 + $0x1930] sm:$0xff]   ;;  %v14796_v48 = vld [vmem:[#allocation2 + $0x1938] sm:$0xff]  }
 0x352   :  { %v14793_v44 = vld [vmem:[#allocation2 + $0x19b0] sm:$0xff]   ;;  %v2700_v50 = vrot.slane %v15367_v0, %v15138_v35  ;;  %v14811_v0 = vld [vmem:[#allocation2 + $0x1a58] sm:$0xff]  }
 0x353   :  { %v15359_v52 = vadd.f32 %v13292_v47, %v10312_v46  ;;  %13573 = vmatpush3.bf16.msra.mxu0 %v14760_v49  ;;  %v14794_v46 = vld [vmem:[#allocation2 + $0x1978] sm:$0xff]  }
 0x354   :  { %13574 = vmatprep.subr.bf16.mxu0 %v14762_v51  ;;  %13595 = vmatpush3.bf16.msra.mxu1 %v14761_v53  ;;  %v14795_v47 = vld [vmem:[#allocation2 + $0x19f8] sm:$0xff]   ;;  %v14799_v51 = vld [vmem:[#allocation2 + $0x1a40] sm:$0xff]  }
 0x355   :  { %13596 = vmatprep.subr.bf16.mxu1 %v14763_v54  ;;  %v14797_v49 = vld [vmem:[#allocation2 + $0x19b8] sm:$0xff]   ;;  %v14801_v53 = vld [vmem:[#allocation2 + $0x1a00] sm:$0xff]  }
 0x356   :  { %v14802_v54 = vld [vmem:[#allocation2 + $0x1a80] sm:$0xff]  }
 0x357   :  { %13575 = vmatpush3.bf16.msra.mxu0 %v14764_v55  ;;  %v2716_v55 = vcombine.high %v2700_v50, %v2700_v50 }
 0x358   :  { %13604 = vmatprep.subr.bf16.mxu0 %v14766_v58  ;;  %13597 = vmatpush3.bf16.msra.mxu1 %v14765_v60  ;;  %v14805_v58 = vld [vmem:[#allocation2 + $0x1a08] sm:$0xff]   ;;  %v14807_v60 = vld [vmem:[#allocation2 + $0x1a50] sm:$0xff]  }
 0x359   :  { %13626 = vmatprep.subr.bf16.mxu1 %v14767_v63  ;;  %v14810_v63 = vld [vmem:[#allocation2 + $0x1a90] sm:$0xff]  }
 0x35a   :  { %10870 = vmatmul.mubr.bf16.vlgmr.msra.gmra.mrb[96].mxu0 %v2693_v62  ;;  %v14809_v62 = vld [vmem:[#allocation2 + $0x1a10] sm:$0xff]  }
 0x35b   :  { %13605 = vmatpush3.bf16.msra.mxu0 %v14768_v1  ;;  %10910 = vmatmul.mubr.bf16.vlgmr.msra.gmra.mrb[96].mxu1 %v2715_v5  ;;  %v14812_v1 = vld [vmem:[#allocation2 + $0x1ad8] sm:$0xff]   ;;  %v14816_v5 = vld [vmem:[#allocation2 + $0x1ae0] sm:$0xff]  }
 0x35c   :  { %13606 = vmatprep.subr.bf16.mxu0 %v14770_v6  ;;  %13627 = vmatpush3.bf16.msra.mxu1 %v14769_v3  ;;  %v14814_v3 = vld [vmem:[#allocation2 + $0x1a98] sm:$0xff]   ;;  %v14817_v6 = vld [vmem:[#allocation2 + $0x1a20] sm:$0xff]  }
 0x35d   :  { %10949 = vmatprep.mubr.bf16.mxu0 %v2714_v9  ;;  %13628 = vmatprep.subr.bf16.mxu1 %v14771_v8  ;;  %v14819_v8 = vld [vmem:[#allocation2 + $0x1a68] sm:$0xff]  }
 0x35e   :  { %10989 = vmatprep.mubr.bf16.mxu1 %v2718_v12  ;;  %v14820_v9 = vld [vmem:[#allocation2 + $0x1ae8] sm:$0xff]  }
 0x35f   :  { %13607 = vmatpush3.bf16.msra.mxu0 %v14772_v10 }
 0x360   :  { %13608 = vmatprep.subr.bf16.mxu0 %v14774_v13  ;;  %13629 = vmatpush3.bf16.msra.mxu1 %v14773_v11  ;;  %v14821_v11 = vld [vmem:[#allocation2 + $0x1a28] sm:$0xff]   ;;  %v14823_v13 = vld [vmem:[#allocation2 + $0x1a70] sm:$0xff]  }
 0x361   :  { %13630 = vmatprep.subr.bf16.mxu1 %v14775_v14 }
 0x363   :  { %13609 = vmatpush3.bf16.msra.mxu0 %v14776_v15 }
 0x364   :  { %13610 = vmatprep.subr.bf16.mxu0 %v14778_v17  ;;  %13631 = vmatpush3.bf16.msra.mxu1 %v14777_v16 }
 0x365   :  { %13632 = vmatprep.subr.bf16.mxu1 %v14779_v18  ;;  %v14822_v18 = vld [vmem:[#allocation2 + $0x1aa8] sm:$0xff]  }
 0x367   :  { %13611 = vmatpush3.bf16.msra.mxu0 %v14780_v19 }
 0x368   :  { %13612 = vmatprep.subr.bf16.mxu0 %v14782_v21  ;;  %13633 = vmatpush3.bf16.msra.mxu1 %v14781_v20  ;;  %v14824_v20 = vld [vmem:[#allocation2 + $0x1af0] sm:$0xff]  }
 0x369   :  { %13634 = vmatprep.subr.bf16.mxu1 %v14783_v22 }
 0x36b   :  { %13613 = vmatpush3.bf16.msra.mxu0 %v14784_v23 }
 0x36c   :  { %13614 = vmatprep.subr.bf16.mxu0 %v14786_v25  ;;  %13635 = vmatpush3.bf16.msra.mxu1 %v14785_v24  ;;  %v14825_v24 = vld [vmem:[#allocation2 + $0x1a30] sm:$0xff]  }
 0x36d   :  { %v13312_v27 = vpop.f32.mrb[72].mxu0  ;;  %13636 = vmatprep.subr.bf16.mxu1 %v14787_v26  ;;  %v14827_v26 = vld [vmem:[#allocation2 + $0x1a78] sm:$0xff]  }
 0x36e   :  { %v13313_v29 = vpop.f32.mrb[73].mxu0  ;;  %v13334_v31 = vpop.f32.mrb[72].mxu1 }
 0x36f   :  { %v13314_v32 = vadd.f32 %v13313_v29, %v13312_v27  ;;  %v13315_v33 = vpop.f32.mrb[74].mxu0  ;;  %v13335_v37 = vpop.f32.mrb[73].mxu1  ;;  %13615 = vmatpush3.bf16.msra.mxu0 %v14788_v28  ;;  %v14826_v28 = vld [vmem:[#allocation2 + $0x1ab0] sm:$0xff]   ;;  %v14828_v29 = vld [vmem:[#allocation2 + $0x1af8] sm:$0xff]  }
 0x370   :  { %v13316_v38 = vpop.f32.mrb[75].mxu0  ;;  %v13336_v40 = vadd.f32 %v13335_v37, %v13334_v31  ;;  %v13337_v41 = vpop.f32.mrb[74].mxu1  ;;  %13616 = vmatprep.subr.bf16.mxu0 %v14790_v34  ;;  %13637 = vmatpush3.bf16.msra.mxu1 %v14789_v30  ;;  %v14829_v30 = vld [vmem:[#allocation2 + $0x1a38] sm:$0xff]   ;;  %v72_v31 = vld [vmem:[%s15484_s0 + $0x68] sm:$0xff]  ;;  %v14831_v33 = vld [vmem:[#allocation2 + $0x1b40] sm:$0xff]  }
 0x371   :  { %v10392_v39 = vadd.f32 %v13314_v32, %v15359_v52  ;;  %v13338_v43 = vpop.f32.mrb[75].mxu1  ;;  %13638 = vmatprep.subr.bf16.mxu1 %v14791_v36  ;;  %v14800_v52 = vld [vmem:[#allocation2 + $0x1ac0] sm:$0xff]   ;;  %v2726_v32 = vrot.slane %v72_v31, %v15138_v35  ;;  %v2719_v34 = vcombine.high %v72_v31, %v72_v31  ;;  %v14830_v36 = vld [vmem:[#allocation2 + $0x1ab8] sm:$0xff]   ;;  %v14868_v31 = vld [vmem:[#allocation2 + $0x1c48] sm:$0xff]  }
 0x372   :  { %v14833_v41 = vld [vmem:[#allocation2 + $0x1b00] sm:$0xff]  }
 0x373   :  { %v15374_v45 = vadd.f32 %v13336_v40, %v10392_v39  ;;  %13617 = vmatpush3.bf16.msra.mxu0 %v14792_v42  ;;  %v2734_v37 = vcombine.high %v2726_v32, %v2726_v32  ;;  %v2742_v38 = vrot.slane %v2726_v32, %v15138_v35  ;;  %v14832_v39 = vld [vmem:[#allocation2 + $0x1bc0] sm:$0xff]   ;;  %v15387_v40 = vrot.slane %v2719_v34, %v15138_v35  ;;  %v14869_v32 = vld [vmem:[#allocation2 + $0x1cc8] sm:$0xff]  }
 0x374   :  { %13618 = vmatprep.subr.bf16.mxu0 %v14794_v46  ;;  %13639 = vmatpush3.bf16.msra.mxu1 %v14793_v44  ;;  %v14834_v43 = vld [vmem:[#allocation2 + $0x1b80] sm:$0xff]   ;;  %v14835_v46 = vld [vmem:[#allocation2 + $0x1b48] sm:$0xff]  }
 0x375   :  { %13640 = vmatprep.subr.bf16.mxu1 %v14795_v47  ;;  %v2756_v42 = vrot.slane %v2734_v37, %v15138_v35  ;;  %v2735_v44 = vcombine.high %v15387_v40, %v15387_v40  ;;  %v14871_v34 = vld [vmem:[#allocation2 + $0x1c88] sm:$0xff]   ;;  %v14873_v37 = vld [vmem:[#allocation2 + $0x1cd0] sm:$0xff]  }
 0x377   :  { %13619 = vmatpush3.bf16.msra.mxu0 %v14796_v48  ;;  %v2766_v47 = vcombine.high %v2756_v42, %v2756_v42  ;;  %v14836_v48 = vld [vmem:[#allocation2 + $0x1bc8] sm:$0xff]  }
 0x378   :  { %13648 = vmatprep.subr.bf16.mxu0 %v14799_v51  ;;  %13641 = vmatpush3.bf16.msra.mxu1 %v14797_v49  ;;  %v2763_v49 = vrot.slane %v2735_v44, %v15138_v35  ;;  %v14838_v51 = vld [vmem:[#allocation2 + $0x1b88] sm:$0xff]   ;;  %v14880_v44 = vld [vmem:[#allocation2 + $0x1c60] sm:$0xff]  }
 0x379   :  { %13670 = vmatprep.subr.bf16.mxu1 %v14800_v52 }
 0x37a   :  { %10950 = vmatmul.mubr.bf16.vlgmr.msra.gmra.mrb[100].mxu0 %v2700_v50  ;;  %v14837_v50 = vld [vmem:[#allocation2 + $0x1b08] sm:$0xff]   ;;  %v2767_v52 = vcombine.high %v2763_v49, %v2763_v49 }
 0x37b   :  { %13649 = vmatpush3.bf16.msra.mxu0 %v14801_v53  ;;  %10990 = vmatmul.mubr.bf16.vlgmr.msra.gmra.mrb[100].mxu1 %v2716_v55  ;;  %v14839_v53 = vld [vmem:[#allocation2 + $0x1b50] sm:$0xff]  }
 0x37c   :  { %13650 = vmatprep.subr.bf16.mxu0 %v14803_v56  ;;  %13671 = vmatpush3.bf16.msra.mxu1 %v14802_v54  ;;  %v14840_v54 = vld [vmem:[#allocation2 + $0x1bd0] sm:$0xff]  }
 0x37d   :  { %13672 = vmatprep.subr.bf16.mxu1 %v14804_v57  ;;  %11029 = vmatprep.mubr.bf16.mxu0 %v2756_v42  ;;  %v14841_v55 = vld [vmem:[#allocation2 + $0x1b10] sm:$0xff]   ;;  %v14843_v57 = vld [vmem:[#allocation2 + $0x1b58] sm:$0xff]  }
 0x37e   :  { %11069 = vmatprep.mubr.bf16.mxu1 %v2766_v47  ;;  %v14842_v56 = vld [vmem:[#allocation2 + $0x1b90] sm:$0xff]   ;;  %v14878_v42 = vld [vmem:[#allocation2 + $0x1c18] sm:$0xff]   ;;  %v14883_v47 = vld [vmem:[#allocation2 + $0x1ca0] sm:$0xff]  }
 0x37f   :  { %13651 = vmatpush3.bf16.msra.mxu0 %v14805_v58  ;;  %v14844_v58 = vld [vmem:[#allocation2 + $0x1bd8] sm:$0xff]  }
 0x380   :  { %13652 = vmatprep.subr.bf16.mxu0 %v14807_v60  ;;  %13673 = vmatpush3.bf16.msra.mxu1 %v14806_v59  ;;  %v14845_v59 = vld [vmem:[#allocation2 + $0x1b18] sm:$0xff]  }
 0x381   :  { %13674 = vmatprep.subr.bf16.mxu1 %v14808_v61  ;;  %v14846_v60 = vld [vmem:[#allocation2 + $0x1b98] sm:$0xff]   ;;  %v14847_v61 = vld [vmem:[#allocation2 + $0x1b60] sm:$0xff]  }
 0x383   :  { %13653 = vmatpush3.bf16.msra.mxu0 %v14809_v62  ;;  %v14848_v62 = vld [vmem:[#allocation2 + $0x1be0] sm:$0xff]  }
 0x384   :  { %13654 = vmatprep.subr.bf16.mxu0 %v14811_v0  ;;  %13675 = vmatpush3.bf16.msra.mxu1 %v14810_v63  ;;  %v14849_v63 = vld [vmem:[#allocation2 + $0x1b20] sm:$0xff]  }
 0x385   :  { %13676 = vmatprep.subr.bf16.mxu1 %v14812_v1  ;;  %v14850_v0 = vld [vmem:[#allocation2 + $0x1ba0] sm:$0xff]   ;;  %v14851_v1 = vld [vmem:[#allocation2 + $0x1b68] sm:$0xff]  }
 0x387   :  { %13655 = vmatpush3.bf16.msra.mxu0 %v14813_v2  ;;  %v14852_v2 = vld [vmem:[#allocation2 + $0x1be8] sm:$0xff]  }
 0x388   :  { %13656 = vmatprep.subr.bf16.mxu0 %v14815_v4  ;;  %13677 = vmatpush3.bf16.msra.mxu1 %v14814_v3  ;;  %v14853_v4 = vld [vmem:[#allocation2 + $0x1b28] sm:$0xff]  }
 0x389   :  { %13678 = vmatprep.subr.bf16.mxu1 %v14816_v5 }
 0x38b   :  { %13657 = vmatpush3.bf16.msra.mxu0 %v14817_v6  ;;  %v14854_v6 = vld [vmem:[#allocation2 + $0x1ba8] sm:$0xff]  }
 0x38c   :  { %13658 = vmatprep.subr.bf16.mxu0 %v14819_v8  ;;  %13679 = vmatpush3.bf16.msra.mxu1 %v14818_v7 }
 0x38d   :  { %v13356_v10 = vpop.f32.mrb[76].mxu0  ;;  %13680 = vmatprep.subr.bf16.mxu1 %v14820_v9 }
 0x38e   :  { %v13357_v12 = vpop.f32.mrb[77].mxu0  ;;  %v13378_v14 = vpop.f32.mrb[76].mxu1 }
 0x38f   :  { %v13358_v15 = vadd.f32 %v13357_v12, %v13356_v10  ;;  %v13359_v16 = vpop.f32.mrb[78].mxu0  ;;  %v13379_v17 = vpop.f32.mrb[77].mxu1  ;;  %13659 = vmatpush3.bf16.msra.mxu0 %v14821_v11  ;;  %v14855_v10 = vld [vmem:[#allocation2 + $0x1b70] sm:$0xff]  }
 0x390   :  { %v13360_v19 = vpop.f32.mrb[79].mxu0  ;;  %v13380_v22 = vadd.f32 %v13379_v17, %v13378_v14  ;;  %v13381_v23 = vpop.f32.mrb[78].mxu1  ;;  %13660 = vmatprep.subr.bf16.mxu0 %v14823_v13  ;;  %13681 = vmatpush3.bf16.msra.mxu1 %v14822_v18  ;;  %v14856_v11 = vld [vmem:[#allocation2 + $0x1bf0] sm:$0xff]  }
 0x391   :  { %v10472_v21 = vadd.f32 %v13358_v15, %v15374_v45  ;;  %v13382_v25 = vpop.f32.mrb[79].mxu1  ;;  %13682 = vmatprep.subr.bf16.mxu1 %v14824_v20  ;;  %v2764_v45 = vcombine.high %v2742_v38, %v2742_v38  ;;  %v14857_v17 = vld [vmem:[#allocation2 + $0x1b30] sm:$0xff]   ;;  %v14861_v23 = vld [vmem:[#allocation2 + $0x1b38] sm:$0xff]  }
 0x392   :  { %v14858_v19 = vld [vmem:[#allocation2 + $0x1bb0] sm:$0xff]   ;;  %v2749_v25 = vrot.slane %v15387_v40, %v15138_v35  ;;  %v14876_v40 = vld [vmem:[#allocation2 + $0x1c58] sm:$0xff]  }
 0x393   :  { %v15379_v27 = vadd.f32 %v13380_v22, %v10472_v21  ;;  %13661 = vmatpush3.bf16.msra.mxu0 %v14825_v24  ;;  %v14859_v21 = vld [vmem:[#allocation2 + $0x1b78] sm:$0xff]  }
 0x394   :  { %13662 = vmatprep.subr.bf16.mxu0 %v14827_v26  ;;  %13683 = vmatpush3.bf16.msra.mxu1 %v14826_v28  ;;  %v14860_v22 = vld [vmem:[#allocation2 + $0x1bf8] sm:$0xff]   ;;  %v14864_v26 = vld [vmem:[#allocation2 + $0x1c40] sm:$0xff]  }
 0x395   :  { %13684 = vmatprep.subr.bf16.mxu1 %v14828_v29  ;;  %v14862_v24 = vld [vmem:[#allocation2 + $0x1bb8] sm:$0xff]   ;;  %v14866_v28 = vld [vmem:[#allocation2 + $0x1c00] sm:$0xff]  }
 0x396   :  { %v14867_v29 = vld [vmem:[#allocation2 + $0x1c80] sm:$0xff]  }
 0x397   :  { %13663 = vmatpush3.bf16.msra.mxu0 %v14829_v30  ;;  %v2765_v30 = vcombine.high %v2749_v25, %v2749_v25 }
 0x398   :  { %13692 = vmatprep.subr.bf16.mxu0 %v14831_v33  ;;  %13685 = vmatpush3.bf16.msra.mxu1 %v14830_v36  ;;  %v14870_v33 = vld [vmem:[#allocation2 + $0x1c08] sm:$0xff]   ;;  %v14872_v36 = vld [vmem:[#allocation2 + $0x1c50] sm:$0xff]  }
 0x399   :  { %13714 = vmatprep.subr.bf16.mxu1 %v14832_v39  ;;  %v14875_v39 = vld [vmem:[#allocation2 + $0x1c90] sm:$0xff]  }
 0x39a   :  { %11030 = vmatmul.mubr.bf16.vlgmr.msra.gmra.mrb[104].mxu0 %v2742_v38  ;;  %v14874_v38 = vld [vmem:[#allocation2 + $0x1c10] sm:$0xff]  }
 0x39b   :  { %13693 = vmatpush3.bf16.msra.mxu0 %v14833_v41  ;;  %11070 = vmatmul.mubr.bf16.vlgmr.msra.gmra.mrb[104].mxu1 %v2764_v45  ;;  %v14877_v41 = vld [vmem:[#allocation2 + $0x1cd8] sm:$0xff]   ;;  %v14881_v45 = vld [vmem:[#allocation2 + $0x1ce0] sm:$0xff]  }
 0x39c   :  { %13694 = vmatprep.subr.bf16.mxu0 %v14835_v46  ;;  %13715 = vmatpush3.bf16.msra.mxu1 %v14834_v43  ;;  %v14879_v43 = vld [vmem:[#allocation2 + $0x1c98] sm:$0xff]   ;;  %v14882_v46 = vld [vmem:[#allocation2 + $0x1c20] sm:$0xff]  }
 0x39d   :  { %11109 = vmatprep.mubr.bf16.mxu0 %v2763_v49  ;;  %13716 = vmatprep.subr.bf16.mxu1 %v14836_v48  ;;  %v14884_v48 = vld [vmem:[#allocation2 + $0x1c68] sm:$0xff]  }
 0x39e   :  { %11149 = vmatprep.mubr.bf16.mxu1 %v2767_v52  ;;  %v14885_v49 = vld [vmem:[#allocation2 + $0x1ce8] sm:$0xff]  }
 0x39f   :  { %13695 = vmatpush3.bf16.msra.mxu0 %v14837_v50 }
 0x3a0   :  { %13696 = vmatprep.subr.bf16.mxu0 %v14839_v53  ;;  %13717 = vmatpush3.bf16.msra.mxu1 %v14838_v51  ;;  %v14886_v51 = vld [vmem:[#allocation2 + $0x1c28] sm:$0xff]   ;;  %v14888_v53 = vld [vmem:[#allocation2 + $0x1c70] sm:$0xff]  }
 0x3a1   :  { %13718 = vmatprep.subr.bf16.mxu1 %v14840_v54 }
 0x3a3   :  { %13697 = vmatpush3.bf16.msra.mxu0 %v14841_v55 }
 0x3a4   :  { %13698 = vmatprep.subr.bf16.mxu0 %v14843_v57  ;;  %13719 = vmatpush3.bf16.msra.mxu1 %v14842_v56 }
 0x3a5   :  { %13720 = vmatprep.subr.bf16.mxu1 %v14844_v58  ;;  %v14887_v58 = vld [vmem:[#allocation2 + $0x1ca8] sm:$0xff]  }
 0x3a7   :  { %13699 = vmatpush3.bf16.msra.mxu0 %v14845_v59 }
 0x3a8   :  { %13700 = vmatprep.subr.bf16.mxu0 %v14847_v61  ;;  %13721 = vmatpush3.bf16.msra.mxu1 %v14846_v60  ;;  %v14889_v60 = vld [vmem:[#allocation2 + $0x1cf0] sm:$0xff]  }
 0x3a9   :  { %13722 = vmatprep.subr.bf16.mxu1 %v14848_v62 }
 0x3ab   :  { %13701 = vmatpush3.bf16.msra.mxu0 %v14849_v63 }
 0x3ac   :  { %13702 = vmatprep.subr.bf16.mxu0 %v14851_v1  ;;  %13723 = vmatpush3.bf16.msra.mxu1 %v14850_v0  ;;  %v14890_v0 = vld [vmem:[#allocation2 + $0x1c30] sm:$0xff]  }
 0x3ad   :  { %v13400_v3 = vpop.f32.mrb[80].mxu0  ;;  %13724 = vmatprep.subr.bf16.mxu1 %v14852_v2  ;;  %v14892_v2 = vld [vmem:[#allocation2 + $0x1c78] sm:$0xff]  }
 0x3ae   :  { %v13401_v5 = vpop.f32.mrb[81].mxu0  ;;  %v13422_v7 = vpop.f32.mrb[80].mxu1 }
 0x3af   :  { %v13402_v8 = vadd.f32 %v13401_v5, %v13400_v3  ;;  %v13403_v9 = vpop.f32.mrb[82].mxu0  ;;  %v13423_v12 = vpop.f32.mrb[81].mxu1  ;;  %13703 = vmatpush3.bf16.msra.mxu0 %v14853_v4  ;;  %v14891_v4 = vld [vmem:[#allocation2 + $0x1cb0] sm:$0xff]   ;;  %v14893_v5 = vld [vmem:[#allocation2 + $0x1cf8] sm:$0xff]  }
 0x3b0   :  { %v13404_v13 = vpop.f32.mrb[83].mxu0  ;;  %v13424_v15 = vadd.f32 %v13423_v12, %v13422_v7  ;;  %v13425_v16 = vpop.f32.mrb[82].mxu1  ;;  %13704 = vmatprep.subr.bf16.mxu0 %v14855_v10  ;;  %13725 = vmatpush3.bf16.msra.mxu1 %v14854_v6  ;;  %v14894_v6 = vld [vmem:[#allocation2 + $0x1c38] sm:$0xff]   ;;  %v73_v7 = vld [vmem:[%s15484_s0 + $0x70] sm:$0xff]  ;;  %v14896_v9 = vld [vmem:[#allocation2 + $0x1d40] sm:$0xff]  }
 0x3b1   :  { %v10552_v14 = vadd.f32 %v13402_v8, %v15379_v27  ;;  %v13426_v18 = vpop.f32.mrb[83].mxu1  ;;  %13726 = vmatprep.subr.bf16.mxu1 %v14856_v11  ;;  %v14865_v27 = vld [vmem:[#allocation2 + $0x1cc0] sm:$0xff]   ;;  %v2775_v8 = vrot.slane %v73_v7, %v15138_v35  ;;  %v2768_v10 = vcombine.high %v73_v7, %v73_v7  ;;  %v14895_v11 = vld [vmem:[#allocation2 + $0x1cb8] sm:$0xff]   ;;  %v14933_v7 = vld [vmem:[#allocation2 + $0x1e48] sm:$0xff]  }
 0x3b2   :  { %v14898_v16 = vld [vmem:[#allocation2 + $0x1d00] sm:$0xff]  }
 0x3b3   :  { %v15394_v20 = vadd.f32 %v13424_v15, %v10552_v14  ;;  %13705 = vmatpush3.bf16.msra.mxu0 %v14857_v17  ;;  %v2783_v12 = vcombine.high %v2775_v8, %v2775_v8  ;;  %v2791_v13 = vrot.slane %v2775_v8, %v15138_v35  ;;  %v14897_v14 = vld [vmem:[#allocation2 + $0x1dc0] sm:$0xff]   ;;  %v15407_v15 = vrot.slane %v2768_v10, %v15138_v35  ;;  %v14934_v8 = vld [vmem:[#allocation2 + $0x1ec8] sm:$0xff]  }
 0x3b4   :  { %13706 = vmatprep.subr.bf16.mxu0 %v14859_v21  ;;  %13727 = vmatpush3.bf16.msra.mxu1 %v14858_v19  ;;  %v14899_v18 = vld [vmem:[#allocation2 + $0x1d80] sm:$0xff]   ;;  %v14900_v21 = vld [vmem:[#allocation2 + $0x1d48] sm:$0xff]  }
 0x3b5   :  { %13728 = vmatprep.subr.bf16.mxu1 %v14860_v22  ;;  %v2805_v17 = vrot.slane %v2783_v12, %v15138_v35  ;;  %v2784_v19 = vcombine.high %v15407_v15, %v15407_v15  ;;  %v14936_v10 = vld [vmem:[#allocation2 + $0x1e88] sm:$0xff]   ;;  %v14938_v12 = vld [vmem:[#allocation2 + $0x1ed0] sm:$0xff]  }
 0x3b7   :  { %13707 = vmatpush3.bf16.msra.mxu0 %v14861_v23  ;;  %v2815_v22 = vcombine.high %v2805_v17, %v2805_v17  ;;  %v14901_v23 = vld [vmem:[#allocation2 + $0x1dc8] sm:$0xff]  }
 0x3b8   :  { %13736 = vmatprep.subr.bf16.mxu0 %v14864_v26  ;;  %13729 = vmatpush3.bf16.msra.mxu1 %v14862_v24  ;;  %v2812_v24 = vrot.slane %v2784_v19, %v15138_v35  ;;  %v14903_v26 = vld [vmem:[#allocation2 + $0x1d88] sm:$0xff]   ;;  %v14945_v19 = vld [vmem:[#allocation2 + $0x1e60] sm:$0xff]  }
 0x3b9   :  { %13758 = vmatprep.subr.bf16.mxu1 %v14865_v27 }
 0x3ba   :  { %11110 = vmatmul.mubr.bf16.vlgmr.msra.gmra.mrb[108].mxu0 %v2749_v25  ;;  %v14902_v25 = vld [vmem:[#allocation2 + $0x1d08] sm:$0xff]   ;;  %v2816_v27 = vcombine.high %v2812_v24, %v2812_v24 }
 0x3bb   :  { %13737 = vmatpush3.bf16.msra.mxu0 %v14866_v28  ;;  %11150 = vmatmul.mubr.bf16.vlgmr.msra.gmra.mrb[108].mxu1 %v2765_v30  ;;  %v14904_v28 = vld [vmem:[#allocation2 + $0x1d50] sm:$0xff]  }
 0x3bc   :  { %13738 = vmatprep.subr.bf16.mxu0 %v14868_v31  ;;  %13759 = vmatpush3.bf16.msra.mxu1 %v14867_v29  ;;  %v14905_v29 = vld [vmem:[#allocation2 + $0x1dd0] sm:$0xff]  }
 0x3bd   :  { %13760 = vmatprep.subr.bf16.mxu1 %v14869_v32  ;;  %11189 = vmatprep.mubr.bf16.mxu0 %v2805_v17  ;;  %v14906_v30 = vld [vmem:[#allocation2 + $0x1d10] sm:$0xff]   ;;  %v14908_v32 = vld [vmem:[#allocation2 + $0x1d58] sm:$0xff]  }
 0x3be   :  { %11229 = vmatprep.mubr.bf16.mxu1 %v2815_v22  ;;  %v14907_v31 = vld [vmem:[#allocation2 + $0x1d90] sm:$0xff]   ;;  %v14943_v17 = vld [vmem:[#allocation2 + $0x1e18] sm:$0xff]   ;;  %v14948_v22 = vld [vmem:[#allocation2 + $0x1ea0] sm:$0xff]  }
 0x3bf   :  { %13739 = vmatpush3.bf16.msra.mxu0 %v14870_v33  ;;  %v14909_v33 = vld [vmem:[#allocation2 + $0x1dd8] sm:$0xff]  }
 0x3c0   :  { %13740 = vmatprep.subr.bf16.mxu0 %v14872_v36  ;;  %13761 = vmatpush3.bf16.msra.mxu1 %v14871_v34  ;;  %v14910_v34 = vld [vmem:[#allocation2 + $0x1d18] sm:$0xff]  }
 0x3c1   :  { %13762 = vmatprep.subr.bf16.mxu1 %v14873_v37  ;;  %v14911_v36 = vld [vmem:[#allocation2 + $0x1d98] sm:$0xff]   ;;  %v14912_v37 = vld [vmem:[#allocation2 + $0x1d60] sm:$0xff]  }
 0x3c3   :  { %13741 = vmatpush3.bf16.msra.mxu0 %v14874_v38  ;;  %v14913_v38 = vld [vmem:[#allocation2 + $0x1de0] sm:$0xff]  }
 0x3c4   :  { %13742 = vmatprep.subr.bf16.mxu0 %v14876_v40  ;;  %13763 = vmatpush3.bf16.msra.mxu1 %v14875_v39  ;;  %v14914_v39 = vld [vmem:[#allocation2 + $0x1d20] sm:$0xff]  }
 0x3c5   :  { %13764 = vmatprep.subr.bf16.mxu1 %v14877_v41  ;;  %v14915_v40 = vld [vmem:[#allocation2 + $0x1da0] sm:$0xff]   ;;  %v14916_v41 = vld [vmem:[#allocation2 + $0x1d68] sm:$0xff]  }
 0x3c7   :  { %13743 = vmatpush3.bf16.msra.mxu0 %v14878_v42  ;;  %v14917_v42 = vld [vmem:[#allocation2 + $0x1de8] sm:$0xff]  }
 0x3c8   :  { %13744 = vmatprep.subr.bf16.mxu0 %v14880_v44  ;;  %13765 = vmatpush3.bf16.msra.mxu1 %v14879_v43  ;;  %v14918_v44 = vld [vmem:[#allocation2 + $0x1d28] sm:$0xff]  }
 0x3c9   :  { %13766 = vmatprep.subr.bf16.mxu1 %v14881_v45 }
 0x3cb   :  { %13745 = vmatpush3.bf16.msra.mxu0 %v14882_v46  ;;  %v14919_v46 = vld [vmem:[#allocation2 + $0x1da8] sm:$0xff]  }
 0x3cc   :  { %13746 = vmatprep.subr.bf16.mxu0 %v14884_v48  ;;  %13767 = vmatpush3.bf16.msra.mxu1 %v14883_v47 }
 0x3cd   :  { %v13444_v50 = vpop.f32.mrb[84].mxu0  ;;  %13768 = vmatprep.subr.bf16.mxu1 %v14885_v49 }
 0x3ce   :  { %v13445_v52 = vpop.f32.mrb[85].mxu0  ;;  %v13466_v54 = vpop.f32.mrb[84].mxu1 }
 0x3cf   :  { %v13446_v55 = vadd.f32 %v13445_v52, %v13444_v50  ;;  %v13447_v56 = vpop.f32.mrb[86].mxu0  ;;  %v13467_v57 = vpop.f32.mrb[85].mxu1  ;;  %13747 = vmatpush3.bf16.msra.mxu0 %v14886_v51  ;;  %v14920_v50 = vld [vmem:[#allocation2 + $0x1d70] sm:$0xff]  }
 0x3d0   :  { %v13448_v59 = vpop.f32.mrb[87].mxu0  ;;  %v13468_v62 = vadd.f32 %v13467_v57, %v13466_v54  ;;  %v13469_v63 = vpop.f32.mrb[86].mxu1  ;;  %13748 = vmatprep.subr.bf16.mxu0 %v14888_v53  ;;  %13769 = vmatpush3.bf16.msra.mxu1 %v14887_v58  ;;  %v14921_v51 = vld [vmem:[#allocation2 + $0x1df0] sm:$0xff]  }
 0x3d1   :  { %v10632_v61 = vadd.f32 %v13446_v55, %v15394_v20  ;;  %v13470_v1 = vpop.f32.mrb[87].mxu1  ;;  %13770 = vmatprep.subr.bf16.mxu1 %v14889_v60  ;;  %v2813_v20 = vcombine.high %v2791_v13, %v2791_v13  ;;  %v14922_v57 = vld [vmem:[#allocation2 + $0x1d30] sm:$0xff]   ;;  %v14926_v63 = vld [vmem:[#allocation2 + $0x1d38] sm:$0xff]  }
 0x3d2   :  { %v14923_v59 = vld [vmem:[#allocation2 + $0x1db0] sm:$0xff]   ;;  %v2798_v1 = vrot.slane %v15407_v15, %v15138_v35  ;;  %v14941_v15 = vld [vmem:[#allocation2 + $0x1e58] sm:$0xff]  }
 0x3d3   :  { %v15399_v3 = vadd.f32 %v13468_v62, %v10632_v61  ;;  %13749 = vmatpush3.bf16.msra.mxu0 %v14890_v0  ;;  %v14924_v61 = vld [vmem:[#allocation2 + $0x1d78] sm:$0xff]  }
 0x3d4   :  { %13750 = vmatprep.subr.bf16.mxu0 %v14892_v2  ;;  %13771 = vmatpush3.bf16.msra.mxu1 %v14891_v4  ;;  %v14925_v62 = vld [vmem:[#allocation2 + $0x1df8] sm:$0xff]   ;;  %v14929_v2 = vld [vmem:[#allocation2 + $0x1e40] sm:$0xff]  }
 0x3d5   :  { %13772 = vmatprep.subr.bf16.mxu1 %v14893_v5  ;;  %v14927_v0 = vld [vmem:[#allocation2 + $0x1db8] sm:$0xff]   ;;  %v14931_v4 = vld [vmem:[#allocation2 + $0x1e00] sm:$0xff]  }
 0x3d6   :  { %v14932_v5 = vld [vmem:[#allocation2 + $0x1e80] sm:$0xff]  }
 0x3d7   :  { %13751 = vmatpush3.bf16.msra.mxu0 %v14894_v6  ;;  %v2814_v6 = vcombine.high %v2798_v1, %v2798_v1 }
 0x3d8   :  { %13780 = vmatprep.subr.bf16.mxu0 %v14896_v9  ;;  %13773 = vmatpush3.bf16.msra.mxu1 %v14895_v11  ;;  %v14935_v9 = vld [vmem:[#allocation2 + $0x1e08] sm:$0xff]   ;;  %v14937_v11 = vld [vmem:[#allocation2 + $0x1e50] sm:$0xff]  }
 0x3d9   :  { %13802 = vmatprep.subr.bf16.mxu1 %v14897_v14  ;;  %v14940_v14 = vld [vmem:[#allocation2 + $0x1e90] sm:$0xff]  }
 0x3da   :  { %11190 = vmatmul.mubr.bf16.vlgmr.msra.gmra.mrb[112].mxu0 %v2791_v13  ;;  %v14939_v13 = vld [vmem:[#allocation2 + $0x1e10] sm:$0xff]  }
 0x3db   :  { %13781 = vmatpush3.bf16.msra.mxu0 %v14898_v16  ;;  %11230 = vmatmul.mubr.bf16.vlgmr.msra.gmra.mrb[112].mxu1 %v2813_v20  ;;  %v14942_v16 = vld [vmem:[#allocation2 + $0x1ed8] sm:$0xff]   ;;  %v14946_v20 = vld [vmem:[#allocation2 + $0x1ee0] sm:$0xff]  }
 0x3dc   :  { %13782 = vmatprep.subr.bf16.mxu0 %v14900_v21  ;;  %13803 = vmatpush3.bf16.msra.mxu1 %v14899_v18  ;;  %v14944_v18 = vld [vmem:[#allocation2 + $0x1e98] sm:$0xff]   ;;  %v14947_v21 = vld [vmem:[#allocation2 + $0x1e20] sm:$0xff]  }
 0x3dd   :  { %11269 = vmatprep.mubr.bf16.mxu0 %v2812_v24  ;;  %13804 = vmatprep.subr.bf16.mxu1 %v14901_v23  ;;  %v14949_v23 = vld [vmem:[#allocation2 + $0x1e68] sm:$0xff]  }
 0x3de   :  { %11309 = vmatprep.mubr.bf16.mxu1 %v2816_v27  ;;  %v14950_v24 = vld [vmem:[#allocation2 + $0x1ee8] sm:$0xff]  }
 0x3df   :  { %13783 = vmatpush3.bf16.msra.mxu0 %v14902_v25 }
 0x3e0   :  { %13784 = vmatprep.subr.bf16.mxu0 %v14904_v28  ;;  %13805 = vmatpush3.bf16.msra.mxu1 %v14903_v26  ;;  %v14951_v26 = vld [vmem:[#allocation2 + $0x1e28] sm:$0xff]   ;;  %v14953_v28 = vld [vmem:[#allocation2 + $0x1e70] sm:$0xff]  }
 0x3e1   :  { %13806 = vmatprep.subr.bf16.mxu1 %v14905_v29 }
 0x3e3   :  { %13785 = vmatpush3.bf16.msra.mxu0 %v14906_v30 }
 0x3e4   :  { %13786 = vmatprep.subr.bf16.mxu0 %v14908_v32  ;;  %13807 = vmatpush3.bf16.msra.mxu1 %v14907_v31 }
 0x3e5   :  { %13808 = vmatprep.subr.bf16.mxu1 %v14909_v33  ;;  %v14952_v33 = vld [vmem:[#allocation2 + $0x1ea8] sm:$0xff]  }
 0x3e7   :  { %13787 = vmatpush3.bf16.msra.mxu0 %v14910_v34 }
 0x3e8   :  { %13788 = vmatprep.subr.bf16.mxu0 %v14912_v37  ;;  %13809 = vmatpush3.bf16.msra.mxu1 %v14911_v36  ;;  %v14954_v36 = vld [vmem:[#allocation2 + $0x1ef0] sm:$0xff]  }
 0x3e9   :  { %13810 = vmatprep.subr.bf16.mxu1 %v14913_v38 }
 0x3eb   :  { %13789 = vmatpush3.bf16.msra.mxu0 %v14914_v39 }
 0x3ec   :  { %13790 = vmatprep.subr.bf16.mxu0 %v14916_v41  ;;  %13811 = vmatpush3.bf16.msra.mxu1 %v14915_v40  ;;  %v14955_v40 = vld [vmem:[#allocation2 + $0x1e30] sm:$0xff]  }
 0x3ed   :  { %v13488_v43 = vpop.f32.mrb[88].mxu0  ;;  %13812 = vmatprep.subr.bf16.mxu1 %v14917_v42  ;;  %v14957_v42 = vld [vmem:[#allocation2 + $0x1e78] sm:$0xff]  }
 0x3ee   :  { %v13489_v45 = vpop.f32.mrb[89].mxu0  ;;  %v13510_v47 = vpop.f32.mrb[88].mxu1 }
 0x3ef   :  { %v13490_v48 = vadd.f32 %v13489_v45, %v13488_v43  ;;  %v13491_v49 = vpop.f32.mrb[90].mxu0  ;;  %v13511_v52 = vpop.f32.mrb[89].mxu1  ;;  %13791 = vmatpush3.bf16.msra.mxu0 %v14918_v44  ;;  %v14956_v44 = vld [vmem:[#allocation2 + $0x1eb0] sm:$0xff]   ;;  %v14958_v45 = vld [vmem:[#allocation2 + $0x1ef8] sm:$0xff]  }
 0x3f0   :  { %v13492_v53 = vpop.f32.mrb[91].mxu0  ;;  %v13512_v55 = vadd.f32 %v13511_v52, %v13510_v47  ;;  %v13513_v56 = vpop.f32.mrb[90].mxu1  ;;  %13792 = vmatprep.subr.bf16.mxu0 %v14920_v50  ;;  %13813 = vmatpush3.bf16.msra.mxu1 %v14919_v46  ;;  %v14959_v46 = vld [vmem:[#allocation2 + $0x1e38] sm:$0xff]  }
 0x3f1   :  { %v10712_v54 = vadd.f32 %v13490_v48, %v15399_v3  ;;  %v13514_v58 = vpop.f32.mrb[91].mxu1  ;;  %13814 = vmatprep.subr.bf16.mxu1 %v14921_v51  ;;  %v14930_v3 = vld [vmem:[#allocation2 + $0x1ec0] sm:$0xff]   ;;  %v11510_v47 = vld.sshfl [vmem:[%s15484_s0 + $0x78] sm:$0x33 pattern:$0x75316420] }
 0x3f2   :  { %v2824_v48 = vcombine.high %v11510_v47, %v11510_v47  ;;  %v2831_v49 = vrot.slane %v11510_v47, %v15138_v35  ;;  %v14960_v50 = vld [vmem:[#allocation2 + $0x1eb8] sm:$0xff]  }
 0x3f3   :  { %v15414_v60 = vadd.f32 %v13512_v55, %v10712_v54  ;;  %13793 = vmatpush3.bf16.msra.mxu0 %v14922_v57 }
 0x3f4   :  { %13794 = vmatprep.subr.bf16.mxu0 %v14924_v61  ;;  %13815 = vmatpush3.bf16.msra.mxu1 %v14923_v59  ;;  %v2838_v51 = vrot.slane %v2824_v48, %v15138_v35  ;;  %v2839_v53 = vcombine.high %v2831_v49, %v2831_v49  ;;  %v11412_v48 = vld [vmem:[%s15487_s3 + $0x70] sm:$0xff] }
 0x3f5   :  { %13816 = vmatprep.subr.bf16.mxu1 %v14925_v62 }
 0x3f6   :  { %v2840_v52 = vcombine.high %v2838_v51, %v2838_v51 }
 0x3f7   :  { %13795 = vmatpush3.bf16.msra.mxu0 %v14926_v63 }
 0x3f8   :  { %13824 = vmatprep.subr.bf16.mxu0 %v14929_v2  ;;  %13817 = vmatpush3.bf16.msra.mxu1 %v14927_v0 }
 0x3f9   :  { %13846 = vmatprep.subr.bf16.mxu1 %v14930_v3 }
 0x3fa   :  { %11270 = vmatmul.mubr.bf16.vlgmr.msra.gmra.mrb[116].mxu0 %v2798_v1 }
 0x3fb   :  { %13825 = vmatpush3.bf16.msra.mxu0 %v14931_v4  ;;  %11310 = vmatmul.mubr.bf16.vlgmr.msra.gmra.mrb[116].mxu1 %v2814_v6 }
 0x3fc   :  { %13826 = vmatprep.subr.bf16.mxu0 %v14933_v7  ;;  %13847 = vmatpush3.bf16.msra.mxu1 %v14932_v5 }
 0x3fd   :  { %13848 = vmatprep.subr.bf16.mxu1 %v14934_v8  ;;  %11349 = vmatprep.mubr.bf16.mxu0 %v2838_v51  ;;  %v15063_v51 = vmov 0.0  }
 0x3fe   :  { %11389 = vmatprep.mubr.bf16.mxu1 %v2840_v52 }
 0x3ff   :  { %13827 = vmatpush3.bf16.msra.mxu0 %v14935_v9 }
 0x400   :  { %13828 = vmatprep.subr.bf16.mxu0 %v14937_v11  ;;  %13849 = vmatpush3.bf16.msra.mxu1 %v14936_v10 }
 0x401   :  { %13850 = vmatprep.subr.bf16.mxu1 %v14938_v12 }
 0x403   :  { %13829 = vmatpush3.bf16.msra.mxu0 %v14939_v13  ;;  %v11398_v13 = vld [vmem:[%s15487_s3] sm:$0xff] }
 0x404   :  { %13830 = vmatprep.subr.bf16.mxu0 %v14941_v15  ;;  %13851 = vmatpush3.bf16.msra.mxu1 %v14940_v14  ;;  %v11399_v14 = vld [vmem:[%s15487_s3 + $0x8] sm:$0xff]  ;;  %v11400_v15 = vld [vmem:[%s15487_s3 + $0x10] sm:$0xff] }
 0x405   :  { %13852 = vmatprep.subr.bf16.mxu1 %v14942_v16  ;;  %v15061_v16 = vmov 0.0|0.0  }
 0x407   :  { %13831 = vmatpush3.bf16.msra.mxu0 %v14943_v17  ;;  %v13921_v17 = vpack.c.bf16 %v11399_v14, %v11398_v13 }
 0x408   :  { %13832 = vmatprep.subr.bf16.mxu0 %v14945_v19  ;;  %13853 = vmatpush3.bf16.msra.mxu1 %v14944_v18  ;;  %v11401_v18 = vld [vmem:[%s15487_s3 + $0x18] sm:$0xff] }
 0x409   :  { %13854 = vmatprep.subr.bf16.mxu1 %v14946_v20  ;;  %v13924_v19 = vpack.c.bf16 %v11401_v18, %v11400_v15  ;;  %v11402_v20 = vld [vmem:[%s15487_s3 + $0x20] sm:$0xff] }
 0x40b   :  { %13833 = vmatpush3.bf16.msra.mxu0 %v14947_v21  ;;  %v11403_v21 = vld [vmem:[%s15487_s3 + $0x28] sm:$0xff] }
 0x40c   :  { %13834 = vmatprep.subr.bf16.mxu0 %v14949_v23  ;;  %13855 = vmatpush3.bf16.msra.mxu1 %v14948_v22  ;;  %v13927_v22 = vpack.c.bf16 %v11403_v21, %v11402_v20  ;;  %v11404_v23 = vld [vmem:[%s15487_s3 + $0x30] sm:$0xff] }
 0x40d   :  { %v13532_v25 = vpop.f32.mrb[92].mxu0  ;;  %13856 = vmatprep.subr.bf16.mxu1 %v14950_v24  ;;  %v11405_v24 = vld [vmem:[%s15487_s3 + $0x38] sm:$0xff] }
 0x40e   :  { %v13533_v27 = vpop.f32.mrb[93].mxu0  ;;  %v13554_v29 = vpop.f32.mrb[92].mxu1 }
 0x40f   :  { %v13534_v30 = vadd.f32 %v13533_v27, %v13532_v25  ;;  %v13535_v31 = vpop.f32.mrb[94].mxu0  ;;  %v13555_v32 = vpop.f32.mrb[93].mxu1  ;;  %13835 = vmatpush3.bf16.msra.mxu0 %v14951_v26  ;;  %v13930_v25 = vpack.c.bf16 %v11405_v24, %v11404_v23  ;;  %v11406_v26 = vld [vmem:[%s15487_s3 + $0x40] sm:$0xff]  ;;  %v11407_v27 = vld [vmem:[%s15487_s3 + $0x48] sm:$0xff] }
 0x410   :  { %v13536_v34 = vpop.f32.mrb[95].mxu0  ;;  %v13556_v38 = vadd.f32 %v13555_v32, %v13554_v29  ;;  %v13557_v39 = vpop.f32.mrb[94].mxu1  ;;  %13836 = vmatprep.subr.bf16.mxu0 %v14953_v28  ;;  %13857 = vmatpush3.bf16.msra.mxu1 %v14952_v33  ;;  %v13933_v28 = vpack.c.bf16 %v11407_v27, %v11406_v26  ;;  %v11408_v29 = vld [vmem:[%s15487_s3 + $0x50] sm:$0xff] }
 0x411   :  { %v10792_v37 = vadd.f32 %v13534_v30, %v15414_v60  ;;  %v13558_v41 = vpop.f32.mrb[95].mxu1  ;;  %13858 = vmatprep.subr.bf16.mxu1 %v14954_v36  ;;  %v11409_v30 = vld [vmem:[%s15487_s3 + $0x58] sm:$0xff] }
 0x412   :  { %v13936_v31 = vpack.c.bf16 %v11409_v30, %v11408_v29  ;;  %v11411_v41 = vld [vmem:[%s15487_s3 + $0x68] sm:$0xff] }
 0x413   :  { %v10832_v43 = vadd.f32 %v13556_v38, %v10792_v37  ;;  %13837 = vmatpush3.bf16.msra.mxu0 %v14955_v40  ;;  %v11410_v40 = vld [vmem:[%s15487_s3 + $0x60] sm:$0xff] }
 0x414   :  { %13838 = vmatprep.subr.bf16.mxu0 %v14957_v42  ;;  %13859 = vmatpush3.bf16.msra.mxu1 %v14956_v44 }
 0x415   :  { %13860 = vmatprep.subr.bf16.mxu1 %v14958_v45  ;;  %v13939_v45 = vpack.c.bf16 %v11411_v41, %v11410_v40 }
 0x417   :  { %13839 = vmatpush3.bf16.msra.mxu0 %v14959_v46 }
 0x418   :  { %13861 = vmatpush3.bf16.msra.mxu1 %v14960_v50  ;;  %13920 = vmatprep.subr.bf16.mxu0 %v15061_v16 }
 0x41a   :  { %11350 = vmatmul.mubr.bf16.vlgmr.msra.gmra.mrb[120].mxu0 %v2831_v49  ;;  %v11413_v49 = vld [vmem:[%s15487_s3 + $0x78] sm:$0xff]  ;;  %s15064_s3 = smov [#allocation8]  }
 0x41b   :  { %11390 = vmatmul.mubr.bf16.vlgmr.msra.gmra.mrb[120].mxu1 %v2839_v53  ;;  %13922 = vmatpush3.bf16.msra.mxu0 %v13921_v17  ;;  %v13942_v50 = vpack.c.bf16 %v11413_v49, %v11412_v48  ;;  %s11499_s11 = sshll.u32 %s15064_s3, 4  ;;  %s11500_s11 = int_to_ptr.vmem [resolvable:$true] %s11499_s11 }
 0x41c   :  { %13923 = vmatprep.subr.bf16.mxu0 %v15061_v16  ;;  %13917 = vmatprep.mubr.msk.f32.mxu0 %vm15062_vm0, %v15063_v51  ;;  %s15027_s12 = scalar_lea.vmem %s11500_s11, 32  ;;  %p15032_p11 = scmp.lt.s32.totalorder %s11500_s11, %s11500_s11 }
 0x41d   :  { %p15028_p10 = scmp.ne.s32.totalorder %s11500_s11, %s15027_s12  ;;  %p15033_p12 = scmp.lt.s32.totalorder %s15027_s12, %s15027_s12 }
 0x41f   :  { %13925 = vmatpush3.bf16.msra.mxu0 %v13924_v19  ;;  %p15034_p13 = por %p15033_p12, %p15032_p11 }
 0x420   :  { %13926 = vmatprep.subr.bf16.mxu0 %v15061_v16 }
 0x421   :  { %p15035_p0 = pnand %p15034_p13, %p15028_p10 }
 0x423   :  { %13928 = vmatpush3.bf16.msra.mxu0 %v13927_v22 }
 0x424   :  { %13929 = vmatprep.subr.bf16.mxu0 %v15061_v16 }
 0x427   :  { %13931 = vmatpush3.bf16.msra.mxu0 %v13930_v25 }
 0x428   :  { %13932 = vmatprep.subr.bf16.mxu0 %v15061_v16 }
 0x42b   :  { %13934 = vmatpush3.bf16.msra.mxu0 %v13933_v28 }
 0x42c   :  { %13935 = vmatprep.subr.bf16.mxu0 %v15061_v16 }
 0x42d   :  { %v13576_v54 = vpop.f32.mrb[96].mxu0 }
 0x42e   :  { %v13577_v55 = vpop.f32.mrb[97].mxu0  ;;  %v13598_v56 = vpop.f32.mrb[96].mxu1 }
 0x42f   :  { %v13578_v57 = vadd.f32 %v13577_v55, %v13576_v54  ;;  %v13579_v58 = vpop.f32.mrb[98].mxu0  ;;  %v13599_v59 = vpop.f32.mrb[97].mxu1  ;;  %13937 = vmatpush3.bf16.msra.mxu0 %v13936_v31 }
 0x430   :  { %v13580_v60 = vpop.f32.mrb[99].mxu0  ;;  %v13600_v62 = vadd.f32 %v13599_v59, %v13598_v56  ;;  %v13601_v63 = vpop.f32.mrb[98].mxu1  ;;  %13938 = vmatprep.subr.bf16.mxu0 %v15061_v16 }
 0x431   :  { %v10872_v61 = vadd.f32 %v13578_v57, %v10832_v43  ;;  %v13602_v0 = vpop.f32.mrb[99].mxu1 }
 0x433   :  { %v10912_v35 = vadd.f32 %v13600_v62, %v10872_v61  ;;  %13940 = vmatpush3.bf16.msra.mxu0 %v13939_v45 }
 0x434   :  { %13941 = vmatprep.subr.bf16.mxu0 %v15061_v16 }
 0x437   :  { %13943 = vmatpush3.bf16.msra.mxu0 %v13942_v50 }
 0x44d   :  { %v13620_v1 = vpop.f32.mrb[100].mxu0 }
 0x44e   :  { %v13621_v2 = vpop.f32.mrb[101].mxu0  ;;  %v13642_v3 = vpop.f32.mrb[100].mxu1 }
 0x44f   :  { %v13622_v4 = vadd.f32 %v13621_v2, %v13620_v1  ;;  %v13623_v5 = vpop.f32.mrb[102].mxu0  ;;  %v13643_v6 = vpop.f32.mrb[101].mxu1 }
 0x450   :  { %v13624_v7 = vpop.f32.mrb[103].mxu0  ;;  %v13644_v9 = vadd.f32 %v13643_v6, %v13642_v3  ;;  %v13645_v10 = vpop.f32.mrb[102].mxu1 }
 0x451   :  { %v10952_v8 = vadd.f32 %v13622_v4, %v10912_v35  ;;  %v13646_v11 = vpop.f32.mrb[103].mxu1 }
 0x453   :  { %v10992_v12 = vadd.f32 %v13644_v9, %v10952_v8 }
 0x46d   :  { %v13664_v32 = vpop.f32.mrb[104].mxu0 }
 0x46e   :  { %v13665_v33 = vpop.f32.mrb[105].mxu0  ;;  %v13686_v34 = vpop.f32.mrb[104].mxu1 }
 0x46f   :  { %v13666_v36 = vadd.f32 %v13665_v33, %v13664_v32  ;;  %v13667_v37 = vpop.f32.mrb[106].mxu0  ;;  %v13687_v38 = vpop.f32.mrb[105].mxu1 }
 0x470   :  { %v13668_v39 = vpop.f32.mrb[107].mxu0  ;;  %v13688_v43 = vadd.f32 %v13687_v38, %v13686_v34  ;;  %v13689_v44 = vpop.f32.mrb[106].mxu1  ;;  %v12503_v37 = vld [vmem:[#allocation7] ss:$0 sm:$0xff] }
 0x471   :  { %v11032_v42 = vadd.f32 %v13666_v36, %v10992_v12  ;;  %v13690_v46 = vpop.f32.mrb[107].mxu1 }
 0x473   :  { %v11072_v47 = vadd.f32 %v13688_v43, %v11032_v42 }
 0x48d   :  { %v13708_v52 = vpop.f32.mrb[108].mxu0 }
 0x48e   :  { %v13709_v53 = vpop.f32.mrb[109].mxu0  ;;  %v13730_v54 = vpop.f32.mrb[108].mxu1 }
 0x48f   :  { %v13710_v55 = vadd.f32 %v13709_v53, %v13708_v52  ;;  %v13711_v56 = vpop.f32.mrb[110].mxu0  ;;  %v13731_v57 = vpop.f32.mrb[109].mxu1 }
 0x490   :  { %v13712_v58 = vpop.f32.mrb[111].mxu0  ;;  %v13732_v60 = vadd.f32 %v13731_v57, %v13730_v54  ;;  %v13733_v61 = vpop.f32.mrb[110].mxu1 }
 0x491   :  { %v11112_v59 = vadd.f32 %v13710_v55, %v11072_v47  ;;  %v13734_v62 = vpop.f32.mrb[111].mxu1 }
 0x493   :  { %v11152_v63 = vadd.f32 %v13732_v60, %v11112_v59 }
 0x4ad   :  { %v13752_v0 = vpop.f32.mrb[112].mxu0 }
 0x4ae   :  { %v13753_v35 = vpop.f32.mrb[113].mxu0  ;;  %v13774_v1 = vpop.f32.mrb[112].mxu1 }
 0x4af   :  { %v13754_v2 = vadd.f32 %v13753_v35, %v13752_v0  ;;  %v13755_v3 = vpop.f32.mrb[114].mxu0  ;;  %v13775_v4 = vpop.f32.mrb[113].mxu1 }
 0x4b0   :  { %v13756_v5 = vpop.f32.mrb[115].mxu0  ;;  %v13776_v7 = vadd.f32 %v13775_v4, %v13774_v1  ;;  %v13777_v8 = vpop.f32.mrb[114].mxu1 }
 0x4b1   :  { %v11192_v6 = vadd.f32 %v13754_v2, %v11152_v63  ;;  %v13778_v9 = vpop.f32.mrb[115].mxu1 }
 0x4b3   :  { %v11232_v10 = vadd.f32 %v13776_v7, %v11192_v6 }
 0x4cd   :  { %v13796_v11 = vpop.f32.mrb[116].mxu0 }
 0x4ce   :  { %v13797_v12 = vpop.f32.mrb[117].mxu0  ;;  %v13818_v13 = vpop.f32.mrb[116].mxu1 }
 0x4cf   :  { %v13798_v14 = vadd.f32 %v13797_v12, %v13796_v11  ;;  %v13799_v15 = vpop.f32.mrb[118].mxu0  ;;  %v13819_v16 = vpop.f32.mrb[117].mxu1 }
 0x4d0   :  { %v13800_v17 = vpop.f32.mrb[119].mxu0  ;;  %v13820_v19 = vadd.f32 %v13819_v16, %v13818_v13  ;;  %v13821_v20 = vpop.f32.mrb[118].mxu1 }
 0x4d1   :  { %v11272_v18 = vadd.f32 %v13798_v14, %v11232_v10  ;;  %v13822_v21 = vpop.f32.mrb[119].mxu1 }
 0x4d3   :  { %v11312_v22 = vadd.f32 %v13820_v19, %v11272_v18 }
 0x4ed   :  { %v13840_v23 = vpop.f32.mrb[120].mxu0 }
 0x4ee   :  { %v13841_v24 = vpop.f32.mrb[121].mxu0  ;;  %v13862_v25 = vpop.f32.mrb[120].mxu1 }
 0x4ef   :  { %v13842_v26 = vadd.f32 %v13841_v24, %v13840_v23  ;;  %v13843_v27 = vpop.f32.mrb[122].mxu0  ;;  %v13863_v28 = vpop.f32.mrb[121].mxu1 }
 0x4f0   :  { %v13844_v29 = vpop.f32.mrb[123].mxu0  ;;  %v13864_v31 = vadd.f32 %v13863_v28, %v13862_v25  ;;  %v13865_v32 = vpop.f32.mrb[122].mxu1 }
 0x4f1   :  { %v11352_v30 = vadd.f32 %v13842_v26, %v11312_v22  ;;  %v13866_v33 = vpop.f32.mrb[123].mxu1 }
 0x4f3   :  { %v11392_v34 = vadd.f32 %v13864_v31, %v11352_v30 }
 0x4f5   :  { %v11397_v36 = vmax.f32 %v11392_v34, 0.0 }
 0x4f7   :  { %13918 = vmatmul.mubr.f32.vlgmr.msra.gmra.mrb[124].mxu0 %v11397_v36 }
 0x5ca   :  { %v11487_v38 = vpop.f32.mrb[124].mxu0 }
 0x5cb   :  { %v11488_v39 = vadd.f32 %v12503_v37, %v11487_v38  ;;  %v13919_v40 = vpop.f32.mrb[125].mxu0 }
 0x5cd   :  { %11492 = vst.msk [vmem:[#allocation8] sm:$0x3] %vm11491_vm1, %v11488_v39 }
 0x5ce   :  { %15038 = shalt.err (!%p15035_p0)
}
 0x5cf   :  { %s15039_s15 = scalar_lea.hbm %s15489_s5, 32 }
 0x5d0   :  { %p15040_p1 = scmp.ne.s32.totalorder %s15489_s5, %s15039_s15  ;;  %p15043_p2 = scmp.lt.u32.totalorder %s15039_s15, %s15489_s5 }
 0x5d2   :  { %p15045_p3 = pnand %p15043_p2, %p15040_p1 }
 0x5d4   :  { %15048 = shalt.err (!%p15045_p3)
}
 0x5d5   :  { %11502 = dma.vmem_to_hbm [thread:$0]  %s11500_s11, 32, %s15489_s5, [#allocation4]  }
 0x5d6   :  { %15053 = dma.done.wait [#allocation4], 32  }
 0x5d7   :  { %15054 = vsyncadd [#allocation4], 4294967264 }
 0x5d8   :  { %11506 = vsyncpa [#allocation3], 1 }
 0x5d9   :  { %11507 = vsyncpa [#allocation6], 1 }
 0x5da   :  { %11508 = vsyncpa [#allocation4], 1 }

</bundles_post_ra>
